<compile_context>
chip_gen: v5e
topology: v5e:2x2
jax: 0.10.0
libtpu: 0.0.40
codegen_flags: <defaults>
</compile_context>

<pallas_src>
import functools

import jax
import jax.numpy as jnp
from jax import lax
from jax.experimental import pallas as pl
from jax.experimental.pallas import tpu as pltpu


def _round_up(x, m):
    return ((x + m - 1) // m) * m


def _sigmoid_eup(x):
    # sigmoid(x) == 0.5*(tanh(x/2)+1); tanh uses the otherwise-idle EUP slot
    # instead of an exp + full-precision divide on the recurrence chain.
    return 0.5 * jnp.tanh(0.5 * x) + 0.5


def decoder_kernel(x_ref, h0_ref, c0_ref, wcat_ref, b_ref, wfc_ref, bfc_ref,
                   out_ref, h_scr_ref, *, num_layers, max_length, hp, out_size,
                   t_chunk, unroll):
    """Full max_length recurrence for one batch block, resident in VMEM.

    Refs (all padded in the wrapper):
      x_ref    : (BB, HP)          f32   decoder input (same every step)
      h0_ref   : (L, BB, HP)       f32   initial hidden
      c0_ref   : (L, BB, HP)       f32   initial cell
      wcat_ref : (L, 2*HP, 4*HP)   wdt   [W_ih^T ; W_hh^T], gate blocks HP wide
      b_ref    : (L, 1, 4*HP)      f32   b_ih + b_hh, gate blocks HP wide
      wfc_ref  : (HP, OP)          wdt   fc weight (transposed, padded)
      bfc_ref  : (1, OP)           f32   fc bias (padded)
      out_ref  : (T, BB, OP)       f32   log-prob output slab
      h_scr_ref: (T, BB, HP)       wdt   per-step top-layer h (scratch)
    """
    HP = hp
    OP = out_ref.shape[2]
    wdt = wcat_ref.dtype

    # ---- hoisted, step-invariant work -------------------------------------
    x = x_ref[...]                                            # (BB, HP) f32
    x_proj = (jnp.dot(x.astype(wdt), wcat_ref[0, 0:HP, :],
                      preferred_element_type=jnp.float32)
              + b_ref[0])                                     # (BB, 4*HP) f32

    # h carried in weight dtype (cast once per step at the cell output);
    # c carried in f32.
    h_init = tuple(h0_ref[l].astype(wdt) for l in range(num_layers))
    c_init = tuple(c0_ref[l] for l in range(num_layers))

    def lstm_cell(gates, c_prev):
        i = _sigmoid_eup(gates[:, 0 * HP:1 * HP])
        f = _sigmoid_eup(gates[:, 1 * HP:2 * HP])
        g = jnp.tanh(gates[:, 2 * HP:3 * HP])
        o = _sigmoid_eup(gates[:, 3 * HP:4 * HP])
        c_new = f * c_prev + i * g
        h_new = (o * jnp.tanh(c_new)).astype(wdt)
        return h_new, c_new

    def step(t, carry):
        hs, cs = carry
        new_hs, new_cs = [], []

        # layer 0: reuse the hoisted x-projection; one recurrent matmul.
        gates = x_proj + jnp.dot(hs[0], wcat_ref[0, HP:2 * HP, :],
                                 preferred_element_type=jnp.float32)
        h_new, c_new = lstm_cell(gates, cs[0])
        new_hs.append(h_new)
        new_cs.append(c_new)
        inp = h_new

        # layers 1..L-1: two accumulated dots (no per-step concat). The W_hh
        # half depends only on the previous step's h and can overlap with the
        # lower layer's cell math.
        for l in range(1, num_layers):
            rec = jnp.dot(hs[l], wcat_ref[l, HP:2 * HP, :],
                          preferred_element_type=jnp.float32)
            cur = jnp.dot(inp, wcat_ref[l, 0:HP, :],
                          preferred_element_type=jnp.float32)
            gates = rec + cur + b_ref[l]
            h_new, c_new = lstm_cell(gates, cs[l])
            new_hs.append(h_new)
            new_cs.append(c_new)
            inp = h_new

        # fc projection is hoisted out of the recurrence: stash top-layer h.
        h_scr_ref[t] = inp
        return tuple(new_hs), tuple(new_cs)

    lax.fori_loop(0, max_length, step, (h_init, c_init), unroll=unroll)

    # ---- batched fc + activation post-processing, chunked over T ----------
    BB = h_scr_ref.shape[1]
    for t0 in range(0, max_length, t_chunk):
        tc = min(t_chunk, max_length - t0)
        lhs = h_scr_ref[pl.ds(t0, tc)].reshape(tc * BB, HP)   # wdt
        logits = (jnp.dot(lhs, wfc_ref[...],
                          preferred_element_type=jnp.float32)
                  + bfc_ref[...])                             # (tc*BB, OP) f32

        lane = lax.broadcasted_iota(jnp.int32, logits.shape, 1)
        is_act = lane < (out_size - 1)
        is_dur = lane == (out_size - 1)

        masked = jnp.where(is_act, logits, -jnp.inf)
        m = jnp.max(masked, axis=-1, keepdims=True)
        sumexp = jnp.sum(jnp.where(is_act, jnp.exp(logits - m), 0.0),
                         axis=-1, keepdims=True)
        log_probs = logits - m - jnp.log(sumexp)
        # stable log(sigmoid(x)) = min(x, 0) - log(1 + exp(-|x|))
        log_dur = (jnp.minimum(logits, 0.0)
                   - jnp.log(1.0 + jnp.exp(-jnp.abs(logits))))
        res = jnp.where(is_act, log_probs, jnp.where(is_dur, log_dur, 0.0))
        out_ref[pl.ds(t0, tc)] = res.reshape(tc, BB, OP)


def pack_decoder_params(params, *, hidden_size, output_size,
                        weight_dtype=jnp.bfloat16):
    """Pack/pad the LSTM + fc weights once per parameter version."""
    H, O = hidden_size, output_size
    L = params["w_ih"].shape[0]
    HP = _round_up(H, 128)   # pad hidden (and each gate block) to full lanes
    OP = _round_up(O, 128)   # pad output channels -> lane-dense output store
    # TODO(synk): for H < 128 the per-gate 128-lane padding wastes MXU columns;
    #             a contiguous 4H-lane gate packing would be tighter.

    w_ih = params["w_ih"].astype(jnp.float32)                      # (L, 4H, H)
    w_hh = params["w_hh"].astype(jnp.float32)                      # (L, 4H, H)
    bias = (params["b_ih"] + params["b_hh"]).astype(jnp.float32)   # (L, 4H)

    # Packed weight: rows [0,H) = W_ih^T, rows [HP, HP+H) = W_hh^T, gate g at
    # columns [g*HP, g*HP+H).  Zero padding keeps padded lanes of the recurrent
    # state exactly zero.
    wcat = jnp.zeros((L, 2 * HP, 4 * HP), jnp.float32)
    bpad = jnp.zeros((L, 1, 4 * HP), jnp.float32)
    for g in range(4):
        wih_g = jnp.transpose(w_ih[:, g * H:(g + 1) * H, :], (0, 2, 1))
        whh_g = jnp.transpose(w_hh[:, g * H:(g + 1) * H, :], (0, 2, 1))
        wcat = wcat.at[:, 0:H, g * HP:g * HP + H].set(wih_g)
        wcat = wcat.at[:, HP:HP + H, g * HP:g * HP + H].set(whh_g)
        bpad = bpad.at[:, 0, g * HP:g * HP + H].set(bias[:, g * H:(g + 1) * H])
    wcat = wcat.astype(weight_dtype)

    wfc = jnp.zeros((HP, OP), jnp.float32).at[:H, :O].set(
        params["w_fc"].astype(jnp.float32).T).astype(weight_dtype)
    bfc = jnp.zeros((1, OP), jnp.float32).at[0, :O].set(
        params["b_fc"].astype(jnp.float32))

    return {"wcat": wcat, "b": bpad, "wfc": wfc, "bfc": bfc,
            "L": L, "H": H, "O": O, "HP": HP, "OP": OP}


def decoder_forward(hidden, cell, x, packed, *, max_length,
                    batch_block=128, t_chunk=8):
    """hidden/cell: (L, B, H); x: (B, 1, H) (batch_first, seq len 1).

    `packed` comes from pack_decoder_params (computed once per param version).
    Returns log_prob_outputs: (B, max_length, output_size) float32.
    """
    L, H, O = packed["L"], packed["H"], packed["O"]
    HP, OP = packed["HP"], packed["OP"]
    wdt = packed["wcat"].dtype
    wbytes = jnp.dtype(wdt).itemsize

    Lh, B, Hh = hidden.shape
    assert (Lh, Hh) == (L, H)
    T = max_length

    BB = min(_round_up(B, 8), _round_up(batch_block, 8))   # batch block (rows)
    BP = _round_up(_round_up(B, 8), BB)                    # padded batch
    G = BP // BB                                           # batch grid
    TC = max(1, min(t_chunk, T))
    UNROLL = max(1, min(8, T))

    xp = jnp.zeros((BP, HP), jnp.float32).at[:B, :H].set(
        x[:, 0, :].astype(jnp.float32))
    h0 = jnp.zeros((L, BP, HP), jnp.float32).at[:, :B, :H].set(
        hidden.astype(jnp.float32))
    c0 = jnp.zeros((L, BP, HP), jnp.float32).at[:, :B, :H].set(
        cell.astype(jnp.float32))

    kernel = functools.partial(decoder_kernel, num_layers=L, max_length=T,
                               hp=HP, out_size=O, t_chunk=TC, unroll=UNROLL)

    # Resident VMEM footprint per grid step (weights + state blocks + slabs),
    # doubled for buffering headroom, floored at 16 MiB.
    footprint = (L * 2 * HP * 4 * HP * wbytes + L * 4 * HP * 4
                 + HP * OP * wbytes + OP * 4
                 + BB * HP * 4 + 2 * L * BB * HP * 4
                 + T * BB * HP * wbytes + T * BB * OP * 4)
    vmem_limit = int(min(128 << 20, max(2 * footprint + (2 << 20), 16 << 20)))

    out = pl.pallas_call(
        kernel,
        out_shape=jax.ShapeDtypeStruct((T, BP, OP), jnp.float32),
        grid=(G,),
        in_specs=[
            pl.BlockSpec((BB, HP), lambda i: (i, 0)),            # x
            pl.BlockSpec((L, BB, HP), lambda i: (0, i, 0)),      # h0
            pl.BlockSpec((L, BB, HP), lambda i: (0, i, 0)),      # c0
            pl.BlockSpec((L, 2 * HP, 4 * HP), lambda i: (0, 0, 0)),  # wcat
            pl.BlockSpec((L, 1, 4 * HP), lambda i: (0, 0, 0)),       # bias
            pl.BlockSpec((HP, OP), lambda i: (0, 0)),                # wfc
            pl.BlockSpec((1, OP), lambda i: (0, 0)),                 # bfc
        ],
        out_specs=pl.BlockSpec((T, BB, OP), lambda i: (0, i, 0)),
        scratch_shapes=[pltpu.VMEM((T, BB, HP), wdt)],
        compiler_params=pltpu.CompilerParams(
            dimension_semantics=("parallel",),
            vmem_limit_bytes=vmem_limit),
    )(xp, h0, c0, packed["wcat"], packed["b"], packed["wfc"], packed["bfc"])

    # (T, BP, OP) -> (B, T, O), dropping padding; permute to batch-first.
    return jnp.transpose(out[:, :B, :O], (1, 0, 2))


def decoder_reference(hidden, cell, x, params, *, max_length, output_size):
    """Pure-JAX f32 reference mirroring the PyTorch forward()."""
    L, B, H = hidden.shape
    O = output_size

    def sig(v):
        return 1.0 / (1.0 + jnp.exp(-v))

    h, c = hidden.astype(jnp.float32), cell.astype(jnp.float32)
    xs = x[:, 0, :].astype(jnp.float32)
    outs = []
    for _ in range(max_length):
        inp = xs
        new_h, new_c = [], []
        for l in range(L):
            gates = (inp @ params["w_ih"][l].T + params["b_ih"][l]
                     + h[l] @ params["w_hh"][l].T + params["b_hh"][l])
            i = sig(gates[:, 0 * H:1 * H])
            f = sig(gates[:, 1 * H:2 * H])
            g = jnp.tanh(gates[:, 2 * H:3 * H])
            o = sig(gates[:, 3 * H:4 * H])
            cc = f * c[l] + i * g
            hh = o * jnp.tanh(cc)
            new_h.append(hh)
            new_c.append(cc)
            inp = hh
        h = jnp.stack(new_h)
        c = jnp.stack(new_c)
        outs.append(inp @ params["w_fc"].T + params["b_fc"])
    outs = jnp.stack(outs, axis=1)  # (B, T, O)
    acts, dur = outs[..., :O - 1], outs[..., O - 1:]
    m = jnp.max(acts, axis=-1, keepdims=True)
    lp = acts - m - jnp.log(jnp.sum(jnp.exp(acts - m), axis=-1, keepdims=True))
    ld = jnp.log(sig(dur))
    return jnp.concatenate([lp, ld], axis=-1)


if __name__ == "__main__":
    # Small shapes consistent with the module: Decoder(input_size, hidden_size,
    # output_size, num_layers, max_length) with x of shape (B, 1, hidden_size).
    B, H, L, T, O = 4, 32, 2, 8, 6

    key = jax.random.PRNGKey(0)
    keys = jax.random.split(key, 9)
    scale = 0.2
    hidden0 = jax.random.normal(keys[0], (L, B, H), jnp.float32)
    cell0 = jax.random.normal(keys[1], (L, B, H), jnp.float32)
    x = jax.random.normal(keys[2], (B, 1, H), jnp.float32)
    params = {
        "w_ih": scale * jax.random.normal(keys[3], (L, 4 * H, H), jnp.float32),
        "w_hh": scale * jax.random.normal(keys[4], (L, 4 * H, H), jnp.float32),
        "b_ih": scale * jax.random.normal(keys[5], (L, 4 * H), jnp.float32),
        "b_hh": scale * jax.random.normal(keys[6], (L, 4 * H), jnp.float32),
        "w_fc": scale * jax.random.normal(keys[7], (O, H), jnp.float32),
        "b_fc": scale * jax.random.normal(keys[8], (O,), jnp.float32),
    }

    ref = decoder_reference(hidden0, cell0, x, params,
                            max_length=T, output_size=O)
    ref = jax.block_until_ready(ref)

    # f32-weight path: tight numerical check against the reference.
    packed_f32 = pack_decoder_params(params, hidden_size=H, output_size=O,
                                     weight_dtype=jnp.float32)
    out_f32 = decoder_forward(hidden0, cell0, x, packed_f32, max_length=T)
    out_f32 = jax.block_until_ready(out_f32)
    assert out_f32.shape == (B, T, O), out_f32.shape
    assert jnp.allclose(out_f32, ref, rtol=1e-3, atol=1e-3), (
        f"f32 max abs err {jnp.max(jnp.abs(out_f32 - ref))}")

    # bf16-weight path (MXU-friendly default; h also carried in bf16).
    packed_bf16 = pack_decoder_params(params, hidden_size=H, output_size=O,
                                      weight_dtype=jnp.bfloat16)
    out_bf16 = decoder_forward(hidden0, cell0, x, packed_bf16, max_length=T)
    out_bf16 = jax.block_until_ready(out_bf16)
    assert out_bf16.shape == (B, T, O), out_bf16.shape
    assert jnp.allclose(out_bf16, ref, rtol=7e-2, atol=7e-2), (
        f"bf16 max abs err {jnp.max(jnp.abs(out_bf16 - ref))}")

    print("KERNEL_OK")
</pallas_src>

<mosaic_0001>
module attributes {stable_mosaic.version = 11 : i64} {
  func.func @decoder_kernel(%arg0: i32, %arg1: memref<8x128xf32, #tpu.memory_space<vmem>>, %arg2: memref<2x8x128xf32, #tpu.memory_space<vmem>>, %arg3: memref<2x8x128xf32, #tpu.memory_space<vmem>>, %arg4: memref<2x256x512xf32, #tpu.memory_space<vmem>>, %arg5: memref<2x1x512xf32, #tpu.memory_space<vmem>>, %arg6: memref<128x128xf32, #tpu.memory_space<vmem>>, %arg7: memref<1x128xf32, #tpu.memory_space<vmem>>, %arg8: memref<8x8x128xf32, #tpu.memory_space<vmem>>, %arg9: memref<8x8x128xf32, #tpu.memory_space<vmem>>) attributes {dimension_semantics = [#tpu.dimension_semantics<parallel>], iteration_bounds = array<i64: 1>, scalar_prefetch = 0 : i64, scratch_operands = 1 : i64, tpu.core_type = #tpu.core_type<tc>, window_params = [{transform_indices = @transform_0, window_bounds = array<i64: 8, 128>}, {transform_indices = @transform_1, window_bounds = array<i64: 2, 8, 128>}, {transform_indices = @transform_2, window_bounds = array<i64: 2, 8, 128>}, {pipeline_mode = #tpu.pipeline_mode<synchronous>, transform_indices = @transform_3, window_bounds = array<i64: 2, 256, 512>}, {pipeline_mode = #tpu.pipeline_mode<synchronous>, transform_indices = @transform_4, window_bounds = array<i64: 2, 1, 512>}, {pipeline_mode = #tpu.pipeline_mode<synchronous>, transform_indices = @transform_5, window_bounds = array<i64: 128, 128>}, {pipeline_mode = #tpu.pipeline_mode<synchronous>, transform_indices = @transform_6, window_bounds = array<i64: 1, 128>}, {transform_indices = @transform_7, window_bounds = array<i64: 8, 8, 128>}]} {
    %c0 = arith.constant 0 : index
    %c0_0 = arith.constant 0 : index
    %0 = vector.load %arg1[%c0, %c0_0] : memref<8x128xf32, #tpu.memory_space<vmem>>, vector<8x128xf32>
    %c0_1 = arith.constant 0 : index
    %c0_2 = arith.constant 0 : index
    %c0_3 = arith.constant 0 : index
    %1 = vector.load %arg4[%c0_1, %c0_2, %c0_3] : memref<2x256x512xf32, #tpu.memory_space<vmem>>, vector<1x128x512xf32>
    %2 = vector.shape_cast %1 : vector<1x128x512xf32> to vector<128x512xf32>
    %cst = arith.constant dense<0.000000e+00> : vector<8x512xf32>
    %3 = tpu.matmul %0, %2, %cst {dimension_numbers = #tpu.dot_dimension_numbers<[1], [0], [0], [1], [0, 0, 1, 1], [], []>} : vector<8x128xf32>, vector<128x512xf32>, vector<8x512xf32> -> vector<8x512xf32>
    %c0_4 = arith.constant 0 : index
    %c0_5 = arith.constant 0 : index
    %c0_6 = arith.constant 0 : index
    %4 = vector.load %arg5[%c0_4, %c0_5, %c0_6] : memref<2x1x512xf32, #tpu.memory_space<vmem>>, vector<1x1x512xf32>
    %5 = vector.shape_cast %4 : vector<1x1x512xf32> to vector<1x512xf32>
    %6 = vector.broadcast %5 : vector<1x512xf32> to vector<8x512xf32>
    %7 = arith.addf %3, %6 : vector<8x512xf32>
    %c0_7 = arith.constant 0 : index
    %c0_8 = arith.constant 0 : index
    %c0_9 = arith.constant 0 : index
    %8 = vector.load %arg2[%c0_7, %c0_8, %c0_9] : memref<2x8x128xf32, #tpu.memory_space<vmem>>, vector<1x8x128xf32>
    %9 = vector.shape_cast %8 : vector<1x8x128xf32> to vector<8x128xf32>
    %c1 = arith.constant 1 : index
    %c0_10 = arith.constant 0 : index
    %c0_11 = arith.constant 0 : index
    %10 = vector.load %arg2[%c1, %c0_10, %c0_11] : memref<2x8x128xf32, #tpu.memory_space<vmem>>, vector<1x8x128xf32>
    %11 = vector.shape_cast %10 : vector<1x8x128xf32> to vector<8x128xf32>
    %c0_12 = arith.constant 0 : index
    %c0_13 = arith.constant 0 : index
    %c0_14 = arith.constant 0 : index
    %12 = vector.load %arg3[%c0_12, %c0_13, %c0_14] : memref<2x8x128xf32, #tpu.memory_space<vmem>>, vector<1x8x128xf32>
    %13 = vector.shape_cast %12 : vector<1x8x128xf32> to vector<8x128xf32>
    %c1_15 = arith.constant 1 : index
    %c0_16 = arith.constant 0 : index
    %c0_17 = arith.constant 0 : index
    %14 = vector.load %arg3[%c1_15, %c0_16, %c0_17] : memref<2x8x128xf32, #tpu.memory_space<vmem>>, vector<1x8x128xf32>
    %15 = vector.shape_cast %14 : vector<1x8x128xf32> to vector<8x128xf32>
    %c0_i32 = arith.constant 0 : i32
    %c0_18 = arith.constant 0 : index
    %c128 = arith.constant 128 : index
    %c0_19 = arith.constant 0 : index
    %16 = vector.load %arg4[%c0_18, %c128, %c0_19] : memref<2x256x512xf32, #tpu.memory_space<vmem>>, vector<1x128x512xf32>
    %17 = vector.shape_cast %16 : vector<1x128x512xf32> to vector<128x512xf32>
    %cst_20 = arith.constant dense<0.000000e+00> : vector<8x512xf32>
    %18 = tpu.matmul %9, %17, %cst_20 {dimension_numbers = #tpu.dot_dimension_numbers<[1], [0], [0], [1], [0, 0, 1, 1], [], []>} : vector<8x128xf32>, vector<128x512xf32>, vector<8x512xf32> -> vector<8x512xf32>
    %19 = arith.addf %7, %18 : vector<8x512xf32>
    %20 = vector.extract_strided_slice %19 {offsets = [0, 0], sizes = [8, 128], strides = [1, 1]} : vector<8x512xf32> to vector<8x128xf32>
    %cst_21 = arith.constant 5.000000e-01 : f32
    %21 = vector.broadcast %cst_21 : f32 to vector<8x128xf32>
    %22 = arith.mulf %21, %20 : vector<8x128xf32>
    %23 = math.tanh %22 : vector<8x128xf32>
    %cst_22 = arith.constant 5.000000e-01 : f32
    %24 = vector.broadcast %cst_22 : f32 to vector<8x128xf32>
    %25 = arith.mulf %24, %23 : vector<8x128xf32>
    %cst_23 = arith.constant 5.000000e-01 : f32
    %26 = vector.broadcast %cst_23 : f32 to vector<8x128xf32>
    %27 = arith.addf %25, %26 : vector<8x128xf32>
    %28 = vector.extract_strided_slice %19 {offsets = [0, 128], sizes = [8, 128], strides = [1, 1]} : vector<8x512xf32> to vector<8x128xf32>
    %cst_24 = arith.constant 5.000000e-01 : f32
    %29 = vector.broadcast %cst_24 : f32 to vector<8x128xf32>
    %30 = arith.mulf %29, %28 : vector<8x128xf32>
    %31 = math.tanh %30 : vector<8x128xf32>
    %cst_25 = arith.constant 5.000000e-01 : f32
    %32 = vector.broadcast %cst_25 : f32 to vector<8x128xf32>
    %33 = arith.mulf %32, %31 : vector<8x128xf32>
    %cst_26 = arith.constant 5.000000e-01 : f32
    %34 = vector.broadcast %cst_26 : f32 to vector<8x128xf32>
    %35 = arith.addf %33, %34 : vector<8x128xf32>
    %36 = vector.extract_strided_slice %19 {offsets = [0, 256], sizes = [8, 128], strides = [1, 1]} : vector<8x512xf32> to vector<8x128xf32>
    %37 = math.tanh %36 : vector<8x128xf32>
    %38 = vector.extract_strided_slice %19 {offsets = [0, 384], sizes = [8, 128], strides = [1, 1]} : vector<8x512xf32> to vector<8x128xf32>
    %cst_27 = arith.constant 5.000000e-01 : f32
    %39 = vector.broadcast %cst_27 : f32 to vector<8x128xf32>
    %40 = arith.mulf %39, %38 : vector<8x128xf32>
    %41 = math.tanh %40 : vector<8x128xf32>
    %cst_28 = arith.constant 5.000000e-01 : f32
    %42 = vector.broadcast %cst_28 : f32 to vector<8x128xf32>
    %43 = arith.mulf %42, %41 : vector<8x128xf32>
    %cst_29 = arith.constant 5.000000e-01 : f32
    %44 = vector.broadcast %cst_29 : f32 to vector<8x128xf32>
    %45 = arith.addf %43, %44 : vector<8x128xf32>
    %46 = arith.mulf %35, %13 : vector<8x128xf32>
    %47 = arith.mulf %27, %37 : vector<8x128xf32>
    %48 = arith.addf %46, %47 : vector<8x128xf32>
    %49 = math.tanh %48 : vector<8x128xf32>
    %50 = arith.mulf %45, %49 : vector<8x128xf32>
    %c1_30 = arith.constant 1 : index
    %c128_31 = arith.constant 128 : index
    %c0_32 = arith.constant 0 : index
    %51 = vector.load %arg4[%c1_30, %c128_31, %c0_32] : memref<2x256x512xf32, #tpu.memory_space<vmem>>, vector<1x128x512xf32>
    %52 = vector.shape_cast %51 : vector<1x128x512xf32> to vector<128x512xf32>
    %cst_33 = arith.constant dense<0.000000e+00> : vector<8x512xf32>
    %53 = tpu.matmul %11, %52, %cst_33 {dimension_numbers = #tpu.dot_dimension_numbers<[1], [0], [0], [1], [0, 0, 1, 1], [], []>} : vector<8x128xf32>, vector<128x512xf32>, vector<8x512xf32> -> vector<8x512xf32>
    %c1_34 = arith.constant 1 : index
    %c0_35 = arith.constant 0 : index
    %c0_36 = arith.constant 0 : index
    %54 = vector.load %arg4[%c1_34, %c0_35, %c0_36] : memref<2x256x512xf32, #tpu.memory_space<vmem>>, vector<1x128x512xf32>
    %55 = vector.shape_cast %54 : vector<1x128x512xf32> to vector<128x512xf32>
    %cst_37 = arith.constant dense<0.000000e+00> : vector<8x512xf32>
    %56 = tpu.matmul %50, %55, %cst_37 {dimension_numbers = #tpu.dot_dimension_numbers<[1], [0], [0], [1], [0, 0, 1, 1], [], []>} : vector<8x128xf32>, vector<128x512xf32>, vector<8x512xf32> -> vector<8x512xf32>
    %57 = arith.addf %53, %56 : vector<8x512xf32>
    %c1_38 = arith.constant 1 : index
    %c0_39 = arith.constant 0 : index
    %c0_40 = arith.constant 0 : index
    %58 = vector.load %arg5[%c1_38, %c0_39, %c0_40] : memref<2x1x512xf32, #tpu.memory_space<vmem>>, vector<1x1x512xf32>
    %59 = vector.shape_cast %58 : vector<1x1x512xf32> to vector<1x512xf32>
    %60 = vector.broadcast %59 : vector<1x512xf32> to vector<8x512xf32>
    %61 = arith.addf %57, %60 : vector<8x512xf32>
    %62 = vector.extract_strided_slice %61 {offsets = [0, 0], sizes = [8, 128], strides = [1, 1]} : vector<8x512xf32> to vector<8x128xf32>
    %cst_41 = arith.constant 5.000000e-01 : f32
    %63 = vector.broadcast %cst_41 : f32 to vector<8x128xf32>
    %64 = arith.mulf %63, %62 : vector<8x128xf32>
    %65 = math.tanh %64 : vector<8x128xf32>
    %cst_42 = arith.constant 5.000000e-01 : f32
    %66 = vector.broadcast %cst_42 : f32 to vector<8x128xf32>
    %67 = arith.mulf %66, %65 : vector<8x128xf32>
    %cst_43 = arith.constant 5.000000e-01 : f32
    %68 = vector.broadcast %cst_43 : f32 to vector<8x128xf32>
    %69 = arith.addf %67, %68 : vector<8x128xf32>
    %70 = vector.extract_strided_slice %61 {offsets = [0, 128], sizes = [8, 128], strides = [1, 1]} : vector<8x512xf32> to vector<8x128xf32>
    %cst_44 = arith.constant 5.000000e-01 : f32
    %71 = vector.broadcast %cst_44 : f32 to vector<8x128xf32>
    %72 = arith.mulf %71, %70 : vector<8x128xf32>
    %73 = math.tanh %72 : vector<8x128xf32>
    %cst_45 = arith.constant 5.000000e-01 : f32
    %74 = vector.broadcast %cst_45 : f32 to vector<8x128xf32>
    %75 = arith.mulf %74, %73 : vector<8x128xf32>
    %cst_46 = arith.constant 5.000000e-01 : f32
    %76 = vector.broadcast %cst_46 : f32 to vector<8x128xf32>
    %77 = arith.addf %75, %76 : vector<8x128xf32>
    %78 = vector.extract_strided_slice %61 {offsets = [0, 256], sizes = [8, 128], strides = [1, 1]} : vector<8x512xf32> to vector<8x128xf32>
    %79 = math.tanh %78 : vector<8x128xf32>
    %80 = vector.extract_strided_slice %61 {offsets = [0, 384], sizes = [8, 128], strides = [1, 1]} : vector<8x512xf32> to vector<8x128xf32>
    %cst_47 = arith.constant 5.000000e-01 : f32
    %81 = vector.broadcast %cst_47 : f32 to vector<8x128xf32>
    %82 = arith.mulf %81, %80 : vector<8x128xf32>
    %83 = math.tanh %82 : vector<8x128xf32>
    %cst_48 = arith.constant 5.000000e-01 : f32
    %84 = vector.broadcast %cst_48 : f32 to vector<8x128xf32>
    %85 = arith.mulf %84, %83 : vector<8x128xf32>
    %cst_49 = arith.constant 5.000000e-01 : f32
    %86 = vector.broadcast %cst_49 : f32 to vector<8x128xf32>
    %87 = arith.addf %85, %86 : vector<8x128xf32>
    %88 = arith.mulf %77, %15 : vector<8x128xf32>
    %89 = arith.mulf %69, %79 : vector<8x128xf32>
    %90 = arith.addf %88, %89 : vector<8x128xf32>
    %91 = math.tanh %90 : vector<8x128xf32>
    %92 = arith.mulf %87, %91 : vector<8x128xf32>
    %93 = arith.index_cast %c0_i32 : i32 to index
    %c0_50 = arith.constant 0 : index
    %c0_51 = arith.constant 0 : index
    %94 = vector.load %arg9[%93, %c0_50, %c0_51] : memref<8x8x128xf32, #tpu.memory_space<vmem>>, vector<1x8x128xf32>
    %95 = vector.shape_cast %94 : vector<1x8x128xf32> to vector<8x128xf32>
    %96 = vector.shape_cast %92 : vector<8x128xf32> to vector<1x8x128xf32>
    tpu.vector_store %arg9[%93, %c0_50, %c0_51], %96 {strides = array<i32>} : memref<8x8x128xf32, #tpu.memory_space<vmem>>, vector<1x8x128xf32>,
    %c1_i32 = arith.constant 1 : i32
    %c0_52 = arith.constant 0 : index
    %c128_53 = arith.constant 128 : index
    %c0_54 = arith.constant 0 : index
    %97 = vector.load %arg4[%c0_52, %c128_53, %c0_54] : memref<2x256x512xf32, #tpu.memory_space<vmem>>, vector<1x128x512xf32>
    %98 = vector.shape_cast %97 : vector<1x128x512xf32> to vector<128x512xf32>
    %cst_55 = arith.constant dense<0.000000e+00> : vector<8x512xf32>
    %99 = tpu.matmul %50, %98, %cst_55 {dimension_numbers = #tpu.dot_dimension_numbers<[1], [0], [0], [1], [0, 0, 1, 1], [], []>} : vector<8x128xf32>, vector<128x512xf32>, vector<8x512xf32> -> vector<8x512xf32>
    %100 = arith.addf %7, %99 : vector<8x512xf32>
    %101 = vector.extract_strided_slice %100 {offsets = [0, 0], sizes = [8, 128], strides = [1, 1]} : vector<8x512xf32> to vector<8x128xf32>
    %cst_56 = arith.constant 5.000000e-01 : f32
    %102 = vector.broadcast %cst_56 : f32 to vector<8x128xf32>
    %103 = arith.mulf %102, %101 : vector<8x128xf32>
    %104 = math.tanh %103 : vector<8x128xf32>
    %cst_57 = arith.constant 5.000000e-01 : f32
    %105 = vector.broadcast %cst_57 : f32 to vector<8x128xf32>
    %106 = arith.mulf %105, %104 : vector<8x128xf32>
    %cst_58 = arith.constant 5.000000e-01 : f32
    %107 = vector.broadcast %cst_58 : f32 to vector<8x128xf32>
    %108 = arith.addf %106, %107 : vector<8x128xf32>
    %109 = vector.extract_strided_slice %100 {offsets = [0, 128], sizes = [8, 128], strides = [1, 1]} : vector<8x512xf32> to vector<8x128xf32>
    %cst_59 = arith.constant 5.000000e-01 : f32
    %110 = vector.broadcast %cst_59 : f32 to vector<8x128xf32>
    %111 = arith.mulf %110, %109 : vector<8x128xf32>
    %112 = math.tanh %111 : vector<8x128xf32>
    %cst_60 = arith.constant 5.000000e-01 : f32
    %113 = vector.broadcast %cst_60 : f32 to vector<8x128xf32>
    %114 = arith.mulf %113, %112 : vector<8x128xf32>
    %cst_61 = arith.constant 5.000000e-01 : f32
    %115 = vector.broadcast %cst_61 : f32 to vector<8x128xf32>
    %116 = arith.addf %114, %115 : vector<8x128xf32>
    %117 = vector.extract_strided_slice %100 {offsets = [0, 256], sizes = [8, 128], strides = [1, 1]} : vector<8x512xf32> to vector<8x128xf32>
    %118 = math.tanh %117 : vector<8x128xf32>
    %119 = vector.extract_strided_slice %100 {offsets = [0, 384], sizes = [8, 128], strides = [1, 1]} : vector<8x512xf32> to vector<8x128xf32>
    %cst_62 = arith.constant 5.000000e-01 : f32
    %120 = vector.broadcast %cst_62 : f32 to vector<8x128xf32>
    %121 = arith.mulf %120, %119 : vector<8x128xf32>
    %122 = math.tanh %121 : vector<8x128xf32>
    %cst_63 = arith.constant 5.000000e-01 : f32
    %123 = vector.broadcast %cst_63 : f32 to vector<8x128xf32>
    %124 = arith.mulf %123, %122 : vector<8x128xf32>
    %cst_64 = arith.constant 5.000000e-01 : f32
    %125 = vector.broadcast %cst_64 : f32 to vector<8x128xf32>
    %126 = arith.addf %124, %125 : vector<8x128xf32>
    %127 = arith.mulf %116, %48 : vector<8x128xf32>
    %128 = arith.mulf %108, %118 : vector<8x128xf32>
    %129 = arith.addf %127, %128 : vector<8x128xf32>
    %130 = math.tanh %129 : vector<8x128xf32>
    %131 = arith.mulf %126, %130 : vector<8x128xf32>
    %c1_65 = arith.constant 1 : index
    %c128_66 = arith.constant 128 : index
    %c0_67 = arith.constant 0 : index
    %132 = vector.load %arg4[%c1_65, %c128_66, %c0_67] : memref<2x256x512xf32, #tpu.memory_space<vmem>>, vector<1x128x512xf32>
    %133 = vector.shape_cast %132 : vector<1x128x512xf32> to vector<128x512xf32>
    %cst_68 = arith.constant dense<0.000000e+00> : vector<8x512xf32>
    %134 = tpu.matmul %92, %133, %cst_68 {dimension_numbers = #tpu.dot_dimension_numbers<[1], [0], [0], [1], [0, 0, 1, 1], [], []>} : vector<8x128xf32>, vector<128x512xf32>, vector<8x512xf32> -> vector<8x512xf32>
    %c1_69 = arith.constant 1 : index
    %c0_70 = arith.constant 0 : index
    %c0_71 = arith.constant 0 : index
    %135 = vector.load %arg4[%c1_69, %c0_70, %c0_71] : memref<2x256x512xf32, #tpu.memory_space<vmem>>, vector<1x128x512xf32>
    %136 = vector.shape_cast %135 : vector<1x128x512xf32> to vector<128x512xf32>
    %cst_72 = arith.constant dense<0.000000e+00> : vector<8x512xf32>
    %137 = tpu.matmul %131, %136, %cst_72 {dimension_numbers = #tpu.dot_dimension_numbers<[1], [0], [0], [1], [0, 0, 1, 1], [], []>} : vector<8x128xf32>, vector<128x512xf32>, vector<8x512xf32> -> vector<8x512xf32>
    %138 = arith.addf %134, %137 : vector<8x512xf32>
    %c1_73 = arith.constant 1 : index
    %c0_74 = arith.constant 0 : index
    %c0_75 = arith.constant 0 : index
    %139 = vector.load %arg5[%c1_73, %c0_74, %c0_75] : memref<2x1x512xf32, #tpu.memory_space<vmem>>, vector<1x1x512xf32>
    %140 = vector.shape_cast %139 : vector<1x1x512xf32> to vector<1x512xf32>
    %141 = vector.broadcast %140 : vector<1x512xf32> to vector<8x512xf32>
    %142 = arith.addf %138, %141 : vector<8x512xf32>
    %143 = vector.extract_strided_slice %142 {offsets = [0, 0], sizes = [8, 128], strides = [1, 1]} : vector<8x512xf32> to vector<8x128xf32>
    %cst_76 = arith.constant 5.000000e-01 : f32
    %144 = vector.broadcast %cst_76 : f32 to vector<8x128xf32>
    %145 = arith.mulf %144, %143 : vector<8x128xf32>
    %146 = math.tanh %145 : vector<8x128xf32>
    %cst_77 = arith.constant 5.000000e-01 : f32
    %147 = vector.broadcast %cst_77 : f32 to vector<8x128xf32>
    %148 = arith.mulf %147, %146 : vector<8x128xf32>
    %cst_78 = arith.constant 5.000000e-01 : f32
    %149 = vector.broadcast %cst_78 : f32 to vector<8x128xf32>
    %150 = arith.addf %148, %149 : vector<8x128xf32>
    %151 = vector.extract_strided_slice %142 {offsets = [0, 128], sizes = [8, 128], strides = [1, 1]} : vector<8x512xf32> to vector<8x128xf32>
    %cst_79 = arith.constant 5.000000e-01 : f32
    %152 = vector.broadcast %cst_79 : f32 to vector<8x128xf32>
    %153 = arith.mulf %152, %151 : vector<8x128xf32>
    %154 = math.tanh %153 : vector<8x128xf32>
    %cst_80 = arith.constant 5.000000e-01 : f32
    %155 = vector.broadcast %cst_80 : f32 to vector<8x128xf32>
    %156 = arith.mulf %155, %154 : vector<8x128xf32>
    %cst_81 = arith.constant 5.000000e-01 : f32
    %157 = vector.broadcast %cst_81 : f32 to vector<8x128xf32>
    %158 = arith.addf %156, %157 : vector<8x128xf32>
    %159 = vector.extract_strided_slice %142 {offsets = [0, 256], sizes = [8, 128], strides = [1, 1]} : vector<8x512xf32> to vector<8x128xf32>
    %160 = math.tanh %159 : vector<8x128xf32>
    %161 = vector.extract_strided_slice %142 {offsets = [0, 384], sizes = [8, 128], strides = [1, 1]} : vector<8x512xf32> to vector<8x128xf32>
    %cst_82 = arith.constant 5.000000e-01 : f32
    %162 = vector.broadcast %cst_82 : f32 to vector<8x128xf32>
    %163 = arith.mulf %162, %161 : vector<8x128xf32>
    %164 = math.tanh %163 : vector<8x128xf32>
    %cst_83 = arith.constant 5.000000e-01 : f32
    %165 = vector.broadcast %cst_83 : f32 to vector<8x128xf32>
    %166 = arith.mulf %165, %164 : vector<8x128xf32>
    %cst_84 = arith.constant 5.000000e-01 : f32
    %167 = vector.broadcast %cst_84 : f32 to vector<8x128xf32>
    %168 = arith.addf %166, %167 : vector<8x128xf32>
    %169 = arith.mulf %158, %90 : vector<8x128xf32>
    %170 = arith.mulf %150, %160 : vector<8x128xf32>
    %171 = arith.addf %169, %170 : vector<8x128xf32>
    %172 = math.tanh %171 : vector<8x128xf32>
    %173 = arith.mulf %168, %172 : vector<8x128xf32>
    %174 = arith.index_cast %c1_i32 : i32 to index
    %c0_85 = arith.constant 0 : index
    %c0_86 = arith.constant 0 : index
    %175 = vector.load %arg9[%174, %c0_85, %c0_86] : memref<8x8x128xf32, #tpu.memory_space<vmem>>, vector<1x8x128xf32>
    %176 = vector.shape_cast %175 : vector<1x8x128xf32> to vector<8x128xf32>
    %177 = vector.shape_cast %173 : vector<8x128xf32> to vector<1x8x128xf32>
    tpu.vector_store %arg9[%174, %c0_85, %c0_86], %177 {strides = array<i32>} : memref<8x8x128xf32, #tpu.memory_space<vmem>>, vector<1x8x128xf32>,
    %c2_i32 = arith.constant 2 : i32
    %c0_87 = arith.constant 0 : index
    %c128_88 = arith.constant 128 : index
    %c0_89 = arith.constant 0 : index
    %178 = vector.load %arg4[%c0_87, %c128_88, %c0_89] : memref<2x256x512xf32, #tpu.memory_space<vmem>>, vector<1x128x512xf32>
    %179 = vector.shape_cast %178 : vector<1x128x512xf32> to vector<128x512xf32>
    %cst_90 = arith.constant dense<0.000000e+00> : vector<8x512xf32>
    %180 = tpu.matmul %131, %179, %cst_90 {dimension_numbers = #tpu.dot_dimension_numbers<[1], [0], [0], [1], [0, 0, 1, 1], [], []>} : vector<8x128xf32>, vector<128x512xf32>, vector<8x512xf32> -> vector<8x512xf32>
    %181 = arith.addf %7, %180 : vector<8x512xf32>
    %182 = vector.extract_strided_slice %181 {offsets = [0, 0], sizes = [8, 128], strides = [1, 1]} : vector<8x512xf32> to vector<8x128xf32>
    %cst_91 = arith.constant 5.000000e-01 : f32
    %183 = vector.broadcast %cst_91 : f32 to vector<8x128xf32>
    %184 = arith.mulf %183, %182 : vector<8x128xf32>
    %185 = math.tanh %184 : vector<8x128xf32>
    %cst_92 = arith.constant 5.000000e-01 : f32
    %186 = vector.broadcast %cst_92 : f32 to vector<8x128xf32>
    %187 = arith.mulf %186, %185 : vector<8x128xf32>
    %cst_93 = arith.constant 5.000000e-01 : f32
    %188 = vector.broadcast %cst_93 : f32 to vector<8x128xf32>
    %189 = arith.addf %187, %188 : vector<8x128xf32>
    %190 = vector.extract_strided_slice %181 {offsets = [0, 128], sizes = [8, 128], strides = [1, 1]} : vector<8x512xf32> to vector<8x128xf32>
    %cst_94 = arith.constant 5.000000e-01 : f32
    %191 = vector.broadcast %cst_94 : f32 to vector<8x128xf32>
    %192 = arith.mulf %191, %190 : vector<8x128xf32>
    %193 = math.tanh %192 : vector<8x128xf32>
    %cst_95 = arith.constant 5.000000e-01 : f32
    %194 = vector.broadcast %cst_95 : f32 to vector<8x128xf32>
    %195 = arith.mulf %194, %193 : vector<8x128xf32>
    %cst_96 = arith.constant 5.000000e-01 : f32
    %196 = vector.broadcast %cst_96 : f32 to vector<8x128xf32>
    %197 = arith.addf %195, %196 : vector<8x128xf32>
    %198 = vector.extract_strided_slice %181 {offsets = [0, 256], sizes = [8, 128], strides = [1, 1]} : vector<8x512xf32> to vector<8x128xf32>
    %199 = math.tanh %198 : vector<8x128xf32>
    %200 = vector.extract_strided_slice %181 {offsets = [0, 384], sizes = [8, 128], strides = [1, 1]} : vector<8x512xf32> to vector<8x128xf32>
    %cst_97 = arith.constant 5.000000e-01 : f32
    %201 = vector.broadcast %cst_97 : f32 to vector<8x128xf32>
    %202 = arith.mulf %201, %200 : vector<8x128xf32>
    %203 = math.tanh %202 : vector<8x128xf32>
    %cst_98 = arith.constant 5.000000e-01 : f32
    %204 = vector.broadcast %cst_98 : f32 to vector<8x128xf32>
    %205 = arith.mulf %204, %203 : vector<8x128xf32>
    %cst_99 = arith.constant 5.000000e-01 : f32
    %206 = vector.broadcast %cst_99 : f32 to vector<8x128xf32>
    %207 = arith.addf %205, %206 : vector<8x128xf32>
    %208 = arith.mulf %197, %129 : vector<8x128xf32>
    %209 = arith.mulf %189, %199 : vector<8x128xf32>
    %210 = arith.addf %208, %209 : vector<8x128xf32>
    %211 = math.tanh %210 : vector<8x128xf32>
    %212 = arith.mulf %207, %211 : vector<8x128xf32>
    %c1_100 = arith.constant 1 : index
    %c128_101 = arith.constant 128 : index
    %c0_102 = arith.constant 0 : index
    %213 = vector.load %arg4[%c1_100, %c128_101, %c0_102] : memref<2x256x512xf32, #tpu.memory_space<vmem>>, vector<1x128x512xf32>
    %214 = vector.shape_cast %213 : vector<1x128x512xf32> to vector<128x512xf32>
    %cst_103 = arith.constant dense<0.000000e+00> : vector<8x512xf32>
    %215 = tpu.matmul %173, %214, %cst_103 {dimension_numbers = #tpu.dot_dimension_numbers<[1], [0], [0], [1], [0, 0, 1, 1], [], []>} : vector<8x128xf32>, vector<128x512xf32>, vector<8x512xf32> -> vector<8x512xf32>
    %c1_104 = arith.constant 1 : index
    %c0_105 = arith.constant 0 : index
    %c0_106 = arith.constant 0 : index
    %216 = vector.load %arg4[%c1_104, %c0_105, %c0_106] : memref<2x256x512xf32, #tpu.memory_space<vmem>>, vector<1x128x512xf32>
    %217 = vector.shape_cast %216 : vector<1x128x512xf32> to vector<128x512xf32>
    %cst_107 = arith.constant dense<0.000000e+00> : vector<8x512xf32>
    %218 = tpu.matmul %212, %217, %cst_107 {dimension_numbers = #tpu.dot_dimension_numbers<[1], [0], [0], [1], [0, 0, 1, 1], [], []>} : vector<8x128xf32>, vector<128x512xf32>, vector<8x512xf32> -> vector<8x512xf32>
    %219 = arith.addf %215, %218 : vector<8x512xf32>
    %c1_108 = arith.constant 1 : index
    %c0_109 = arith.constant 0 : index
    %c0_110 = arith.constant 0 : index
    %220 = vector.load %arg5[%c1_108, %c0_109, %c0_110] : memref<2x1x512xf32, #tpu.memory_space<vmem>>, vector<1x1x512xf32>
    %221 = vector.shape_cast %220 : vector<1x1x512xf32> to vector<1x512xf32>
    %222 = vector.broadcast %221 : vector<1x512xf32> to vector<8x512xf32>
    %223 = arith.addf %219, %222 : vector<8x512xf32>
    %224 = vector.extract_strided_slice %223 {offsets = [0, 0], sizes = [8, 128], strides = [1, 1]} : vector<8x512xf32> to vector<8x128xf32>
    %cst_111 = arith.constant 5.000000e-01 : f32
    %225 = vector.broadcast %cst_111 : f32 to vector<8x128xf32>
    %226 = arith.mulf %225, %224 : vector<8x128xf32>
    %227 = math.tanh %226 : vector<8x128xf32>
    %cst_112 = arith.constant 5.000000e-01 : f32
    %228 = vector.broadcast %cst_112 : f32 to vector<8x128xf32>
    %229 = arith.mulf %228, %227 : vector<8x128xf32>
    %cst_113 = arith.constant 5.000000e-01 : f32
    %230 = vector.broadcast %cst_113 : f32 to vector<8x128xf32>
    %231 = arith.addf %229, %230 : vector<8x128xf32>
    %232 = vector.extract_strided_slice %223 {offsets = [0, 128], sizes = [8, 128], strides = [1, 1]} : vector<8x512xf32> to vector<8x128xf32>
    %cst_114 = arith.constant 5.000000e-01 : f32
    %233 = vector.broadcast %cst_114 : f32 to vector<8x128xf32>
    %234 = arith.mulf %233, %232 : vector<8x128xf32>
    %235 = math.tanh %234 : vector<8x128xf32>
    %cst_115 = arith.constant 5.000000e-01 : f32
    %236 = vector.broadcast %cst_115 : f32 to vector<8x128xf32>
    %237 = arith.mulf %236, %235 : vector<8x128xf32>
    %cst_116 = arith.constant 5.000000e-01 : f32
    %238 = vector.broadcast %cst_116 : f32 to vector<8x128xf32>
    %239 = arith.addf %237, %238 : vector<8x128xf32>
    %240 = vector.extract_strided_slice %223 {offsets = [0, 256], sizes = [8, 128], strides = [1, 1]} : vector<8x512xf32> to vector<8x128xf32>
    %241 = math.tanh %240 : vector<8x128xf32>
    %242 = vector.extract_strided_slice %223 {offsets = [0, 384], sizes = [8, 128], strides = [1, 1]} : vector<8x512xf32> to vector<8x128xf32>
    %cst_117 = arith.constant 5.000000e-01 : f32
    %243 = vector.broadcast %cst_117 : f32 to vector<8x128xf32>
    %244 = arith.mulf %243, %242 : vector<8x128xf32>
    %245 = math.tanh %244 : vector<8x128xf32>
    %cst_118 = arith.constant 5.000000e-01 : f32
    %246 = vector.broadcast %cst_118 : f32 to vector<8x128xf32>
    %247 = arith.mulf %246, %245 : vector<8x128xf32>
    %cst_119 = arith.constant 5.000000e-01 : f32
    %248 = vector.broadcast %cst_119 : f32 to vector<8x128xf32>
    %249 = arith.addf %247, %248 : vector<8x128xf32>
    %250 = arith.mulf %239, %171 : vector<8x128xf32>
    %251 = arith.mulf %231, %241 : vector<8x128xf32>
    %252 = arith.addf %250, %251 : vector<8x128xf32>
    %253 = math.tanh %252 : vector<8x128xf32>
    %254 = arith.mulf %249, %253 : vector<8x128xf32>
    %255 = arith.index_cast %c2_i32 : i32 to index
    %c0_120 = arith.constant 0 : index
    %c0_121 = arith.constant 0 : index
    %256 = vector.load %arg9[%255, %c0_120, %c0_121] : memref<8x8x128xf32, #tpu.memory_space<vmem>>, vector<1x8x128xf32>
    %257 = vector.shape_cast %256 : vector<1x8x128xf32> to vector<8x128xf32>
    %258 = vector.shape_cast %254 : vector<8x128xf32> to vector<1x8x128xf32>
    tpu.vector_store %arg9[%255, %c0_120, %c0_121], %258 {strides = array<i32>} : memref<8x8x128xf32, #tpu.memory_space<vmem>>, vector<1x8x128xf32>,
    %c3_i32 = arith.constant 3 : i32
    %c0_122 = arith.constant 0 : index
    %c128_123 = arith.constant 128 : index
    %c0_124 = arith.constant 0 : index
    %259 = vector.load %arg4[%c0_122, %c128_123, %c0_124] : memref<2x256x512xf32, #tpu.memory_space<vmem>>, vector<1x128x512xf32>
    %260 = vector.shape_cast %259 : vector<1x128x512xf32> to vector<128x512xf32>
    %cst_125 = arith.constant dense<0.000000e+00> : vector<8x512xf32>
    %261 = tpu.matmul %212, %260, %cst_125 {dimension_numbers = #tpu.dot_dimension_numbers<[1], [0], [0], [1], [0, 0, 1, 1], [], []>} : vector<8x128xf32>, vector<128x512xf32>, vector<8x512xf32> -> vector<8x512xf32>
    %262 = arith.addf %7, %261 : vector<8x512xf32>
    %263 = vector.extract_strided_slice %262 {offsets = [0, 0], sizes = [8, 128], strides = [1, 1]} : vector<8x512xf32> to vector<8x128xf32>
    %cst_126 = arith.constant 5.000000e-01 : f32
    %264 = vector.broadcast %cst_126 : f32 to vector<8x128xf32>
    %265 = arith.mulf %264, %263 : vector<8x128xf32>
    %266 = math.tanh %265 : vector<8x128xf32>
    %cst_127 = arith.constant 5.000000e-01 : f32
    %267 = vector.broadcast %cst_127 : f32 to vector<8x128xf32>
    %268 = arith.mulf %267, %266 : vector<8x128xf32>
    %cst_128 = arith.constant 5.000000e-01 : f32
    %269 = vector.broadcast %cst_128 : f32 to vector<8x128xf32>
    %270 = arith.addf %268, %269 : vector<8x128xf32>
    %271 = vector.extract_strided_slice %262 {offsets = [0, 128], sizes = [8, 128], strides = [1, 1]} : vector<8x512xf32> to vector<8x128xf32>
    %cst_129 = arith.constant 5.000000e-01 : f32
    %272 = vector.broadcast %cst_129 : f32 to vector<8x128xf32>
    %273 = arith.mulf %272, %271 : vector<8x128xf32>
    %274 = math.tanh %273 : vector<8x128xf32>
    %cst_130 = arith.constant 5.000000e-01 : f32
    %275 = vector.broadcast %cst_130 : f32 to vector<8x128xf32>
    %276 = arith.mulf %275, %274 : vector<8x128xf32>
    %cst_131 = arith.constant 5.000000e-01 : f32
    %277 = vector.broadcast %cst_131 : f32 to vector<8x128xf32>
    %278 = arith.addf %276, %277 : vector<8x128xf32>
    %279 = vector.extract_strided_slice %262 {offsets = [0, 256], sizes = [8, 128], strides = [1, 1]} : vector<8x512xf32> to vector<8x128xf32>
    %280 = math.tanh %279 : vector<8x128xf32>
    %281 = vector.extract_strided_slice %262 {offsets = [0, 384], sizes = [8, 128], strides = [1, 1]} : vector<8x512xf32> to vector<8x128xf32>
    %cst_132 = arith.constant 5.000000e-01 : f32
    %282 = vector.broadcast %cst_132 : f32 to vector<8x128xf32>
    %283 = arith.mulf %282, %281 : vector<8x128xf32>
    %284 = math.tanh %283 : vector<8x128xf32>
    %cst_133 = arith.constant 5.000000e-01 : f32
    %285 = vector.broadcast %cst_133 : f32 to vector<8x128xf32>
    %286 = arith.mulf %285, %284 : vector<8x128xf32>
    %cst_134 = arith.constant 5.000000e-01 : f32
    %287 = vector.broadcast %cst_134 : f32 to vector<8x128xf32>
    %288 = arith.addf %286, %287 : vector<8x128xf32>
    %289 = arith.mulf %278, %210 : vector<8x128xf32>
    %290 = arith.mulf %270, %280 : vector<8x128xf32>
    %291 = arith.addf %289, %290 : vector<8x128xf32>
    %292 = math.tanh %291 : vector<8x128xf32>
    %293 = arith.mulf %288, %292 : vector<8x128xf32>
    %c1_135 = arith.constant 1 : index
    %c128_136 = arith.constant 128 : index
    %c0_137 = arith.constant 0 : index
    %294 = vector.load %arg4[%c1_135, %c128_136, %c0_137] : memref<2x256x512xf32, #tpu.memory_space<vmem>>, vector<1x128x512xf32>
    %295 = vector.shape_cast %294 : vector<1x128x512xf32> to vector<128x512xf32>
    %cst_138 = arith.constant dense<0.000000e+00> : vector<8x512xf32>
    %296 = tpu.matmul %254, %295, %cst_138 {dimension_numbers = #tpu.dot_dimension_numbers<[1], [0], [0], [1], [0, 0, 1, 1], [], []>} : vector<8x128xf32>, vector<128x512xf32>, vector<8x512xf32> -> vector<8x512xf32>
    %c1_139 = arith.constant 1 : index
    %c0_140 = arith.constant 0 : index
    %c0_141 = arith.constant 0 : index
    %297 = vector.load %arg4[%c1_139, %c0_140, %c0_141] : memref<2x256x512xf32, #tpu.memory_space<vmem>>, vector<1x128x512xf32>
    %298 = vector.shape_cast %297 : vector<1x128x512xf32> to vector<128x512xf32>
    %cst_142 = arith.constant dense<0.000000e+00> : vector<8x512xf32>
    %299 = tpu.matmul %293, %298, %cst_142 {dimension_numbers = #tpu.dot_dimension_numbers<[1], [0], [0], [1], [0, 0, 1, 1], [], []>} : vector<8x128xf32>, vector<128x512xf32>, vector<8x512xf32> -> vector<8x512xf32>
    %300 = arith.addf %296, %299 : vector<8x512xf32>
    %c1_143 = arith.constant 1 : index
    %c0_144 = arith.constant 0 : index
    %c0_145 = arith.constant 0 : index
    %301 = vector.load %arg5[%c1_143, %c0_144, %c0_145] : memref<2x1x512xf32, #tpu.memory_space<vmem>>, vector<1x1x512xf32>
    %302 = vector.shape_cast %301 : vector<1x1x512xf32> to vector<1x512xf32>
    %303 = vector.broadcast %302 : vector<1x512xf32> to vector<8x512xf32>
    %304 = arith.addf %300, %303 : vector<8x512xf32>
    %305 = vector.extract_strided_slice %304 {offsets = [0, 0], sizes = [8, 128], strides = [1, 1]} : vector<8x512xf32> to vector<8x128xf32>
    %cst_146 = arith.constant 5.000000e-01 : f32
    %306 = vector.broadcast %cst_146 : f32 to vector<8x128xf32>
    %307 = arith.mulf %306, %305 : vector<8x128xf32>
    %308 = math.tanh %307 : vector<8x128xf32>
    %cst_147 = arith.constant 5.000000e-01 : f32
    %309 = vector.broadcast %cst_147 : f32 to vector<8x128xf32>
    %310 = arith.mulf %309, %308 : vector<8x128xf32>
    %cst_148 = arith.constant 5.000000e-01 : f32
    %311 = vector.broadcast %cst_148 : f32 to vector<8x128xf32>
    %312 = arith.addf %310, %311 : vector<8x128xf32>
    %313 = vector.extract_strided_slice %304 {offsets = [0, 128], sizes = [8, 128], strides = [1, 1]} : vector<8x512xf32> to vector<8x128xf32>
    %cst_149 = arith.constant 5.000000e-01 : f32
    %314 = vector.broadcast %cst_149 : f32 to vector<8x128xf32>
    %315 = arith.mulf %314, %313 : vector<8x128xf32>
    %316 = math.tanh %315 : vector<8x128xf32>
    %cst_150 = arith.constant 5.000000e-01 : f32
    %317 = vector.broadcast %cst_150 : f32 to vector<8x128xf32>
    %318 = arith.mulf %317, %316 : vector<8x128xf32>
    %cst_151 = arith.constant 5.000000e-01 : f32
    %319 = vector.broadcast %cst_151 : f32 to vector<8x128xf32>
    %320 = arith.addf %318, %319 : vector<8x128xf32>
    %321 = vector.extract_strided_slice %304 {offsets = [0, 256], sizes = [8, 128], strides = [1, 1]} : vector<8x512xf32> to vector<8x128xf32>
    %322 = math.tanh %321 : vector<8x128xf32>
    %323 = vector.extract_strided_slice %304 {offsets = [0, 384], sizes = [8, 128], strides = [1, 1]} : vector<8x512xf32> to vector<8x128xf32>
    %cst_152 = arith.constant 5.000000e-01 : f32
    %324 = vector.broadcast %cst_152 : f32 to vector<8x128xf32>
    %325 = arith.mulf %324, %323 : vector<8x128xf32>
    %326 = math.tanh %325 : vector<8x128xf32>
    %cst_153 = arith.constant 5.000000e-01 : f32
    %327 = vector.broadcast %cst_153 : f32 to vector<8x128xf32>
    %328 = arith.mulf %327, %326 : vector<8x128xf32>
    %cst_154 = arith.constant 5.000000e-01 : f32
    %329 = vector.broadcast %cst_154 : f32 to vector<8x128xf32>
    %330 = arith.addf %328, %329 : vector<8x128xf32>
    %331 = arith.mulf %320, %252 : vector<8x128xf32>
    %332 = arith.mulf %312, %322 : vector<8x128xf32>
    %333 = arith.addf %331, %332 : vector<8x128xf32>
    %334 = math.tanh %333 : vector<8x128xf32>
    %335 = arith.mulf %330, %334 : vector<8x128xf32>
    %336 = arith.index_cast %c3_i32 : i32 to index
    %c0_155 = arith.constant 0 : index
    %c0_156 = arith.constant 0 : index
    %337 = vector.load %arg9[%336, %c0_155, %c0_156] : memref<8x8x128xf32, #tpu.memory_space<vmem>>, vector<1x8x128xf32>
    %338 = vector.shape_cast %337 : vector<1x8x128xf32> to vector<8x128xf32>
    %339 = vector.shape_cast %335 : vector<8x128xf32> to vector<1x8x128xf32>
    tpu.vector_store %arg9[%336, %c0_155, %c0_156], %339 {strides = array<i32>} : memref<8x8x128xf32, #tpu.memory_space<vmem>>, vector<1x8x128xf32>,
    %c4_i32 = arith.constant 4 : i32
    %c0_157 = arith.constant 0 : index
    %c128_158 = arith.constant 128 : index
    %c0_159 = arith.constant 0 : index
    %340 = vector.load %arg4[%c0_157, %c128_158, %c0_159] : memref<2x256x512xf32, #tpu.memory_space<vmem>>, vector<1x128x512xf32>
    %341 = vector.shape_cast %340 : vector<1x128x512xf32> to vector<128x512xf32>
    %cst_160 = arith.constant dense<0.000000e+00> : vector<8x512xf32>
    %342 = tpu.matmul %293, %341, %cst_160 {dimension_numbers = #tpu.dot_dimension_numbers<[1], [0], [0], [1], [0, 0, 1, 1], [], []>} : vector<8x128xf32>, vector<128x512xf32>, vector<8x512xf32> -> vector<8x512xf32>
    %343 = arith.addf %7, %342 : vector<8x512xf32>
    %344 = vector.extract_strided_slice %343 {offsets = [0, 0], sizes = [8, 128], strides = [1, 1]} : vector<8x512xf32> to vector<8x128xf32>
    %cst_161 = arith.constant 5.000000e-01 : f32
    %345 = vector.broadcast %cst_161 : f32 to vector<8x128xf32>
    %346 = arith.mulf %345, %344 : vector<8x128xf32>
    %347 = math.tanh %346 : vector<8x128xf32>
    %cst_162 = arith.constant 5.000000e-01 : f32
    %348 = vector.broadcast %cst_162 : f32 to vector<8x128xf32>
    %349 = arith.mulf %348, %347 : vector<8x128xf32>
    %cst_163 = arith.constant 5.000000e-01 : f32
    %350 = vector.broadcast %cst_163 : f32 to vector<8x128xf32>
    %351 = arith.addf %349, %350 : vector<8x128xf32>
    %352 = vector.extract_strided_slice %343 {offsets = [0, 128], sizes = [8, 128], strides = [1, 1]} : vector<8x512xf32> to vector<8x128xf32>
    %cst_164 = arith.constant 5.000000e-01 : f32
    %353 = vector.broadcast %cst_164 : f32 to vector<8x128xf32>
    %354 = arith.mulf %353, %352 : vector<8x128xf32>
    %355 = math.tanh %354 : vector<8x128xf32>
    %cst_165 = arith.constant 5.000000e-01 : f32
    %356 = vector.broadcast %cst_165 : f32 to vector<8x128xf32>
    %357 = arith.mulf %356, %355 : vector<8x128xf32>
    %cst_166 = arith.constant 5.000000e-01 : f32
    %358 = vector.broadcast %cst_166 : f32 to vector<8x128xf32>
    %359 = arith.addf %357, %358 : vector<8x128xf32>
    %360 = vector.extract_strided_slice %343 {offsets = [0, 256], sizes = [8, 128], strides = [1, 1]} : vector<8x512xf32> to vector<8x128xf32>
    %361 = math.tanh %360 : vector<8x128xf32>
    %362 = vector.extract_strided_slice %343 {offsets = [0, 384], sizes = [8, 128], strides = [1, 1]} : vector<8x512xf32> to vector<8x128xf32>
    %cst_167 = arith.constant 5.000000e-01 : f32
    %363 = vector.broadcast %cst_167 : f32 to vector<8x128xf32>
    %364 = arith.mulf %363, %362 : vector<8x128xf32>
    %365 = math.tanh %364 : vector<8x128xf32>
    %cst_168 = arith.constant 5.000000e-01 : f32
    %366 = vector.broadcast %cst_168 : f32 to vector<8x128xf32>
    %367 = arith.mulf %366, %365 : vector<8x128xf32>
    %cst_169 = arith.constant 5.000000e-01 : f32
    %368 = vector.broadcast %cst_169 : f32 to vector<8x128xf32>
    %369 = arith.addf %367, %368 : vector<8x128xf32>
    %370 = arith.mulf %359, %291 : vector<8x128xf32>
    %371 = arith.mulf %351, %361 : vector<8x128xf32>
    %372 = arith.addf %370, %371 : vector<8x128xf32>
    %373 = math.tanh %372 : vector<8x128xf32>
    %374 = arith.mulf %369, %373 : vector<8x128xf32>
    %c1_170 = arith.constant 1 : index
    %c128_171 = arith.constant 128 : index
    %c0_172 = arith.constant 0 : index
    %375 = vector.load %arg4[%c1_170, %c128_171, %c0_172] : memref<2x256x512xf32, #tpu.memory_space<vmem>>, vector<1x128x512xf32>
    %376 = vector.shape_cast %375 : vector<1x128x512xf32> to vector<128x512xf32>
    %cst_173 = arith.constant dense<0.000000e+00> : vector<8x512xf32>
    %377 = tpu.matmul %335, %376, %cst_173 {dimension_numbers = #tpu.dot_dimension_numbers<[1], [0], [0], [1], [0, 0, 1, 1], [], []>} : vector<8x128xf32>, vector<128x512xf32>, vector<8x512xf32> -> vector<8x512xf32>
    %c1_174 = arith.constant 1 : index
    %c0_175 = arith.constant 0 : index
    %c0_176 = arith.constant 0 : index
    %378 = vector.load %arg4[%c1_174, %c0_175, %c0_176] : memref<2x256x512xf32, #tpu.memory_space<vmem>>, vector<1x128x512xf32>
    %379 = vector.shape_cast %378 : vector<1x128x512xf32> to vector<128x512xf32>
    %cst_177 = arith.constant dense<0.000000e+00> : vector<8x512xf32>
    %380 = tpu.matmul %374, %379, %cst_177 {dimension_numbers = #tpu.dot_dimension_numbers<[1], [0], [0], [1], [0, 0, 1, 1], [], []>} : vector<8x128xf32>, vector<128x512xf32>, vector<8x512xf32> -> vector<8x512xf32>
    %381 = arith.addf %377, %380 : vector<8x512xf32>
    %c1_178 = arith.constant 1 : index
    %c0_179 = arith.constant 0 : index
    %c0_180 = arith.constant 0 : index
    %382 = vector.load %arg5[%c1_178, %c0_179, %c0_180] : memref<2x1x512xf32, #tpu.memory_space<vmem>>, vector<1x1x512xf32>
    %383 = vector.shape_cast %382 : vector<1x1x512xf32> to vector<1x512xf32>
    %384 = vector.broadcast %383 : vector<1x512xf32> to vector<8x512xf32>
    %385 = arith.addf %381, %384 : vector<8x512xf32>
    %386 = vector.extract_strided_slice %385 {offsets = [0, 0], sizes = [8, 128], strides = [1, 1]} : vector<8x512xf32> to vector<8x128xf32>
    %cst_181 = arith.constant 5.000000e-01 : f32
    %387 = vector.broadcast %cst_181 : f32 to vector<8x128xf32>
    %388 = arith.mulf %387, %386 : vector<8x128xf32>
    %389 = math.tanh %388 : vector<8x128xf32>
    %cst_182 = arith.constant 5.000000e-01 : f32
    %390 = vector.broadcast %cst_182 : f32 to vector<8x128xf32>
    %391 = arith.mulf %390, %389 : vector<8x128xf32>
    %cst_183 = arith.constant 5.000000e-01 : f32
    %392 = vector.broadcast %cst_183 : f32 to vector<8x128xf32>
    %393 = arith.addf %391, %392 : vector<8x128xf32>
    %394 = vector.extract_strided_slice %385 {offsets = [0, 128], sizes = [8, 128], strides = [1, 1]} : vector<8x512xf32> to vector<8x128xf32>
    %cst_184 = arith.constant 5.000000e-01 : f32
    %395 = vector.broadcast %cst_184 : f32 to vector<8x128xf32>
    %396 = arith.mulf %395, %394 : vector<8x128xf32>
    %397 = math.tanh %396 : vector<8x128xf32>
    %cst_185 = arith.constant 5.000000e-01 : f32
    %398 = vector.broadcast %cst_185 : f32 to vector<8x128xf32>
    %399 = arith.mulf %398, %397 : vector<8x128xf32>
    %cst_186 = arith.constant 5.000000e-01 : f32
    %400 = vector.broadcast %cst_186 : f32 to vector<8x128xf32>
    %401 = arith.addf %399, %400 : vector<8x128xf32>
    %402 = vector.extract_strided_slice %385 {offsets = [0, 256], sizes = [8, 128], strides = [1, 1]} : vector<8x512xf32> to vector<8x128xf32>
    %403 = math.tanh %402 : vector<8x128xf32>
    %404 = vector.extract_strided_slice %385 {offsets = [0, 384], sizes = [8, 128], strides = [1, 1]} : vector<8x512xf32> to vector<8x128xf32>
    %cst_187 = arith.constant 5.000000e-01 : f32
    %405 = vector.broadcast %cst_187 : f32 to vector<8x128xf32>
    %406 = arith.mulf %405, %404 : vector<8x128xf32>
    %407 = math.tanh %406 : vector<8x128xf32>
    %cst_188 = arith.constant 5.000000e-01 : f32
    %408 = vector.broadcast %cst_188 : f32 to vector<8x128xf32>
    %409 = arith.mulf %408, %407 : vector<8x128xf32>
    %cst_189 = arith.constant 5.000000e-01 : f32
    %410 = vector.broadcast %cst_189 : f32 to vector<8x128xf32>
    %411 = arith.addf %409, %410 : vector<8x128xf32>
    %412 = arith.mulf %401, %333 : vector<8x128xf32>
    %413 = arith.mulf %393, %403 : vector<8x128xf32>
    %414 = arith.addf %412, %413 : vector<8x128xf32>
    %415 = math.tanh %414 : vector<8x128xf32>
    %416 = arith.mulf %411, %415 : vector<8x128xf32>
    %417 = arith.index_cast %c4_i32 : i32 to index
    %c0_190 = arith.constant 0 : index
    %c0_191 = arith.constant 0 : index
    %418 = vector.load %arg9[%417, %c0_190, %c0_191] : memref<8x8x128xf32, #tpu.memory_space<vmem>>, vector<1x8x128xf32>
    %419 = vector.shape_cast %418 : vector<1x8x128xf32> to vector<8x128xf32>
    %420 = vector.shape_cast %416 : vector<8x128xf32> to vector<1x8x128xf32>
    tpu.vector_store %arg9[%417, %c0_190, %c0_191], %420 {strides = array<i32>} : memref<8x8x128xf32, #tpu.memory_space<vmem>>, vector<1x8x128xf32>,
    %c5_i32 = arith.constant 5 : i32
    %c0_192 = arith.constant 0 : index
    %c128_193 = arith.constant 128 : index
    %c0_194 = arith.constant 0 : index
    %421 = vector.load %arg4[%c0_192, %c128_193, %c0_194] : memref<2x256x512xf32, #tpu.memory_space<vmem>>, vector<1x128x512xf32>
    %422 = vector.shape_cast %421 : vector<1x128x512xf32> to vector<128x512xf32>
    %cst_195 = arith.constant dense<0.000000e+00> : vector<8x512xf32>
    %423 = tpu.matmul %374, %422, %cst_195 {dimension_numbers = #tpu.dot_dimension_numbers<[1], [0], [0], [1], [0, 0, 1, 1], [], []>} : vector<8x128xf32>, vector<128x512xf32>, vector<8x512xf32> -> vector<8x512xf32>
    %424 = arith.addf %7, %423 : vector<8x512xf32>
    %425 = vector.extract_strided_slice %424 {offsets = [0, 0], sizes = [8, 128], strides = [1, 1]} : vector<8x512xf32> to vector<8x128xf32>
    %cst_196 = arith.constant 5.000000e-01 : f32
    %426 = vector.broadcast %cst_196 : f32 to vector<8x128xf32>
    %427 = arith.mulf %426, %425 : vector<8x128xf32>
    %428 = math.tanh %427 : vector<8x128xf32>
    %cst_197 = arith.constant 5.000000e-01 : f32
    %429 = vector.broadcast %cst_197 : f32 to vector<8x128xf32>
    %430 = arith.mulf %429, %428 : vector<8x128xf32>
    %cst_198 = arith.constant 5.000000e-01 : f32
    %431 = vector.broadcast %cst_198 : f32 to vector<8x128xf32>
    %432 = arith.addf %430, %431 : vector<8x128xf32>
    %433 = vector.extract_strided_slice %424 {offsets = [0, 128], sizes = [8, 128], strides = [1, 1]} : vector<8x512xf32> to vector<8x128xf32>
    %cst_199 = arith.constant 5.000000e-01 : f32
    %434 = vector.broadcast %cst_199 : f32 to vector<8x128xf32>
    %435 = arith.mulf %434, %433 : vector<8x128xf32>
    %436 = math.tanh %435 : vector<8x128xf32>
    %cst_200 = arith.constant 5.000000e-01 : f32
    %437 = vector.broadcast %cst_200 : f32 to vector<8x128xf32>
    %438 = arith.mulf %437, %436 : vector<8x128xf32>
    %cst_201 = arith.constant 5.000000e-01 : f32
    %439 = vector.broadcast %cst_201 : f32 to vector<8x128xf32>
    %440 = arith.addf %438, %439 : vector<8x128xf32>
    %441 = vector.extract_strided_slice %424 {offsets = [0, 256], sizes = [8, 128], strides = [1, 1]} : vector<8x512xf32> to vector<8x128xf32>
    %442 = math.tanh %441 : vector<8x128xf32>
    %443 = vector.extract_strided_slice %424 {offsets = [0, 384], sizes = [8, 128], strides = [1, 1]} : vector<8x512xf32> to vector<8x128xf32>
    %cst_202 = arith.constant 5.000000e-01 : f32
    %444 = vector.broadcast %cst_202 : f32 to vector<8x128xf32>
    %445 = arith.mulf %444, %443 : vector<8x128xf32>
    %446 = math.tanh %445 : vector<8x128xf32>
    %cst_203 = arith.constant 5.000000e-01 : f32
    %447 = vector.broadcast %cst_203 : f32 to vector<8x128xf32>
    %448 = arith.mulf %447, %446 : vector<8x128xf32>
    %cst_204 = arith.constant 5.000000e-01 : f32
    %449 = vector.broadcast %cst_204 : f32 to vector<8x128xf32>
    %450 = arith.addf %448, %449 : vector<8x128xf32>
    %451 = arith.mulf %440, %372 : vector<8x128xf32>
    %452 = arith.mulf %432, %442 : vector<8x128xf32>
    %453 = arith.addf %451, %452 : vector<8x128xf32>
    %454 = math.tanh %453 : vector<8x128xf32>
    %455 = arith.mulf %450, %454 : vector<8x128xf32>
    %c1_205 = arith.constant 1 : index
    %c128_206 = arith.constant 128 : index
    %c0_207 = arith.constant 0 : index
    %456 = vector.load %arg4[%c1_205, %c128_206, %c0_207] : memref<2x256x512xf32, #tpu.memory_space<vmem>>, vector<1x128x512xf32>
    %457 = vector.shape_cast %456 : vector<1x128x512xf32> to vector<128x512xf32>
    %cst_208 = arith.constant dense<0.000000e+00> : vector<8x512xf32>
    %458 = tpu.matmul %416, %457, %cst_208 {dimension_numbers = #tpu.dot_dimension_numbers<[1], [0], [0], [1], [0, 0, 1, 1], [], []>} : vector<8x128xf32>, vector<128x512xf32>, vector<8x512xf32> -> vector<8x512xf32>
    %c1_209 = arith.constant 1 : index
    %c0_210 = arith.constant 0 : index
    %c0_211 = arith.constant 0 : index
    %459 = vector.load %arg4[%c1_209, %c0_210, %c0_211] : memref<2x256x512xf32, #tpu.memory_space<vmem>>, vector<1x128x512xf32>
    %460 = vector.shape_cast %459 : vector<1x128x512xf32> to vector<128x512xf32>
    %cst_212 = arith.constant dense<0.000000e+00> : vector<8x512xf32>
    %461 = tpu.matmul %455, %460, %cst_212 {dimension_numbers = #tpu.dot_dimension_numbers<[1], [0], [0], [1], [0, 0, 1, 1], [], []>} : vector<8x128xf32>, vector<128x512xf32>, vector<8x512xf32> -> vector<8x512xf32>
    %462 = arith.addf %458, %461 : vector<8x512xf32>
    %c1_213 = arith.constant 1 : index
    %c0_214 = arith.constant 0 : index
    %c0_215 = arith.constant 0 : index
    %463 = vector.load %arg5[%c1_213, %c0_214, %c0_215] : memref<2x1x512xf32, #tpu.memory_space<vmem>>, vector<1x1x512xf32>
    %464 = vector.shape_cast %463 : vector<1x1x512xf32> to vector<1x512xf32>
    %465 = vector.broadcast %464 : vector<1x512xf32> to vector<8x512xf32>
    %466 = arith.addf %462, %465 : vector<8x512xf32>
    %467 = vector.extract_strided_slice %466 {offsets = [0, 0], sizes = [8, 128], strides = [1, 1]} : vector<8x512xf32> to vector<8x128xf32>
    %cst_216 = arith.constant 5.000000e-01 : f32
    %468 = vector.broadcast %cst_216 : f32 to vector<8x128xf32>
    %469 = arith.mulf %468, %467 : vector<8x128xf32>
    %470 = math.tanh %469 : vector<8x128xf32>
    %cst_217 = arith.constant 5.000000e-01 : f32
    %471 = vector.broadcast %cst_217 : f32 to vector<8x128xf32>
    %472 = arith.mulf %471, %470 : vector<8x128xf32>
    %cst_218 = arith.constant 5.000000e-01 : f32
    %473 = vector.broadcast %cst_218 : f32 to vector<8x128xf32>
    %474 = arith.addf %472, %473 : vector<8x128xf32>
    %475 = vector.extract_strided_slice %466 {offsets = [0, 128], sizes = [8, 128], strides = [1, 1]} : vector<8x512xf32> to vector<8x128xf32>
    %cst_219 = arith.constant 5.000000e-01 : f32
    %476 = vector.broadcast %cst_219 : f32 to vector<8x128xf32>
    %477 = arith.mulf %476, %475 : vector<8x128xf32>
    %478 = math.tanh %477 : vector<8x128xf32>
    %cst_220 = arith.constant 5.000000e-01 : f32
    %479 = vector.broadcast %cst_220 : f32 to vector<8x128xf32>
    %480 = arith.mulf %479, %478 : vector<8x128xf32>
    %cst_221 = arith.constant 5.000000e-01 : f32
    %481 = vector.broadcast %cst_221 : f32 to vector<8x128xf32>
    %482 = arith.addf %480, %481 : vector<8x128xf32>
    %483 = vector.extract_strided_slice %466 {offsets = [0, 256], sizes = [8, 128], strides = [1, 1]} : vector<8x512xf32> to vector<8x128xf32>
    %484 = math.tanh %483 : vector<8x128xf32>
    %485 = vector.extract_strided_slice %466 {offsets = [0, 384], sizes = [8, 128], strides = [1, 1]} : vector<8x512xf32> to vector<8x128xf32>
    %cst_222 = arith.constant 5.000000e-01 : f32
    %486 = vector.broadcast %cst_222 : f32 to vector<8x128xf32>
    %487 = arith.mulf %486, %485 : vector<8x128xf32>
    %488 = math.tanh %487 : vector<8x128xf32>
    %cst_223 = arith.constant 5.000000e-01 : f32
    %489 = vector.broadcast %cst_223 : f32 to vector<8x128xf32>
    %490 = arith.mulf %489, %488 : vector<8x128xf32>
    %cst_224 = arith.constant 5.000000e-01 : f32
    %491 = vector.broadcast %cst_224 : f32 to vector<8x128xf32>
    %492 = arith.addf %490, %491 : vector<8x128xf32>
    %493 = arith.mulf %482, %414 : vector<8x128xf32>
    %494 = arith.mulf %474, %484 : vector<8x128xf32>
    %495 = arith.addf %493, %494 : vector<8x128xf32>
    %496 = math.tanh %495 : vector<8x128xf32>
    %497 = arith.mulf %492, %496 : vector<8x128xf32>
    %498 = arith.index_cast %c5_i32 : i32 to index
    %c0_225 = arith.constant 0 : index
    %c0_226 = arith.constant 0 : index
    %499 = vector.load %arg9[%498, %c0_225, %c0_226] : memref<8x8x128xf32, #tpu.memory_space<vmem>>, vector<1x8x128xf32>
    %500 = vector.shape_cast %499 : vector<1x8x128xf32> to vector<8x128xf32>
    %501 = vector.shape_cast %497 : vector<8x128xf32> to vector<1x8x128xf32>
    tpu.vector_store %arg9[%498, %c0_225, %c0_226], %501 {strides = array<i32>} : memref<8x8x128xf32, #tpu.memory_space<vmem>>, vector<1x8x128xf32>,
    %c6_i32 = arith.constant 6 : i32
    %c0_227 = arith.constant 0 : index
    %c128_228 = arith.constant 128 : index
    %c0_229 = arith.constant 0 : index
    %502 = vector.load %arg4[%c0_227, %c128_228, %c0_229] : memref<2x256x512xf32, #tpu.memory_space<vmem>>, vector<1x128x512xf32>
    %503 = vector.shape_cast %502 : vector<1x128x512xf32> to vector<128x512xf32>
    %cst_230 = arith.constant dense<0.000000e+00> : vector<8x512xf32>
    %504 = tpu.matmul %455, %503, %cst_230 {dimension_numbers = #tpu.dot_dimension_numbers<[1], [0], [0], [1], [0, 0, 1, 1], [], []>} : vector<8x128xf32>, vector<128x512xf32>, vector<8x512xf32> -> vector<8x512xf32>
    %505 = arith.addf %7, %504 : vector<8x512xf32>
    %506 = vector.extract_strided_slice %505 {offsets = [0, 0], sizes = [8, 128], strides = [1, 1]} : vector<8x512xf32> to vector<8x128xf32>
    %cst_231 = arith.constant 5.000000e-01 : f32
    %507 = vector.broadcast %cst_231 : f32 to vector<8x128xf32>
    %508 = arith.mulf %507, %506 : vector<8x128xf32>
    %509 = math.tanh %508 : vector<8x128xf32>
    %cst_232 = arith.constant 5.000000e-01 : f32
    %510 = vector.broadcast %cst_232 : f32 to vector<8x128xf32>
    %511 = arith.mulf %510, %509 : vector<8x128xf32>
    %cst_233 = arith.constant 5.000000e-01 : f32
    %512 = vector.broadcast %cst_233 : f32 to vector<8x128xf32>
    %513 = arith.addf %511, %512 : vector<8x128xf32>
    %514 = vector.extract_strided_slice %505 {offsets = [0, 128], sizes = [8, 128], strides = [1, 1]} : vector<8x512xf32> to vector<8x128xf32>
    %cst_234 = arith.constant 5.000000e-01 : f32
    %515 = vector.broadcast %cst_234 : f32 to vector<8x128xf32>
    %516 = arith.mulf %515, %514 : vector<8x128xf32>
    %517 = math.tanh %516 : vector<8x128xf32>
    %cst_235 = arith.constant 5.000000e-01 : f32
    %518 = vector.broadcast %cst_235 : f32 to vector<8x128xf32>
    %519 = arith.mulf %518, %517 : vector<8x128xf32>
    %cst_236 = arith.constant 5.000000e-01 : f32
    %520 = vector.broadcast %cst_236 : f32 to vector<8x128xf32>
    %521 = arith.addf %519, %520 : vector<8x128xf32>
    %522 = vector.extract_strided_slice %505 {offsets = [0, 256], sizes = [8, 128], strides = [1, 1]} : vector<8x512xf32> to vector<8x128xf32>
    %523 = math.tanh %522 : vector<8x128xf32>
    %524 = vector.extract_strided_slice %505 {offsets = [0, 384], sizes = [8, 128], strides = [1, 1]} : vector<8x512xf32> to vector<8x128xf32>
    %cst_237 = arith.constant 5.000000e-01 : f32
    %525 = vector.broadcast %cst_237 : f32 to vector<8x128xf32>
    %526 = arith.mulf %525, %524 : vector<8x128xf32>
    %527 = math.tanh %526 : vector<8x128xf32>
    %cst_238 = arith.constant 5.000000e-01 : f32
    %528 = vector.broadcast %cst_238 : f32 to vector<8x128xf32>
    %529 = arith.mulf %528, %527 : vector<8x128xf32>
    %cst_239 = arith.constant 5.000000e-01 : f32
    %530 = vector.broadcast %cst_239 : f32 to vector<8x128xf32>
    %531 = arith.addf %529, %530 : vector<8x128xf32>
    %532 = arith.mulf %521, %453 : vector<8x128xf32>
    %533 = arith.mulf %513, %523 : vector<8x128xf32>
    %534 = arith.addf %532, %533 : vector<8x128xf32>
    %535 = math.tanh %534 : vector<8x128xf32>
    %536 = arith.mulf %531, %535 : vector<8x128xf32>
    %c1_240 = arith.constant 1 : index
    %c128_241 = arith.constant 128 : index
    %c0_242 = arith.constant 0 : index
    %537 = vector.load %arg4[%c1_240, %c128_241, %c0_242] : memref<2x256x512xf32, #tpu.memory_space<vmem>>, vector<1x128x512xf32>
    %538 = vector.shape_cast %537 : vector<1x128x512xf32> to vector<128x512xf32>
    %cst_243 = arith.constant dense<0.000000e+00> : vector<8x512xf32>
    %539 = tpu.matmul %497, %538, %cst_243 {dimension_numbers = #tpu.dot_dimension_numbers<[1], [0], [0], [1], [0, 0, 1, 1], [], []>} : vector<8x128xf32>, vector<128x512xf32>, vector<8x512xf32> -> vector<8x512xf32>
    %c1_244 = arith.constant 1 : index
    %c0_245 = arith.constant 0 : index
    %c0_246 = arith.constant 0 : index
    %540 = vector.load %arg4[%c1_244, %c0_245, %c0_246] : memref<2x256x512xf32, #tpu.memory_space<vmem>>, vector<1x128x512xf32>
    %541 = vector.shape_cast %540 : vector<1x128x512xf32> to vector<128x512xf32>
    %cst_247 = arith.constant dense<0.000000e+00> : vector<8x512xf32>
    %542 = tpu.matmul %536, %541, %cst_247 {dimension_numbers = #tpu.dot_dimension_numbers<[1], [0], [0], [1], [0, 0, 1, 1], [], []>} : vector<8x128xf32>, vector<128x512xf32>, vector<8x512xf32> -> vector<8x512xf32>
    %543 = arith.addf %539, %542 : vector<8x512xf32>
    %c1_248 = arith.constant 1 : index
    %c0_249 = arith.constant 0 : index
    %c0_250 = arith.constant 0 : index
    %544 = vector.load %arg5[%c1_248, %c0_249, %c0_250] : memref<2x1x512xf32, #tpu.memory_space<vmem>>, vector<1x1x512xf32>
    %545 = vector.shape_cast %544 : vector<1x1x512xf32> to vector<1x512xf32>
    %546 = vector.broadcast %545 : vector<1x512xf32> to vector<8x512xf32>
    %547 = arith.addf %543, %546 : vector<8x512xf32>
    %548 = vector.extract_strided_slice %547 {offsets = [0, 0], sizes = [8, 128], strides = [1, 1]} : vector<8x512xf32> to vector<8x128xf32>
    %cst_251 = arith.constant 5.000000e-01 : f32
    %549 = vector.broadcast %cst_251 : f32 to vector<8x128xf32>
    %550 = arith.mulf %549, %548 : vector<8x128xf32>
    %551 = math.tanh %550 : vector<8x128xf32>
    %cst_252 = arith.constant 5.000000e-01 : f32
    %552 = vector.broadcast %cst_252 : f32 to vector<8x128xf32>
    %553 = arith.mulf %552, %551 : vector<8x128xf32>
    %cst_253 = arith.constant 5.000000e-01 : f32
    %554 = vector.broadcast %cst_253 : f32 to vector<8x128xf32>
    %555 = arith.addf %553, %554 : vector<8x128xf32>
    %556 = vector.extract_strided_slice %547 {offsets = [0, 128], sizes = [8, 128], strides = [1, 1]} : vector<8x512xf32> to vector<8x128xf32>
    %cst_254 = arith.constant 5.000000e-01 : f32
    %557 = vector.broadcast %cst_254 : f32 to vector<8x128xf32>
    %558 = arith.mulf %557, %556 : vector<8x128xf32>
    %559 = math.tanh %558 : vector<8x128xf32>
    %cst_255 = arith.constant 5.000000e-01 : f32
    %560 = vector.broadcast %cst_255 : f32 to vector<8x128xf32>
    %561 = arith.mulf %560, %559 : vector<8x128xf32>
    %cst_256 = arith.constant 5.000000e-01 : f32
    %562 = vector.broadcast %cst_256 : f32 to vector<8x128xf32>
    %563 = arith.addf %561, %562 : vector<8x128xf32>
    %564 = vector.extract_strided_slice %547 {offsets = [0, 256], sizes = [8, 128], strides = [1, 1]} : vector<8x512xf32> to vector<8x128xf32>
    %565 = math.tanh %564 : vector<8x128xf32>
    %566 = vector.extract_strided_slice %547 {offsets = [0, 384], sizes = [8, 128], strides = [1, 1]} : vector<8x512xf32> to vector<8x128xf32>
    %cst_257 = arith.constant 5.000000e-01 : f32
    %567 = vector.broadcast %cst_257 : f32 to vector<8x128xf32>
    %568 = arith.mulf %567, %566 : vector<8x128xf32>
    %569 = math.tanh %568 : vector<8x128xf32>
    %cst_258 = arith.constant 5.000000e-01 : f32
    %570 = vector.broadcast %cst_258 : f32 to vector<8x128xf32>
    %571 = arith.mulf %570, %569 : vector<8x128xf32>
    %cst_259 = arith.constant 5.000000e-01 : f32
    %572 = vector.broadcast %cst_259 : f32 to vector<8x128xf32>
    %573 = arith.addf %571, %572 : vector<8x128xf32>
    %574 = arith.mulf %563, %495 : vector<8x128xf32>
    %575 = arith.mulf %555, %565 : vector<8x128xf32>
    %576 = arith.addf %574, %575 : vector<8x128xf32>
    %577 = math.tanh %576 : vector<8x128xf32>
    %578 = arith.mulf %573, %577 : vector<8x128xf32>
    %579 = arith.index_cast %c6_i32 : i32 to index
    %c0_260 = arith.constant 0 : index
    %c0_261 = arith.constant 0 : index
    %580 = vector.load %arg9[%579, %c0_260, %c0_261] : memref<8x8x128xf32, #tpu.memory_space<vmem>>, vector<1x8x128xf32>
    %581 = vector.shape_cast %580 : vector<1x8x128xf32> to vector<8x128xf32>
    %582 = vector.shape_cast %578 : vector<8x128xf32> to vector<1x8x128xf32>
    tpu.vector_store %arg9[%579, %c0_260, %c0_261], %582 {strides = array<i32>} : memref<8x8x128xf32, #tpu.memory_space<vmem>>, vector<1x8x128xf32>,
    %c7_i32 = arith.constant 7 : i32
    %c0_262 = arith.constant 0 : index
    %c128_263 = arith.constant 128 : index
    %c0_264 = arith.constant 0 : index
    %583 = vector.load %arg4[%c0_262, %c128_263, %c0_264] : memref<2x256x512xf32, #tpu.memory_space<vmem>>, vector<1x128x512xf32>
    %584 = vector.shape_cast %583 : vector<1x128x512xf32> to vector<128x512xf32>
    %cst_265 = arith.constant dense<0.000000e+00> : vector<8x512xf32>
    %585 = tpu.matmul %536, %584, %cst_265 {dimension_numbers = #tpu.dot_dimension_numbers<[1], [0], [0], [1], [0, 0, 1, 1], [], []>} : vector<8x128xf32>, vector<128x512xf32>, vector<8x512xf32> -> vector<8x512xf32>
    %586 = arith.addf %7, %585 : vector<8x512xf32>
    %587 = vector.extract_strided_slice %586 {offsets = [0, 0], sizes = [8, 128], strides = [1, 1]} : vector<8x512xf32> to vector<8x128xf32>
    %cst_266 = arith.constant 5.000000e-01 : f32
    %588 = vector.broadcast %cst_266 : f32 to vector<8x128xf32>
    %589 = arith.mulf %588, %587 : vector<8x128xf32>
    %590 = math.tanh %589 : vector<8x128xf32>
    %cst_267 = arith.constant 5.000000e-01 : f32
    %591 = vector.broadcast %cst_267 : f32 to vector<8x128xf32>
    %592 = arith.mulf %591, %590 : vector<8x128xf32>
    %cst_268 = arith.constant 5.000000e-01 : f32
    %593 = vector.broadcast %cst_268 : f32 to vector<8x128xf32>
    %594 = arith.addf %592, %593 : vector<8x128xf32>
    %595 = vector.extract_strided_slice %586 {offsets = [0, 128], sizes = [8, 128], strides = [1, 1]} : vector<8x512xf32> to vector<8x128xf32>
    %cst_269 = arith.constant 5.000000e-01 : f32
    %596 = vector.broadcast %cst_269 : f32 to vector<8x128xf32>
    %597 = arith.mulf %596, %595 : vector<8x128xf32>
    %598 = math.tanh %597 : vector<8x128xf32>
    %cst_270 = arith.constant 5.000000e-01 : f32
    %599 = vector.broadcast %cst_270 : f32 to vector<8x128xf32>
    %600 = arith.mulf %599, %598 : vector<8x128xf32>
    %cst_271 = arith.constant 5.000000e-01 : f32
    %601 = vector.broadcast %cst_271 : f32 to vector<8x128xf32>
    %602 = arith.addf %600, %601 : vector<8x128xf32>
    %603 = vector.extract_strided_slice %586 {offsets = [0, 256], sizes = [8, 128], strides = [1, 1]} : vector<8x512xf32> to vector<8x128xf32>
    %604 = math.tanh %603 : vector<8x128xf32>
    %605 = vector.extract_strided_slice %586 {offsets = [0, 384], sizes = [8, 128], strides = [1, 1]} : vector<8x512xf32> to vector<8x128xf32>
    %cst_272 = arith.constant 5.000000e-01 : f32
    %606 = vector.broadcast %cst_272 : f32 to vector<8x128xf32>
    %607 = arith.mulf %606, %605 : vector<8x128xf32>
    %608 = math.tanh %607 : vector<8x128xf32>
    %cst_273 = arith.constant 5.000000e-01 : f32
    %609 = vector.broadcast %cst_273 : f32 to vector<8x128xf32>
    %610 = arith.mulf %609, %608 : vector<8x128xf32>
    %cst_274 = arith.constant 5.000000e-01 : f32
    %611 = vector.broadcast %cst_274 : f32 to vector<8x128xf32>
    %612 = arith.addf %610, %611 : vector<8x128xf32>
    %613 = arith.mulf %602, %534 : vector<8x128xf32>
    %614 = arith.mulf %594, %604 : vector<8x128xf32>
    %615 = arith.addf %613, %614 : vector<8x128xf32>
    %616 = math.tanh %615 : vector<8x128xf32>
    %617 = arith.mulf %612, %616 : vector<8x128xf32>
    %c1_275 = arith.constant 1 : index
    %c128_276 = arith.constant 128 : index
    %c0_277 = arith.constant 0 : index
    %618 = vector.load %arg4[%c1_275, %c128_276, %c0_277] : memref<2x256x512xf32, #tpu.memory_space<vmem>>, vector<1x128x512xf32>
    %619 = vector.shape_cast %618 : vector<1x128x512xf32> to vector<128x512xf32>
    %cst_278 = arith.constant dense<0.000000e+00> : vector<8x512xf32>
    %620 = tpu.matmul %578, %619, %cst_278 {dimension_numbers = #tpu.dot_dimension_numbers<[1], [0], [0], [1], [0, 0, 1, 1], [], []>} : vector<8x128xf32>, vector<128x512xf32>, vector<8x512xf32> -> vector<8x512xf32>
    %c1_279 = arith.constant 1 : index
    %c0_280 = arith.constant 0 : index
    %c0_281 = arith.constant 0 : index
    %621 = vector.load %arg4[%c1_279, %c0_280, %c0_281] : memref<2x256x512xf32, #tpu.memory_space<vmem>>, vector<1x128x512xf32>
    %622 = vector.shape_cast %621 : vector<1x128x512xf32> to vector<128x512xf32>
    %cst_282 = arith.constant dense<0.000000e+00> : vector<8x512xf32>
    %623 = tpu.matmul %617, %622, %cst_282 {dimension_numbers = #tpu.dot_dimension_numbers<[1], [0], [0], [1], [0, 0, 1, 1], [], []>} : vector<8x128xf32>, vector<128x512xf32>, vector<8x512xf32> -> vector<8x512xf32>
    %624 = arith.addf %620, %623 : vector<8x512xf32>
    %c1_283 = arith.constant 1 : index
    %c0_284 = arith.constant 0 : index
    %c0_285 = arith.constant 0 : index
    %625 = vector.load %arg5[%c1_283, %c0_284, %c0_285] : memref<2x1x512xf32, #tpu.memory_space<vmem>>, vector<1x1x512xf32>
    %626 = vector.shape_cast %625 : vector<1x1x512xf32> to vector<1x512xf32>
    %627 = vector.broadcast %626 : vector<1x512xf32> to vector<8x512xf32>
    %628 = arith.addf %624, %627 : vector<8x512xf32>
    %629 = vector.extract_strided_slice %628 {offsets = [0, 0], sizes = [8, 128], strides = [1, 1]} : vector<8x512xf32> to vector<8x128xf32>
    %cst_286 = arith.constant 5.000000e-01 : f32
    %630 = vector.broadcast %cst_286 : f32 to vector<8x128xf32>
    %631 = arith.mulf %630, %629 : vector<8x128xf32>
    %632 = math.tanh %631 : vector<8x128xf32>
    %cst_287 = arith.constant 5.000000e-01 : f32
    %633 = vector.broadcast %cst_287 : f32 to vector<8x128xf32>
    %634 = arith.mulf %633, %632 : vector<8x128xf32>
    %cst_288 = arith.constant 5.000000e-01 : f32
    %635 = vector.broadcast %cst_288 : f32 to vector<8x128xf32>
    %636 = arith.addf %634, %635 : vector<8x128xf32>
    %637 = vector.extract_strided_slice %628 {offsets = [0, 128], sizes = [8, 128], strides = [1, 1]} : vector<8x512xf32> to vector<8x128xf32>
    %cst_289 = arith.constant 5.000000e-01 : f32
    %638 = vector.broadcast %cst_289 : f32 to vector<8x128xf32>
    %639 = arith.mulf %638, %637 : vector<8x128xf32>
    %640 = math.tanh %639 : vector<8x128xf32>
    %cst_290 = arith.constant 5.000000e-01 : f32
    %641 = vector.broadcast %cst_290 : f32 to vector<8x128xf32>
    %642 = arith.mulf %641, %640 : vector<8x128xf32>
    %cst_291 = arith.constant 5.000000e-01 : f32
    %643 = vector.broadcast %cst_291 : f32 to vector<8x128xf32>
    %644 = arith.addf %642, %643 : vector<8x128xf32>
    %645 = vector.extract_strided_slice %628 {offsets = [0, 256], sizes = [8, 128], strides = [1, 1]} : vector<8x512xf32> to vector<8x128xf32>
    %646 = math.tanh %645 : vector<8x128xf32>
    %647 = vector.extract_strided_slice %628 {offsets = [0, 384], sizes = [8, 128], strides = [1, 1]} : vector<8x512xf32> to vector<8x128xf32>
    %cst_292 = arith.constant 5.000000e-01 : f32
    %648 = vector.broadcast %cst_292 : f32 to vector<8x128xf32>
    %649 = arith.mulf %648, %647 : vector<8x128xf32>
    %650 = math.tanh %649 : vector<8x128xf32>
    %cst_293 = arith.constant 5.000000e-01 : f32
    %651 = vector.broadcast %cst_293 : f32 to vector<8x128xf32>
    %652 = arith.mulf %651, %650 : vector<8x128xf32>
    %cst_294 = arith.constant 5.000000e-01 : f32
    %653 = vector.broadcast %cst_294 : f32 to vector<8x128xf32>
    %654 = arith.addf %652, %653 : vector<8x128xf32>
    %655 = arith.mulf %644, %576 : vector<8x128xf32>
    %656 = arith.mulf %636, %646 : vector<8x128xf32>
    %657 = arith.addf %655, %656 : vector<8x128xf32>
    %658 = math.tanh %657 : vector<8x128xf32>
    %659 = arith.mulf %654, %658 : vector<8x128xf32>
    %660 = arith.index_cast %c7_i32 : i32 to index
    %c0_295 = arith.constant 0 : index
    %c0_296 = arith.constant 0 : index
    %661 = vector.load %arg9[%660, %c0_295, %c0_296] : memref<8x8x128xf32, #tpu.memory_space<vmem>>, vector<1x8x128xf32>
    %662 = vector.shape_cast %661 : vector<1x8x128xf32> to vector<8x128xf32>
    %663 = vector.shape_cast %659 : vector<8x128xf32> to vector<1x8x128xf32>
    tpu.vector_store %arg9[%660, %c0_295, %c0_296], %663 {strides = array<i32>} : memref<8x8x128xf32, #tpu.memory_space<vmem>>, vector<1x8x128xf32>,
    %c8_i32 = arith.constant 8 : i32
    %c0_297 = arith.constant 0 : index
    %c0_298 = arith.constant 0 : index
    %c0_299 = arith.constant 0 : index
    %664 = vector.load %arg9[%c0_297, %c0_298, %c0_299] : memref<8x8x128xf32, #tpu.memory_space<vmem>>, vector<8x8x128xf32>
    %665 = vector.shape_cast %664 : vector<8x8x128xf32> to vector<64x128xf32>
    %c0_300 = arith.constant 0 : index
    %c0_301 = arith.constant 0 : index
    %666 = vector.load %arg6[%c0_300, %c0_301] : memref<128x128xf32, #tpu.memory_space<vmem>>, vector<128x128xf32>
    %cst_302 = arith.constant dense<0.000000e+00> : vector<64x128xf32>
    %667 = tpu.matmul %665, %666, %cst_302 {dimension_numbers = #tpu.dot_dimension_numbers<[1], [0], [0], [1], [0, 0, 1, 1], [], []>} : vector<64x128xf32>, vector<128x128xf32>, vector<64x128xf32> -> vector<64x128xf32>
    %c0_303 = arith.constant 0 : index
    %c0_304 = arith.constant 0 : index
    %668 = vector.load %arg7[%c0_303, %c0_304] : memref<1x128xf32, #tpu.memory_space<vmem>>, vector<1x128xf32>
    %669 = vector.broadcast %668 : vector<1x128xf32> to vector<64x128xf32>
    %670 = arith.addf %667, %669 : vector<64x128xf32>
    %671 = tpu.iota {dimensions = array<i32: 1>} : vector<64x128xi32>
    %c5_i32_305 = arith.constant 5 : i32
    %672 = vector.broadcast %c5_i32_305 : i32 to vector<64x128xi32>
    %673 = arith.cmpi slt, %671, %672 : vector<64x128xi32>
    %c5_i32_306 = arith.constant 5 : i32
    %674 = vector.broadcast %c5_i32_306 : i32 to vector<64x128xi32>
    %675 = arith.cmpi eq, %671, %674 : vector<64x128xi32>
    %cst_307 = arith.constant 0xFF800000 : f32
    %676 = vector.broadcast %cst_307 : f32 to vector<64x128xf32>
    %677 = arith.select %673, %670, %676 : vector<64x128xi1>, vector<64x128xf32>
    %cst_308 = arith.constant dense<0xFF800000> : vector<64xf32>
    %678 = vector.multi_reduction <maximumf>, %677, %cst_308 [1] : vector<64x128xf32> to vector<64xf32>
    %679 = vector.shape_cast %678 : vector<64xf32> to vector<64x1xf32>
    %680 = vector.broadcast %679 : vector<64x1xf32> to vector<64x128xf32>
    %681 = arith.subf %670, %680 : vector<64x128xf32>
    %682 = math.exp %681 : vector<64x128xf32>
    %cst_309 = arith.constant 0.000000e+00 : f32
    %683 = vector.broadcast %cst_309 : f32 to vector<64x128xf32>
    %684 = arith.select %673, %682, %683 : vector<64x128xi1>, vector<64x128xf32>
    %cst_310 = arith.constant dense<0.000000e+00> : vector<64xf32>
    %685 = vector.multi_reduction <add>, %684, %cst_310 [1] : vector<64x128xf32> to vector<64xf32>
    %686 = vector.shape_cast %685 : vector<64xf32> to vector<64x1xf32>
    %687 = vector.broadcast %679 : vector<64x1xf32> to vector<64x128xf32>
    %688 = arith.subf %670, %687 : vector<64x128xf32>
    %689 = math.log %686 : vector<64x1xf32>
    %690 = vector.broadcast %689 : vector<64x1xf32> to vector<64x128xf32>
    %691 = arith.subf %688, %690 : vector<64x128xf32>
    %cst_311 = arith.constant 0.000000e+00 : f32
    %692 = vector.broadcast %cst_311 : f32 to vector<64x128xf32>
    %693 = arith.minimumf %670, %692 : vector<64x128xf32>
    %694 = math.absf %670 : vector<64x128xf32>
    %cst_312 = arith.constant 0.000000e+00 : f32
    %695 = vector.broadcast %cst_312 : f32 to vector<64x128xf32>
    %696 = arith.subf %695, %694 : vector<64x128xf32>
    %697 = math.exp %696 : vector<64x128xf32>
    %cst_313 = arith.constant 1.000000e+00 : f32
    %698 = vector.broadcast %cst_313 : f32 to vector<64x128xf32>
    %699 = arith.addf %698, %697 : vector<64x128xf32>
    %700 = math.log %699 : vector<64x128xf32>
    %701 = arith.subf %693, %700 : vector<64x128xf32>
    %cst_314 = arith.constant 0.000000e+00 : f32
    %702 = vector.broadcast %cst_314 : f32 to vector<64x128xf32>
    %703 = arith.select %675, %701, %702 : vector<64x128xi1>, vector<64x128xf32>
    %704 = arith.select %673, %691, %703 : vector<64x128xi1>, vector<64x128xf32>
    %705 = vector.shape_cast %704 : vector<64x128xf32> to vector<8x8x128xf32>
    %c0_315 = arith.constant 0 : index
    %c0_316 = arith.constant 0 : index
    %c0_317 = arith.constant 0 : index
    %706 = vector.load %arg8[%c0_315, %c0_316, %c0_317] : memref<8x8x128xf32, #tpu.memory_space<vmem>>, vector<8x8x128xf32>
    tpu.vector_store %arg8[%c0_315, %c0_316, %c0_317], %705 {strides = array<i32>} : memref<8x8x128xf32, #tpu.memory_space<vmem>>, vector<8x8x128xf32>,
    return
  }
  func.func @transform_0(%arg0: i32) -> (i32, i32) {
    %c0_i32 = arith.constant 0 : i32
    %c0_i32_0 = arith.constant 0 : i32
    return %arg0, %c0_i32 : i32, i32
  }
  func.func @transform_1(%arg0: i32) -> (i32, i32, i32) {
    %c0_i32 = arith.constant 0 : i32
    %c0_i32_0 = arith.constant 0 : i32
    %c0_i32_1 = arith.constant 0 : i32
    return %c0_i32, %arg0, %c0_i32_0 : i32, i32, i32
  }
  func.func @transform_2(%arg0: i32) -> (i32, i32, i32) {
    %c0_i32 = arith.constant 0 : i32
    %c0_i32_0 = arith.constant 0 : i32
    %c0_i32_1 = arith.constant 0 : i32
    return %c0_i32, %arg0, %c0_i32_0 : i32, i32, i32
  }
  func.func @transform_3(%arg0: i32) -> (i32, i32, i32) {
    %c0_i32 = arith.constant 0 : i32
    %c0_i32_0 = arith.constant 0 : i32
    %c0_i32_1 = arith.constant 0 : i32
    %c0_i32_2 = arith.constant 0 : i32
    return %c0_i32, %c0_i32_0, %c0_i32_1 : i32, i32, i32
  }
  func.func @transform_4(%arg0: i32) -> (i32, i32, i32) {
    %c0_i32 = arith.constant 0 : i32
    %c0_i32_0 = arith.constant 0 : i32
    %c0_i32_1 = arith.constant 0 : i32
    %c0_i32_2 = arith.constant 0 : i32
    return %c0_i32, %c0_i32_0, %c0_i32_1 : i32, i32, i32
  }
  func.func @transform_5(%arg0: i32) -> (i32, i32) {
    %c0_i32 = arith.constant 0 : i32
    %c0_i32_0 = arith.constant 0 : i32
    %c0_i32_1 = arith.constant 0 : i32
    return %c0_i32, %c0_i32_0 : i32, i32
  }
  func.func @transform_6(%arg0: i32) -> (i32, i32) {
    %c0_i32 = arith.constant 0 : i32
    %c0_i32_0 = arith.constant 0 : i32
    %c0_i32_1 = arith.constant 0 : i32
    return %c0_i32, %c0_i32_0 : i32, i32
  }
  func.func @transform_7(%arg0: i32) -> (i32, i32, i32) {
    %c0_i32 = arith.constant 0 : i32
    %c0_i32_0 = arith.constant 0 : i32
    %c0_i32_1 = arith.constant 0 : i32
    return %c0_i32, %arg0, %c0_i32_0 : i32, i32, i32
  }
}

</mosaic_0001>

<bundles_post_ra>
// kernel: tpu_custom_call.1
= control target key start
LH: loop header
LB: loop body
LE: loop exit
PB: predicated region body
PF: predicated region fallthrough
CT: control target
= control target key end

     0   :  { %12 = vsyncpa [#allocation4], 0  ;;  %s8418_s0 = inlined_call_operand.hbm [shape: f32[8,128], index: 0, kind: input, shape index: {}]   ;;  %s8419_s1 = inlined_call_operand.hbm [shape: f32[2,8,128], index: 1, kind: input, shape index: {}]   ;;  %s8420_s2 = inlined_call_operand.hbm [shape: f32[2,8,128], index: 2, kind: input, shape index: {}]   ;;  %s8421_s3 = inlined_call_operand.hbm [shape: f32[2,256,512], index: 3, kind: input, shape index: {}]   ;;  %s8422_s4 = inlined_call_operand.hbm [shape: f32[2,1,512], index: 4, kind: input, shape index: {}]   ;;  %s8423_s5 = inlined_call_operand.hbm [shape: f32[128,128], index: 5, kind: input, shape index: {}]   ;;  %s8424_s6 = inlined_call_operand.vmem [shape: f32[1,128], index: 6, kind: input, shape index: {}]   ;;  %s8425_s7 = inlined_call_operand.hbm [shape: f32[8,8,128], index: 7, kind: output, shape index: {}]  }
   0x1   :  { %13 = vsyncpa [#allocation7], 0 }
   0x2   :  { %14 = vsyncpa [#allocation10], 0 }
   0x3   :  { %15 = vsyncpa [#allocation13], 0  ;;  %s32_s26 = sshll.u32 %s8419_s1, 4  ;;  %s33_s26 = int_to_ptr.hbm [resolvable:$true] %s32_s26 }
   0x4   :  { %16 = vsyncpa [#allocation5], 0  ;;  %s4888_s27 = smov [#allocation6]   ;;  %s58_s8 = sshll.u32 %s8421_s3, 4  ;;  %s59_s8 = int_to_ptr.hbm [resolvable:$true] %s58_s8 }
   0x5   :  { %s34_s28 = sshll.u32 %s4888_s27, 4  ;;  %s4889_s9 = smov 128   ;;  %s35_s28 = int_to_ptr.vmem [resolvable:$true] %s34_s28 }
   0x6   :  { %s4890_s10 = smov 8   ;;  %s4891_s11 = smov [#allocation9]  }
   0x7   :  { %40 = dma.hbm_to_vmem [thread:$0]  %s33_s26, 256, %s35_s28, [#allocation7], %s4889_s9, %s4889_s9, %s4890_s10  }
   0x8   :  { %s60_s12 = sshll.u32 %s4891_s11, 4  ;;  %s4892_s1 = smov 512   ;;  %s61_s12 = int_to_ptr.vmem [resolvable:$true] %s60_s12 }
   0x9   :  { %s4893_s13 = smov 32   ;;  %s22_s16 = sshll.u32 %s8418_s0, 4  ;;  %s23_s16 = int_to_ptr.hbm [resolvable:$true] %s22_s16 }
   0xa   :  { %66 = dma.hbm_to_vmem [thread:$0]  %s59_s8, 32768, %s61_s12, [#allocation10], %s4892_s1, %s4892_s1, %s4893_s13  }
   0xb   :  { %s4894_s17 = smov [#allocation3]   ;;  %s45_s20 = sshll.u32 %s8420_s2, 4  ;;  %s46_s20 = int_to_ptr.hbm [resolvable:$true] %s45_s20 }
   0xc   :  { %s24_s3 = sshll.u32 %s4894_s17, 4  ;;  %s4895_s21 = smov [#allocation8]   ;;  %s25_s3 = int_to_ptr.vmem [resolvable:$true] %s24_s3 }
   0xd   :  { %27 = dma.hbm_to_vmem [thread:$0]  %s23_s16, 128, %s25_s3, [#allocation4]  }
   0xe   :  { %s47_s22 = sshll.u32 %s4895_s21, 4  ;;  %s71_s25 = sshll.u32 %s8422_s4, 4  ;;  %s48_s22 = int_to_ptr.vmem [resolvable:$true] %s47_s22  ;;  %s72_s25 = int_to_ptr.hbm [resolvable:$true] %s71_s25 }
   0xf   :  { %53 = dma.hbm_to_vmem [thread:$0]  %s46_s20, 256, %s48_s22, [#allocation7], %s4889_s9, %s4889_s9, %s4890_s10  }
  0x10   :  { %s4896_s0 = smov [#allocation11]   ;;  %s84_s2 = sshll.u32 %s8423_s5, 4  ;;  %s85_s2 = int_to_ptr.hbm [resolvable:$true] %s84_s2 }
  0x11   :  { %s73_s26 = sshll.u32 %s4896_s0, 4  ;;  %s4897_s29 = smov 64   ;;  %s74_s26 = int_to_ptr.vmem [resolvable:$true] %s73_s26 }
  0x12   :  { %s4898_s30 = smov 4   ;;  %s4899_s8 = smov [#allocation12]  }
  0x13   :  { %79 = dma.hbm_to_vmem [thread:$0]  %s72_s25, 128, %s74_s26, [#allocation10], %s4897_s29, %s4897_s29, %s4898_s30  }
  0x14   :  { %s86_s11 = sshll.u32 %s4899_s8, 4  ;;  %s87_s11 = int_to_ptr.vmem [resolvable:$true] %s86_s11 }
  0x15   :  { %92 = dma.hbm_to_vmem [thread:$0]  %s85_s2, 2048, %s87_s11, [#allocation13], %s4889_s9, %s4889_s9, %s4890_s10  }
  0x16   :  { %4878 = dma.done.wait [#allocation4], 128  }
  0x17   :  { %4879 = vsyncadd [#allocation4], 4294967168 }
  0x18   :  { %4880 = dma.done.wait [#allocation7], 512  }
  0x19   :  { %4881 = vsyncadd [#allocation7], 4294966784 }
  0x1a   :  { %4882 = dma.done.wait [#allocation10], 32896  }
  0x1b   :  { %4883 = vsyncadd [#allocation10], 4294934400 }
  0x1c   :  { %4884 = dma.done.wait [#allocation13], 2048  }
  0x1d   :  { %4885 = vsyncadd [#allocation13], 4294965248  ;;  %v180_v0 = vld [vmem:[#allocation9 + $0x1e0] sm:$0xff]  ;;  %v182_v1 = vld [vmem:[#allocation9 + $0x1f0] sm:$0xff]  ;;  %s4456_s14 = sshll.u32 %s8425_s7, 4  ;;  %s4457_s14 = int_to_ptr.hbm [resolvable:$true] %s4456_s14 }
  0x1e   :  { %v176_v2 = vld [vmem:[#allocation9 + $0x1c0] sm:$0xff]  ;;  %194 = vmatpush.msra.mxu1 %v180_v0  ;;  %234 = vmatpush.msra.mxu2 %v182_v1  ;;  %v178_v3 = vld [vmem:[#allocation9 + $0x1d0] sm:$0xff]  ;;  %v183_v14 = vld [vmem:[#allocation9 + $0x1f8] sm:$0xff] }
  0x1f   :  { %v172_v4 = vld [vmem:[#allocation9 + $0x1a0] sm:$0xff]  ;;  %v174_v5 = vld [vmem:[#allocation9 + $0x1b0] sm:$0xff]  ;;  %v179_v15 = vld [vmem:[#allocation9 + $0x1d8] sm:$0xff]  ;;  %254 = vmatpush.msra.mxu3 %v183_v14 }
  0x20   :  { %195 = vmatpush.msra.mxu1 %v176_v2  ;;  %235 = vmatpush.msra.mxu2 %v178_v3  ;;  %v168_v6 = vld [vmem:[#allocation9 + $0x180] sm:$0xff]  ;;  %v170_v7 = vld [vmem:[#allocation9 + $0x190] sm:$0xff]  ;;  %v175_v18 = vld [vmem:[#allocation9 + $0x1b8] sm:$0xff] }
  0x21   :  { %v164_v8 = vld [vmem:[#allocation9 + $0x160] sm:$0xff]  ;;  %v166_v9 = vld [vmem:[#allocation9 + $0x170] sm:$0xff]  ;;  %255 = vmatpush.msra.mxu3 %v179_v15  ;;  %v171_v21 = vld [vmem:[#allocation9 + $0x198] sm:$0xff] }
  0x22   :  { %196 = vmatpush.msra.mxu1 %v172_v4  ;;  %236 = vmatpush.msra.mxu2 %v174_v5  ;;  %v160_v10 = vld [vmem:[#allocation9 + $0x140] sm:$0xff]  ;;  %v162_v11 = vld [vmem:[#allocation9 + $0x150] sm:$0xff]  ;;  %v167_v24 = vld [vmem:[#allocation9 + $0x178] sm:$0xff] }
  0x23   :  { %v156_v12 = vld [vmem:[#allocation9 + $0x120] sm:$0xff]  ;;  %v158_v13 = vld [vmem:[#allocation9 + $0x130] sm:$0xff]  ;;  %256 = vmatpush.msra.mxu3 %v175_v18  ;;  %v163_v27 = vld [vmem:[#allocation9 + $0x158] sm:$0xff] }
  0x24   :  { %197 = vmatpush.msra.mxu1 %v168_v6  ;;  %237 = vmatpush.msra.mxu2 %v170_v7  ;;  %v152_v16 = vld [vmem:[#allocation9 + $0x100] sm:$0xff]  ;;  %v154_v17 = vld [vmem:[#allocation9 + $0x110] sm:$0xff]  ;;  %v159_v30 = vld [vmem:[#allocation9 + $0x138] sm:$0xff] }
  0x25   :  { %v148_v19 = vld [vmem:[#allocation9 + $0xe0] sm:$0xff]  ;;  %v150_v20 = vld [vmem:[#allocation9 + $0xf0] sm:$0xff]  ;;  %257 = vmatpush.msra.mxu3 %v171_v21  ;;  %v155_v33 = vld [vmem:[#allocation9 + $0x118] sm:$0xff] }
  0x26   :  { %198 = vmatpush.msra.mxu1 %v164_v8  ;;  %238 = vmatpush.msra.mxu2 %v166_v9  ;;  %v144_v22 = vld [vmem:[#allocation9 + $0xc0] sm:$0xff]  ;;  %v146_v23 = vld [vmem:[#allocation9 + $0xd0] sm:$0xff]  ;;  %v151_v36 = vld [vmem:[#allocation9 + $0xf8] sm:$0xff] }
  0x27   :  { %v140_v25 = vld [vmem:[#allocation9 + $0xa0] sm:$0xff]  ;;  %v142_v26 = vld [vmem:[#allocation9 + $0xb0] sm:$0xff]  ;;  %258 = vmatpush.msra.mxu3 %v167_v24  ;;  %v147_v39 = vld [vmem:[#allocation9 + $0xd8] sm:$0xff] }
  0x28   :  { %199 = vmatpush.msra.mxu1 %v160_v10  ;;  %239 = vmatpush.msra.mxu2 %v162_v11  ;;  %v136_v28 = vld [vmem:[#allocation9 + $0x80] sm:$0xff]  ;;  %v138_v29 = vld [vmem:[#allocation9 + $0x90] sm:$0xff]  ;;  %v181_v42 = vld [vmem:[#allocation9 + $0x1e8] sm:$0xff] }
  0x29   :  { %v132_v31 = vld [vmem:[#allocation9 + $0x60] sm:$0xff]  ;;  %v134_v32 = vld [vmem:[#allocation9 + $0x70] sm:$0xff]  ;;  %259 = vmatpush.msra.mxu3 %v163_v27  ;;  %v143_v44 = vld [vmem:[#allocation9 + $0xb8] sm:$0xff] }
  0x2a   :  { %200 = vmatpush.msra.mxu1 %v156_v12  ;;  %240 = vmatpush.msra.mxu2 %v158_v13  ;;  %v128_v34 = vld [vmem:[#allocation9 + $0x40] sm:$0xff]  ;;  %v130_v35 = vld [vmem:[#allocation9 + $0x50] sm:$0xff]  ;;  %v4970_v45 = vld [vmem:[#allocation3] sm:$0xff] }
  0x2b   :  { %260 = vmatpush.msra.mxu3 %v159_v30  ;;  %v124_v37 = vld [vmem:[#allocation9 + $0x20] sm:$0xff]  ;;  %v126_v38 = vld [vmem:[#allocation9 + $0x30] sm:$0xff]  ;;  %v177_v46 = vld [vmem:[#allocation9 + $0x1c8] sm:$0xff] }
  0x2c   :  { %201 = vmatpush.msra.mxu1 %v152_v16  ;;  %241 = vmatpush.msra.mxu2 %v154_v17  ;;  %v120_v40 = vld [vmem:[#allocation9] sm:$0xff]  ;;  %v122_v41 = vld [vmem:[#allocation9 + $0x10] sm:$0xff]  ;;  %v139_v48 = vld [vmem:[#allocation9 + $0x98] sm:$0xff] }
  0x2d   :  { %261 = vmatpush.msra.mxu3 %v155_v33  ;;  %v4968_v43 = vld [vmem:[#allocation9 + $0x3e0] sm:$0xff]  ;;  %v173_v49 = vld [vmem:[#allocation9 + $0x1a8] sm:$0xff]  ;;  %v135_v51 = vld [vmem:[#allocation9 + $0x78] sm:$0xff] }
  0x2e   :  { %202 = vmatpush.msra.mxu1 %v148_v19  ;;  %242 = vmatpush.msra.mxu2 %v150_v20  ;;  %v4972_v47 = vld [vmem:[#allocation9 + $0x3c0] sm:$0xff]  ;;  %v169_v52 = vld [vmem:[#allocation9 + $0x188] sm:$0xff]  ;;  %v131_v54 = vld [vmem:[#allocation9 + $0x58] sm:$0xff] }
  0x2f   :  { %262 = vmatpush.msra.mxu3 %v151_v36  ;;  %v4975_v50 = vld [vmem:[#allocation9 + $0x3a0] sm:$0xff]  ;;  %v165_v55 = vld [vmem:[#allocation9 + $0x168] sm:$0xff]  ;;  %v127_v57 = vld [vmem:[#allocation9 + $0x38] sm:$0xff] }
  0x30   :  { %203 = vmatpush.msra.mxu1 %v144_v22  ;;  %243 = vmatpush.msra.mxu2 %v146_v23  ;;  %v4979_v53 = vld [vmem:[#allocation9 + $0x380] sm:$0xff]  ;;  %v161_v58 = vld [vmem:[#allocation9 + $0x148] sm:$0xff]  ;;  %v123_v60 = vld [vmem:[#allocation9 + $0x18] sm:$0xff] }
  0x31   :  { %263 = vmatpush.msra.mxu3 %v147_v39  ;;  %v4983_v56 = vld [vmem:[#allocation9 + $0x360] sm:$0xff]  ;;  %v157_v61 = vld [vmem:[#allocation9 + $0x128] sm:$0xff]  ;;  %v4987_v63 = vld [vmem:[#allocation9 + $0x3f8] sm:$0xff] }
  0x32   :  { %204 = vmatpush.msra.mxu1 %v140_v25  ;;  %244 = vmatpush.msra.mxu2 %v142_v26  ;;  %v320_v59 = vld [vmem:[#allocation9 + $0x340] sm:$0xff]  ;;  %v153_v0 = vld [vmem:[#allocation9 + $0x108] sm:$0xff]  ;;  %v4989_v2 = vld [vmem:[#allocation9 + $0x3d8] sm:$0xff] }
  0x33   :  { %264 = vmatpush.msra.mxu3 %v143_v44  ;;  %v316_v62 = vld [vmem:[#allocation9 + $0x320] sm:$0xff]  ;;  %v149_v3 = vld [vmem:[#allocation9 + $0xe8] sm:$0xff]  ;;  %v4992_v5 = vld [vmem:[#allocation9 + $0x3b8] sm:$0xff] }
  0x34   :  { %205 = vmatpush.msra.mxu1 %v136_v28  ;;  %245 = vmatpush.msra.mxu2 %v138_v29  ;;  %v312_v1 = vld [vmem:[#allocation9 + $0x300] sm:$0xff]  ;;  %v145_v6 = vld [vmem:[#allocation9 + $0xc8] sm:$0xff]  ;;  %v4995_v8 = vld [vmem:[#allocation9 + $0x398] sm:$0xff] }
  0x35   :  { %265 = vmatpush.msra.mxu3 %v139_v48  ;;  %v308_v4 = vld [vmem:[#allocation9 + $0x2e0] sm:$0xff]  ;;  %v141_v9 = vld [vmem:[#allocation9 + $0xa8] sm:$0xff]  ;;  %v4998_v11 = vld [vmem:[#allocation9 + $0x378] sm:$0xff] }
  0x36   :  { %206 = vmatpush.msra.mxu1 %v132_v31  ;;  %246 = vmatpush.msra.mxu2 %v134_v32  ;;  %v304_v7 = vld [vmem:[#allocation9 + $0x2c0] sm:$0xff]  ;;  %v137_v12 = vld [vmem:[#allocation9 + $0x88] sm:$0xff]  ;;  %v5001_v14 = vld [vmem:[#allocation9 + $0x358] sm:$0xff] }
  0x37   :  { %266 = vmatpush.msra.mxu3 %v135_v51  ;;  %v300_v10 = vld [vmem:[#allocation9 + $0x2a0] sm:$0xff]  ;;  %v133_v15 = vld [vmem:[#allocation9 + $0x68] sm:$0xff]  ;;  %v5004_v17 = vld [vmem:[#allocation9 + $0x338] sm:$0xff] }
  0x38   :  { %207 = vmatpush.msra.mxu1 %v128_v34  ;;  %247 = vmatpush.msra.mxu2 %v130_v35  ;;  %v296_v13 = vld [vmem:[#allocation9 + $0x280] sm:$0xff]  ;;  %v129_v18 = vld [vmem:[#allocation9 + $0x48] sm:$0xff]  ;;  %v5007_v20 = vld [vmem:[#allocation9 + $0x318] sm:$0xff] }
  0x39   :  { %267 = vmatpush.msra.mxu3 %v131_v54  ;;  %v292_v16 = vld [vmem:[#allocation9 + $0x260] sm:$0xff]  ;;  %v125_v21 = vld [vmem:[#allocation9 + $0x28] sm:$0xff]  ;;  %v5010_v23 = vld [vmem:[#allocation9 + $0x2f8] sm:$0xff] }
  0x3a   :  { %208 = vmatpush.msra.mxu1 %v124_v37  ;;  %248 = vmatpush.msra.mxu2 %v126_v38  ;;  %v288_v19 = vld [vmem:[#allocation9 + $0x240] sm:$0xff]  ;;  %v121_v24 = vld [vmem:[#allocation9 + $0x8] sm:$0xff]  ;;  %v5017_v28 = vld [vmem:[#allocation9 + $0x3f0] sm:$0xff] }
  0x3b   :  { %268 = vmatpush.msra.mxu3 %v127_v57  ;;  %v284_v22 = vld [vmem:[#allocation9 + $0x220] sm:$0xff]  ;;  %v5015_v27 = vld [vmem:[#allocation9 + $0x3e8] sm:$0xff]  ;;  %v5020_v29 = vld [vmem:[#allocation9 + $0x2d8] sm:$0xff] }
  0x3c   :  { %209 = vmatpush.msra.mxu1 %v120_v40  ;;  %249 = vmatpush.msra.mxu2 %v122_v41  ;;  %v280_v25 = vld [vmem:[#allocation9 + $0x200] sm:$0xff]  ;;  %v5022_v30 = vld [vmem:[#allocation9 + $0x3c8] sm:$0xff]  ;;  %v5026_v31 = vld [vmem:[#allocation9 + $0x3d0] sm:$0xff] }
  0x3d   :  { %250 = vmatmul.f32.vlgmr.msra.gmra.mxu2 %v4970_v45  ;;  %210 = vmatmul.f32.vlgmr.msra.gmra.mxu1 %v4970_v45  ;;  %v5013_v26 = vld [vmem:[#allocation6] sm:$0xff]  ;;  %v5028_v32 = vld [vmem:[#allocation9 + $0x2b8] sm:$0xff]  ;;  %v5031_v33 = vld [vmem:[#allocation9 + $0x3a8] sm:$0xff] }
  0x3e   :  { %214 = vmatpush.msrb.mxu1 %v181_v42  ;;  %344 = vmatpush.msrb.mxu2 %v4968_v43  ;;  %v5035_v34 = vld [vmem:[#allocation9 + $0x3b0] sm:$0xff]  ;;  %v5037_v35 = vld [vmem:[#allocation9 + $0x298] sm:$0xff]  ;;  %v5041_v36 = vld [vmem:[#allocation9 + $0x388] sm:$0xff] }
  0x3f   :  { %269 = vmatpush.msra.mxu3 %v123_v60  ;;  %v5045_v37 = vld [vmem:[#allocation9 + $0x390] sm:$0xff]  ;;  %v5048_v38 = vld [vmem:[#allocation9 + $0x368] sm:$0xff]  ;;  %v5051_v39 = vld [vmem:[#allocation9 + $0x278] sm:$0xff] }
  0x40   :  { %215 = vmatpush.msrb.mxu1 %v177_v46  ;;  %345 = vmatpush.msrb.mxu2 %v4972_v47  ;;  %v5054_v40 = vld [vmem:[#allocation9 + $0x370] sm:$0xff]  ;;  %v5057_v41 = vld [vmem:[#allocation9 + $0x348] sm:$0xff]  ;;  %v5060_v42 = vld [vmem:[#allocation9 + $0x258] sm:$0xff] }
  0x41   :  { %404 = vmatpush.msrb.mxu3 %v4987_v63  ;;  %9015 = vst [vmem:[#allocation20_spill] sm:$0xff] %v5060_v42  ;;  %v5063_v44 = vld [vmem:[#allocation9 + $0x350] sm:$0xff]  ;;  %v5067_v46 = vld [vmem:[#allocation9 + $0x328] sm:$0xff]  ;;  %v5069_v48 = vld [vmem:[#allocation9 + $0x238] sm:$0xff] }
  0x42   :  { %216 = vmatpush.msrb.mxu1 %v173_v49  ;;  %346 = vmatpush.msrb.mxu2 %v4975_v50  ;;  %9016 = vst [vmem:[#allocation21_spill] sm:$0xff] %v5069_v48  ;;  %v5072_v49 = vld [vmem:[#allocation9 + $0x330] sm:$0xff]  ;;  %v5078_v51 = vld [vmem:[#allocation9 + $0x218] sm:$0xff]  ;;  %v5085_v54 = vld [vmem:[#allocation9 + $0x2e8] sm:$0xff] }
  0x43   :  { %405 = vmatpush.msrb.mxu3 %v4989_v2  ;;  %9017 = vst [vmem:[#allocation22_spill] sm:$0xff] %v5078_v51  ;;  %v5092_v57 = vld [vmem:[#allocation9 + $0x2c8] sm:$0xff]  ;;  %v5102_v60 = vld [vmem:[#allocation9 + $0x2b0] sm:$0xff] }
  0x44   :  { %217 = vmatpush.msrb.mxu1 %v169_v52  ;;  %347 = vmatpush.msrb.mxu2 %v4979_v53  ;;  %v5081_v52 = vld [vmem:[#allocation9 + $0x310] sm:$0xff] }
  0x45   :  { %406 = vmatpush.msrb.mxu3 %v4992_v5 }
  0x46   :  { %218 = vmatpush.msrb.mxu1 %v165_v55  ;;  %348 = vmatpush.msrb.mxu2 %v4983_v56  ;;  %v5088_v55 = vld [vmem:[#allocation9 + $0x2f0] sm:$0xff] }
  0x47   :  { %407 = vmatpush.msrb.mxu3 %v4995_v8 }
  0x48   :  { %219 = vmatpush.msrb.mxu1 %v161_v58  ;;  %349 = vmatpush.msrb.mxu2 %v320_v59  ;;  %v5096_v58 = vld [vmem:[#allocation9 + $0x2d0] sm:$0xff]  ;;  %v5099_v59 = vld [vmem:[#allocation9 + $0x2a8] sm:$0xff] }
  0x49   :  { %408 = vmatpush.msrb.mxu3 %v4998_v11 }
  0x4a   :  { %220 = vmatpush.msrb.mxu1 %v157_v61  ;;  %350 = vmatpush.msrb.mxu2 %v316_v62  ;;  %v5105_v61 = vld [vmem:[#allocation9 + $0x288] sm:$0xff]  ;;  %v5108_v62 = vld [vmem:[#allocation9 + $0x290] sm:$0xff] }
  0x4b   :  { %409 = vmatpush.msrb.mxu3 %v5001_v14 }
  0x4c   :  { %221 = vmatpush.msrb.mxu1 %v153_v0  ;;  %351 = vmatpush.msrb.mxu2 %v312_v1  ;;  %v5111_v0 = vld [vmem:[#allocation9 + $0x268] sm:$0xff]  ;;  %v5114_v1 = vld [vmem:[#allocation9 + $0x270] sm:$0xff] }
  0x4d   :  { %410 = vmatpush.msrb.mxu3 %v5004_v17 }
  0x4e   :  { %222 = vmatpush.msrb.mxu1 %v149_v3  ;;  %352 = vmatpush.msrb.mxu2 %v308_v4  ;;  %v5117_v3 = vld [vmem:[#allocation9 + $0x248] sm:$0xff]  ;;  %v5120_v4 = vld [vmem:[#allocation9 + $0x250] sm:$0xff] }
  0x4f   :  { %411 = vmatpush.msrb.mxu3 %v5007_v20  ;;  %9018 = vst [vmem:[#allocation23_spill] sm:$0xff] %v5120_v4 }
  0x50   :  { %223 = vmatpush.msrb.mxu1 %v145_v6  ;;  %353 = vmatpush.msrb.mxu2 %v304_v7  ;;  %v5123_v6 = vld [vmem:[#allocation9 + $0x228] sm:$0xff]  ;;  %v5126_v7 = vld [vmem:[#allocation9 + $0x230] sm:$0xff] }
  0x51   :  { %412 = vmatpush.msrb.mxu3 %v5010_v23  ;;  %9019 = vst [vmem:[#allocation24_spill] sm:$0xff] %v5123_v6 }
  0x52   :  { %224 = vmatpush.msrb.mxu1 %v141_v9  ;;  %354 = vmatpush.msrb.mxu2 %v300_v10  ;;  %9020 = vst [vmem:[#allocation25_spill] sm:$0xff] %v5126_v7  ;;  %v5129_v9 = vld [vmem:[#allocation9 + $0x208] sm:$0xff]  ;;  %v5132_v10 = vld [vmem:[#allocation9 + $0x210] sm:$0xff] }
  0x53   :  { %413 = vmatpush.msrb.mxu3 %v5020_v29  ;;  %9021 = vst [vmem:[#allocation26_spill] sm:$0xff] %v5129_v9 }
  0x54   :  { %225 = vmatpush.msrb.mxu1 %v137_v12  ;;  %355 = vmatpush.msrb.mxu2 %v296_v13  ;;  %9022 = vst [vmem:[#allocation27_spill] sm:$0xff] %v5132_v10  ;;  %v5139_v12 = vld [vmem:[#allocation9 + $0x5e0] sm:$0xff]  ;;  %v5141_v13 = vld [vmem:[#allocation9 + $0x5e8] sm:$0xff] }
  0x55   :  { %270 = vmatmul.f32.vlgmr.msra.gmra.mxu3 %v4970_v45  ;;  %9023 = vst [vmem:[#allocation28_spill] sm:$0xff] %v5139_v12  ;;  %575 = vmatpush.msra.mxu0 %v5139_v12  ;;  %v5315_v12 = vld [vmem:[#allocation9 + $0x400] sm:$0xff] }
  0x56   :  { %226 = vmatpush.msrb.mxu1 %v133_v15  ;;  %356 = vmatpush.msrb.mxu2 %v292_v16  ;;  %9024 = vst [vmem:[#allocation29_spill] sm:$0xff] %v5141_v13  ;;  %v5143_v15 = vld [vmem:[#allocation9 + $0x5f0] sm:$0xff]  ;;  %v5147_v16 = vld [vmem:[#allocation9 + $0x5f8] sm:$0xff] }
  0x57   :  { %414 = vmatpush.msrb.mxu3 %v5028_v32  ;;  %9025 = vst [vmem:[#allocation30_spill] sm:$0xff] %v5143_v15 }
  0x58   :  { %227 = vmatpush.msrb.mxu1 %v129_v18  ;;  %357 = vmatpush.msrb.mxu2 %v288_v19  ;;  %9026 = vst [vmem:[#allocation31_spill] sm:$0xff] %v5147_v16  ;;  %v5149_v18 = vld [vmem:[#allocation9 + $0x5c0] sm:$0xff]  ;;  %v5151_v19 = vld [vmem:[#allocation9 + $0x5c8] sm:$0xff] }
  0x59   :  { %415 = vmatpush.msrb.mxu3 %v5037_v35  ;;  %9027 = vst [vmem:[#allocation32_spill] sm:$0xff] %v5149_v18  ;;  %576 = vmatpush.msra.mxu0 %v5149_v18  ;;  %v5177_v18 = vld [vmem:[#allocation9 + $0x590] sm:$0xff] }
  0x5a   :  { %228 = vmatpush.msrb.mxu1 %v125_v21  ;;  %358 = vmatpush.msrb.mxu2 %v284_v22  ;;  %9028 = vst [vmem:[#allocation33_spill] sm:$0xff] %v5151_v19  ;;  %v5155_v21 = vld [vmem:[#allocation9 + $0x5d0] sm:$0xff]  ;;  %v5157_v22 = vld [vmem:[#allocation9 + $0x5d8] sm:$0xff] }
  0x5b   :  { %416 = vmatpush.msrb.mxu3 %v5051_v39  ;;  %9029 = vst [vmem:[#allocation34_spill] sm:$0xff] %v5155_v21 }
  0x5c   :  { %229 = vmatpush.msrb.mxu1 %v121_v24  ;;  %359 = vmatpush.msrb.mxu2 %v280_v25  ;;  %9030 = vst [vmem:[#allocation35_spill] sm:$0xff] %v5157_v22  ;;  %v5159_v24 = vld [vmem:[#allocation9 + $0x5a0] sm:$0xff]  ;;  %v5163_v25 = vld [vmem:[#allocation9 + $0x5a8] sm:$0xff] }
  0x5d   :  { %360 = vmatmul.f32.vlgmr.msrb.gmra.mxu2 %v5013_v26  ;;  %230 = vmatmul.f32.vlgmr.msrb.gmra.mxu1 %v4970_v45  ;;  %v5076_v45 = vld [vmem:[#allocation9 + $0x308] sm:$0xff]  ;;  %9031 = vst [vmem:[#allocation36_spill] sm:$0xff] %v5159_v24 }
  0x5e   :  { %364 = vmatpush.msra.mxu1 %v5015_v27  ;;  %384 = vmatpush.msra.mxu2 %v5017_v28  ;;  %9032 = vst [vmem:[#allocation37_spill] sm:$0xff] %v5163_v25 }
  0x5f   :  { %417 = vmatpush.msrb.mxu3 %v5060_v42  ;;  %577 = vmatpush.msra.mxu0 %v5159_v24  ;;  %9037 = vst [vmem:[#allocation42_spill] sm:$0xff] %v5177_v18  ;;  %v5189_v24 = vld [vmem:[#allocation9 + $0x568] sm:$0xff] }
  0x60   :  { %365 = vmatpush.msra.mxu1 %v5022_v30  ;;  %385 = vmatpush.msra.mxu2 %v5026_v31  ;;  %9040 = vst [vmem:[#allocation45_spill] sm:$0xff] %v5189_v24 }
  0x61   :  { %418 = vmatpush.msrb.mxu3 %v5069_v48  ;;  %9083 = vst [vmem:[#allocation88_spill] sm:$0xff] %v5315_v12 }
  0x62   :  { %366 = vmatpush.msra.mxu1 %v5031_v33  ;;  %386 = vmatpush.msra.mxu2 %v5035_v34 }
  0x63   :  { %419 = vmatpush.msrb.mxu3 %v5078_v51  ;;  %v5445_v51 = vld [vmem:[#allocation11] sm:$0xf] }
  0x64   :  { %367 = vmatpush.msra.mxu1 %v5041_v36  ;;  %387 = vmatpush.msra.mxu2 %v5045_v37 }
  0x65   :  { %420 = vmatmul.f32.vlgmr.msrb.gmra.mxu3 %v5013_v26 }
  0x66   :  { %368 = vmatpush.msra.mxu1 %v5048_v38  ;;  %388 = vmatpush.msra.mxu2 %v5054_v40 }
  0x67   :  { %635 = vmatpush.msra.mxu3 %v5147_v16  ;;  %v5171_v16 = vld [vmem:[#allocation9 + $0x580] sm:$0xff] }
  0x68   :  { %369 = vmatpush.msra.mxu1 %v5057_v41  ;;  %389 = vmatpush.msra.mxu2 %v5063_v44  ;;  %9035 = vst [vmem:[#allocation40_spill] sm:$0xff] %v5171_v16 }
  0x69   :  { %636 = vmatpush.msra.mxu3 %v5157_v22  ;;  %578 = vmatpush.msra.mxu0 %v5171_v16  ;;  %v5187_v22 = vld [vmem:[#allocation9 + $0x560] sm:$0xff]  ;;  %v5207_v16 = vld [vmem:[#allocation9 + $0x558] sm:$0xff] }
  0x6a   :  { %370 = vmatpush.msra.mxu1 %v5067_v46  ;;  %390 = vmatpush.msra.mxu2 %v5072_v49  ;;  %9039 = vst [vmem:[#allocation44_spill] sm:$0xff] %v5187_v22 }
  0x6b   :  { %579 = vmatpush.msra.mxu0 %v5187_v22  ;;  %9046 = vst [vmem:[#allocation51_spill] sm:$0xff] %v5207_v16  ;;  %v5219_v22 = vld [vmem:[#allocation9 + $0x538] sm:$0xff] }
  0x6c   :  { %371 = vmatpush.msra.mxu1 %v5076_v45  ;;  %391 = vmatpush.msra.mxu2 %v5081_v52  ;;  %9050 = vst [vmem:[#allocation55_spill] sm:$0xff] %v5219_v22 }
  0x6e   :  { %372 = vmatpush.msra.mxu1 %v5085_v54  ;;  %392 = vmatpush.msra.mxu2 %v5088_v55 }
  0x70   :  { %373 = vmatpush.msra.mxu1 %v5092_v57  ;;  %393 = vmatpush.msra.mxu2 %v5096_v58 }
  0x72   :  { %374 = vmatpush.msra.mxu1 %v5099_v59  ;;  %394 = vmatpush.msra.mxu2 %v5102_v60 }
  0x74   :  { %375 = vmatpush.msra.mxu1 %v5105_v61  ;;  %395 = vmatpush.msra.mxu2 %v5108_v62 }
  0x76   :  { %376 = vmatpush.msra.mxu1 %v5111_v0  ;;  %396 = vmatpush.msra.mxu2 %v5114_v1 }
  0x78   :  { %377 = vmatpush.msra.mxu1 %v5117_v3  ;;  %397 = vmatpush.msra.mxu2 %v5120_v4 }
  0x7a   :  { %378 = vmatpush.msra.mxu1 %v5123_v6  ;;  %398 = vmatpush.msra.mxu2 %v5126_v7  ;;  %v5496_v6 = vld [vmem:[#allocation9 + $0x650] sm:$0xff] }
  0x7b   :  { %9142 = vst [vmem:[#allocation147_spill] sm:$0xff] %v5496_v6 }
  0x7c   :  { %379 = vmatpush.msra.mxu1 %v5129_v9  ;;  %399 = vmatpush.msra.mxu2 %v5132_v10  ;;  %v5461_v10 = vld [vmem:[#allocation9 + $0x6b8] sm:$0xff]  ;;  %v5482_v9 = vld [vmem:[#allocation9 + $0x670] sm:$0xff] }
  0x7d   :  { %380 = vmatmul.f32.vlgmr.msra.gmra.mxu1 %v5013_v26  ;;  %400 = vmatmul.f32.vlgmr.msra.gmra.mxu2 %v5013_v26  ;;  %v5165_v26 = vld [vmem:[#allocation9 + $0x5b0] sm:$0xff]  ;;  %9130 = vst [vmem:[#allocation135_spill] sm:$0xff] %v5461_v10 }
  0x7e   :  { %595 = vmatpush.msrb.mxu1 %v5141_v13  ;;  %615 = vmatpush.msrb.mxu2 %v5143_v15  ;;  %9033 = vst [vmem:[#allocation38_spill] sm:$0xff] %v5165_v26  ;;  %v5167_v13 = vld [vmem:[#allocation9 + $0x5b8] sm:$0xff]  ;;  %v5173_v15 = vld [vmem:[#allocation9 + $0x588] sm:$0xff] }
  0x7f   :  { %9034 = vst [vmem:[#allocation39_spill] sm:$0xff] %v5167_v13  ;;  %637 = vmatpush.msra.mxu3 %v5167_v13  ;;  %v5291_v13 = vld [vmem:[#allocation9 + $0x440] sm:$0xff] }
  0x80   :  { %596 = vmatpush.msrb.mxu1 %v5151_v19  ;;  %616 = vmatpush.msrb.mxu2 %v5155_v21  ;;  %9036 = vst [vmem:[#allocation41_spill] sm:$0xff] %v5173_v15  ;;  %v5179_v19 = vld [vmem:[#allocation9 + $0x598] sm:$0xff] }
  0x81   :  { %9038 = vst [vmem:[#allocation43_spill] sm:$0xff] %v5179_v19  ;;  %638 = vmatpush.msra.mxu3 %v5179_v19  ;;  %v5203_v19 = vld [vmem:[#allocation9 + $0x550] sm:$0xff]  ;;  %v5299_v21 = vld [vmem:[#allocation9 + $0x458] sm:$0xff] }
  0x82   :  { %597 = vmatpush.msrb.mxu1 %v5163_v25  ;;  %617 = vmatpush.msrb.mxu2 %v5165_v26  ;;  %v5191_v25 = vld [vmem:[#allocation9 + $0x570] sm:$0xff]  ;;  %v5195_v26 = vld [vmem:[#allocation9 + $0x578] sm:$0xff]  ;;  %9045 = vst [vmem:[#allocation50_spill] sm:$0xff] %v5203_v19 }
  0x83   :  { %9041 = vst [vmem:[#allocation46_spill] sm:$0xff] %v5191_v25  ;;  %639 = vmatpush.msra.mxu3 %v5195_v26 }
  0x84   :  { %598 = vmatpush.msrb.mxu1 %v5173_v15  ;;  %618 = vmatpush.msrb.mxu2 %v5177_v18  ;;  %9042 = vst [vmem:[#allocation47_spill] sm:$0xff] %v5195_v26  ;;  %v5199_v15 = vld [vmem:[#allocation9 + $0x540] sm:$0xff]  ;;  %v5201_v18 = vld [vmem:[#allocation9 + $0x548] sm:$0xff]  ;;  %v5215_v26 = vld [vmem:[#allocation9 + $0x530] sm:$0xff] }
  0x85   :  { %9043 = vst [vmem:[#allocation48_spill] sm:$0xff] %v5199_v15  ;;  %580 = vmatpush.msra.mxu0 %v5199_v15  ;;  %640 = vmatpush.msra.mxu3 %v5207_v16  ;;  %v5227_v16 = vld [vmem:[#allocation9 + $0x510] sm:$0xff]  ;;  %v5231_v15 = vld [vmem:[#allocation9 + $0x518] sm:$0xff] }
  0x86   :  { %599 = vmatpush.msrb.mxu1 %v5189_v24  ;;  %619 = vmatpush.msrb.mxu2 %v5191_v25  ;;  %9044 = vst [vmem:[#allocation49_spill] sm:$0xff] %v5201_v18  ;;  %v5211_v24 = vld [vmem:[#allocation9 + $0x520] sm:$0xff]  ;;  %v5213_v25 = vld [vmem:[#allocation9 + $0x528] sm:$0xff] }
  0x87   :  { %9047 = vst [vmem:[#allocation52_spill] sm:$0xff] %v5211_v24  ;;  %581 = vmatpush.msra.mxu0 %v5211_v24  ;;  %641 = vmatpush.msra.mxu3 %v5219_v22  ;;  %v5239_v22 = vld [vmem:[#allocation9 + $0x4f0] sm:$0xff]  ;;  %v5243_v24 = vld [vmem:[#allocation9 + $0x4f8] sm:$0xff] }
  0x88   :  { %600 = vmatpush.msrb.mxu1 %v5201_v18  ;;  %620 = vmatpush.msrb.mxu2 %v5203_v19  ;;  %9048 = vst [vmem:[#allocation53_spill] sm:$0xff] %v5213_v25  ;;  %v5223_v18 = vld [vmem:[#allocation9 + $0x500] sm:$0xff]  ;;  %v5225_v19 = vld [vmem:[#allocation9 + $0x508] sm:$0xff] }
  0x89   :  { %9049 = vst [vmem:[#allocation54_spill] sm:$0xff] %v5215_v26  ;;  %582 = vmatpush.msra.mxu0 %v5223_v18  ;;  %642 = vmatpush.msra.mxu3 %v5231_v15 }
  0x8a   :  { %601 = vmatpush.msrb.mxu1 %v5213_v25  ;;  %621 = vmatpush.msrb.mxu2 %v5215_v26  ;;  %9051 = vst [vmem:[#allocation56_spill] sm:$0xff] %v5223_v18  ;;  %v5235_v25 = vld [vmem:[#allocation9 + $0x4e0] sm:$0xff]  ;;  %v5237_v26 = vld [vmem:[#allocation9 + $0x4e8] sm:$0xff]  ;;  %v5255_v18 = vld [vmem:[#allocation9 + $0x4d8] sm:$0xff] }
  0x8b   :  { %9052 = vst [vmem:[#allocation57_spill] sm:$0xff] %v5225_v19  ;;  %583 = vmatpush.msra.mxu0 %v5235_v25  ;;  %643 = vmatpush.msra.mxu3 %v5243_v24 }
  0x8c   :  { %9053 = vst [vmem:[#allocation58_spill] sm:$0xff] %v5227_v16  ;;  %602 = vmatpush.msrb.mxu1 %v5225_v19  ;;  %622 = vmatpush.msrb.mxu2 %v5227_v16  ;;  %v5247_v19 = vld [vmem:[#allocation9 + $0x4c0] sm:$0xff]  ;;  %v5249_v16 = vld [vmem:[#allocation9 + $0x4c8] sm:$0xff] }
  0x8d   :  { %9054 = vst [vmem:[#allocation59_spill] sm:$0xff] %v5231_v15  ;;  %v5251_v15 = vld [vmem:[#allocation9 + $0x4d0] sm:$0xff]  ;;  %584 = vmatpush.msra.mxu0 %v5247_v19  ;;  %644 = vmatpush.msra.mxu3 %v5255_v18 }
  0x8e   :  { %9055 = vst [vmem:[#allocation60_spill] sm:$0xff] %v5235_v25  ;;  %603 = vmatpush.msrb.mxu1 %v5237_v26  ;;  %623 = vmatpush.msrb.mxu2 %v5239_v22  ;;  %v5267_v25 = vld [vmem:[#allocation9 + $0x4b8] sm:$0xff] }
  0x8f   :  { %9056 = vst [vmem:[#allocation61_spill] sm:$0xff] %v5237_v26  ;;  %v5259_v26 = vld [vmem:[#allocation9 + $0x4a0] sm:$0xff]  ;;  %645 = vmatpush.msra.mxu3 %v5267_v25 }
  0x90   :  { %9057 = vst [vmem:[#allocation62_spill] sm:$0xff] %v5239_v22  ;;  %604 = vmatpush.msrb.mxu1 %v5249_v16  ;;  %624 = vmatpush.msrb.mxu2 %v5251_v15  ;;  %v5261_v22 = vld [vmem:[#allocation9 + $0x4a8] sm:$0xff] }
  0x91   :  { %9058 = vst [vmem:[#allocation63_spill] sm:$0xff] %v5243_v24  ;;  %v5263_v24 = vld [vmem:[#allocation9 + $0x4b0] sm:$0xff]  ;;  %585 = vmatpush.msra.mxu0 %v5259_v26 }
  0x92   :  { %9059 = vst [vmem:[#allocation64_spill] sm:$0xff] %v5247_v19  ;;  %605 = vmatpush.msrb.mxu1 %v5261_v22  ;;  %625 = vmatpush.msrb.mxu2 %v5263_v24  ;;  %v5279_v19 = vld [vmem:[#allocation9 + $0x498] sm:$0xff] }
  0x93   :  { %9060 = vst [vmem:[#allocation65_spill] sm:$0xff] %v5249_v16  ;;  %v5271_v16 = vld [vmem:[#allocation9 + $0x480] sm:$0xff]  ;;  %646 = vmatpush.msra.mxu3 %v5279_v19 }
  0x94   :  { %9061 = vst [vmem:[#allocation66_spill] sm:$0xff] %v5251_v15  ;;  %v5273_v15 = vld [vmem:[#allocation9 + $0x488] sm:$0xff]  ;;  %586 = vmatpush.msra.mxu0 %v5271_v16 }
  0x95   :  { %9062 = vst [vmem:[#allocation67_spill] sm:$0xff] %v5255_v18  ;;  %v5275_v18 = vld [vmem:[#allocation9 + $0x490] sm:$0xff]  ;;  %606 = vmatpush.msrb.mxu1 %v5273_v15 }
  0x96   :  { %9063 = vst [vmem:[#allocation68_spill] sm:$0xff] %v5259_v26  ;;  %v5281_v26 = vld [vmem:[#allocation9 + $0x460] sm:$0xff]  ;;  %626 = vmatpush.msrb.mxu2 %v5275_v18 }
  0x97   :  { %9064 = vst [vmem:[#allocation69_spill] sm:$0xff] %v5261_v22  ;;  %v5283_v22 = vld [vmem:[#allocation9 + $0x468] sm:$0xff]  ;;  %587 = vmatpush.msra.mxu0 %v5281_v26 }
  0x98   :  { %9065 = vst [vmem:[#allocation70_spill] sm:$0xff] %v5263_v24  ;;  %v5289_v24 = vld [vmem:[#allocation9 + $0x478] sm:$0xff]  ;;  %607 = vmatpush.msrb.mxu1 %v5283_v22 }
  0x99   :  { %9066 = vst [vmem:[#allocation71_spill] sm:$0xff] %v5267_v25  ;;  %v5287_v25 = vld [vmem:[#allocation9 + $0x470] sm:$0xff]  ;;  %647 = vmatpush.msra.mxu3 %v5289_v24  ;;  %588 = vmatpush.msra.mxu0 %v5291_v13 }
  0x9a   :  { %9067 = vst [vmem:[#allocation72_spill] sm:$0xff] %v5271_v16  ;;  %v5297_v16 = vld [vmem:[#allocation9 + $0x450] sm:$0xff]  ;;  %627 = vmatpush.msrb.mxu2 %v5287_v25 }
  0x9b   :  { %9068 = vst [vmem:[#allocation73_spill] sm:$0xff] %v5273_v15  ;;  %v5295_v15 = vld [vmem:[#allocation9 + $0x448] sm:$0xff]  ;;  %648 = vmatpush.msra.mxu3 %v5299_v21 }
  0x9c   :  { %9069 = vst [vmem:[#allocation74_spill] sm:$0xff] %v5275_v18  ;;  %v5305_v18 = vld [vmem:[#allocation9 + $0x428] sm:$0xff]  ;;  %608 = vmatpush.msrb.mxu1 %v5295_v15  ;;  %628 = vmatpush.msrb.mxu2 %v5297_v16 }
  0x9d   :  { %9070 = vst [vmem:[#allocation75_spill] sm:$0xff] %v5279_v19  ;;  %v5303_v19 = vld [vmem:[#allocation9 + $0x420] sm:$0xff] }
  0x9e   :  { %9071 = vst [vmem:[#allocation76_spill] sm:$0xff] %v5281_v26  ;;  %v5309_v26 = vld [vmem:[#allocation9 + $0x430] sm:$0xff]  ;;  %589 = vmatpush.msra.mxu0 %v5303_v19  ;;  %609 = vmatpush.msrb.mxu1 %v5305_v18 }
  0x9f   :  { %9072 = vst [vmem:[#allocation77_spill] sm:$0xff] %v5283_v22  ;;  %v5311_v22 = vld [vmem:[#allocation9 + $0x438] sm:$0xff]  ;;  %629 = vmatpush.msrb.mxu2 %v5309_v26 }
  0xa0   :  { %9073 = vst [vmem:[#allocation78_spill] sm:$0xff] %v5287_v25  ;;  %v5317_v25 = vld [vmem:[#allocation9 + $0x408] sm:$0xff]  ;;  %649 = vmatpush.msra.mxu3 %v5311_v22  ;;  %590 = vmatpush.msra.mxu0 %v5315_v12  ;;  %v5431_v12 = vld [vmem:[#allocation9 + $0x6f0] sm:$0xff] }
  0xa1   :  { %9074 = vst [vmem:[#allocation79_spill] sm:$0xff] %v5289_v24  ;;  %v5321_v24 = vld [vmem:[#allocation9 + $0x410] sm:$0xff]  ;;  %610 = vmatpush.msrb.mxu1 %v5317_v25 }
  0xa2   :  { %9075 = vst [vmem:[#allocation80_spill] sm:$0xff] %v5291_v13  ;;  %v5323_v13 = vld [vmem:[#allocation9 + $0x418] sm:$0xff]  ;;  %630 = vmatpush.msrb.mxu2 %v5321_v24 }
  0xa3   :  { %9076 = vst [vmem:[#allocation81_spill] sm:$0xff] %v5295_v15  ;;  %v5327_v15 = vld [vmem:[#allocation9 + $0x7e0] sm:$0xff]  ;;  %650 = vmatpush.msra.mxu3 %v5323_v13 }
  0xa4   :  { %9077 = vst [vmem:[#allocation82_spill] sm:$0xff] %v5297_v16  ;;  %v5329_v16 = vld [vmem:[#allocation9 + $0x7e8] sm:$0xff]  ;;  %655 = vmatpush.msrb.mxu0 %v5327_v15 }
  0xa5   :  { %9078 = vst [vmem:[#allocation83_spill] sm:$0xff] %v5299_v21  ;;  %v5333_v21 = vld [vmem:[#allocation9 + $0x7f0] sm:$0xff]  ;;  %675 = vmatpush.msra.mxu1 %v5329_v16 }
  0xa6   :  { %9079 = vst [vmem:[#allocation84_spill] sm:$0xff] %v5303_v19  ;;  %v5335_v19 = vld [vmem:[#allocation9 + $0x7f8] sm:$0xff]  ;;  %695 = vmatpush.msra.mxu2 %v5333_v21 }
  0xa7   :  { %9080 = vst [vmem:[#allocation85_spill] sm:$0xff] %v5305_v18  ;;  %v5345_v18 = vld [vmem:[#allocation9 + $0x7d0] sm:$0xff]  ;;  %715 = vmatpush.msrb.mxu3 %v5335_v19 }
  0xa8   :  { %9081 = vst [vmem:[#allocation86_spill] sm:$0xff] %v5309_v26  ;;  %v5343_v26 = vld [vmem:[#allocation9 + $0x7c8] sm:$0xff]  ;;  %696 = vmatpush.msra.mxu2 %v5345_v18 }
  0xa9   :  { %9082 = vst [vmem:[#allocation87_spill] sm:$0xff] %v5311_v22  ;;  %v5341_v22 = vld [vmem:[#allocation9 + $0x7c0] sm:$0xff]  ;;  %676 = vmatpush.msra.mxu1 %v5343_v26 }
  0xaa   :  { %9084 = vst [vmem:[#allocation89_spill] sm:$0xff] %v5317_v25  ;;  %v5349_v25 = vld [vmem:[#allocation9 + $0x7d8] sm:$0xff]  ;;  %656 = vmatpush.msrb.mxu0 %v5341_v22 }
  0xab   :  { %9085 = vst [vmem:[#allocation90_spill] sm:$0xff] %v5321_v24  ;;  %716 = vmatpush.msrb.mxu3 %v5349_v25  ;;  %v5361_v24 = vld [vmem:[#allocation9 + $0x7b8] sm:$0xff] }
  0xac   :  { %9086 = vst [vmem:[#allocation91_spill] sm:$0xff] %v5323_v13  ;;  %v5353_v13 = vld [vmem:[#allocation9 + $0x7a0] sm:$0xff] }
  0xad   :  { %9087 = vst [vmem:[#allocation92_spill] sm:$0xff] %v5327_v15  ;;  %v5355_v15 = vld [vmem:[#allocation9 + $0x7a8] sm:$0xff]  ;;  %657 = vmatpush.msrb.mxu0 %v5353_v13  ;;  %717 = vmatpush.msrb.mxu3 %v5361_v24 }
  0xae   :  { %9088 = vst [vmem:[#allocation93_spill] sm:$0xff] %v5329_v16  ;;  %v5357_v16 = vld [vmem:[#allocation9 + $0x7b0] sm:$0xff]  ;;  %677 = vmatpush.msra.mxu1 %v5355_v15 }
  0xaf   :  { %9089 = vst [vmem:[#allocation94_spill] sm:$0xff] %v5333_v21  ;;  %697 = vmatpush.msra.mxu2 %v5357_v16  ;;  %v5373_v21 = vld [vmem:[#allocation9 + $0x798] sm:$0xff] }
  0xb0   :  { %9090 = vst [vmem:[#allocation95_spill] sm:$0xff] %v5335_v19  ;;  %v5365_v19 = vld [vmem:[#allocation9 + $0x780] sm:$0xff]  ;;  %718 = vmatpush.msrb.mxu3 %v5373_v21 }
  0xb1   :  { %9091 = vst [vmem:[#allocation96_spill] sm:$0xff] %v5341_v22  ;;  %v5367_v22 = vld [vmem:[#allocation9 + $0x788] sm:$0xff]  ;;  %658 = vmatpush.msrb.mxu0 %v5365_v19 }
  0xb2   :  { %9092 = vst [vmem:[#allocation97_spill] sm:$0xff] %v5343_v26  ;;  %v5369_v26 = vld [vmem:[#allocation9 + $0x790] sm:$0xff]  ;;  %678 = vmatpush.msra.mxu1 %v5367_v22 }
  0xb3   :  { %9093 = vst [vmem:[#allocation98_spill] sm:$0xff] %v5345_v18  ;;  %698 = vmatpush.msra.mxu2 %v5369_v26  ;;  %v5385_v18 = vld [vmem:[#allocation9 + $0x778] sm:$0xff] }
  0xb4   :  { %9094 = vst [vmem:[#allocation99_spill] sm:$0xff] %v5349_v25  ;;  %v5377_v25 = vld [vmem:[#allocation9 + $0x760] sm:$0xff]  ;;  %719 = vmatpush.msrb.mxu3 %v5385_v18 }
  0xb5   :  { %9095 = vst [vmem:[#allocation100_spill] sm:$0xff] %v5353_v13  ;;  %v5379_v13 = vld [vmem:[#allocation9 + $0x768] sm:$0xff]  ;;  %659 = vmatpush.msrb.mxu0 %v5377_v25 }
  0xb6   :  { %9096 = vst [vmem:[#allocation101_spill] sm:$0xff] %v5355_v15  ;;  %v5381_v15 = vld [vmem:[#allocation9 + $0x770] sm:$0xff]  ;;  %679 = vmatpush.msra.mxu1 %v5379_v13 }
  0xb7   :  { %9097 = vst [vmem:[#allocation102_spill] sm:$0xff] %v5357_v16  ;;  %699 = vmatpush.msra.mxu2 %v5381_v15  ;;  %v5397_v16 = vld [vmem:[#allocation9 + $0x758] sm:$0xff] }
  0xb8   :  { %9098 = vst [vmem:[#allocation103_spill] sm:$0xff] %v5361_v24  ;;  %v5389_v24 = vld [vmem:[#allocation9 + $0x740] sm:$0xff]  ;;  %720 = vmatpush.msrb.mxu3 %v5397_v16 }
  0xb9   :  { %9099 = vst [vmem:[#allocation104_spill] sm:$0xff] %v5365_v19  ;;  %v5391_v19 = vld [vmem:[#allocation9 + $0x748] sm:$0xff]  ;;  %660 = vmatpush.msrb.mxu0 %v5389_v24 }
  0xba   :  { %9100 = vst [vmem:[#allocation105_spill] sm:$0xff] %v5367_v22  ;;  %v5393_v22 = vld [vmem:[#allocation9 + $0x750] sm:$0xff]  ;;  %680 = vmatpush.msra.mxu1 %v5391_v19 }
  0xbb   :  { %9101 = vst [vmem:[#allocation106_spill] sm:$0xff] %v5369_v26  ;;  %700 = vmatpush.msra.mxu2 %v5393_v22  ;;  %v5409_v26 = vld [vmem:[#allocation9 + $0x738] sm:$0xff] }
  0xbc   :  { %9102 = vst [vmem:[#allocation107_spill] sm:$0xff] %v5373_v21  ;;  %v5401_v21 = vld [vmem:[#allocation9 + $0x720] sm:$0xff]  ;;  %721 = vmatpush.msrb.mxu3 %v5409_v26 }
  0xbd   :  { %9103 = vst [vmem:[#allocation108_spill] sm:$0xff] %v5377_v25  ;;  %v5403_v25 = vld [vmem:[#allocation9 + $0x728] sm:$0xff]  ;;  %661 = vmatpush.msrb.mxu0 %v5401_v21 }
  0xbe   :  { %9104 = vst [vmem:[#allocation109_spill] sm:$0xff] %v5379_v13  ;;  %v5405_v13 = vld [vmem:[#allocation9 + $0x730] sm:$0xff]  ;;  %681 = vmatpush.msra.mxu1 %v5403_v25 }
  0xbf   :  { %9105 = vst [vmem:[#allocation110_spill] sm:$0xff] %v5381_v15  ;;  %701 = vmatpush.msra.mxu2 %v5405_v13 }
  0xc0   :  { %9106 = vst [vmem:[#allocation111_spill] sm:$0xff] %v5385_v18  ;;  %v5413_v18 = vld [vmem:[#allocation9 + $0x700] sm:$0xff]  ;;  %v5419_v15 = vpop.f32.mrf.mxu2 }
  0xc1   :  { %9107 = vst [vmem:[#allocation112_spill] sm:$0xff] %v5389_v24  ;;  %v5415_v24 = vld [vmem:[#allocation9 + $0x708] sm:$0xff]  ;;  %662 = vmatpush.msrb.mxu0 %v5413_v18 }
  0xc2   :  { %9108 = vst [vmem:[#allocation113_spill] sm:$0xff] %v5391_v19  ;;  %v5417_v19 = vld [vmem:[#allocation9 + $0x710] sm:$0xff]  ;;  %682 = vmatpush.msra.mxu1 %v5415_v24 }
  0xc3   :  { %9109 = vst [vmem:[#allocation114_spill] sm:$0xff] %v5393_v22  ;;  %v5423_v22 = vld [vmem:[#allocation9 + $0x718] sm:$0xff]  ;;  %702 = vmatpush.msra.mxu2 %v5417_v19 }
  0xc4   :  { %9110 = vst [vmem:[#allocation115_spill] sm:$0xff] %v5397_v16  ;;  %v211_v16 = vpop.f32.mrf.mxu1  ;;  %722 = vmatpush.msrb.mxu3 %v5423_v22 }
  0xc5   :  { %9111 = vst [vmem:[#allocation116_spill] sm:$0xff] %v5401_v21  ;;  %v5429_v21 = vld [vmem:[#allocation9 + $0x6e8] sm:$0xff]  ;;  %703 = vmatpush.msra.mxu2 %v5431_v12 }
  0xc6   :  { %9112 = vst [vmem:[#allocation117_spill] sm:$0xff] %v5403_v25  ;;  %v5427_v25 = vld [vmem:[#allocation9 + $0x6e0] sm:$0xff]  ;;  %683 = vmatpush.msra.mxu1 %v5429_v21 }
  0xc7   :  { %9113 = vst [vmem:[#allocation118_spill] sm:$0xff] %v5405_v13  ;;  %v5435_v13 = vld [vmem:[#allocation9 + $0x6f8] sm:$0xff]  ;;  %663 = vmatpush.msrb.mxu0 %v5427_v25 }
  0xc8   :  { %9114 = vst [vmem:[#allocation119_spill] sm:$0xff] %v5409_v26  ;;  %v5439_v26 = vld [vmem:[#allocation9 + $0x6c0] sm:$0xff]  ;;  %723 = vmatpush.msrb.mxu3 %v5435_v13 }
  0xc9   :  { %9115 = vst [vmem:[#allocation120_spill] sm:$0xff] %v5413_v18  ;;  %v5441_v18 = vld [vmem:[#allocation9 + $0x6c8] sm:$0xff]  ;;  %664 = vmatpush.msrb.mxu0 %v5439_v26 }
  0xca   :  { %9116 = vst [vmem:[#allocation121_spill] sm:$0xff] %v5415_v24  ;;  %v5443_v24 = vld [vmem:[#allocation9 + $0x6d0] sm:$0xff]  ;;  %684 = vmatpush.msra.mxu1 %v5441_v18 }
  0xcb   :  { %9117 = vst [vmem:[#allocation122_spill] sm:$0xff] %v5417_v19  ;;  %v5449_v19 = vld [vmem:[#allocation9 + $0x6d8] sm:$0xff]  ;;  %704 = vmatpush.msra.mxu2 %v5443_v24 }
  0xcc   :  { %9118 = vst [vmem:[#allocation123_spill] sm:$0xff] %v5423_v22  ;;  %v5457_v22 = vld [vmem:[#allocation9 + $0x6b0] sm:$0xff]  ;;  %724 = vmatpush.msrb.mxu3 %v5449_v19 }
  0xcd   :  { %9119 = vst [vmem:[#allocation124_spill] sm:$0xff] %v5427_v25  ;;  %v5453_v25 = vld [vmem:[#allocation9 + $0x6a0] sm:$0xff]  ;;  %705 = vmatpush.msra.mxu2 %v5457_v22 }
  0xce   :  { %9120 = vst [vmem:[#allocation125_spill] sm:$0xff] %v5429_v21  ;;  %v5455_v21 = vld [vmem:[#allocation9 + $0x6a8] sm:$0xff]  ;;  %665 = vmatpush.msrb.mxu0 %v5453_v25  ;;  %725 = vmatpush.msrb.mxu3 %v5461_v10 }
  0xcf   :  { %9121 = vst [vmem:[#allocation126_spill] sm:$0xff] %v5431_v12  ;;  %685 = vmatpush.msra.mxu1 %v5455_v21  ;;  %v5470_v12 = vld [vmem:[#allocation9 + $0x690] sm:$0xff] }
  0xd0   :  { %9122 = vst [vmem:[#allocation127_spill] sm:$0xff] %v5435_v13  ;;  %v186_v13 = vperm.slane %v5445_v51, 0  ;;  %706 = vmatpush.msra.mxu2 %v5470_v12 }
  0xd1   :  { %9123 = vst [vmem:[#allocation128_spill] sm:$0xff] %v5439_v26  ;;  %v5466_v26 = vld [vmem:[#allocation9 + $0x680] sm:$0xff] }
  0xd2   :  { %9124 = vst [vmem:[#allocation129_spill] sm:$0xff] %v5441_v18  ;;  %v5468_v18 = vld [vmem:[#allocation9 + $0x688] sm:$0xff]  ;;  %666 = vmatpush.msrb.mxu0 %v5466_v26  ;;  %v5488_v10 = vadd.f32 %v211_v16, %v186_v13  ;;  %707 = vmatpush.msra.mxu2 %v5482_v9  ;;  %v5505_v16 = vld [vmem:[#allocation9 + $0x620] sm:$0xff] }
  0xd3   :  { %9125 = vst [vmem:[#allocation130_spill] sm:$0xff] %v5443_v24  ;;  %v5474_v24 = vld [vmem:[#allocation9 + $0x698] sm:$0xff]  ;;  %686 = vmatpush.msra.mxu1 %v5468_v18 }
  0xd4   :  { %9126 = vst [vmem:[#allocation131_spill] sm:$0xff] %v5449_v19  ;;  %726 = vmatpush.msrb.mxu3 %v5474_v24  ;;  %708 = vmatpush.msra.mxu2 %v5496_v6  ;;  %v5527_v6 = vld [vmem:[#allocation9 + $0x618] sm:$0xff] }
  0xd5   :  { %9127 = vst [vmem:[#allocation132_spill] sm:$0xff] %v5453_v25  ;;  %v5478_v25 = vld [vmem:[#allocation9 + $0x660] sm:$0xff] }
  0xd6   :  { %9128 = vst [vmem:[#allocation133_spill] sm:$0xff] %v5455_v21  ;;  %v5480_v21 = vld [vmem:[#allocation9 + $0x668] sm:$0xff]  ;;  %667 = vmatpush.msrb.mxu0 %v5478_v25 }
  0xd7   :  { %9129 = vst [vmem:[#allocation134_spill] sm:$0xff] %v5457_v22  ;;  %v5486_v22 = vld [vmem:[#allocation9 + $0x678] sm:$0xff]  ;;  %687 = vmatpush.msra.mxu1 %v5480_v21 }
  0xd8   :  { %9131 = vst [vmem:[#allocation136_spill] sm:$0xff] %v5466_v26  ;;  %v271_v7 = vpop.f32.mrf.mxu3  ;;  %v5494_v26 = vld [vmem:[#allocation9 + $0x648] sm:$0xff]  ;;  %727 = vmatpush.msrb.mxu3 %v5486_v22 }
  0xd9   :  { %9132 = vst [vmem:[#allocation137_spill] sm:$0xff] %v5468_v18  ;;  %v5492_v18 = vld [vmem:[#allocation9 + $0x640] sm:$0xff]  ;;  %688 = vmatpush.msra.mxu1 %v5494_v26 }
  0xda   :  { %9133 = vst [vmem:[#allocation138_spill] sm:$0xff] %v5470_v12  ;;  %v231_v19 = vpop.f32.mrf.mxu1  ;;  %668 = vmatpush.msrb.mxu0 %v5492_v18  ;;  %v187_v12 = vperm.slane %v5445_v51, 1 }
  0xdb   :  { %9134 = vst [vmem:[#allocation139_spill] sm:$0xff] %v5474_v24  ;;  %v5500_v24 = vld [vmem:[#allocation9 + $0x658] sm:$0xff] }
  0xdc   :  { %9135 = vst [vmem:[#allocation140_spill] sm:$0xff] %v5478_v25  ;;  %v5509_v25 = vld [vmem:[#allocation9 + $0x630] sm:$0xff]  ;;  %728 = vmatpush.msrb.mxu3 %v5500_v24  ;;  %669 = vmatpush.msrb.mxu0 %v5505_v16 }
  0xdd   :  { %9136 = vst [vmem:[#allocation141_spill] sm:$0xff] %v5480_v21  ;;  %v5507_v21 = vld [vmem:[#allocation9 + $0x628] sm:$0xff]  ;;  %709 = vmatpush.msra.mxu2 %v5509_v25 }
  0xde   :  { %9137 = vst [vmem:[#allocation142_spill] sm:$0xff] %v5482_v9  ;;  %689 = vmatpush.msra.mxu1 %v5507_v21 }
  0xdf   :  { %9138 = vst [vmem:[#allocation143_spill] sm:$0xff] %v5486_v22  ;;  %v5514_v22 = vld [vmem:[#allocation9 + $0x638] sm:$0xff] }
  0xe0   :  { %v361_v48 = vpop.f32.mrf.mxu2  ;;  %9139 = vst [vmem:[#allocation144_spill] sm:$0xff] %v5488_v10  ;;  %729 = vmatpush.msrb.mxu3 %v5514_v22 }
  0xe1   :  { %9140 = vst [vmem:[#allocation145_spill] sm:$0xff] %v5492_v18  ;;  %v424_v13 = vadd.f32 %v361_v48, %v5488_v10  ;;  %v5518_v48 = vld [vmem:[#allocation9 + $0x600] sm:$0xff]  ;;  %v5520_v10 = vld [vmem:[#allocation9 + $0x608] sm:$0xff]  ;;  %v189_v18 = vperm.slane %v5445_v51, 3 }
  0xe2   :  { %9141 = vst [vmem:[#allocation146_spill] sm:$0xff] %v5494_v26  ;;  %v5522_v26 = vld [vmem:[#allocation9 + $0x610] sm:$0xff]  ;;  %670 = vmatpush.msrb.mxu0 %v5518_v48  ;;  %690 = vmatpush.msra.mxu1 %v5520_v10 }
  0xe3   :  { %9143 = vst [vmem:[#allocation148_spill] sm:$0xff] %v5500_v24  ;;  %v428_v24 = vmul.f32 0.5, %v424_v13  ;;  %710 = vmatpush.msra.mxu2 %v5522_v26  ;;  %730 = vmatpush.msrb.mxu3 %v5527_v6  ;;  %v5535_v9 = vadd.f32 %v271_v7, %v189_v18 }
  0xe4   :  { %9144 = vst [vmem:[#allocation149_spill] sm:$0xff] %v5505_v16 }
  0xe5   :  { %9145 = vst [vmem:[#allocation150_spill] sm:$0xff] %v5507_v21  ;;  %v5531_v21 = vadd.f32 %v231_v19, %v187_v12  ;;  %4486 = vtanh.f32 %v428_v24 }
  0xe6   :  { %9146 = vst [vmem:[#allocation151_spill] sm:$0xff] %v5509_v25 }
  0xe7   :  { %9147 = vst [vmem:[#allocation152_spill] sm:$0xff] %v5514_v22  ;;  %v188_v22 = vperm.slane %v5445_v51, 2 }
  0xe8   :  { %9148 = vst [vmem:[#allocation153_spill] sm:$0xff] %v5518_v48  ;;  %v421_v42 = vpop.f32.mrf.mxu3 }
  0xe9   :  { %9149 = vst [vmem:[#allocation154_spill] sm:$0xff] %v5520_v10  ;;  %v427_v48 = vadd.f32 %v421_v42, %v5535_v9  ;;  %v5541_v12 = vadd.f32 %v5419_v15, %v188_v22 }
  0xea   :  { %9150 = vst [vmem:[#allocation155_spill] sm:$0xff] %v5522_v26 }
  0xeb   :  { %9151 = vst [vmem:[#allocation156_spill] sm:$0xff] %v5527_v6  ;;  %v4487_v26 = vpop.eup %4486  ;;  %v437_v10 = vmul.f32 0.5, %v427_v48 }
  0xec   :  { %9152 = vst [vmem:[#allocation157_spill] sm:$0xff] %v5531_v21  ;;  %v430_v18 = vmul.f32 0.5, %v4487_v26  ;;  %v9192_v26 = vld [vmem:[#allocation57_spill] sm:$0xff] }
  0xed   :  { %9153 = vst [vmem:[#allocation158_spill] sm:$0xff] %v5535_v9 }
  0xee   :  { %9154 = vst [vmem:[#allocation159_spill] sm:$0xff] %v5541_v12  ;;  %v431_v24 = vadd.f32 0.5, %v430_v18  ;;  %v9194_v18 = vld [vmem:[#allocation59_spill] sm:$0xff] }
  0xfa   :  { %v381_v16 = vpop.f32.mrf.mxu1 }
  0xfb   :  { %v425_v25 = vadd.f32 %v381_v16, %v5531_v21  ;;  %v277_v21 = vld [vmem:[#allocation8] sm:$0xff] }
  0xfd   :  { %v432_v13 = vmul.f32 0.5, %v425_v25 }
  0xff   :  { %4488 = vtanh.f32 %v432_v13 }
 0x100   :  { %v401_v19 = vpop.f32.mrf.mxu2 }
 0x101   :  { %v426_v6 = vadd.f32 %v401_v19, %v5541_v12 }
 0x103   :  { %4490 = vtanh.f32 %v426_v6  ;;  %v9189_v6 = vld [vmem:[#allocation54_spill] sm:$0xff] }
 0x104   :  { %4492 = vtanh.f32 %v437_v10  ;;  %v9190_v10 = vld [vmem:[#allocation55_spill] sm:$0xff] }
 0x105   :  { %v4489_v7 = vpop.eup %4488 }
 0x106   :  { %v434_v16 = vmul.f32 0.5, %v4489_v7  ;;  %v9193_v7 = vld [vmem:[#allocation58_spill] sm:$0xff] }
 0x108   :  { %v435_v51 = vadd.f32 0.5, %v434_v16  ;;  %v9195_v16 = vld [vmem:[#allocation60_spill] sm:$0xff] }
 0x109   :  { %v4491_v25 = vpop.eup %4490 }
 0x10a   :  { %v441_v13 = vmul.f32 %v435_v51, %v277_v21  ;;  %v442_v4 = vmul.f32 %v4491_v25, %v431_v24  ;;  %v4493_v42 = vpop.eup %4492  ;;  %v9191_v21 = vld [vmem:[#allocation56_spill] sm:$0xff]  ;;  %v9196_v51 = vld [vmem:[#allocation61_spill] sm:$0xff]  ;;  %v9197_v24 = vld [vmem:[#allocation62_spill] sm:$0xff] }
 0x10b   :  { %v439_v15 = vmul.f32 0.5, %v4493_v42  ;;  %v9198_v25 = vld [vmem:[#allocation63_spill] sm:$0xff]  ;;  %v9200_v42 = vld [vmem:[#allocation65_spill] sm:$0xff] }
 0x10c   :  { %v5544_v9 = vadd.f32 %v442_v4, %v441_v13  ;;  %v9188_v4 = vld [vmem:[#allocation53_spill] sm:$0xff]  ;;  %v9199_v13 = vld [vmem:[#allocation64_spill] sm:$0xff] }
 0x10d   :  { %v440_v22 = vadd.f32 0.5, %v439_v15  ;;  %v9201_v15 = vld [vmem:[#allocation66_spill] sm:$0xff] }
 0x10e   :  { %4494 = vtanh.f32 %v5544_v9 }
 0x114   :  { %v4495_v19 = vpop.eup %4494 }
 0x115   :  { %v5547_v48 = vmul.f32 %v4495_v19, %v440_v22  ;;  %v9202_v22 = vld [vmem:[#allocation67_spill] sm:$0xff]  ;;  %v9203_v19 = vld [vmem:[#allocation68_spill] sm:$0xff] }
 0x117   :  { %591 = vmatmul.f32.vlgmr.msra.gmra.mxu0 %v5547_v48  ;;  %611 = vmatmul.f32.vlgmr.msrb.gmra.mxu1 %v5547_v48 }
 0x118   :  { %631 = vmatmul.f32.vlgmr.msrb.gmra.mxu2 %v5547_v48  ;;  %651 = vmatmul.f32.vlgmr.msra.gmra.mxu3 %v5547_v48 }
 0x119   :  { %833 = vmatpush.msra.mxu0 %v4968_v43  ;;  %853 = vmatpush.msrb.mxu1 %v5015_v27  ;;  %v276_v43 = vld [vmem:[#allocation6 + $0x8] sm:$0xff] }
 0x11a   :  { %873 = vmatpush.msrb.mxu2 %v5017_v28  ;;  %893 = vmatpush.msra.mxu3 %v4987_v63  ;;  %v5593_v63 = vld [vmem:[#allocation9 + $0x2c0] sm:$0xff]  ;;  %v9157_v27 = vld [vmem:[#allocation24_spill] sm:$0xff]  ;;  %v9158_v28 = vld [vmem:[#allocation25_spill] sm:$0xff] }
 0x11b   :  { %834 = vmatpush.msra.mxu0 %v4972_v47  ;;  %854 = vmatpush.msrb.mxu1 %v5022_v30  ;;  %v5569_v47 = vld [vmem:[#allocation9 + $0x340] sm:$0xff]  ;;  %v9160_v30 = vld [vmem:[#allocation26_spill] sm:$0xff] }
 0x11c   :  { %874 = vmatpush.msrb.mxu2 %v5026_v31  ;;  %894 = vmatpush.msra.mxu3 %v4989_v2  ;;  %v5599_v2 = vld [vmem:[#allocation9 + $0x2a0] sm:$0xff] }
 0x11d   :  { %835 = vmatpush.msra.mxu0 %v4975_v50  ;;  %855 = vmatpush.msrb.mxu1 %v5031_v33  ;;  %v5575_v50 = vld [vmem:[#allocation9 + $0x320] sm:$0xff]  ;;  %v9163_v33 = vld [vmem:[#allocation28_spill] sm:$0xff] }
 0x11e   :  { %875 = vmatpush.msrb.mxu2 %v5035_v34  ;;  %895 = vmatpush.msra.mxu3 %v4992_v5  ;;  %v5605_v5 = vld [vmem:[#allocation9 + $0x280] sm:$0xff]  ;;  %v9164_v34 = vld [vmem:[#allocation29_spill] sm:$0xff] }
 0x11f   :  { %836 = vmatpush.msra.mxu0 %v4979_v53  ;;  %856 = vmatpush.msrb.mxu1 %v5041_v36  ;;  %v5581_v53 = vld [vmem:[#allocation9 + $0x300] sm:$0xff] }
 0x120   :  { %876 = vmatpush.msrb.mxu2 %v5045_v37  ;;  %896 = vmatpush.msra.mxu3 %v4995_v8  ;;  %v5611_v8 = vld [vmem:[#allocation9 + $0x260] sm:$0xff]  ;;  %v9167_v37 = vld [vmem:[#allocation32_spill] sm:$0xff] }
 0x121   :  { %671 = vmatmul.f32.vlgmr.msrb.gmra.mxu0 %v276_v43  ;;  %691 = vmatmul.f32.vlgmr.msra.gmra.mxu1 %v276_v43  ;;  %v9161_v31 = vld [vmem:[#allocation27_spill] sm:$0xff] }
 0x122   :  { %711 = vmatmul.f32.vlgmr.msra.gmra.mxu2 %v276_v43  ;;  %731 = vmatmul.f32.vlgmr.msrb.gmra.mxu3 %v276_v43  ;;  %v9166_v36 = vld [vmem:[#allocation31_spill] sm:$0xff]  ;;  %v9205_v43 = vld [vmem:[#allocation70_spill] sm:$0xff] }
 0x123   :  { %837 = vmatpush.msra.mxu0 %v4983_v56  ;;  %857 = vmatpush.msrb.mxu1 %v5048_v38  ;;  %v5587_v56 = vld [vmem:[#allocation9 + $0x2e0] sm:$0xff]  ;;  %v9168_v38 = vld [vmem:[#allocation33_spill] sm:$0xff] }
 0x124   :  { %877 = vmatpush.msrb.mxu2 %v5054_v40  ;;  %897 = vmatpush.msra.mxu3 %v4998_v11  ;;  %v5617_v11 = vld [vmem:[#allocation9 + $0x240] sm:$0xff] }
 0x125   :  { %838 = vmatpush.msra.mxu0 %v5569_v47  ;;  %858 = vmatpush.msrb.mxu1 %v5057_v41  ;;  %v9170_v40 = vld [vmem:[#allocation35_spill] sm:$0xff]  ;;  %v9171_v41 = vld [vmem:[#allocation36_spill] sm:$0xff] }
 0x126   :  { %878 = vmatpush.msrb.mxu2 %v5063_v44  ;;  %898 = vmatpush.msra.mxu3 %v5001_v14  ;;  %v5623_v14 = vld [vmem:[#allocation9 + $0x220] sm:$0xff]  ;;  %v9172_v44 = vld [vmem:[#allocation37_spill] sm:$0xff] }
 0x127   :  { %839 = vmatpush.msra.mxu0 %v5575_v50  ;;  %859 = vmatpush.msrb.mxu1 %v5067_v46  ;;  %v9173_v46 = vld [vmem:[#allocation38_spill] sm:$0xff] }
 0x128   :  { %879 = vmatpush.msrb.mxu2 %v5072_v49  ;;  %899 = vmatpush.msra.mxu3 %v5004_v17  ;;  %v9155_v17 = vld [vmem:[#allocation23_spill] sm:$0xff] }
 0x129   :  { %840 = vmatpush.msra.mxu0 %v5581_v53  ;;  %860 = vmatpush.msrb.mxu1 %v5076_v45  ;;  %v9174_v49 = vld [vmem:[#allocation39_spill] sm:$0xff]  ;;  %v9175_v45 = vld [vmem:[#allocation40_spill] sm:$0xff] }
 0x12a   :  { %880 = vmatpush.msrb.mxu2 %v5081_v52  ;;  %900 = vmatpush.msra.mxu3 %v5007_v20  ;;  %v9156_v20 = vld [vmem:[#allocation20_spill] sm:$0xff]  ;;  %v9176_v52 = vld [vmem:[#allocation41_spill] sm:$0xff] }
 0x12b   :  { %841 = vmatpush.msra.mxu0 %v5587_v56  ;;  %861 = vmatpush.msrb.mxu1 %v5085_v54  ;;  %v9177_v54 = vld [vmem:[#allocation42_spill] sm:$0xff] }
 0x12c   :  { %881 = vmatpush.msrb.mxu2 %v5088_v55  ;;  %901 = vmatpush.msra.mxu3 %v5010_v23  ;;  %v5629_v23 = vld [vmem:[#allocation9 + $0x200] sm:$0xff] }
 0x12d   :  { %842 = vmatpush.msra.mxu0 %v5593_v63  ;;  %862 = vmatpush.msrb.mxu1 %v5092_v57  ;;  %v9178_v55 = vld [vmem:[#allocation43_spill] sm:$0xff]  ;;  %v9179_v57 = vld [vmem:[#allocation44_spill] sm:$0xff] }
 0x12e   :  { %882 = vmatpush.msrb.mxu2 %v5096_v58  ;;  %902 = vmatpush.msra.mxu3 %v5020_v29  ;;  %v9159_v29 = vld [vmem:[#allocation21_spill] sm:$0xff] }
 0x12f   :  { %843 = vmatpush.msra.mxu0 %v5599_v2  ;;  %863 = vmatpush.msrb.mxu1 %v5099_v59  ;;  %v9180_v58 = vld [vmem:[#allocation45_spill] sm:$0xff]  ;;  %v9181_v59 = vld [vmem:[#allocation46_spill] sm:$0xff] }
 0x130   :  { %883 = vmatpush.msrb.mxu2 %v5102_v60  ;;  %903 = vmatpush.msra.mxu3 %v5028_v32  ;;  %v9162_v32 = vld [vmem:[#allocation22_spill] sm:$0xff]  ;;  %v9182_v60 = vld [vmem:[#allocation47_spill] sm:$0xff] }
 0x131   :  { %844 = vmatpush.msra.mxu0 %v5605_v5  ;;  %864 = vmatpush.msrb.mxu1 %v5105_v61  ;;  %v9183_v61 = vld [vmem:[#allocation48_spill] sm:$0xff] }
 0x132   :  { %884 = vmatpush.msrb.mxu2 %v5108_v62  ;;  %904 = vmatpush.msra.mxu3 %v5037_v35  ;;  %v9165_v35 = vld [vmem:[#allocation30_spill] sm:$0xff]  ;;  %v9184_v62 = vld [vmem:[#allocation49_spill] sm:$0xff] }
 0x133   :  { %845 = vmatpush.msra.mxu0 %v5611_v8  ;;  %865 = vmatpush.msrb.mxu1 %v5111_v0  ;;  %v9185_v0 = vld [vmem:[#allocation50_spill] sm:$0xff] }
 0x134   :  { %885 = vmatpush.msrb.mxu2 %v5114_v1  ;;  %905 = vmatpush.msra.mxu3 %v5051_v39  ;;  %v9169_v39 = vld [vmem:[#allocation34_spill] sm:$0xff]  ;;  %v9186_v1 = vld [vmem:[#allocation51_spill] sm:$0xff] }
 0x135   :  { %846 = vmatpush.msra.mxu0 %v5617_v11  ;;  %866 = vmatpush.msrb.mxu1 %v5117_v3  ;;  %v9187_v3 = vld [vmem:[#allocation52_spill] sm:$0xff] }
 0x136   :  { %886 = vmatpush.msrb.mxu2 %v9155_v17  ;;  %906 = vmatpush.msra.mxu3 %v9156_v20  ;;  %v9206_v17 = vld [vmem:[#allocation71_spill] sm:$0xff]  ;;  %v9207_v20 = vld [vmem:[#allocation72_spill] sm:$0xff] }
 0x137   :  { %847 = vmatpush.msra.mxu0 %v5623_v14  ;;  %867 = vmatpush.msrb.mxu1 %v9157_v27  ;;  %v9208_v27 = vld [vmem:[#allocation73_spill] sm:$0xff] }
 0x138   :  { %887 = vmatpush.msrb.mxu2 %v9158_v28  ;;  %907 = vmatpush.msra.mxu3 %v9159_v29  ;;  %v9209_v28 = vld [vmem:[#allocation74_spill] sm:$0xff]  ;;  %v9210_v29 = vld [vmem:[#allocation75_spill] sm:$0xff] }
 0x139   :  { %848 = vmatpush.msra.mxu0 %v5629_v23  ;;  %868 = vmatpush.msrb.mxu1 %v9160_v30  ;;  %v9211_v30 = vld [vmem:[#allocation76_spill] sm:$0xff] }
 0x13a   :  { %888 = vmatpush.msrb.mxu2 %v9161_v31  ;;  %908 = vmatpush.msra.mxu3 %v9162_v32  ;;  %v9212_v31 = vld [vmem:[#allocation77_spill] sm:$0xff]  ;;  %v9213_v32 = vld [vmem:[#allocation78_spill] sm:$0xff] }
 0x13b   :  { %849 = vmatmul.f32.vlgmr.msra.gmra.mxu0 %v5547_v48  ;;  %869 = vmatmul.f32.vlgmr.msrb.gmra.mxu1 %v5547_v48 }
 0x13c   :  { %889 = vmatmul.f32.vlgmr.msrb.gmra.mxu2 %v5547_v48  ;;  %909 = vmatmul.f32.vlgmr.msra.gmra.mxu3 %v5547_v48  ;;  %v9204_v48 = vld [vmem:[#allocation69_spill] sm:$0xff] }
 0x13d   :  { %1063 = vmatpush.msrb.mxu0 %v9163_v33  ;;  %1083 = vmatpush.msra.mxu1 %v9164_v34  ;;  %v9214_v33 = vld [vmem:[#allocation79_spill] sm:$0xff]  ;;  %v9215_v34 = vld [vmem:[#allocation80_spill] sm:$0xff] }
 0x13e   :  { %1103 = vmatpush.msra.mxu2 %v9165_v35  ;;  %1123 = vmatpush.msrb.mxu3 %v9166_v36  ;;  %v9216_v35 = vld [vmem:[#allocation81_spill] sm:$0xff]  ;;  %v9217_v36 = vld [vmem:[#allocation82_spill] sm:$0xff] }
 0x13f   :  { %1064 = vmatpush.msrb.mxu0 %v9167_v37  ;;  %1084 = vmatpush.msra.mxu1 %v9168_v38  ;;  %v9218_v37 = vld [vmem:[#allocation83_spill] sm:$0xff]  ;;  %v9219_v38 = vld [vmem:[#allocation84_spill] sm:$0xff] }
 0x140   :  { %1104 = vmatpush.msra.mxu2 %v9169_v39  ;;  %1124 = vmatpush.msrb.mxu3 %v9170_v40  ;;  %v9220_v39 = vld [vmem:[#allocation85_spill] sm:$0xff]  ;;  %v9221_v40 = vld [vmem:[#allocation86_spill] sm:$0xff] }
 0x141   :  { %1065 = vmatpush.msrb.mxu0 %v9171_v41  ;;  %1085 = vmatpush.msra.mxu1 %v9172_v44  ;;  %v9222_v41 = vld [vmem:[#allocation87_spill] sm:$0xff]  ;;  %v9223_v44 = vld [vmem:[#allocation88_spill] sm:$0xff] }
 0x142   :  { %1105 = vmatpush.msra.mxu2 %v9173_v46  ;;  %1125 = vmatpush.msrb.mxu3 %v9174_v49  ;;  %v9224_v46 = vld [vmem:[#allocation89_spill] sm:$0xff]  ;;  %v9225_v49 = vld [vmem:[#allocation90_spill] sm:$0xff] }
 0x143   :  { %1066 = vmatpush.msrb.mxu0 %v9175_v45  ;;  %1086 = vmatpush.msra.mxu1 %v9176_v52  ;;  %v9226_v45 = vld [vmem:[#allocation91_spill] sm:$0xff]  ;;  %v9227_v52 = vld [vmem:[#allocation92_spill] sm:$0xff] }
 0x144   :  { %1106 = vmatpush.msra.mxu2 %v9177_v54  ;;  %1126 = vmatpush.msrb.mxu3 %v9178_v55  ;;  %v9228_v54 = vld [vmem:[#allocation93_spill] sm:$0xff]  ;;  %v9229_v55 = vld [vmem:[#allocation94_spill] sm:$0xff] }
 0x145   :  { %1067 = vmatpush.msrb.mxu0 %v9179_v57  ;;  %1087 = vmatpush.msra.mxu1 %v9180_v58  ;;  %v9230_v57 = vld [vmem:[#allocation95_spill] sm:$0xff]  ;;  %v9231_v58 = vld [vmem:[#allocation96_spill] sm:$0xff] }
 0x146   :  { %1107 = vmatpush.msra.mxu2 %v9181_v59  ;;  %1127 = vmatpush.msrb.mxu3 %v9182_v60  ;;  %v9232_v59 = vld [vmem:[#allocation97_spill] sm:$0xff]  ;;  %v9233_v60 = vld [vmem:[#allocation98_spill] sm:$0xff] }
 0x147   :  { %1068 = vmatpush.msrb.mxu0 %v9183_v61  ;;  %1088 = vmatpush.msra.mxu1 %v9184_v62  ;;  %v9234_v61 = vld [vmem:[#allocation99_spill] sm:$0xff]  ;;  %v9235_v62 = vld [vmem:[#allocation100_spill] sm:$0xff] }
 0x148   :  { %1108 = vmatpush.msra.mxu2 %v9185_v0  ;;  %1128 = vmatpush.msrb.mxu3 %v9186_v1  ;;  %v9236_v0 = vld [vmem:[#allocation101_spill] sm:$0xff]  ;;  %v9237_v1 = vld [vmem:[#allocation102_spill] sm:$0xff] }
 0x149   :  { %1069 = vmatpush.msrb.mxu0 %v9187_v3  ;;  %1089 = vmatpush.msra.mxu1 %v9188_v4  ;;  %v9238_v3 = vld [vmem:[#allocation103_spill] sm:$0xff]  ;;  %v9239_v4 = vld [vmem:[#allocation104_spill] sm:$0xff] }
 0x14a   :  { %1109 = vmatpush.msra.mxu2 %v9189_v6  ;;  %1129 = vmatpush.msrb.mxu3 %v9190_v10  ;;  %v9240_v6 = vld [vmem:[#allocation105_spill] sm:$0xff]  ;;  %v9241_v10 = vld [vmem:[#allocation106_spill] sm:$0xff] }
 0x14b   :  { %1070 = vmatpush.msrb.mxu0 %v9191_v21  ;;  %1090 = vmatpush.msra.mxu1 %v9192_v26  ;;  %v9242_v21 = vld [vmem:[#allocation107_spill] sm:$0xff]  ;;  %v9243_v26 = vld [vmem:[#allocation108_spill] sm:$0xff] }
 0x14c   :  { %1110 = vmatpush.msra.mxu2 %v9193_v7  ;;  %1130 = vmatpush.msrb.mxu3 %v9194_v18  ;;  %v9244_v7 = vld [vmem:[#allocation109_spill] sm:$0xff]  ;;  %v9245_v18 = vld [vmem:[#allocation110_spill] sm:$0xff] }
 0x14d   :  { %1071 = vmatpush.msrb.mxu0 %v9195_v16  ;;  %1091 = vmatpush.msra.mxu1 %v9196_v51  ;;  %v9246_v16 = vld [vmem:[#allocation111_spill] sm:$0xff]  ;;  %v9247_v51 = vld [vmem:[#allocation112_spill] sm:$0xff] }
 0x14e   :  { %1111 = vmatpush.msra.mxu2 %v9197_v24  ;;  %1131 = vmatpush.msrb.mxu3 %v9198_v25  ;;  %v9248_v24 = vld [vmem:[#allocation113_spill] sm:$0xff]  ;;  %v9249_v25 = vld [vmem:[#allocation114_spill] sm:$0xff] }
 0x14f   :  { %1072 = vmatpush.msrb.mxu0 %v9199_v13  ;;  %1092 = vmatpush.msra.mxu1 %v9200_v42  ;;  %v9250_v13 = vld [vmem:[#allocation115_spill] sm:$0xff]  ;;  %v9251_v42 = vld [vmem:[#allocation116_spill] sm:$0xff] }
 0x150   :  { %1112 = vmatpush.msra.mxu2 %v9201_v15  ;;  %1132 = vmatpush.msrb.mxu3 %v9202_v22  ;;  %v9252_v15 = vld [vmem:[#allocation117_spill] sm:$0xff]  ;;  %v9253_v22 = vld [vmem:[#allocation118_spill] sm:$0xff] }
 0x151   :  { %1073 = vmatpush.msrb.mxu0 %v9203_v19  ;;  %1093 = vmatpush.msra.mxu1 %v9204_v48  ;;  %v9254_v19 = vld [vmem:[#allocation119_spill] sm:$0xff]  ;;  %v9255_v48 = vld [vmem:[#allocation120_spill] sm:$0xff] }
 0x152   :  { %1113 = vmatpush.msra.mxu2 %v9205_v43  ;;  %1133 = vmatpush.msrb.mxu3 %v9206_v17  ;;  %v9256_v43 = vld [vmem:[#allocation121_spill] sm:$0xff]  ;;  %v9257_v17 = vld [vmem:[#allocation122_spill] sm:$0xff] }
 0x153   :  { %1074 = vmatpush.msrb.mxu0 %v9207_v20  ;;  %1094 = vmatpush.msra.mxu1 %v9208_v27  ;;  %v9258_v20 = vld [vmem:[#allocation123_spill] sm:$0xff]  ;;  %v9259_v27 = vld [vmem:[#allocation124_spill] sm:$0xff] }
 0x154   :  { %1114 = vmatpush.msra.mxu2 %v9209_v28  ;;  %1134 = vmatpush.msrb.mxu3 %v9210_v29  ;;  %v9260_v28 = vld [vmem:[#allocation125_spill] sm:$0xff]  ;;  %v9261_v29 = vld [vmem:[#allocation126_spill] sm:$0xff] }
 0x155   :  { %1075 = vmatpush.msrb.mxu0 %v9211_v30  ;;  %1095 = vmatpush.msra.mxu1 %v9212_v31  ;;  %v9262_v30 = vld [vmem:[#allocation127_spill] sm:$0xff]  ;;  %v9263_v31 = vld [vmem:[#allocation128_spill] sm:$0xff] }
 0x156   :  { %1115 = vmatpush.msra.mxu2 %v9213_v32  ;;  %1135 = vmatpush.msrb.mxu3 %v9214_v33  ;;  %v9264_v32 = vld [vmem:[#allocation129_spill] sm:$0xff]  ;;  %v9265_v33 = vld [vmem:[#allocation130_spill] sm:$0xff] }
 0x157   :  { %1076 = vmatpush.msrb.mxu0 %v9215_v34  ;;  %1096 = vmatpush.msra.mxu1 %v9216_v35  ;;  %v9266_v34 = vld [vmem:[#allocation131_spill] sm:$0xff]  ;;  %v9267_v35 = vld [vmem:[#allocation132_spill] sm:$0xff] }
 0x158   :  { %1116 = vmatpush.msra.mxu2 %v9217_v36  ;;  %1136 = vmatpush.msrb.mxu3 %v9218_v37  ;;  %v9268_v36 = vld [vmem:[#allocation133_spill] sm:$0xff]  ;;  %v9269_v37 = vld [vmem:[#allocation134_spill] sm:$0xff] }
 0x159   :  { %1077 = vmatpush.msrb.mxu0 %v9219_v38  ;;  %1097 = vmatpush.msra.mxu1 %v9220_v39  ;;  %v9270_v38 = vld [vmem:[#allocation135_spill] sm:$0xff]  ;;  %v9271_v39 = vld [vmem:[#allocation136_spill] sm:$0xff] }
 0x15a   :  { %1117 = vmatpush.msra.mxu2 %v9221_v40  ;;  %1137 = vmatpush.msrb.mxu3 %v9222_v41  ;;  %v9272_v40 = vld [vmem:[#allocation137_spill] sm:$0xff]  ;;  %v9273_v41 = vld [vmem:[#allocation138_spill] sm:$0xff] }
 0x15b   :  { %1078 = vmatpush.msrb.mxu0 %v9223_v44  ;;  %1098 = vmatpush.msra.mxu1 %v9224_v46  ;;  %v9274_v44 = vld [vmem:[#allocation139_spill] sm:$0xff]  ;;  %v9275_v46 = vld [vmem:[#allocation140_spill] sm:$0xff] }
 0x15c   :  { %1118 = vmatpush.msra.mxu2 %v9225_v49  ;;  %1138 = vmatpush.msrb.mxu3 %v9226_v45  ;;  %v9276_v49 = vld [vmem:[#allocation141_spill] sm:$0xff]  ;;  %v9277_v45 = vld [vmem:[#allocation142_spill] sm:$0xff] }
 0x15d   :  { %1143 = vmatpush.msra.mxu0 %v9227_v52  ;;  %1163 = vmatpush.msrb.mxu1 %v9228_v54  ;;  %v9278_v52 = vld [vmem:[#allocation143_spill] sm:$0xff]  ;;  %v9279_v54 = vld [vmem:[#allocation145_spill] sm:$0xff] }
 0x15e   :  { %1183 = vmatpush.msrb.mxu2 %v9229_v55  ;;  %1203 = vmatpush.msra.mxu3 %v9230_v57  ;;  %v9280_v55 = vld [vmem:[#allocation146_spill] sm:$0xff]  ;;  %v9281_v57 = vld [vmem:[#allocation147_spill] sm:$0xff] }
 0x15f   :  { %1144 = vmatpush.msra.mxu0 %v9231_v58  ;;  %1164 = vmatpush.msrb.mxu1 %v9232_v59  ;;  %v9282_v58 = vld [vmem:[#allocation148_spill] sm:$0xff]  ;;  %v9283_v59 = vld [vmem:[#allocation149_spill] sm:$0xff] }
 0x160   :  { %1184 = vmatpush.msrb.mxu2 %v9233_v60  ;;  %1204 = vmatpush.msra.mxu3 %v9234_v61  ;;  %v9284_v60 = vld [vmem:[#allocation150_spill] sm:$0xff]  ;;  %v9285_v61 = vld [vmem:[#allocation151_spill] sm:$0xff] }
 0x161   :  { %1145 = vmatpush.msra.mxu0 %v9235_v62  ;;  %1165 = vmatpush.msrb.mxu1 %v9236_v0  ;;  %v9286_v62 = vld [vmem:[#allocation152_spill] sm:$0xff]  ;;  %v9287_v0 = vld [vmem:[#allocation153_spill] sm:$0xff] }
 0x162   :  { %1185 = vmatpush.msrb.mxu2 %v9237_v1  ;;  %1205 = vmatpush.msra.mxu3 %v9238_v3  ;;  %v9288_v1 = vld [vmem:[#allocation154_spill] sm:$0xff]  ;;  %v9289_v3 = vld [vmem:[#allocation155_spill] sm:$0xff] }
 0x163   :  { %1146 = vmatpush.msra.mxu0 %v9239_v4  ;;  %1166 = vmatpush.msrb.mxu1 %v9240_v6  ;;  %v9290_v4 = vld [vmem:[#allocation156_spill] sm:$0xff] }
 0x164   :  { %1186 = vmatpush.msrb.mxu2 %v9241_v10  ;;  %1206 = vmatpush.msra.mxu3 %v9242_v21 }
 0x165   :  { %1147 = vmatpush.msra.mxu0 %v9243_v26  ;;  %1167 = vmatpush.msrb.mxu1 %v9244_v7  ;;  %v736_v7 = vld [vmem:[#allocation11 + $0x4] sm:$0xf] }
 0x166   :  { %1187 = vmatpush.msrb.mxu2 %v9245_v18  ;;  %1207 = vmatpush.msra.mxu3 %v9246_v16 }
 0x167   :  { %1148 = vmatpush.msra.mxu0 %v9247_v51  ;;  %1168 = vmatpush.msrb.mxu1 %v9248_v24  ;;  %v738_v24 = vperm.slane %v736_v7, 0 }
 0x168   :  { %1188 = vmatpush.msrb.mxu2 %v9249_v25  ;;  %1208 = vmatpush.msra.mxu3 %v9250_v13  ;;  %v739_v13 = vperm.slane %v736_v7, 1 }
 0x169   :  { %1149 = vmatpush.msra.mxu0 %v9251_v42  ;;  %1169 = vmatpush.msrb.mxu1 %v9252_v15 }
 0x16a   :  { %1189 = vmatpush.msrb.mxu2 %v9253_v22  ;;  %1209 = vmatpush.msra.mxu3 %v9254_v19 }
 0x16b   :  { %1150 = vmatpush.msra.mxu0 %v9255_v48  ;;  %1170 = vmatpush.msrb.mxu1 %v9256_v43 }
 0x16c   :  { %1190 = vmatpush.msrb.mxu2 %v9257_v17  ;;  %1210 = vmatpush.msra.mxu3 %v9258_v20 }
 0x16d   :  { %1151 = vmatpush.msra.mxu0 %v9259_v27  ;;  %1171 = vmatpush.msrb.mxu1 %v9260_v28  ;;  %v9291_v27 = vld [vmem:[#allocation144_spill] sm:$0xff] }
 0x16e   :  { %1191 = vmatpush.msrb.mxu2 %v9261_v29  ;;  %1211 = vmatpush.msra.mxu3 %v9262_v30  ;;  %v9292_v29 = vld [vmem:[#allocation157_spill] sm:$0xff] }
 0x16f   :  { %1152 = vmatpush.msra.mxu0 %v9263_v31  ;;  %1172 = vmatpush.msrb.mxu1 %v9264_v32 }
 0x170   :  { %1192 = vmatpush.msrb.mxu2 %v9265_v33  ;;  %1212 = vmatpush.msra.mxu3 %v9266_v34  ;;  %v740_v34 = vperm.slane %v736_v7, 2 }
 0x171   :  { %1153 = vmatpush.msra.mxu0 %v9267_v35  ;;  %1173 = vmatpush.msrb.mxu1 %v9268_v36 }
 0x172   :  { %1193 = vmatpush.msrb.mxu2 %v9269_v37  ;;  %1213 = vmatpush.msra.mxu3 %v9270_v38 }
 0x173   :  { %1154 = vmatpush.msra.mxu0 %v9271_v39  ;;  %1174 = vmatpush.msrb.mxu1 %v9272_v40  ;;  %v9293_v39 = vld [vmem:[#allocation158_spill] sm:$0xff] }
 0x174   :  { %1194 = vmatpush.msrb.mxu2 %v9273_v41  ;;  %1214 = vmatpush.msra.mxu3 %v9274_v44 }
 0x175   :  { %1155 = vmatpush.msra.mxu0 %v9275_v46  ;;  %1175 = vmatpush.msrb.mxu1 %v9276_v49 }
 0x176   :  { %1195 = vmatpush.msrb.mxu2 %v9277_v45  ;;  %1215 = vmatpush.msra.mxu3 %v9278_v52  ;;  %v741_v52 = vperm.slane %v736_v7, 3 }
 0x177   :  { %1156 = vmatpush.msra.mxu0 %v9279_v54  ;;  %1176 = vmatpush.msrb.mxu1 %v9280_v55 }
 0x178   :  { %1196 = vmatpush.msrb.mxu2 %v9281_v57  ;;  %1216 = vmatpush.msra.mxu3 %v9282_v58 }
 0x179   :  { %1157 = vmatpush.msra.mxu0 %v9283_v59  ;;  %1177 = vmatpush.msrb.mxu1 %v9284_v60 }
 0x17a   :  { %1197 = vmatpush.msrb.mxu2 %v9285_v61  ;;  %1217 = vmatpush.msra.mxu3 %v9286_v62 }
 0x17b   :  { %1158 = vmatpush.msra.mxu0 %v9287_v0  ;;  %1178 = vmatpush.msrb.mxu1 %v9288_v1 }
 0x17c   :  { %1198 = vmatpush.msrb.mxu2 %v9289_v3  ;;  %1218 = vmatpush.msra.mxu3 %v9290_v4 }
 0x194   :  { %v592_v6 = vpop.f32.mrf.mxu0  ;;  %v612_v10 = vpop.f32.mrf.mxu1 }
 0x19b   :  { %v632_v21 = vpop.f32.mrf.mxu2  ;;  %v652_v18 = vpop.f32.mrf.mxu3 }
 0x19e   :  { %v672_v26 = vpop.f32.mrf.mxu0  ;;  %v692_v16 = vpop.f32.mrf.mxu1 }
 0x19f   :  { %v673_v51 = vadd.f32 %v672_v26, %v592_v6  ;;  %v693_v25 = vadd.f32 %v692_v16, %v612_v10 }
 0x1a1   :  { %v746_v42 = vadd.f32 %v738_v24, %v673_v51  ;;  %v747_v15 = vadd.f32 %v739_v13, %v693_v25 }
 0x1a3   :  { %v750_v22 = vmul.f32 0.5, %v746_v42  ;;  %v754_v43 = vmul.f32 0.5, %v747_v15 }
 0x1a5   :  { %v712_v19 = vpop.f32.mrf.mxu2  ;;  %v732_v48 = vpop.f32.mrf.mxu3  ;;  %4496 = vtanh.f32 %v750_v22  ;;  %v5784_v22 = vld [vmem:[#allocation9 + $0x3e0] sm:$0xff] }
 0x1a6   :  { %4498 = vtanh.f32 %v754_v43  ;;  %v713_v33 = vadd.f32 %v712_v19, %v632_v21  ;;  %v733_v45 = vadd.f32 %v732_v48, %v652_v18  ;;  %v279_v21 = vld [vmem:[#allocation8 + $0x8] sm:$0xff]  ;;  %v5786_v19 = vld [vmem:[#allocation9 + $0x3e8] sm:$0xff]  ;;  %v5790_v48 = vld [vmem:[#allocation9 + $0x3f0] sm:$0xff] }
 0x1a7   :  { %v5792_v43 = vld [vmem:[#allocation9 + $0x3f8] sm:$0xff] }
 0x1a8   :  { %v748_v37 = vadd.f32 %v740_v34, %v713_v33  ;;  %v749_v61 = vadd.f32 %v741_v52, %v733_v45  ;;  %v5810_v33 = vld [vmem:[#allocation9 + $0x3a8] sm:$0xff]  ;;  %v5814_v34 = vld [vmem:[#allocation9 + $0x3b0] sm:$0xff] }
 0x1a9   :  { %v5840_v45 = vld [vmem:[#allocation9 + $0x368] sm:$0xff]  ;;  %v5844_v52 = vld [vmem:[#allocation9 + $0x370] sm:$0xff] }
 0x1aa   :  { %v759_v7 = vmul.f32 0.5, %v749_v61  ;;  %v5866_v61 = vld [vmem:[#allocation9 + $0x338] sm:$0xff] }
 0x1ab   :  { %v4497_v41 = vpop.eup %4496 }
 0x1ac   :  { %v4499_v44 = vpop.eup %4498  ;;  %v752_v57 = vmul.f32 0.5, %v4497_v41  ;;  %v5826_v41 = vld [vmem:[#allocation9 + $0x390] sm:$0xff] }
 0x1ad   :  { %v756_v58 = vmul.f32 0.5, %v4499_v44  ;;  %v5828_v44 = vld [vmem:[#allocation9 + $0x398] sm:$0xff] }
 0x1ae   :  { %v753_v1 = vadd.f32 0.5, %v752_v57  ;;  %v5854_v57 = vld [vmem:[#allocation9 + $0x350] sm:$0xff] }
 0x1af   :  { %v757_v3 = vadd.f32 0.5, %v756_v58  ;;  %v5856_v58 = vld [vmem:[#allocation9 + $0x358] sm:$0xff] }
 0x1b1   :  { %v763_v16 = vmul.f32 %v757_v3, %v279_v21  ;;  %v5884_v3 = vld [vmem:[#allocation9 + $0x2f0] sm:$0xff] }
 0x1b2   :  { %v5904_v21 = vld [vmem:[#allocation9 + $0x2b0] sm:$0xff] }
 0x1b8   :  { %v850_v17 = vpop.f32.mrf.mxu0  ;;  %v870_v20 = vpop.f32.mrf.mxu1 }
 0x1b9   :  { %v913_v28 = vadd.f32 %v850_v17, %v9291_v27  ;;  %v914_v30 = vadd.f32 %v870_v20, %v9292_v29  ;;  %v5796_v17 = vld [vmem:[#allocation9 + $0x3c0] sm:$0xff]  ;;  %v5798_v20 = vld [vmem:[#allocation9 + $0x3c8] sm:$0xff] }
 0x1bb   :  { %v917_v31 = vmul.f32 0.5, %v913_v28  ;;  %v921_v32 = vmul.f32 0.5, %v914_v30  ;;  %v5802_v30 = vld [vmem:[#allocation9 + $0x3d0] sm:$0xff] }
 0x1bd   :  { %4500 = vtanh.f32 %v917_v31  ;;  %v5804_v31 = vld [vmem:[#allocation9 + $0x3d8] sm:$0xff] }
 0x1be   :  { %4502 = vtanh.f32 %v921_v32  ;;  %v5808_v32 = vld [vmem:[#allocation9 + $0x3a0] sm:$0xff] }
 0x1bf   :  { %v890_v35 = vpop.f32.mrf.mxu2  ;;  %v910_v36 = vpop.f32.mrf.mxu3 }
 0x1c0   :  { %v915_v38 = vadd.f32 %v890_v35, %v5541_v12  ;;  %v916_v40 = vadd.f32 %v910_v36, %v9293_v39  ;;  %v5816_v35 = vld [vmem:[#allocation9 + $0x3b8] sm:$0xff] }
 0x1c2   :  { %4504 = vtanh.f32 %v915_v38  ;;  %v926_v46 = vmul.f32 0.5, %v916_v40  ;;  %v5822_v38 = vld [vmem:[#allocation9 + $0x388] sm:$0xff] }
 0x1c3   :  { %v4501_v49 = vpop.eup %4500  ;;  %4506 = vtanh.f32 %v748_v37  ;;  %v5820_v37 = vld [vmem:[#allocation9 + $0x380] sm:$0xff] }
 0x1c4   :  { %v4503_v54 = vpop.eup %4502  ;;  %v919_v55 = vmul.f32 0.5, %v4501_v49  ;;  %4508 = vtanh.f32 %v926_v46  ;;  %v5838_v49 = vld [vmem:[#allocation9 + $0x360] sm:$0xff] }
 0x1c5   :  { %v923_v59 = vmul.f32 0.5, %v4503_v54  ;;  %v5846_v54 = vld [vmem:[#allocation9 + $0x378] sm:$0xff] }
 0x1c6   :  { %v920_v60 = vadd.f32 0.5, %v919_v55  ;;  %v5850_v55 = vld [vmem:[#allocation9 + $0x348] sm:$0xff] }
 0x1c7   :  { %v924_v62 = vadd.f32 0.5, %v923_v59  ;;  %v5860_v59 = vld [vmem:[#allocation9 + $0x328] sm:$0xff] }
 0x1c8   :  { %v4505_v0 = vpop.eup %4504 }
 0x1c9   :  { %v930_v4 = vmul.f32 %v924_v62, %v5544_v9  ;;  %v931_v6 = vmul.f32 %v4505_v0, %v920_v60  ;;  %v4507_v10 = vpop.eup %4506  ;;  %v5864_v60 = vld [vmem:[#allocation9 + $0x330] sm:$0xff]  ;;  %v5870_v62 = vld [vmem:[#allocation9 + $0x308] sm:$0xff] }
 0x1ca   :  { %v4509_v26 = vpop.eup %4508  ;;  %v764_v51 = vmul.f32 %v4507_v10, %v753_v1  ;;  %v5874_v0 = vld [vmem:[#allocation9 + $0x310] sm:$0xff]  ;;  %v5876_v1 = vld [vmem:[#allocation9 + $0x318] sm:$0xff] }
 0x1cb   :  { %v5776_v18 = vadd.f32 %v931_v6, %v930_v4  ;;  %v928_v24 = vmul.f32 0.5, %v4509_v26  ;;  %v5886_v4 = vld [vmem:[#allocation9 + $0x2f8] sm:$0xff]  ;;  %v5894_v6 = vld [vmem:[#allocation9 + $0x2d0] sm:$0xff] }
 0x1cc   :  { %v5779_v25 = vadd.f32 %v764_v51, %v763_v16  ;;  %v5896_v10 = vld [vmem:[#allocation9 + $0x2d8] sm:$0xff]  ;;  %v5924_v51 = vld [vmem:[#allocation9 + $0x270] sm:$0xff] }
 0x1cd   :  { %4510 = vtanh.f32 %v5776_v18  ;;  %v929_v13 = vadd.f32 0.5, %v928_v24  ;;  %v5906_v26 = vld [vmem:[#allocation9 + $0x2b8] sm:$0xff]  ;;  %9299 = vst [vmem:[#allocation26_spill] sm:$0xff] %v5924_v51 }
 0x1ce   :  { %4512 = vtanh.f32 %v759_v7  ;;  %v5914_v7 = vld [vmem:[#allocation9 + $0x290] sm:$0xff]  ;;  %v5916_v16 = vld [vmem:[#allocation9 + $0x298] sm:$0xff] }
 0x1cf   :  { %4514 = vtanh.f32 %v5779_v25  ;;  %9296 = vst [vmem:[#allocation24_spill] sm:$0xff] %v5914_v7  ;;  %v5926_v24 = vld [vmem:[#allocation9 + $0x278] sm:$0xff] }
 0x1d0   :  { %9297 = vst [vmem:[#allocation25_spill] sm:$0xff] %v5916_v16 }
 0x1d1   :  { %9300 = vst [vmem:[#allocation27_spill] sm:$0xff] %v5926_v24 }
 0x1d3   :  { %v4511_v42 = vpop.eup %4510 }
 0x1d4   :  { %v5781_v15 = vmul.f32 %v4511_v42, %v929_v13  ;;  %v4513_v9 = vpop.eup %4512  ;;  %v5934_v13 = vld [vmem:[#allocation9 + $0x250] sm:$0xff]  ;;  %v5936_v42 = vld [vmem:[#allocation9 + $0x258] sm:$0xff] }
 0x1d5   :  { %v761_v28 = vmul.f32 0.5, %v4513_v9  ;;  %v4515_v36 = vpop.eup %4514  ;;  %9302 = vst [vmem:[#allocation28_spill] sm:$0xff] %v5934_v13  ;;  %v5944_v9 = vld [vmem:[#allocation9 + $0x230] sm:$0xff] }
 0x1d6   :  { %1079 = vmatmul.f32.vlgmr.msrb.gmra.mxu0 %v5781_v15  ;;  %1099 = vmatmul.f32.vlgmr.msra.gmra.mxu1 %v5781_v15  ;;  %9303 = vst [vmem:[#allocation29_spill] sm:$0xff] %v5936_v42 }
 0x1d7   :  { %1119 = vmatmul.f32.vlgmr.msra.gmra.mxu2 %v5781_v15  ;;  %1139 = vmatmul.f32.vlgmr.msrb.gmra.mxu3 %v5781_v15  ;;  %v762_v40 = vadd.f32 0.5, %v761_v28  ;;  %9305 = vst [vmem:[#allocation31_spill] sm:$0xff] %v5944_v9  ;;  %v5946_v28 = vld [vmem:[#allocation9 + $0x238] sm:$0xff] }
 0x1d8   :  { %1321 = vmatpush.msrb.mxu0 %v5784_v22  ;;  %1341 = vmatpush.msra.mxu1 %v5786_v19  ;;  %9306 = vst [vmem:[#allocation32_spill] sm:$0xff] %v5946_v28 }
 0x1d9   :  { %1361 = vmatpush.msra.mxu2 %v5790_v48  ;;  %1381 = vmatpush.msrb.mxu3 %v5792_v43  ;;  %v5832_v46 = vmul.f32 %v4515_v36, %v762_v40  ;;  %v5954_v36 = vld [vmem:[#allocation9 + $0x210] sm:$0xff]  ;;  %v5956_v40 = vld [vmem:[#allocation9 + $0x218] sm:$0xff] }
 0x1da   :  { %1322 = vmatpush.msrb.mxu0 %v5796_v17  ;;  %1342 = vmatpush.msra.mxu1 %v5798_v20  ;;  %9308 = vst [vmem:[#allocation34_spill] sm:$0xff] %v5954_v36 }
 0x1db   :  { %1362 = vmatpush.msra.mxu2 %v5802_v30  ;;  %1382 = vmatpush.msrb.mxu3 %v5804_v31  ;;  %9294 = vst [vmem:[#allocation23_spill] sm:$0xff] %v5832_v46 }
 0x1dc   :  { %1323 = vmatpush.msrb.mxu0 %v5808_v32  ;;  %1343 = vmatpush.msra.mxu1 %v5810_v33  ;;  %9309 = vst [vmem:[#allocation35_spill] sm:$0xff] %v5956_v40 }
 0x1dd   :  { %1363 = vmatpush.msra.mxu2 %v5814_v34  ;;  %1383 = vmatpush.msrb.mxu3 %v5816_v35 }
 0x1de   :  { %1324 = vmatpush.msrb.mxu0 %v5820_v37  ;;  %1344 = vmatpush.msra.mxu1 %v5822_v38 }
 0x1df   :  { %1364 = vmatpush.msra.mxu2 %v5826_v41  ;;  %1384 = vmatpush.msrb.mxu3 %v5828_v44 }
 0x1e0   :  { %1159 = vmatmul.f32.vlgmr.msra.gmra.mxu0 %v5832_v46  ;;  %1179 = vmatmul.f32.vlgmr.msrb.gmra.mxu1 %v5832_v46 }
 0x1e1   :  { %1199 = vmatmul.f32.vlgmr.msrb.gmra.mxu2 %v5832_v46  ;;  %1219 = vmatmul.f32.vlgmr.msra.gmra.mxu3 %v5832_v46  ;;  %v5970_v46 = vld [vmem:[#allocation9 + $0x5f0] sm:$0xff] }
 0x1e2   :  { %1325 = vmatpush.msrb.mxu0 %v5838_v49  ;;  %1345 = vmatpush.msra.mxu1 %v5840_v45  ;;  %9312 = vst [vmem:[#allocation38_spill] sm:$0xff] %v5970_v46 }
 0x1e3   :  { %1365 = vmatpush.msra.mxu2 %v5844_v52  ;;  %1385 = vmatpush.msrb.mxu3 %v5846_v54 }
 0x1e4   :  { %1326 = vmatpush.msrb.mxu0 %v5569_v47  ;;  %1346 = vmatpush.msra.mxu1 %v5850_v55  ;;  %v5880_v47 = vld [vmem:[#allocation9 + $0x2e8] sm:$0xff] }
 0x1e5   :  { %1366 = vmatpush.msra.mxu2 %v5854_v57  ;;  %1386 = vmatpush.msrb.mxu3 %v5856_v58 }
 0x1e6   :  { %1327 = vmatpush.msrb.mxu0 %v5575_v50  ;;  %1347 = vmatpush.msra.mxu1 %v5860_v59  ;;  %v5890_v50 = vld [vmem:[#allocation9 + $0x2c8] sm:$0xff] }
 0x1e7   :  { %1367 = vmatpush.msra.mxu2 %v5864_v60  ;;  %1387 = vmatpush.msrb.mxu3 %v5866_v61 }
 0x1e8   :  { %1328 = vmatpush.msrb.mxu0 %v5581_v53  ;;  %1348 = vmatpush.msra.mxu1 %v5870_v62  ;;  %v5900_v53 = vld [vmem:[#allocation9 + $0x2a8] sm:$0xff] }
 0x1e9   :  { %1368 = vmatpush.msra.mxu2 %v5874_v0  ;;  %1388 = vmatpush.msrb.mxu3 %v5876_v1 }
 0x1ea   :  { %1329 = vmatpush.msrb.mxu0 %v5587_v56  ;;  %1349 = vmatpush.msra.mxu1 %v5880_v47  ;;  %v5910_v56 = vld [vmem:[#allocation9 + $0x288] sm:$0xff] }
 0x1eb   :  { %1369 = vmatpush.msra.mxu2 %v5884_v3  ;;  %1389 = vmatpush.msrb.mxu3 %v5886_v4  ;;  %9295 = vst [vmem:[#allocation20_spill] sm:$0xff] %v5910_v56 }
 0x1ec   :  { %1330 = vmatpush.msrb.mxu0 %v5593_v63  ;;  %1350 = vmatpush.msra.mxu1 %v5890_v50  ;;  %v5920_v63 = vld [vmem:[#allocation9 + $0x268] sm:$0xff] }
 0x1ed   :  { %1370 = vmatpush.msra.mxu2 %v5894_v6  ;;  %1390 = vmatpush.msrb.mxu3 %v5896_v10  ;;  %9298 = vst [vmem:[#allocation21_spill] sm:$0xff] %v5920_v63 }
 0x1ee   :  { %1331 = vmatpush.msrb.mxu0 %v5599_v2  ;;  %1351 = vmatpush.msra.mxu1 %v5900_v53  ;;  %v5930_v2 = vld [vmem:[#allocation9 + $0x248] sm:$0xff] }
 0x1ef   :  { %1371 = vmatpush.msra.mxu2 %v5904_v21  ;;  %1391 = vmatpush.msrb.mxu3 %v5906_v26  ;;  %9301 = vst [vmem:[#allocation22_spill] sm:$0xff] %v5930_v2 }
 0x1f0   :  { %1332 = vmatpush.msrb.mxu0 %v5605_v5  ;;  %1352 = vmatpush.msra.mxu1 %v5910_v56  ;;  %v5940_v5 = vld [vmem:[#allocation9 + $0x228] sm:$0xff] }
 0x1f1   :  { %1372 = vmatpush.msra.mxu2 %v5914_v7  ;;  %1392 = vmatpush.msrb.mxu3 %v5916_v16  ;;  %9304 = vst [vmem:[#allocation30_spill] sm:$0xff] %v5940_v5  ;;  %v6324_v7 = vld [vmem:[#allocation9 + $0x648] sm:$0xff] }
 0x1f2   :  { %1333 = vmatpush.msrb.mxu0 %v5611_v8  ;;  %1353 = vmatpush.msra.mxu1 %v5920_v63  ;;  %v5950_v8 = vld [vmem:[#allocation9 + $0x208] sm:$0xff]  ;;  %9427 = vst [vmem:[#allocation154_spill] sm:$0xff] %v6324_v7 }
 0x1f3   :  { %1373 = vmatpush.msra.mxu2 %v5924_v51  ;;  %1393 = vmatpush.msrb.mxu3 %v5926_v24  ;;  %9307 = vst [vmem:[#allocation33_spill] sm:$0xff] %v5950_v8  ;;  %v6312_v51 = vld [vmem:[#allocation9 + $0x670] sm:$0xff] }
 0x1f4   :  { %1334 = vmatpush.msrb.mxu0 %v5617_v11  ;;  %1354 = vmatpush.msra.mxu1 %v5930_v2  ;;  %v5964_v11 = vld [vmem:[#allocation9 + $0x5e0] sm:$0xff]  ;;  %v6298_v2 = vld [vmem:[#allocation9 + $0x690] sm:$0xff]  ;;  %9424 = vst [vmem:[#allocation151_spill] sm:$0xff] %v6312_v51 }
 0x1f5   :  { %1374 = vmatpush.msra.mxu2 %v5934_v13  ;;  %1394 = vmatpush.msrb.mxu3 %v5936_v42  ;;  %9310 = vst [vmem:[#allocation36_spill] sm:$0xff] %v5964_v11  ;;  %v6250_v42 = vld [vmem:[#allocation9 + $0x718] sm:$0xff] }
 0x1f6   :  { %1335 = vmatpush.msrb.mxu0 %v5623_v14  ;;  %1355 = vmatpush.msra.mxu1 %v5940_v5  ;;  %v5966_v14 = vld [vmem:[#allocation9 + $0x5e8] sm:$0xff]  ;;  %9405 = vst [vmem:[#allocation131_spill] sm:$0xff] %v6250_v42 }
 0x1f7   :  { %1375 = vmatpush.msra.mxu2 %v5944_v9  ;;  %1395 = vmatpush.msrb.mxu3 %v5946_v28  ;;  %9311 = vst [vmem:[#allocation37_spill] sm:$0xff] %v5966_v14  ;;  %v5972_v9 = vld [vmem:[#allocation9 + $0x5f8] sm:$0xff] }
 0x1f8   :  { %1336 = vmatpush.msrb.mxu0 %v5629_v23  ;;  %1356 = vmatpush.msra.mxu1 %v5950_v8  ;;  %9313 = vst [vmem:[#allocation39_spill] sm:$0xff] %v5972_v9  ;;  %v5980_v23 = vld [vmem:[#allocation9 + $0x5c0] sm:$0xff]  ;;  %v5988_v8 = vld [vmem:[#allocation9 + $0x5d8] sm:$0xff] }
 0x1f9   :  { %1376 = vmatpush.msra.mxu2 %v5954_v36  ;;  %1396 = vmatpush.msrb.mxu3 %v5956_v40  ;;  %9314 = vst [vmem:[#allocation40_spill] sm:$0xff] %v5980_v23  ;;  %v5982_v40 = vld [vmem:[#allocation9 + $0x5c8] sm:$0xff]  ;;  %v5984_v36 = vld [vmem:[#allocation9 + $0x5d0] sm:$0xff]  ;;  %v6008_v28 = vld [vmem:[#allocation9 + $0x598] sm:$0xff] }
 0x1fa   :  { %1337 = vmatmul.f32.vlgmr.msrb.gmra.mxu0 %v5781_v15  ;;  %1357 = vmatmul.f32.vlgmr.msra.gmra.mxu1 %v5781_v15  ;;  %9315 = vst [vmem:[#allocation41_spill] sm:$0xff] %v5982_v40 }
 0x1fb   :  { %1377 = vmatmul.f32.vlgmr.msra.gmra.mxu2 %v5781_v15  ;;  %1397 = vmatmul.f32.vlgmr.msrb.gmra.mxu3 %v5781_v15  ;;  %9316 = vst [vmem:[#allocation42_spill] sm:$0xff] %v5984_v36  ;;  %v5990_v15 = vld [vmem:[#allocation9 + $0x5a0] sm:$0xff] }
 0x1fc   :  { %1551 = vmatpush.msra.mxu0 %v5964_v11  ;;  %1571 = vmatpush.msrb.mxu1 %v5966_v14  ;;  %9317 = vst [vmem:[#allocation43_spill] sm:$0xff] %v5988_v8  ;;  %v5992_v11 = vld [vmem:[#allocation9 + $0x5a8] sm:$0xff]  ;;  %v6000_v14 = vld [vmem:[#allocation9 + $0x580] sm:$0xff] }
 0x1fd   :  { %1591 = vmatpush.msrb.mxu2 %v5970_v46  ;;  %1611 = vmatpush.msra.mxu3 %v5972_v9  ;;  %9318 = vst [vmem:[#allocation44_spill] sm:$0xff] %v5990_v15  ;;  %v5996_v9 = vld [vmem:[#allocation9 + $0x5b0] sm:$0xff]  ;;  %v5998_v46 = vld [vmem:[#allocation9 + $0x5b8] sm:$0xff] }
 0x1fe   :  { %1552 = vmatpush.msra.mxu0 %v5980_v23  ;;  %1572 = vmatpush.msrb.mxu1 %v5982_v40  ;;  %9319 = vst [vmem:[#allocation45_spill] sm:$0xff] %v5992_v11  ;;  %v6004_v40 = vld [vmem:[#allocation9 + $0x588] sm:$0xff]  ;;  %v6006_v23 = vld [vmem:[#allocation9 + $0x590] sm:$0xff] }
 0x1ff   :  { %1592 = vmatpush.msrb.mxu2 %v5984_v36  ;;  %1612 = vmatpush.msra.mxu3 %v5988_v8  ;;  %9320 = vst [vmem:[#allocation46_spill] sm:$0xff] %v5996_v9  ;;  %v6020_v8 = vld [vmem:[#allocation9 + $0x570] sm:$0xff]  ;;  %v6190_v36 = vld [vmem:[#allocation9 + $0x7b8] sm:$0xff] }
 0x200   :  { %9321 = vst [vmem:[#allocation47_spill] sm:$0xff] %v5998_v46  ;;  %1553 = vmatpush.msra.mxu0 %v5990_v15  ;;  %1573 = vmatpush.msrb.mxu1 %v5992_v11  ;;  %v6016_v15 = vld [vmem:[#allocation9 + $0x560] sm:$0xff]  ;;  %v6018_v11 = vld [vmem:[#allocation9 + $0x568] sm:$0xff] }
 0x201   :  { %9322 = vst [vmem:[#allocation48_spill] sm:$0xff] %v6000_v14  ;;  %1593 = vmatpush.msrb.mxu2 %v5996_v9  ;;  %1613 = vmatpush.msra.mxu3 %v5998_v46  ;;  %v6024_v9 = vld [vmem:[#allocation9 + $0x578] sm:$0xff]  ;;  %v6174_v46 = vld [vmem:[#allocation9 + $0x7d0] sm:$0xff] }
 0x202   :  { %9323 = vst [vmem:[#allocation49_spill] sm:$0xff] %v6004_v40  ;;  %1554 = vmatpush.msra.mxu0 %v6000_v14  ;;  %1574 = vmatpush.msrb.mxu1 %v6004_v40  ;;  %v6028_v40 = vld [vmem:[#allocation9 + $0x540] sm:$0xff]  ;;  %v6036_v14 = vld [vmem:[#allocation9 + $0x558] sm:$0xff] }
 0x203   :  { %9324 = vst [vmem:[#allocation50_spill] sm:$0xff] %v6006_v23  ;;  %1594 = vmatpush.msrb.mxu2 %v6006_v23  ;;  %1614 = vmatpush.msra.mxu3 %v6008_v28  ;;  %v6030_v23 = vld [vmem:[#allocation9 + $0x548] sm:$0xff] }
 0x204   :  { %9325 = vst [vmem:[#allocation51_spill] sm:$0xff] %v6008_v28  ;;  %1555 = vmatpush.msra.mxu0 %v6016_v15  ;;  %1575 = vmatpush.msrb.mxu1 %v6018_v11  ;;  %v6032_v28 = vld [vmem:[#allocation9 + $0x550] sm:$0xff] }
 0x205   :  { %9326 = vst [vmem:[#allocation52_spill] sm:$0xff] %v6016_v15  ;;  %1595 = vmatpush.msrb.mxu2 %v6020_v8  ;;  %1615 = vmatpush.msra.mxu3 %v6024_v9  ;;  %v6048_v15 = vld [vmem:[#allocation9 + $0x538] sm:$0xff] }
 0x206   :  { %9327 = vst [vmem:[#allocation53_spill] sm:$0xff] %v6018_v11  ;;  %1556 = vmatpush.msra.mxu0 %v6028_v40  ;;  %1576 = vmatpush.msrb.mxu1 %v6030_v23  ;;  %v6040_v11 = vld [vmem:[#allocation9 + $0x520] sm:$0xff] }
 0x207   :  { %9328 = vst [vmem:[#allocation54_spill] sm:$0xff] %v6020_v8  ;;  %1596 = vmatpush.msrb.mxu2 %v6032_v28  ;;  %1616 = vmatpush.msra.mxu3 %v6036_v14  ;;  %v6042_v8 = vld [vmem:[#allocation9 + $0x528] sm:$0xff] }
 0x208   :  { %9329 = vst [vmem:[#allocation55_spill] sm:$0xff] %v6024_v9  ;;  %v6044_v9 = vld [vmem:[#allocation9 + $0x530] sm:$0xff]  ;;  %1557 = vmatpush.msra.mxu0 %v6040_v11  ;;  %1577 = vmatpush.msrb.mxu1 %v6042_v8 }
 0x209   :  { %9330 = vst [vmem:[#allocation56_spill] sm:$0xff] %v6028_v40  ;;  %1597 = vmatpush.msrb.mxu2 %v6044_v9  ;;  %1617 = vmatpush.msra.mxu3 %v6048_v15  ;;  %v6060_v40 = vld [vmem:[#allocation9 + $0x518] sm:$0xff] }
 0x20a   :  { %9331 = vst [vmem:[#allocation57_spill] sm:$0xff] %v6030_v23  ;;  %v6052_v23 = vld [vmem:[#allocation9 + $0x500] sm:$0xff] }
 0x20b   :  { %9332 = vst [vmem:[#allocation58_spill] sm:$0xff] %v6032_v28  ;;  %v6054_v28 = vld [vmem:[#allocation9 + $0x508] sm:$0xff]  ;;  %1558 = vmatpush.msra.mxu0 %v6052_v23  ;;  %1618 = vmatpush.msra.mxu3 %v6060_v40 }
 0x20c   :  { %9333 = vst [vmem:[#allocation59_spill] sm:$0xff] %v6036_v14  ;;  %v6056_v14 = vld [vmem:[#allocation9 + $0x510] sm:$0xff]  ;;  %1578 = vmatpush.msrb.mxu1 %v6054_v28 }
 0x20d   :  { %9334 = vst [vmem:[#allocation60_spill] sm:$0xff] %v6040_v11  ;;  %1598 = vmatpush.msrb.mxu2 %v6056_v14  ;;  %v6072_v11 = vld [vmem:[#allocation9 + $0x4f8] sm:$0xff] }
 0x20e   :  { %9335 = vst [vmem:[#allocation61_spill] sm:$0xff] %v6042_v8  ;;  %v6064_v8 = vld [vmem:[#allocation9 + $0x4e0] sm:$0xff]  ;;  %1619 = vmatpush.msra.mxu3 %v6072_v11 }
 0x20f   :  { %9336 = vst [vmem:[#allocation62_spill] sm:$0xff] %v6044_v9  ;;  %v6066_v9 = vld [vmem:[#allocation9 + $0x4e8] sm:$0xff]  ;;  %1559 = vmatpush.msra.mxu0 %v6064_v8 }
 0x210   :  { %9337 = vst [vmem:[#allocation63_spill] sm:$0xff] %v6048_v15  ;;  %v6068_v15 = vld [vmem:[#allocation9 + $0x4f0] sm:$0xff]  ;;  %1579 = vmatpush.msrb.mxu1 %v6066_v9 }
 0x211   :  { %9338 = vst [vmem:[#allocation64_spill] sm:$0xff] %v6052_v23  ;;  %1599 = vmatpush.msrb.mxu2 %v6068_v15  ;;  %v6084_v23 = vld [vmem:[#allocation9 + $0x4d8] sm:$0xff] }
 0x212   :  { %9339 = vst [vmem:[#allocation65_spill] sm:$0xff] %v6054_v28  ;;  %v6076_v28 = vld [vmem:[#allocation9 + $0x4c0] sm:$0xff]  ;;  %1620 = vmatpush.msra.mxu3 %v6084_v23 }
 0x213   :  { %9340 = vst [vmem:[#allocation66_spill] sm:$0xff] %v6056_v14  ;;  %v6078_v14 = vld [vmem:[#allocation9 + $0x4c8] sm:$0xff]  ;;  %1560 = vmatpush.msra.mxu0 %v6076_v28 }
 0x214   :  { %9341 = vst [vmem:[#allocation67_spill] sm:$0xff] %v6060_v40  ;;  %v6080_v40 = vld [vmem:[#allocation9 + $0x4d0] sm:$0xff]  ;;  %1580 = vmatpush.msrb.mxu1 %v6078_v14 }
 0x215   :  { %9342 = vst [vmem:[#allocation68_spill] sm:$0xff] %v6064_v8  ;;  %1600 = vmatpush.msrb.mxu2 %v6080_v40  ;;  %v6096_v8 = vld [vmem:[#allocation9 + $0x4b8] sm:$0xff] }
 0x216   :  { %9343 = vst [vmem:[#allocation69_spill] sm:$0xff] %v6066_v9  ;;  %v6088_v9 = vld [vmem:[#allocation9 + $0x4a0] sm:$0xff]  ;;  %1621 = vmatpush.msra.mxu3 %v6096_v8 }
 0x217   :  { %9344 = vst [vmem:[#allocation70_spill] sm:$0xff] %v6068_v15  ;;  %v6090_v15 = vld [vmem:[#allocation9 + $0x4a8] sm:$0xff]  ;;  %1561 = vmatpush.msra.mxu0 %v6088_v9 }
 0x218   :  { %9345 = vst [vmem:[#allocation71_spill] sm:$0xff] %v6072_v11  ;;  %v6092_v11 = vld [vmem:[#allocation9 + $0x4b0] sm:$0xff]  ;;  %1581 = vmatpush.msrb.mxu1 %v6090_v15 }
 0x219   :  { %9346 = vst [vmem:[#allocation72_spill] sm:$0xff] %v6076_v28  ;;  %1601 = vmatpush.msrb.mxu2 %v6092_v11  ;;  %v6108_v28 = vld [vmem:[#allocation9 + $0x498] sm:$0xff] }
 0x21a   :  { %9347 = vst [vmem:[#allocation73_spill] sm:$0xff] %v6078_v14  ;;  %v6100_v14 = vld [vmem:[#allocation9 + $0x480] sm:$0xff]  ;;  %1622 = vmatpush.msra.mxu3 %v6108_v28 }
 0x21b   :  { %9348 = vst [vmem:[#allocation74_spill] sm:$0xff] %v6080_v40  ;;  %v6102_v40 = vld [vmem:[#allocation9 + $0x488] sm:$0xff]  ;;  %1562 = vmatpush.msra.mxu0 %v6100_v14 }
 0x21c   :  { %9349 = vst [vmem:[#allocation75_spill] sm:$0xff] %v6084_v23  ;;  %v6104_v23 = vld [vmem:[#allocation9 + $0x490] sm:$0xff]  ;;  %1582 = vmatpush.msrb.mxu1 %v6102_v40 }
 0x21d   :  { %9350 = vst [vmem:[#allocation76_spill] sm:$0xff] %v6088_v9  ;;  %1602 = vmatpush.msrb.mxu2 %v6104_v23  ;;  %v6120_v9 = vld [vmem:[#allocation9 + $0x478] sm:$0xff] }
 0x21e   :  { %9351 = vst [vmem:[#allocation77_spill] sm:$0xff] %v6090_v15  ;;  %v6112_v15 = vld [vmem:[#allocation9 + $0x460] sm:$0xff]  ;;  %1623 = vmatpush.msra.mxu3 %v6120_v9 }
 0x21f   :  { %9352 = vst [vmem:[#allocation78_spill] sm:$0xff] %v6092_v11  ;;  %v6114_v11 = vld [vmem:[#allocation9 + $0x468] sm:$0xff]  ;;  %1563 = vmatpush.msra.mxu0 %v6112_v15 }
 0x220   :  { %9353 = vst [vmem:[#allocation79_spill] sm:$0xff] %v6096_v8  ;;  %v6116_v8 = vld [vmem:[#allocation9 + $0x470] sm:$0xff]  ;;  %1583 = vmatpush.msrb.mxu1 %v6114_v11 }
 0x221   :  { %9354 = vst [vmem:[#allocation80_spill] sm:$0xff] %v6100_v14  ;;  %1603 = vmatpush.msrb.mxu2 %v6116_v8  ;;  %v6132_v14 = vld [vmem:[#allocation9 + $0x458] sm:$0xff] }
 0x222   :  { %9355 = vst [vmem:[#allocation81_spill] sm:$0xff] %v6102_v40  ;;  %v6124_v40 = vld [vmem:[#allocation9 + $0x440] sm:$0xff]  ;;  %1624 = vmatpush.msra.mxu3 %v6132_v14 }
 0x223   :  { %9356 = vst [vmem:[#allocation82_spill] sm:$0xff] %v6104_v23  ;;  %v6126_v23 = vld [vmem:[#allocation9 + $0x448] sm:$0xff]  ;;  %1564 = vmatpush.msra.mxu0 %v6124_v40 }
 0x224   :  { %9357 = vst [vmem:[#allocation83_spill] sm:$0xff] %v6108_v28  ;;  %v6128_v28 = vld [vmem:[#allocation9 + $0x450] sm:$0xff]  ;;  %1584 = vmatpush.msrb.mxu1 %v6126_v23 }
 0x225   :  { %9358 = vst [vmem:[#allocation84_spill] sm:$0xff] %v6112_v15  ;;  %1604 = vmatpush.msrb.mxu2 %v6128_v28  ;;  %v6144_v15 = vld [vmem:[#allocation9 + $0x438] sm:$0xff] }
 0x226   :  { %9359 = vst [vmem:[#allocation85_spill] sm:$0xff] %v6114_v11  ;;  %v6136_v11 = vld [vmem:[#allocation9 + $0x420] sm:$0xff]  ;;  %1625 = vmatpush.msra.mxu3 %v6144_v15 }
 0x227   :  { %9360 = vst [vmem:[#allocation86_spill] sm:$0xff] %v6116_v8  ;;  %v6138_v8 = vld [vmem:[#allocation9 + $0x428] sm:$0xff]  ;;  %1565 = vmatpush.msra.mxu0 %v6136_v11 }
 0x228   :  { %9361 = vst [vmem:[#allocation87_spill] sm:$0xff] %v6120_v9  ;;  %v6140_v9 = vld [vmem:[#allocation9 + $0x430] sm:$0xff]  ;;  %1585 = vmatpush.msrb.mxu1 %v6138_v8 }
 0x229   :  { %9362 = vst [vmem:[#allocation88_spill] sm:$0xff] %v6124_v40  ;;  %1605 = vmatpush.msrb.mxu2 %v6140_v9  ;;  %v6156_v40 = vld [vmem:[#allocation9 + $0x418] sm:$0xff] }
 0x22a   :  { %9363 = vst [vmem:[#allocation89_spill] sm:$0xff] %v6126_v23  ;;  %v6148_v23 = vld [vmem:[#allocation9 + $0x400] sm:$0xff]  ;;  %1626 = vmatpush.msra.mxu3 %v6156_v40 }
 0x22b   :  { %9364 = vst [vmem:[#allocation90_spill] sm:$0xff] %v6128_v28  ;;  %v6150_v28 = vld [vmem:[#allocation9 + $0x408] sm:$0xff]  ;;  %1566 = vmatpush.msra.mxu0 %v6148_v23 }
 0x22c   :  { %9365 = vst [vmem:[#allocation91_spill] sm:$0xff] %v6132_v14  ;;  %v6152_v14 = vld [vmem:[#allocation9 + $0x410] sm:$0xff]  ;;  %1586 = vmatpush.msrb.mxu1 %v6150_v28 }
 0x22d   :  { %9366 = vst [vmem:[#allocation92_spill] sm:$0xff] %v6136_v11  ;;  %v6158_v11 = vld [vmem:[#allocation9 + $0x7e0] sm:$0xff]  ;;  %1606 = vmatpush.msrb.mxu2 %v6152_v14 }
 0x22e   :  { %9367 = vst [vmem:[#allocation93_spill] sm:$0xff] %v6138_v8  ;;  %v6160_v8 = vld [vmem:[#allocation9 + $0x7e8] sm:$0xff]  ;;  %1631 = vmatpush.msrb.mxu0 %v6158_v11 }
 0x22f   :  { %9368 = vst [vmem:[#allocation94_spill] sm:$0xff] %v6140_v9  ;;  %v6166_v9 = vld [vmem:[#allocation9 + $0x7f8] sm:$0xff]  ;;  %1651 = vmatpush.msra.mxu1 %v6160_v8 }
 0x230   :  { %9369 = vst [vmem:[#allocation95_spill] sm:$0xff] %v6144_v15  ;;  %v6164_v15 = vld [vmem:[#allocation9 + $0x7f0] sm:$0xff]  ;;  %1691 = vmatpush.msrb.mxu3 %v6166_v9 }
 0x231   :  { %9370 = vst [vmem:[#allocation96_spill] sm:$0xff] %v6148_v23  ;;  %v6170_v23 = vld [vmem:[#allocation9 + $0x7c0] sm:$0xff]  ;;  %1671 = vmatpush.msra.mxu2 %v6164_v15 }
 0x232   :  { %9371 = vst [vmem:[#allocation97_spill] sm:$0xff] %v6150_v28  ;;  %v6172_v28 = vld [vmem:[#allocation9 + $0x7c8] sm:$0xff]  ;;  %1632 = vmatpush.msrb.mxu0 %v6170_v23 }
 0x233   :  { %9372 = vst [vmem:[#allocation98_spill] sm:$0xff] %v6152_v14  ;;  %v6178_v14 = vld [vmem:[#allocation9 + $0x7d8] sm:$0xff]  ;;  %1652 = vmatpush.msra.mxu1 %v6172_v28  ;;  %1672 = vmatpush.msra.mxu2 %v6174_v46 }
 0x234   :  { %9373 = vst [vmem:[#allocation99_spill] sm:$0xff] %v6156_v40  ;;  %v6182_v40 = vld [vmem:[#allocation9 + $0x7a0] sm:$0xff]  ;;  %1692 = vmatpush.msrb.mxu3 %v6178_v14 }
 0x235   :  { %9374 = vst [vmem:[#allocation100_spill] sm:$0xff] %v6158_v11  ;;  %v6184_v11 = vld [vmem:[#allocation9 + $0x7a8] sm:$0xff]  ;;  %1633 = vmatpush.msrb.mxu0 %v6182_v40 }
 0x236   :  { %9375 = vst [vmem:[#allocation101_spill] sm:$0xff] %v6160_v8  ;;  %v6186_v8 = vld [vmem:[#allocation9 + $0x7b0] sm:$0xff]  ;;  %1653 = vmatpush.msra.mxu1 %v6184_v11  ;;  %1693 = vmatpush.msrb.mxu3 %v6190_v36 }
 0x237   :  { %9376 = vst [vmem:[#allocation102_spill] sm:$0xff] %v6164_v15  ;;  %1673 = vmatpush.msra.mxu2 %v6186_v8  ;;  %v6202_v15 = vld [vmem:[#allocation9 + $0x798] sm:$0xff] }
 0x238   :  { %9377 = vst [vmem:[#allocation103_spill] sm:$0xff] %v6166_v9  ;;  %v6194_v9 = vld [vmem:[#allocation9 + $0x780] sm:$0xff]  ;;  %1694 = vmatpush.msrb.mxu3 %v6202_v15 }
 0x239   :  { %9378 = vst [vmem:[#allocation104_spill] sm:$0xff] %v6170_v23  ;;  %v6196_v23 = vld [vmem:[#allocation9 + $0x788] sm:$0xff]  ;;  %1634 = vmatpush.msrb.mxu0 %v6194_v9 }
 0x23a   :  { %9379 = vst [vmem:[#allocation105_spill] sm:$0xff] %v6172_v28  ;;  %v6198_v28 = vld [vmem:[#allocation9 + $0x790] sm:$0xff]  ;;  %1654 = vmatpush.msra.mxu1 %v6196_v23 }
 0x23b   :  { %9380 = vst [vmem:[#allocation106_spill] sm:$0xff] %v6174_v46  ;;  %1674 = vmatpush.msra.mxu2 %v6198_v28  ;;  %v6214_v46 = vld [vmem:[#allocation9 + $0x778] sm:$0xff] }
 0x23c   :  { %9381 = vst [vmem:[#allocation107_spill] sm:$0xff] %v6178_v14  ;;  %v6206_v14 = vld [vmem:[#allocation9 + $0x760] sm:$0xff]  ;;  %1695 = vmatpush.msrb.mxu3 %v6214_v46 }
 0x23d   :  { %9382 = vst [vmem:[#allocation108_spill] sm:$0xff] %v6182_v40  ;;  %v6208_v40 = vld [vmem:[#allocation9 + $0x768] sm:$0xff]  ;;  %1635 = vmatpush.msrb.mxu0 %v6206_v14 }
 0x23e   :  { %9383 = vst [vmem:[#allocation109_spill] sm:$0xff] %v6184_v11  ;;  %v6210_v11 = vld [vmem:[#allocation9 + $0x770] sm:$0xff]  ;;  %1655 = vmatpush.msra.mxu1 %v6208_v40 }
 0x23f   :  { %9384 = vst [vmem:[#allocation110_spill] sm:$0xff] %v6186_v8  ;;  %1675 = vmatpush.msra.mxu2 %v6210_v11  ;;  %v6226_v8 = vld [vmem:[#allocation9 + $0x758] sm:$0xff] }
 0x240   :  { %9385 = vst [vmem:[#allocation111_spill] sm:$0xff] %v6190_v36  ;;  %v6218_v36 = vld [vmem:[#allocation9 + $0x740] sm:$0xff]  ;;  %1696 = vmatpush.msrb.mxu3 %v6226_v8 }
 0x241   :  { %9386 = vst [vmem:[#allocation112_spill] sm:$0xff] %v6194_v9  ;;  %v6220_v9 = vld [vmem:[#allocation9 + $0x748] sm:$0xff]  ;;  %1636 = vmatpush.msrb.mxu0 %v6218_v36 }
 0x242   :  { %9387 = vst [vmem:[#allocation113_spill] sm:$0xff] %v6196_v23  ;;  %v6222_v23 = vld [vmem:[#allocation9 + $0x750] sm:$0xff]  ;;  %1656 = vmatpush.msra.mxu1 %v6220_v9 }
 0x243   :  { %9388 = vst [vmem:[#allocation114_spill] sm:$0xff] %v6198_v28  ;;  %1676 = vmatpush.msra.mxu2 %v6222_v23 }
 0x244   :  { %9389 = vst [vmem:[#allocation115_spill] sm:$0xff] %v6202_v15  ;;  %v6234_v15 = vld [vmem:[#allocation9 + $0x730] sm:$0xff] }
 0x245   :  { %9390 = vst [vmem:[#allocation116_spill] sm:$0xff] %v6206_v14  ;;  %v6230_v14 = vld [vmem:[#allocation9 + $0x720] sm:$0xff]  ;;  %1677 = vmatpush.msra.mxu2 %v6234_v15 }
 0x246   :  { %9391 = vst [vmem:[#allocation117_spill] sm:$0xff] %v6208_v40  ;;  %v6232_v40 = vld [vmem:[#allocation9 + $0x728] sm:$0xff]  ;;  %1637 = vmatpush.msrb.mxu0 %v6230_v14 }
 0x247   :  { %9392 = vst [vmem:[#allocation118_spill] sm:$0xff] %v6210_v11  ;;  %v6238_v11 = vld [vmem:[#allocation9 + $0x738] sm:$0xff]  ;;  %1657 = vmatpush.msra.mxu1 %v6232_v40 }
 0x248   :  { %9393 = vst [vmem:[#allocation119_spill] sm:$0xff] %v6214_v46  ;;  %v6246_v46 = vld [vmem:[#allocation9 + $0x710] sm:$0xff]  ;;  %1697 = vmatpush.msrb.mxu3 %v6238_v11 }
 0x249   :  { %9394 = vst [vmem:[#allocation120_spill] sm:$0xff] %v6218_v36  ;;  %v6242_v36 = vld [vmem:[#allocation9 + $0x700] sm:$0xff]  ;;  %1678 = vmatpush.msra.mxu2 %v6246_v46 }
 0x24a   :  { %9395 = vst [vmem:[#allocation121_spill] sm:$0xff] %v6220_v9  ;;  %v6244_v9 = vld [vmem:[#allocation9 + $0x708] sm:$0xff]  ;;  %1638 = vmatpush.msrb.mxu0 %v6242_v36  ;;  %1698 = vmatpush.msrb.mxu3 %v6250_v42  ;;  %v6278_v42 = vld [vmem:[#allocation9 + $0x6a0] sm:$0xff] }
 0x24b   :  { %9396 = vst [vmem:[#allocation122_spill] sm:$0xff] %v6222_v23  ;;  %1658 = vmatpush.msra.mxu1 %v6244_v9  ;;  %v6262_v23 = vld [vmem:[#allocation9 + $0x6f8] sm:$0xff] }
 0x24c   :  { %9397 = vst [vmem:[#allocation123_spill] sm:$0xff] %v6226_v8  ;;  %v6254_v8 = vld [vmem:[#allocation9 + $0x6e0] sm:$0xff]  ;;  %1699 = vmatpush.msrb.mxu3 %v6262_v23 }
 0x24d   :  { %9398 = vst [vmem:[#allocation124_spill] sm:$0xff] %v6230_v14  ;;  %v6256_v14 = vld [vmem:[#allocation9 + $0x6e8] sm:$0xff]  ;;  %1639 = vmatpush.msrb.mxu0 %v6254_v8 }
 0x24e   :  { %9399 = vst [vmem:[#allocation125_spill] sm:$0xff] %v6232_v40  ;;  %v6258_v40 = vld [vmem:[#allocation9 + $0x6f0] sm:$0xff]  ;;  %1659 = vmatpush.msra.mxu1 %v6256_v14 }
 0x24f   :  { %9400 = vst [vmem:[#allocation126_spill] sm:$0xff] %v6234_v15  ;;  %1679 = vmatpush.msra.mxu2 %v6258_v40  ;;  %v6274_v15 = vld [vmem:[#allocation9 + $0x6d8] sm:$0xff] }
 0x250   :  { %9401 = vst [vmem:[#allocation127_spill] sm:$0xff] %v6238_v11  ;;  %v6266_v11 = vld [vmem:[#allocation9 + $0x6c0] sm:$0xff]  ;;  %1700 = vmatpush.msrb.mxu3 %v6274_v15 }
 0x251   :  { %9402 = vst [vmem:[#allocation128_spill] sm:$0xff] %v6242_v36  ;;  %v6268_v36 = vld [vmem:[#allocation9 + $0x6c8] sm:$0xff]  ;;  %1640 = vmatpush.msrb.mxu0 %v6266_v11 }
 0x252   :  { %9403 = vst [vmem:[#allocation129_spill] sm:$0xff] %v6244_v9  ;;  %v6270_v9 = vld [vmem:[#allocation9 + $0x6d0] sm:$0xff]  ;;  %1660 = vmatpush.msra.mxu1 %v6268_v36 }
 0x253   :  { %v1080_v28 = vpop.f32.mrf.mxu0  ;;  %v1100_v5 = vpop.f32.mrf.mxu1  ;;  %9404 = vst [vmem:[#allocation130_spill] sm:$0xff] %v6246_v46  ;;  %v6284_v46 = vld [vmem:[#allocation11 + $0x4] sm:$0xf]  ;;  %1680 = vmatpush.msra.mxu2 %v6270_v9  ;;  %1641 = vmatpush.msrb.mxu0 %v6278_v42 }
 0x254   :  { %9406 = vst [vmem:[#allocation132_spill] sm:$0xff] %v6254_v8  ;;  %v6280_v8 = vld [vmem:[#allocation9 + $0x6a8] sm:$0xff]  ;;  %v1225_v16 = vperm.slane %v6284_v46, 0 }
 0x255   :  { %9407 = vst [vmem:[#allocation133_spill] sm:$0xff] %v6256_v14  ;;  %v6282_v14 = vld [vmem:[#allocation9 + $0x6b0] sm:$0xff]  ;;  %1661 = vmatpush.msra.mxu1 %v6280_v8 }
 0x256   :  { %9408 = vst [vmem:[#allocation134_spill] sm:$0xff] %v6258_v40  ;;  %v6288_v40 = vld [vmem:[#allocation9 + $0x6b8] sm:$0xff]  ;;  %1681 = vmatpush.msra.mxu2 %v6282_v14 }
 0x257   :  { %9409 = vst [vmem:[#allocation135_spill] sm:$0xff] %v6262_v23  ;;  %1701 = vmatpush.msrb.mxu3 %v6288_v40 }
 0x258   :  { %9410 = vst [vmem:[#allocation136_spill] sm:$0xff] %v6266_v11  ;;  %v6296_v11 = vld [vmem:[#allocation9 + $0x688] sm:$0xff]  ;;  %1682 = vmatpush.msra.mxu2 %v6298_v2 }
 0x259   :  { %9411 = vst [vmem:[#allocation137_spill] sm:$0xff] %v6268_v36  ;;  %v6294_v36 = vld [vmem:[#allocation9 + $0x680] sm:$0xff]  ;;  %1662 = vmatpush.msra.mxu1 %v6296_v11 }
 0x25a   :  { %9412 = vst [vmem:[#allocation138_spill] sm:$0xff] %v6270_v9  ;;  %v6290_v23 = vpop.f32.mrf.mxu2  ;;  %v6300_v24 = vpop.f32.mrf.mxu3  ;;  %1642 = vmatpush.msrb.mxu0 %v6294_v36  ;;  %1683 = vmatpush.msra.mxu2 %v6312_v51  ;;  %v6342_v51 = vld [vmem:[#allocation9 + $0x638] sm:$0xff] }
 0x25b   :  { %9413 = vst [vmem:[#allocation139_spill] sm:$0xff] %v6274_v15  ;;  %v6304_v15 = vld [vmem:[#allocation9 + $0x698] sm:$0xff] }
 0x25c   :  { %9414 = vst [vmem:[#allocation140_spill] sm:$0xff] %v6278_v42  ;;  %v6310_v42 = vld [vmem:[#allocation9 + $0x668] sm:$0xff]  ;;  %1702 = vmatpush.msrb.mxu3 %v6304_v15 }
 0x25d   :  { %9415 = vst [vmem:[#allocation141_spill] sm:$0xff] %v6280_v8  ;;  %v1160_v13 = vpop.f32.mrf.mxu0  ;;  %v1180_v9 = vpop.f32.mrf.mxu1  ;;  %v6308_v8 = vld [vmem:[#allocation9 + $0x660] sm:$0xff]  ;;  %1663 = vmatpush.msra.mxu1 %v6310_v42 }
 0x25e   :  { %9416 = vst [vmem:[#allocation142_spill] sm:$0xff] %v6282_v14  ;;  %v1161_v63 = vadd.f32 %v1160_v13, %v1080_v28  ;;  %v1181_v14 = vadd.f32 %v1180_v9, %v1100_v5  ;;  %1643 = vmatpush.msrb.mxu0 %v6308_v8  ;;  %v6326_v13 = vld [vmem:[#allocation9 + $0x650] sm:$0xff]  ;;  %v6330_v28 = vld [vmem:[#allocation9 + $0x658] sm:$0xff]  ;;  %v6334_v5 = vld [vmem:[#allocation9 + $0x620] sm:$0xff] }
 0x25f   :  { %9417 = vst [vmem:[#allocation143_spill] sm:$0xff] %v6288_v40  ;;  %v6317_v40 = vld [vmem:[#allocation9 + $0x678] sm:$0xff]  ;;  %1664 = vmatpush.msra.mxu1 %v6324_v7  ;;  %v6336_v9 = vld [vmem:[#allocation9 + $0x628] sm:$0xff]  ;;  %1684 = vmatpush.msra.mxu2 %v6326_v13 }
 0x260   :  { %9418 = vst [vmem:[#allocation145_spill] sm:$0xff] %v6294_v36  ;;  %v1226_v36 = vperm.slane %v6284_v46, 1  ;;  %1703 = vmatpush.msrb.mxu3 %v6317_v40  ;;  %v6348_v7 = vld [vmem:[#allocation9 + $0x608] sm:$0xff] }
 0x261   :  { %9419 = vst [vmem:[#allocation146_spill] sm:$0xff] %v6296_v11  ;;  %v6322_v11 = vld [vmem:[#allocation9 + $0x640] sm:$0xff]  ;;  %1665 = vmatpush.msra.mxu1 %v6336_v9 }
 0x262   :  { %9420 = vst [vmem:[#allocation147_spill] sm:$0xff] %v6298_v2  ;;  %1644 = vmatpush.msrb.mxu0 %v6322_v11  ;;  %1704 = vmatpush.msrb.mxu3 %v6330_v28 }
 0x263   :  { %9421 = vst [vmem:[#allocation148_spill] sm:$0xff] %v6304_v15  ;;  %v6350_v15 = vld [vmem:[#allocation9 + $0x610] sm:$0xff]  ;;  %1666 = vmatpush.msra.mxu1 %v6348_v7 }
 0x264   :  { %9422 = vst [vmem:[#allocation149_spill] sm:$0xff] %v6308_v8  ;;  %v1233_v8 = vadd.f32 %v1225_v16, %v1161_v63  ;;  %1645 = vmatpush.msrb.mxu0 %v6334_v5  ;;  %1705 = vmatpush.msrb.mxu3 %v6342_v51  ;;  %v6354_v16 = vld [vmem:[#allocation9 + $0x618] sm:$0xff] }
 0x265   :  { %9423 = vst [vmem:[#allocation150_spill] sm:$0xff] %v6310_v42  ;;  %v6338_v42 = vld [vmem:[#allocation9 + $0x630] sm:$0xff] }
 0x266   :  { %9425 = vst [vmem:[#allocation152_spill] sm:$0xff] %v6317_v40  ;;  %v1234_v40 = vadd.f32 %v1226_v36, %v1181_v14  ;;  %1685 = vmatpush.msra.mxu2 %v6338_v42  ;;  %v1237_v63 = vmul.f32 0.5, %v1233_v8  ;;  %v1200_v36 = vpop.f32.mrf.mxu2  ;;  %v1220_v14 = vpop.f32.mrf.mxu3  ;;  %1706 = vmatpush.msrb.mxu3 %v6354_v16  ;;  %v1227_v8 = vperm.slane %v6284_v46, 2 }
 0x267   :  { %9426 = vst [vmem:[#allocation153_spill] sm:$0xff] %v6322_v11  ;;  %v6346_v11 = vld [vmem:[#allocation9 + $0x600] sm:$0xff] }
 0x268   :  { %9428 = vst [vmem:[#allocation155_spill] sm:$0xff] %v6326_v13  ;;  %1646 = vmatpush.msrb.mxu0 %v6346_v11  ;;  %1686 = vmatpush.msra.mxu2 %v6350_v15  ;;  %4516 = vtanh.f32 %v1237_v63 }
 0x269   :  { %9429 = vst [vmem:[#allocation156_spill] sm:$0xff] %v6330_v28 }
 0x26a   :  { %9430 = vst [vmem:[#allocation160_spill] sm:$0xff] %v6334_v5 }
 0x26b   :  { %9431 = vst [vmem:[#allocation161_spill] sm:$0xff] %v6336_v9  ;;  %v1241_v9 = vmul.f32 0.5, %v1234_v40 }
 0x26c   :  { %9432 = vst [vmem:[#allocation162_spill] sm:$0xff] %v6338_v42 }
 0x26d   :  { %9433 = vst [vmem:[#allocation163_spill] sm:$0xff] %v6342_v51  ;;  %4518 = vtanh.f32 %v1241_v9 }
 0x26e   :  { %9434 = vst [vmem:[#allocation164_spill] sm:$0xff] %v6346_v11 }
 0x26f   :  { %9435 = vst [vmem:[#allocation165_spill] sm:$0xff] %v6348_v7  ;;  %v1201_v7 = vadd.f32 %v1200_v36, %v6290_v23  ;;  %v1228_v23 = vperm.slane %v6284_v46, 3 }
 0x270   :  { %9436 = vst [vmem:[#allocation166_spill] sm:$0xff] %v6350_v15 }
 0x271   :  { %9437 = vst [vmem:[#allocation167_spill] sm:$0xff] %v6354_v16  ;;  %v1235_v16 = vadd.f32 %v1227_v8, %v1201_v7 }
 0x277   :  { %v1338_v5 = vpop.f32.mrf.mxu0  ;;  %v1358_v28 = vpop.f32.mrf.mxu1 }
 0x278   :  { %v1401_v42 = vadd.f32 %v1338_v5, %v9291_v27  ;;  %v1402_v51 = vadd.f32 %v1358_v28, %v9292_v29  ;;  %v4517_v5 = vpop.eup %4516 }
 0x279   :  { %v4519_v27 = vpop.eup %4518 }
 0x27a   :  { %v1405_v13 = vmul.f32 0.5, %v1401_v42  ;;  %v1409_v2 = vmul.f32 0.5, %v1402_v51  ;;  %v1221_v51 = vadd.f32 %v1220_v14, %v6300_v24  ;;  %v1243_v63 = vmul.f32 0.5, %v4519_v27 }
 0x27c   :  { %4520 = vtanh.f32 %v1405_v13 }
 0x27d   :  { %4522 = vtanh.f32 %v1409_v2  ;;  %v1239_v2 = vmul.f32 0.5, %v4517_v5 }
 0x27e   :  { %v1378_v15 = vpop.f32.mrf.mxu2  ;;  %v1398_v11 = vpop.f32.mrf.mxu3 }
 0x27f   :  { %v1403_v40 = vadd.f32 %v1378_v15, %v5541_v12  ;;  %v1404_v56 = vadd.f32 %v1398_v11, %v9293_v39  ;;  %v1236_v15 = vadd.f32 %v1228_v23, %v1221_v51  ;;  %v1240_v39 = vadd.f32 0.5, %v1239_v2  ;;  %v9468_v2 = vld [vmem:[#allocation50_spill] sm:$0xff] }
 0x280   :  { %v1244_v12 = vadd.f32 0.5, %v1243_v63  ;;  %v9469_v63 = vld [vmem:[#allocation51_spill] sm:$0xff] }
 0x281   :  { %4524 = vtanh.f32 %v1403_v40  ;;  %v1414_v28 = vmul.f32 0.5, %v1404_v56  ;;  %v1246_v14 = vmul.f32 0.5, %v1236_v15  ;;  %v9472_v15 = vld [vmem:[#allocation54_spill] sm:$0xff] }
 0x282   :  { %v4521_v42 = vpop.eup %4520  ;;  %4526 = vtanh.f32 %v1235_v16  ;;  %v1250_v16 = vmul.f32 %v1244_v12, %v5779_v25 }
 0x283   :  { %v4523_v9 = vpop.eup %4522  ;;  %v1407_v13 = vmul.f32 0.5, %v4521_v42  ;;  %4528 = vtanh.f32 %v1414_v28 }
 0x284   :  { %v1411_v36 = vmul.f32 0.5, %v4523_v9  ;;  %v9466_v9 = vld [vmem:[#allocation48_spill] sm:$0xff] }
 0x285   :  { %v1408_v7 = vadd.f32 0.5, %v1407_v13  ;;  %v9467_v13 = vld [vmem:[#allocation49_spill] sm:$0xff] }
 0x286   :  { %v1412_v8 = vadd.f32 0.5, %v1411_v36  ;;  %v9470_v36 = vld [vmem:[#allocation52_spill] sm:$0xff] }
 0x287   :  { %v4525_v11 = vpop.eup %4524 }
 0x288   :  { %v1418_v56 = vmul.f32 %v1412_v8, %v5776_v18  ;;  %v1419_v40 = vmul.f32 %v4525_v11, %v1408_v7  ;;  %v4527_v29 = vpop.eup %4526  ;;  %v9471_v7 = vld [vmem:[#allocation53_spill] sm:$0xff]  ;;  %v9473_v8 = vld [vmem:[#allocation55_spill] sm:$0xff]  ;;  %v9474_v11 = vld [vmem:[#allocation56_spill] sm:$0xff] }
 0x289   :  { %v4529_v24 = vpop.eup %4528  ;;  %v1251_v5 = vmul.f32 %v4527_v29, %v1240_v39 }
 0x28a   :  { %v6369_v46 = vadd.f32 %v1419_v40, %v1418_v56  ;;  %v1416_v27 = vmul.f32 0.5, %v4529_v24  ;;  %v9475_v56 = vld [vmem:[#allocation57_spill] sm:$0xff]  ;;  %v9476_v40 = vld [vmem:[#allocation58_spill] sm:$0xff]  ;;  %v9477_v24 = vld [vmem:[#allocation59_spill] sm:$0xff] }
 0x28b   :  { %v6373_v28 = vadd.f32 %v1251_v5, %v1250_v16  ;;  %v9479_v16 = vld [vmem:[#allocation61_spill] sm:$0xff]  ;;  %v9480_v5 = vld [vmem:[#allocation62_spill] sm:$0xff] }
 0x28c   :  { %4530 = vtanh.f32 %v6369_v46  ;;  %v1417_v42 = vadd.f32 0.5, %v1416_v27  ;;  %v9481_v27 = vld [vmem:[#allocation63_spill] sm:$0xff] }
 0x28d   :  { %4532 = vtanh.f32 %v1246_v14  ;;  %v9478_v14 = vld [vmem:[#allocation60_spill] sm:$0xff] }
 0x28e   :  { %4534 = vtanh.f32 %v6373_v28 }
 0x292   :  { %v4531_v51 = vpop.eup %4530 }
 0x293   :  { %v6375_v23 = vmul.f32 %v4531_v51, %v1417_v42  ;;  %v4533_v18 = vpop.eup %4532  ;;  %v9482_v42 = vld [vmem:[#allocation64_spill] sm:$0xff]  ;;  %v9483_v51 = vld [vmem:[#allocation65_spill] sm:$0xff] }
 0x294   :  { %v1248_v12 = vmul.f32 0.5, %v4533_v18  ;;  %v4535_v29 = vpop.eup %4534  ;;  %v9485_v18 = vld [vmem:[#allocation67_spill] sm:$0xff] }
 0x295   :  { %1567 = vmatmul.f32.vlgmr.msra.gmra.mxu0 %v6375_v23  ;;  %1587 = vmatmul.f32.vlgmr.msrb.gmra.mxu1 %v6375_v23 }
 0x296   :  { %1607 = vmatmul.f32.vlgmr.msrb.gmra.mxu2 %v6375_v23  ;;  %1627 = vmatmul.f32.vlgmr.msra.gmra.mxu3 %v6375_v23  ;;  %v1249_v39 = vadd.f32 0.5, %v1248_v12  ;;  %v9486_v12 = vld [vmem:[#allocation68_spill] sm:$0xff] }
 0x297   :  { %1809 = vmatpush.msra.mxu0 %v5784_v22  ;;  %1829 = vmatpush.msrb.mxu1 %v5786_v19  ;;  %v6404_v22 = vld [vmem:[#allocation9 + $0x340] sm:$0xff] }
 0x298   :  { %1849 = vmatpush.msrb.mxu2 %v5790_v48  ;;  %1869 = vmatpush.msra.mxu3 %v5792_v43  ;;  %v6394_v25 = vmul.f32 %v4535_v29, %v1249_v39  ;;  %v6410_v19 = vld [vmem:[#allocation9 + $0x320] sm:$0xff]  ;;  %v9487_v29 = vld [vmem:[#allocation69_spill] sm:$0xff]  ;;  %v9488_v39 = vld [vmem:[#allocation70_spill] sm:$0xff] }
 0x299   :  { %1810 = vmatpush.msra.mxu0 %v5796_v17  ;;  %1830 = vmatpush.msrb.mxu1 %v5798_v20  ;;  %v6416_v48 = vld [vmem:[#allocation9 + $0x300] sm:$0xff] }
 0x29a   :  { %1850 = vmatpush.msrb.mxu2 %v5802_v30  ;;  %1870 = vmatpush.msra.mxu3 %v5804_v31  ;;  %9438 = vst [vmem:[#allocation168_spill] sm:$0xff] %v6394_v25  ;;  %v6422_v43 = vld [vmem:[#allocation9 + $0x2e0] sm:$0xff] }
 0x29b   :  { %1811 = vmatpush.msra.mxu0 %v5808_v32  ;;  %1831 = vmatpush.msrb.mxu1 %v5810_v33  ;;  %v6428_v17 = vld [vmem:[#allocation9 + $0x2c0] sm:$0xff]  ;;  %v9439_v32 = vld [vmem:[#allocation20_spill] sm:$0xff] }
 0x29c   :  { %1851 = vmatpush.msrb.mxu2 %v5814_v34  ;;  %1871 = vmatpush.msra.mxu3 %v5816_v35  ;;  %v6434_v20 = vld [vmem:[#allocation9 + $0x2a0] sm:$0xff]  ;;  %v9440_v33 = vld [vmem:[#allocation24_spill] sm:$0xff]  ;;  %v9441_v34 = vld [vmem:[#allocation25_spill] sm:$0xff] }
 0x29d   :  { %1812 = vmatpush.msra.mxu0 %v5820_v37  ;;  %1832 = vmatpush.msrb.mxu1 %v5822_v38  ;;  %v6440_v30 = vld [vmem:[#allocation9 + $0x280] sm:$0xff]  ;;  %v9442_v37 = vld [vmem:[#allocation21_spill] sm:$0xff]  ;;  %v9443_v38 = vld [vmem:[#allocation26_spill] sm:$0xff] }
 0x29e   :  { %1852 = vmatpush.msrb.mxu2 %v5826_v41  ;;  %1872 = vmatpush.msra.mxu3 %v5828_v44  ;;  %v6446_v31 = vld [vmem:[#allocation9 + $0x260] sm:$0xff] }
 0x29f   :  { %1647 = vmatmul.f32.vlgmr.msrb.gmra.mxu0 %v6394_v25  ;;  %1667 = vmatmul.f32.vlgmr.msra.gmra.mxu1 %v6394_v25  ;;  %v6452_v35 = vld [vmem:[#allocation9 + $0x240] sm:$0xff] }
 0x2a0   :  { %1687 = vmatmul.f32.vlgmr.msra.gmra.mxu2 %v6394_v25  ;;  %1707 = vmatmul.f32.vlgmr.msrb.gmra.mxu3 %v6394_v25  ;;  %v9444_v41 = vld [vmem:[#allocation27_spill] sm:$0xff]  ;;  %v6806_v25 = vld [vmem:[#allocation9 + $0x5f0] sm:$0xff] }
 0x2a1   :  { %1813 = vmatpush.msra.mxu0 %v5838_v49  ;;  %1833 = vmatpush.msrb.mxu1 %v5840_v45  ;;  %v6458_v44 = vld [vmem:[#allocation9 + $0x220] sm:$0xff]  ;;  %v9445_v49 = vld [vmem:[#allocation22_spill] sm:$0xff]  ;;  %v9446_v45 = vld [vmem:[#allocation28_spill] sm:$0xff] }
 0x2a2   :  { %1853 = vmatpush.msrb.mxu2 %v5844_v52  ;;  %1873 = vmatpush.msra.mxu3 %v5846_v54  ;;  %v9447_v52 = vld [vmem:[#allocation29_spill] sm:$0xff]  ;;  %v6464_v54 = vld [vmem:[#allocation9 + $0x200] sm:$0xff] }
 0x2a3   :  { %1814 = vmatpush.msra.mxu0 %v6404_v22  ;;  %1834 = vmatpush.msrb.mxu1 %v5850_v55  ;;  %v9448_v55 = vld [vmem:[#allocation30_spill] sm:$0xff] }
 0x2a4   :  { %1854 = vmatpush.msrb.mxu2 %v5854_v57  ;;  %1874 = vmatpush.msra.mxu3 %v5856_v58  ;;  %v9449_v57 = vld [vmem:[#allocation31_spill] sm:$0xff]  ;;  %v9450_v58 = vld [vmem:[#allocation32_spill] sm:$0xff] }
 0x2a5   :  { %1815 = vmatpush.msra.mxu0 %v6410_v19  ;;  %1835 = vmatpush.msrb.mxu1 %v5860_v59  ;;  %v9451_v59 = vld [vmem:[#allocation33_spill] sm:$0xff] }
 0x2a6   :  { %1855 = vmatpush.msrb.mxu2 %v5864_v60  ;;  %1875 = vmatpush.msra.mxu3 %v5866_v61  ;;  %v9452_v60 = vld [vmem:[#allocation34_spill] sm:$0xff]  ;;  %v9453_v61 = vld [vmem:[#allocation35_spill] sm:$0xff] }
 0x2a7   :  { %1816 = vmatpush.msra.mxu0 %v6416_v48  ;;  %1836 = vmatpush.msrb.mxu1 %v5870_v62  ;;  %v9454_v62 = vld [vmem:[#allocation36_spill] sm:$0xff] }
 0x2a8   :  { %1856 = vmatpush.msrb.mxu2 %v5874_v0  ;;  %1876 = vmatpush.msra.mxu3 %v5876_v1  ;;  %v9455_v0 = vld [vmem:[#allocation37_spill] sm:$0xff]  ;;  %v9456_v1 = vld [vmem:[#allocation38_spill] sm:$0xff] }
 0x2a9   :  { %1817 = vmatpush.msra.mxu0 %v6422_v43  ;;  %1837 = vmatpush.msrb.mxu1 %v5880_v47  ;;  %v9457_v47 = vld [vmem:[#allocation39_spill] sm:$0xff] }
 0x2aa   :  { %1857 = vmatpush.msrb.mxu2 %v5884_v3  ;;  %1877 = vmatpush.msra.mxu3 %v5886_v4  ;;  %v9458_v3 = vld [vmem:[#allocation40_spill] sm:$0xff]  ;;  %v9459_v4 = vld [vmem:[#allocation41_spill] sm:$0xff]  ;;  %9604 = vst [vmem:[#allocation39_spill] sm:$0xff] %v6806_v25 }
 0x2ab   :  { %1818 = vmatpush.msra.mxu0 %v6428_v17  ;;  %1838 = vmatpush.msrb.mxu1 %v5890_v50  ;;  %v9460_v50 = vld [vmem:[#allocation42_spill] sm:$0xff] }
 0x2ac   :  { %1858 = vmatpush.msrb.mxu2 %v5894_v6  ;;  %1878 = vmatpush.msra.mxu3 %v5896_v10  ;;  %v9461_v6 = vld [vmem:[#allocation43_spill] sm:$0xff]  ;;  %v9462_v10 = vld [vmem:[#allocation44_spill] sm:$0xff] }
 0x2ad   :  { %1819 = vmatpush.msra.mxu0 %v6434_v20  ;;  %1839 = vmatpush.msrb.mxu1 %v5900_v53  ;;  %v9463_v53 = vld [vmem:[#allocation45_spill] sm:$0xff] }
 0x2ae   :  { %1859 = vmatpush.msrb.mxu2 %v5904_v21  ;;  %1879 = vmatpush.msra.mxu3 %v5906_v26  ;;  %v9464_v21 = vld [vmem:[#allocation46_spill] sm:$0xff]  ;;  %v9465_v26 = vld [vmem:[#allocation47_spill] sm:$0xff] }
 0x2af   :  { %1820 = vmatpush.msra.mxu0 %v6440_v30  ;;  %1840 = vmatpush.msrb.mxu1 %v9439_v32  ;;  %v9489_v32 = vld [vmem:[#allocation71_spill] sm:$0xff] }
 0x2b0   :  { %1860 = vmatpush.msrb.mxu2 %v9440_v33  ;;  %1880 = vmatpush.msra.mxu3 %v9441_v34  ;;  %v9490_v33 = vld [vmem:[#allocation72_spill] sm:$0xff]  ;;  %v9491_v34 = vld [vmem:[#allocation73_spill] sm:$0xff] }
 0x2b1   :  { %1821 = vmatpush.msra.mxu0 %v6446_v31  ;;  %1841 = vmatpush.msrb.mxu1 %v9442_v37  ;;  %v9492_v37 = vld [vmem:[#allocation74_spill] sm:$0xff] }
 0x2b2   :  { %1861 = vmatpush.msrb.mxu2 %v9443_v38  ;;  %1881 = vmatpush.msra.mxu3 %v9444_v41  ;;  %v9493_v38 = vld [vmem:[#allocation75_spill] sm:$0xff]  ;;  %v9494_v41 = vld [vmem:[#allocation76_spill] sm:$0xff] }
 0x2b3   :  { %1822 = vmatpush.msra.mxu0 %v6452_v35  ;;  %1842 = vmatpush.msrb.mxu1 %v9445_v49  ;;  %v9495_v49 = vld [vmem:[#allocation77_spill] sm:$0xff] }
 0x2b4   :  { %1862 = vmatpush.msrb.mxu2 %v9446_v45  ;;  %1882 = vmatpush.msra.mxu3 %v9447_v52  ;;  %v9496_v45 = vld [vmem:[#allocation78_spill] sm:$0xff]  ;;  %v9497_v52 = vld [vmem:[#allocation79_spill] sm:$0xff] }
 0x2b5   :  { %1823 = vmatpush.msra.mxu0 %v6458_v44  ;;  %1843 = vmatpush.msrb.mxu1 %v9448_v55  ;;  %v9498_v55 = vld [vmem:[#allocation80_spill] sm:$0xff] }
 0x2b6   :  { %1863 = vmatpush.msrb.mxu2 %v9449_v57  ;;  %1883 = vmatpush.msra.mxu3 %v9450_v58  ;;  %v9499_v57 = vld [vmem:[#allocation81_spill] sm:$0xff]  ;;  %v9500_v58 = vld [vmem:[#allocation82_spill] sm:$0xff] }
 0x2b7   :  { %1824 = vmatpush.msra.mxu0 %v6464_v54  ;;  %1844 = vmatpush.msrb.mxu1 %v9451_v59  ;;  %v9501_v59 = vld [vmem:[#allocation83_spill] sm:$0xff] }
 0x2b8   :  { %1864 = vmatpush.msrb.mxu2 %v9452_v60  ;;  %1884 = vmatpush.msra.mxu3 %v9453_v61  ;;  %v9502_v60 = vld [vmem:[#allocation84_spill] sm:$0xff]  ;;  %v9503_v61 = vld [vmem:[#allocation85_spill] sm:$0xff] }
 0x2b9   :  { %1825 = vmatmul.f32.vlgmr.msra.gmra.mxu0 %v6375_v23  ;;  %1845 = vmatmul.f32.vlgmr.msrb.gmra.mxu1 %v6375_v23 }
 0x2ba   :  { %1865 = vmatmul.f32.vlgmr.msrb.gmra.mxu2 %v6375_v23  ;;  %1885 = vmatmul.f32.vlgmr.msra.gmra.mxu3 %v6375_v23  ;;  %v9484_v23 = vld [vmem:[#allocation66_spill] sm:$0xff] }
 0x2bb   :  { %2039 = vmatpush.msrb.mxu0 %v9454_v62  ;;  %2059 = vmatpush.msra.mxu1 %v9455_v0  ;;  %v9504_v62 = vld [vmem:[#allocation86_spill] sm:$0xff]  ;;  %v9505_v0 = vld [vmem:[#allocation87_spill] sm:$0xff] }
 0x2bc   :  { %2079 = vmatpush.msra.mxu2 %v9456_v1  ;;  %2099 = vmatpush.msrb.mxu3 %v9457_v47  ;;  %v9506_v1 = vld [vmem:[#allocation88_spill] sm:$0xff]  ;;  %v9507_v47 = vld [vmem:[#allocation89_spill] sm:$0xff] }
 0x2bd   :  { %2040 = vmatpush.msrb.mxu0 %v9458_v3  ;;  %2060 = vmatpush.msra.mxu1 %v9459_v4  ;;  %v9508_v3 = vld [vmem:[#allocation90_spill] sm:$0xff]  ;;  %v9509_v4 = vld [vmem:[#allocation91_spill] sm:$0xff] }
 0x2be   :  { %2080 = vmatpush.msra.mxu2 %v9460_v50  ;;  %2100 = vmatpush.msrb.mxu3 %v9461_v6  ;;  %v9510_v50 = vld [vmem:[#allocation92_spill] sm:$0xff]  ;;  %v9511_v6 = vld [vmem:[#allocation93_spill] sm:$0xff] }
 0x2bf   :  { %2041 = vmatpush.msrb.mxu0 %v9462_v10  ;;  %2061 = vmatpush.msra.mxu1 %v9463_v53  ;;  %v9512_v10 = vld [vmem:[#allocation94_spill] sm:$0xff]  ;;  %v9513_v53 = vld [vmem:[#allocation95_spill] sm:$0xff] }
 0x2c0   :  { %2081 = vmatpush.msra.mxu2 %v9464_v21  ;;  %2101 = vmatpush.msrb.mxu3 %v9465_v26  ;;  %v9514_v21 = vld [vmem:[#allocation96_spill] sm:$0xff]  ;;  %v9515_v26 = vld [vmem:[#allocation97_spill] sm:$0xff] }
 0x2c1   :  { %2042 = vmatpush.msrb.mxu0 %v9466_v9  ;;  %2062 = vmatpush.msra.mxu1 %v9467_v13  ;;  %v9516_v9 = vld [vmem:[#allocation98_spill] sm:$0xff]  ;;  %v9517_v13 = vld [vmem:[#allocation99_spill] sm:$0xff] }
 0x2c2   :  { %2082 = vmatpush.msra.mxu2 %v9468_v2  ;;  %2102 = vmatpush.msrb.mxu3 %v9469_v63  ;;  %v9518_v2 = vld [vmem:[#allocation100_spill] sm:$0xff]  ;;  %v9519_v63 = vld [vmem:[#allocation101_spill] sm:$0xff] }
 0x2c3   :  { %2043 = vmatpush.msrb.mxu0 %v9470_v36  ;;  %2063 = vmatpush.msra.mxu1 %v9471_v7  ;;  %v9520_v36 = vld [vmem:[#allocation102_spill] sm:$0xff]  ;;  %v9521_v7 = vld [vmem:[#allocation103_spill] sm:$0xff] }
 0x2c4   :  { %2083 = vmatpush.msra.mxu2 %v9472_v15  ;;  %2103 = vmatpush.msrb.mxu3 %v9473_v8  ;;  %v9522_v15 = vld [vmem:[#allocation104_spill] sm:$0xff]  ;;  %v9523_v8 = vld [vmem:[#allocation105_spill] sm:$0xff] }
 0x2c5   :  { %2044 = vmatpush.msrb.mxu0 %v9474_v11  ;;  %2064 = vmatpush.msra.mxu1 %v9475_v56  ;;  %v9524_v11 = vld [vmem:[#allocation106_spill] sm:$0xff]  ;;  %v9525_v56 = vld [vmem:[#allocation107_spill] sm:$0xff] }
 0x2c6   :  { %2084 = vmatpush.msra.mxu2 %v9476_v40  ;;  %2104 = vmatpush.msrb.mxu3 %v9477_v24  ;;  %v9526_v40 = vld [vmem:[#allocation108_spill] sm:$0xff]  ;;  %v9527_v24 = vld [vmem:[#allocation109_spill] sm:$0xff] }
 0x2c7   :  { %2045 = vmatpush.msrb.mxu0 %v9478_v14  ;;  %2065 = vmatpush.msra.mxu1 %v9479_v16  ;;  %v9528_v14 = vld [vmem:[#allocation110_spill] sm:$0xff]  ;;  %v9529_v16 = vld [vmem:[#allocation111_spill] sm:$0xff] }
 0x2c8   :  { %2085 = vmatpush.msra.mxu2 %v9480_v5  ;;  %2105 = vmatpush.msrb.mxu3 %v9481_v27  ;;  %v9530_v5 = vld [vmem:[#allocation112_spill] sm:$0xff]  ;;  %v9531_v27 = vld [vmem:[#allocation113_spill] sm:$0xff] }
 0x2c9   :  { %2046 = vmatpush.msrb.mxu0 %v9482_v42  ;;  %2066 = vmatpush.msra.mxu1 %v9483_v51  ;;  %v9532_v42 = vld [vmem:[#allocation114_spill] sm:$0xff]  ;;  %v9533_v51 = vld [vmem:[#allocation115_spill] sm:$0xff] }
 0x2ca   :  { %2086 = vmatpush.msra.mxu2 %v9484_v23  ;;  %2106 = vmatpush.msrb.mxu3 %v9485_v18  ;;  %v9534_v23 = vld [vmem:[#allocation116_spill] sm:$0xff]  ;;  %v9535_v18 = vld [vmem:[#allocation117_spill] sm:$0xff] }
 0x2cb   :  { %2047 = vmatpush.msrb.mxu0 %v9486_v12  ;;  %2067 = vmatpush.msra.mxu1 %v9487_v29  ;;  %v9536_v12 = vld [vmem:[#allocation118_spill] sm:$0xff]  ;;  %v9537_v29 = vld [vmem:[#allocation119_spill] sm:$0xff] }
 0x2cc   :  { %2087 = vmatpush.msra.mxu2 %v9488_v39  ;;  %2107 = vmatpush.msrb.mxu3 %v9489_v32  ;;  %v9538_v39 = vld [vmem:[#allocation120_spill] sm:$0xff]  ;;  %v9539_v32 = vld [vmem:[#allocation121_spill] sm:$0xff] }
 0x2cd   :  { %2048 = vmatpush.msrb.mxu0 %v9490_v33  ;;  %2068 = vmatpush.msra.mxu1 %v9491_v34  ;;  %v9540_v33 = vld [vmem:[#allocation122_spill] sm:$0xff]  ;;  %v9541_v34 = vld [vmem:[#allocation123_spill] sm:$0xff] }
 0x2ce   :  { %2088 = vmatpush.msra.mxu2 %v9492_v37  ;;  %2108 = vmatpush.msrb.mxu3 %v9493_v38  ;;  %v9542_v37 = vld [vmem:[#allocation124_spill] sm:$0xff]  ;;  %v9543_v38 = vld [vmem:[#allocation125_spill] sm:$0xff] }
 0x2cf   :  { %2049 = vmatpush.msrb.mxu0 %v9494_v41  ;;  %2069 = vmatpush.msra.mxu1 %v9495_v49  ;;  %v9544_v41 = vld [vmem:[#allocation126_spill] sm:$0xff]  ;;  %v9545_v49 = vld [vmem:[#allocation127_spill] sm:$0xff] }
 0x2d0   :  { %2089 = vmatpush.msra.mxu2 %v9496_v45  ;;  %2109 = vmatpush.msrb.mxu3 %v9497_v52  ;;  %v9546_v45 = vld [vmem:[#allocation128_spill] sm:$0xff]  ;;  %v9547_v52 = vld [vmem:[#allocation129_spill] sm:$0xff] }
 0x2d1   :  { %2050 = vmatpush.msrb.mxu0 %v9498_v55  ;;  %2070 = vmatpush.msra.mxu1 %v9499_v57  ;;  %v9548_v55 = vld [vmem:[#allocation130_spill] sm:$0xff]  ;;  %v9549_v57 = vld [vmem:[#allocation131_spill] sm:$0xff] }
 0x2d2   :  { %2090 = vmatpush.msra.mxu2 %v9500_v58  ;;  %2110 = vmatpush.msrb.mxu3 %v9501_v59  ;;  %v9550_v58 = vld [vmem:[#allocation132_spill] sm:$0xff]  ;;  %v9551_v59 = vld [vmem:[#allocation133_spill] sm:$0xff] }
 0x2d3   :  { %2051 = vmatpush.msrb.mxu0 %v9502_v60  ;;  %2071 = vmatpush.msra.mxu1 %v9503_v61  ;;  %v9552_v60 = vld [vmem:[#allocation134_spill] sm:$0xff]  ;;  %v9553_v61 = vld [vmem:[#allocation135_spill] sm:$0xff] }
 0x2d4   :  { %2091 = vmatpush.msra.mxu2 %v9504_v62  ;;  %2111 = vmatpush.msrb.mxu3 %v9505_v0  ;;  %v9554_v62 = vld [vmem:[#allocation136_spill] sm:$0xff]  ;;  %v9555_v0 = vld [vmem:[#allocation137_spill] sm:$0xff] }
 0x2d5   :  { %2052 = vmatpush.msrb.mxu0 %v9506_v1  ;;  %2072 = vmatpush.msra.mxu1 %v9507_v47  ;;  %v9556_v1 = vld [vmem:[#allocation138_spill] sm:$0xff]  ;;  %v9557_v47 = vld [vmem:[#allocation139_spill] sm:$0xff] }
 0x2d6   :  { %2092 = vmatpush.msra.mxu2 %v9508_v3  ;;  %2112 = vmatpush.msrb.mxu3 %v9509_v4  ;;  %v9558_v3 = vld [vmem:[#allocation140_spill] sm:$0xff]  ;;  %v9559_v4 = vld [vmem:[#allocation141_spill] sm:$0xff] }
 0x2d7   :  { %2053 = vmatpush.msrb.mxu0 %v9510_v50  ;;  %2073 = vmatpush.msra.mxu1 %v9511_v6  ;;  %v9560_v50 = vld [vmem:[#allocation142_spill] sm:$0xff]  ;;  %v9561_v6 = vld [vmem:[#allocation143_spill] sm:$0xff] }
 0x2d8   :  { %2093 = vmatpush.msra.mxu2 %v9512_v10  ;;  %2113 = vmatpush.msrb.mxu3 %v9513_v53  ;;  %v9562_v10 = vld [vmem:[#allocation145_spill] sm:$0xff]  ;;  %v9563_v53 = vld [vmem:[#allocation146_spill] sm:$0xff] }
 0x2d9   :  { %2054 = vmatpush.msrb.mxu0 %v9514_v21  ;;  %2074 = vmatpush.msra.mxu1 %v9515_v26  ;;  %v9564_v21 = vld [vmem:[#allocation147_spill] sm:$0xff]  ;;  %v9565_v26 = vld [vmem:[#allocation148_spill] sm:$0xff] }
 0x2da   :  { %2094 = vmatpush.msra.mxu2 %v9516_v9  ;;  %2114 = vmatpush.msrb.mxu3 %v9517_v13  ;;  %v9566_v9 = vld [vmem:[#allocation149_spill] sm:$0xff]  ;;  %v9567_v13 = vld [vmem:[#allocation150_spill] sm:$0xff] }
 0x2db   :  { %2119 = vmatpush.msra.mxu0 %v9518_v2  ;;  %2139 = vmatpush.msrb.mxu1 %v9519_v63  ;;  %v9568_v2 = vld [vmem:[#allocation151_spill] sm:$0xff]  ;;  %v9569_v63 = vld [vmem:[#allocation152_spill] sm:$0xff] }
 0x2dc   :  { %2159 = vmatpush.msrb.mxu2 %v9520_v36  ;;  %2179 = vmatpush.msra.mxu3 %v9521_v7  ;;  %v9570_v36 = vld [vmem:[#allocation153_spill] sm:$0xff]  ;;  %v9571_v7 = vld [vmem:[#allocation154_spill] sm:$0xff] }
 0x2dd   :  { %2120 = vmatpush.msra.mxu0 %v9522_v15  ;;  %2140 = vmatpush.msrb.mxu1 %v9523_v8  ;;  %v9572_v15 = vld [vmem:[#allocation155_spill] sm:$0xff]  ;;  %v9573_v8 = vld [vmem:[#allocation156_spill] sm:$0xff] }
 0x2de   :  { %2160 = vmatpush.msrb.mxu2 %v9524_v11  ;;  %2180 = vmatpush.msra.mxu3 %v9525_v56  ;;  %v9574_v11 = vld [vmem:[#allocation160_spill] sm:$0xff]  ;;  %v9575_v56 = vld [vmem:[#allocation161_spill] sm:$0xff] }
 0x2df   :  { %2121 = vmatpush.msra.mxu0 %v9526_v40  ;;  %2141 = vmatpush.msrb.mxu1 %v9527_v24  ;;  %v9576_v40 = vld [vmem:[#allocation162_spill] sm:$0xff]  ;;  %v9577_v24 = vld [vmem:[#allocation163_spill] sm:$0xff] }
 0x2e0   :  { %2161 = vmatpush.msrb.mxu2 %v9528_v14  ;;  %2181 = vmatpush.msra.mxu3 %v9529_v16  ;;  %v9578_v14 = vld [vmem:[#allocation164_spill] sm:$0xff]  ;;  %v9579_v16 = vld [vmem:[#allocation165_spill] sm:$0xff] }
 0x2e1   :  { %2122 = vmatpush.msra.mxu0 %v9530_v5  ;;  %2142 = vmatpush.msrb.mxu1 %v9531_v27  ;;  %v9580_v5 = vld [vmem:[#allocation166_spill] sm:$0xff]  ;;  %v9581_v27 = vld [vmem:[#allocation167_spill] sm:$0xff] }
 0x2e2   :  { %2162 = vmatpush.msrb.mxu2 %v9532_v42  ;;  %2182 = vmatpush.msra.mxu3 %v9533_v51 }
 0x2e3   :  { %2123 = vmatpush.msra.mxu0 %v9534_v23  ;;  %2143 = vmatpush.msrb.mxu1 %v9535_v18 }
 0x2e4   :  { %2163 = vmatpush.msrb.mxu2 %v9536_v12  ;;  %2183 = vmatpush.msra.mxu3 %v9537_v29  ;;  %v1711_v12 = vld [vmem:[#allocation11 + $0x4] sm:$0xf] }
 0x2e5   :  { %2124 = vmatpush.msra.mxu0 %v9538_v39  ;;  %2144 = vmatpush.msrb.mxu1 %v9539_v32 }
 0x2e6   :  { %2164 = vmatpush.msrb.mxu2 %v9540_v33  ;;  %2184 = vmatpush.msra.mxu3 %v9541_v34  ;;  %v1713_v33 = vperm.slane %v1711_v12, 0 }
 0x2e7   :  { %2125 = vmatpush.msra.mxu0 %v9542_v37  ;;  %2145 = vmatpush.msrb.mxu1 %v9543_v38  ;;  %v1714_v37 = vperm.slane %v1711_v12, 1 }
 0x2e8   :  { %2165 = vmatpush.msrb.mxu2 %v9544_v41  ;;  %2185 = vmatpush.msra.mxu3 %v9545_v49 }
 0x2e9   :  { %2126 = vmatpush.msra.mxu0 %v9546_v45  ;;  %2146 = vmatpush.msrb.mxu1 %v9547_v52 }
 0x2ea   :  { %2166 = vmatpush.msrb.mxu2 %v9548_v55  ;;  %2186 = vmatpush.msra.mxu3 %v9549_v57 }
 0x2eb   :  { %2127 = vmatpush.msra.mxu0 %v9550_v58  ;;  %2147 = vmatpush.msrb.mxu1 %v9551_v59  ;;  %v9582_v59 = vld [vmem:[#allocation144_spill] sm:$0xff] }
 0x2ec   :  { %2167 = vmatpush.msrb.mxu2 %v9552_v60  ;;  %2187 = vmatpush.msra.mxu3 %v9553_v61  ;;  %v9583_v61 = vld [vmem:[#allocation157_spill] sm:$0xff] }
 0x2ed   :  { %2128 = vmatpush.msra.mxu0 %v9554_v62  ;;  %2148 = vmatpush.msrb.mxu1 %v9555_v0 }
 0x2ee   :  { %2168 = vmatpush.msrb.mxu2 %v9556_v1  ;;  %2188 = vmatpush.msra.mxu3 %v9557_v47 }
 0x2ef   :  { %2129 = vmatpush.msra.mxu0 %v9558_v3  ;;  %2149 = vmatpush.msrb.mxu1 %v9559_v4  ;;  %v1715_v3 = vperm.slane %v1711_v12, 2 }
 0x2f0   :  { %2169 = vmatpush.msrb.mxu2 %v9560_v50  ;;  %2189 = vmatpush.msra.mxu3 %v9561_v6 }
 0x2f1   :  { %2130 = vmatpush.msra.mxu0 %v9562_v10  ;;  %2150 = vmatpush.msrb.mxu1 %v9563_v53  ;;  %v9584_v10 = vld [vmem:[#allocation159_spill] sm:$0xff] }
 0x2f2   :  { %2170 = vmatpush.msrb.mxu2 %v9564_v21  ;;  %2190 = vmatpush.msra.mxu3 %v9565_v26  ;;  %v9585_v21 = vld [vmem:[#allocation158_spill] sm:$0xff] }
 0x2f3   :  { %2131 = vmatpush.msra.mxu0 %v9566_v9  ;;  %2151 = vmatpush.msrb.mxu1 %v9567_v13 }
 0x2f4   :  { %2171 = vmatpush.msrb.mxu2 %v9568_v2  ;;  %2191 = vmatpush.msra.mxu3 %v9569_v63 }
 0x2f5   :  { %2132 = vmatpush.msra.mxu0 %v9570_v36  ;;  %2152 = vmatpush.msrb.mxu1 %v9571_v7  ;;  %v1716_v7 = vperm.slane %v1711_v12, 3 }
 0x2f6   :  { %2172 = vmatpush.msrb.mxu2 %v9572_v15  ;;  %2192 = vmatpush.msra.mxu3 %v9573_v8 }
 0x2f7   :  { %2133 = vmatpush.msra.mxu0 %v9574_v11  ;;  %2153 = vmatpush.msrb.mxu1 %v9575_v56 }
 0x2f8   :  { %2173 = vmatpush.msrb.mxu2 %v9576_v40  ;;  %2193 = vmatpush.msra.mxu3 %v9577_v24 }
 0x2f9   :  { %2134 = vmatpush.msra.mxu0 %v9578_v14  ;;  %2154 = vmatpush.msrb.mxu1 %v9579_v16 }
 0x2fa   :  { %2174 = vmatpush.msrb.mxu2 %v9580_v5  ;;  %2194 = vmatpush.msra.mxu3 %v9581_v27 }
 0x312   :  { %v1568_v42 = vpop.f32.mrf.mxu0  ;;  %v1588_v51 = vpop.f32.mrf.mxu1 }
 0x319   :  { %v1608_v23 = vpop.f32.mrf.mxu2  ;;  %v1628_v29 = vpop.f32.mrf.mxu3 }
 0x31c   :  { %v1648_v18 = vpop.f32.mrf.mxu0  ;;  %v1668_v39 = vpop.f32.mrf.mxu1 }
 0x31d   :  { %v1649_v32 = vadd.f32 %v1648_v18, %v1568_v42  ;;  %v1669_v34 = vadd.f32 %v1668_v39, %v1588_v51 }
 0x31f   :  { %v1721_v38 = vadd.f32 %v1713_v33, %v1649_v32  ;;  %v1722_v41 = vadd.f32 %v1714_v37, %v1669_v34 }
 0x321   :  { %v1725_v49 = vmul.f32 0.5, %v1721_v38  ;;  %v1729_v55 = vmul.f32 0.5, %v1722_v41 }
 0x323   :  { %v1688_v45 = vpop.f32.mrf.mxu2  ;;  %v1708_v52 = vpop.f32.mrf.mxu3  ;;  %4536 = vtanh.f32 %v1725_v49 }
 0x324   :  { %4538 = vtanh.f32 %v1729_v55  ;;  %v1689_v47 = vadd.f32 %v1688_v45, %v1608_v23  ;;  %v1709_v36 = vadd.f32 %v1708_v52, %v1628_v29  ;;  %v6620_v45 = vld [vmem:[#allocation9 + $0x3e0] sm:$0xff]  ;;  %v6622_v52 = vld [vmem:[#allocation9 + $0x3e8] sm:$0xff]  ;;  %v6628_v55 = vld [vmem:[#allocation9 + $0x3f8] sm:$0xff] }
 0x326   :  { %v1723_v6 = vadd.f32 %v1715_v3, %v1689_v47  ;;  %v1724_v14 = vadd.f32 %v1716_v7, %v1709_v36  ;;  %v6646_v47 = vld [vmem:[#allocation9 + $0x3a8] sm:$0xff]  ;;  %v6650_v3 = vld [vmem:[#allocation9 + $0x3b0] sm:$0xff] }
 0x327   :  { %v6676_v36 = vld [vmem:[#allocation9 + $0x368] sm:$0xff]  ;;  %v6680_v7 = vld [vmem:[#allocation9 + $0x370] sm:$0xff] }
 0x328   :  { %v1734_v29 = vmul.f32 0.5, %v1724_v14  ;;  %v6702_v14 = vld [vmem:[#allocation9 + $0x338] sm:$0xff] }
 0x329   :  { %v4537_v9 = vpop.eup %4536 }
 0x32a   :  { %v4539_v13 = vpop.eup %4538  ;;  %v1727_v11 = vmul.f32 0.5, %v4537_v9  ;;  %v6662_v9 = vld [vmem:[#allocation9 + $0x390] sm:$0xff] }
 0x32b   :  { %v1731_v56 = vmul.f32 0.5, %v4539_v13  ;;  %v6664_v13 = vld [vmem:[#allocation9 + $0x398] sm:$0xff] }
 0x32c   :  { %v1728_v27 = vadd.f32 0.5, %v1727_v11  ;;  %v6690_v11 = vld [vmem:[#allocation9 + $0x350] sm:$0xff] }
 0x32d   :  { %v1732_v42 = vadd.f32 0.5, %v1731_v56  ;;  %v6692_v56 = vld [vmem:[#allocation9 + $0x358] sm:$0xff] }
 0x32f   :  { %v1738_v32 = vmul.f32 %v1732_v42, %v6373_v28  ;;  %v6626_v28 = vld [vmem:[#allocation9 + $0x3f0] sm:$0xff] }
 0x330   :  { %v6720_v42 = vld [vmem:[#allocation9 + $0x2f0] sm:$0xff] }
 0x336   :  { %v1826_v57 = vpop.f32.mrf.mxu0  ;;  %v1846_v58 = vpop.f32.mrf.mxu1 }
 0x337   :  { %v1889_v60 = vadd.f32 %v1826_v57, %v9582_v59  ;;  %v1890_v62 = vadd.f32 %v1846_v58, %v9583_v61  ;;  %v6632_v57 = vld [vmem:[#allocation9 + $0x3c0] sm:$0xff]  ;;  %v6634_v58 = vld [vmem:[#allocation9 + $0x3c8] sm:$0xff] }
 0x339   :  { %v1893_v0 = vmul.f32 0.5, %v1889_v60  ;;  %v1897_v1 = vmul.f32 0.5, %v1890_v62  ;;  %v6638_v62 = vld [vmem:[#allocation9 + $0x3d0] sm:$0xff] }
 0x33b   :  { %4540 = vtanh.f32 %v1893_v0  ;;  %v6640_v0 = vld [vmem:[#allocation9 + $0x3d8] sm:$0xff] }
 0x33c   :  { %4542 = vtanh.f32 %v1897_v1  ;;  %v6644_v1 = vld [vmem:[#allocation9 + $0x3a0] sm:$0xff] }
 0x33d   :  { %v1866_v4 = vpop.f32.mrf.mxu2  ;;  %v1886_v50 = vpop.f32.mrf.mxu3 }
 0x33e   :  { %v1891_v53 = vadd.f32 %v1866_v4, %v9584_v10  ;;  %v1892_v26 = vadd.f32 %v1886_v50, %v9585_v21  ;;  %v6652_v4 = vld [vmem:[#allocation9 + $0x3b8] sm:$0xff] }
 0x340   :  { %4544 = vtanh.f32 %v1891_v53  ;;  %v1902_v2 = vmul.f32 0.5, %v1892_v26  ;;  %v6658_v53 = vld [vmem:[#allocation9 + $0x388] sm:$0xff] }
 0x341   :  { %v4541_v63 = vpop.eup %4540  ;;  %4546 = vtanh.f32 %v1723_v6  ;;  %v6656_v6 = vld [vmem:[#allocation9 + $0x380] sm:$0xff] }
 0x342   :  { %v4543_v15 = vpop.eup %4542  ;;  %v1895_v8 = vmul.f32 0.5, %v4541_v63  ;;  %4548 = vtanh.f32 %v1902_v2  ;;  %v6674_v63 = vld [vmem:[#allocation9 + $0x360] sm:$0xff] }
 0x343   :  { %v1899_v40 = vmul.f32 0.5, %v4543_v15  ;;  %v6682_v15 = vld [vmem:[#allocation9 + $0x378] sm:$0xff] }
 0x344   :  { %v1896_v24 = vadd.f32 0.5, %v1895_v8  ;;  %v6686_v8 = vld [vmem:[#allocation9 + $0x348] sm:$0xff] }
 0x345   :  { %v1900_v16 = vadd.f32 0.5, %v1899_v40  ;;  %v6696_v40 = vld [vmem:[#allocation9 + $0x328] sm:$0xff] }
 0x346   :  { %v4545_v5 = vpop.eup %4544 }
 0x347   :  { %v1906_v51 = vmul.f32 %v1900_v16, %v6369_v46  ;;  %v1907_v23 = vmul.f32 %v4545_v5, %v1896_v24  ;;  %v4547_v18 = vpop.eup %4546  ;;  %v6700_v24 = vld [vmem:[#allocation9 + $0x330] sm:$0xff]  ;;  %v6706_v16 = vld [vmem:[#allocation9 + $0x308] sm:$0xff] }
 0x348   :  { %v4549_v39 = vpop.eup %4548  ;;  %v1739_v33 = vmul.f32 %v4547_v18, %v1728_v27  ;;  %v6710_v5 = vld [vmem:[#allocation9 + $0x310] sm:$0xff]  ;;  %v6712_v27 = vld [vmem:[#allocation9 + $0x318] sm:$0xff] }
 0x349   :  { %v6611_v12 = vadd.f32 %v1907_v23, %v1906_v51  ;;  %v1904_v34 = vmul.f32 0.5, %v4549_v39  ;;  %v6722_v51 = vld [vmem:[#allocation9 + $0x2f8] sm:$0xff]  ;;  %v6730_v23 = vld [vmem:[#allocation9 + $0x2d0] sm:$0xff] }
 0x34a   :  { %v6615_v37 = vadd.f32 %v1739_v33, %v1738_v32  ;;  %v6732_v18 = vld [vmem:[#allocation9 + $0x2d8] sm:$0xff]  ;;  %v6740_v39 = vld [vmem:[#allocation9 + $0x2b0] sm:$0xff] }
 0x34b   :  { %4550 = vtanh.f32 %v6611_v12  ;;  %v1905_v38 = vadd.f32 0.5, %v1904_v34  ;;  %v6750_v32 = vld [vmem:[#allocation9 + $0x290] sm:$0xff]  ;;  %v6752_v33 = vld [vmem:[#allocation9 + $0x298] sm:$0xff] }
 0x34c   :  { %4552 = vtanh.f32 %v1734_v29  ;;  %v6742_v29 = vld [vmem:[#allocation9 + $0x2b8] sm:$0xff]  ;;  %9588 = vst [vmem:[#allocation25_spill] sm:$0xff] %v6750_v32  ;;  %v6760_v34 = vld [vmem:[#allocation9 + $0x270] sm:$0xff] }
 0x34d   :  { %4554 = vtanh.f32 %v6615_v37  ;;  %9589 = vst [vmem:[#allocation21_spill] sm:$0xff] %v6752_v33 }
 0x34e   :  { %9591 = vst [vmem:[#allocation27_spill] sm:$0xff] %v6760_v34 }
 0x351   :  { %v4551_v41 = vpop.eup %4550 }
 0x352   :  { %v6617_v49 = vmul.f32 %v4551_v41, %v1905_v38  ;;  %v4553_v46 = vpop.eup %4552  ;;  %v6762_v38 = vld [vmem:[#allocation9 + $0x278] sm:$0xff]  ;;  %v6770_v41 = vld [vmem:[#allocation9 + $0x250] sm:$0xff] }
 0x353   :  { %v1736_v60 = vmul.f32 0.5, %v4553_v46  ;;  %v4555_v50 = vpop.eup %4554  ;;  %9592 = vst [vmem:[#allocation22_spill] sm:$0xff] %v6762_v38  ;;  %v6772_v46 = vld [vmem:[#allocation9 + $0x258] sm:$0xff] }
 0x354   :  { %2055 = vmatmul.f32.vlgmr.msrb.gmra.mxu0 %v6617_v49  ;;  %2075 = vmatmul.f32.vlgmr.msra.gmra.mxu1 %v6617_v49  ;;  %9594 = vst [vmem:[#allocation29_spill] sm:$0xff] %v6770_v41 }
 0x355   :  { %2095 = vmatmul.f32.vlgmr.msra.gmra.mxu2 %v6617_v49  ;;  %2115 = vmatmul.f32.vlgmr.msrb.gmra.mxu3 %v6617_v49  ;;  %v1737_v26 = vadd.f32 0.5, %v1736_v60  ;;  %9595 = vst [vmem:[#allocation30_spill] sm:$0xff] %v6772_v46  ;;  %v6780_v60 = vld [vmem:[#allocation9 + $0x230] sm:$0xff] }
 0x356   :  { %2297 = vmatpush.msrb.mxu0 %v6620_v45  ;;  %2317 = vmatpush.msra.mxu1 %v6622_v52  ;;  %9597 = vst [vmem:[#allocation32_spill] sm:$0xff] %v6780_v60 }
 0x357   :  { %2337 = vmatpush.msra.mxu2 %v6626_v28  ;;  %2357 = vmatpush.msrb.mxu3 %v6628_v55  ;;  %v6668_v2 = vmul.f32 %v4555_v50, %v1737_v26  ;;  %v6782_v50 = vld [vmem:[#allocation9 + $0x238] sm:$0xff]  ;;  %v6790_v26 = vld [vmem:[#allocation9 + $0x210] sm:$0xff] }
 0x358   :  { %2298 = vmatpush.msrb.mxu0 %v6632_v57  ;;  %2318 = vmatpush.msra.mxu1 %v6634_v58  ;;  %9598 = vst [vmem:[#allocation33_spill] sm:$0xff] %v6782_v50 }
 0x359   :  { %2338 = vmatpush.msra.mxu2 %v6638_v62  ;;  %2358 = vmatpush.msrb.mxu3 %v6640_v0  ;;  %9586 = vst [vmem:[#allocation20_spill] sm:$0xff] %v6668_v2 }
 0x35a   :  { %2299 = vmatpush.msrb.mxu0 %v6644_v1  ;;  %2319 = vmatpush.msra.mxu1 %v6646_v47  ;;  %9600 = vst [vmem:[#allocation35_spill] sm:$0xff] %v6790_v26 }
 0x35b   :  { %2339 = vmatpush.msra.mxu2 %v6650_v3  ;;  %2359 = vmatpush.msrb.mxu3 %v6652_v4 }
 0x35c   :  { %2300 = vmatpush.msrb.mxu0 %v6656_v6  ;;  %2320 = vmatpush.msra.mxu1 %v6658_v53 }
 0x35d   :  { %2340 = vmatpush.msra.mxu2 %v6662_v9  ;;  %2360 = vmatpush.msrb.mxu3 %v6664_v13 }
 0x35e   :  { %2135 = vmatmul.f32.vlgmr.msra.gmra.mxu0 %v6668_v2  ;;  %2155 = vmatmul.f32.vlgmr.msrb.gmra.mxu1 %v6668_v2 }
 0x35f   :  { %2175 = vmatmul.f32.vlgmr.msrb.gmra.mxu2 %v6668_v2  ;;  %2195 = vmatmul.f32.vlgmr.msra.gmra.mxu3 %v6668_v2  ;;  %v6792_v2 = vld [vmem:[#allocation9 + $0x218] sm:$0xff] }
 0x360   :  { %2301 = vmatpush.msrb.mxu0 %v6674_v63  ;;  %2321 = vmatpush.msra.mxu1 %v6676_v36  ;;  %9601 = vst [vmem:[#allocation36_spill] sm:$0xff] %v6792_v2 }
 0x361   :  { %2341 = vmatpush.msra.mxu2 %v6680_v7  ;;  %2361 = vmatpush.msrb.mxu3 %v6682_v15 }
 0x362   :  { %2302 = vmatpush.msrb.mxu0 %v6404_v22  ;;  %2322 = vmatpush.msra.mxu1 %v6686_v8  ;;  %v6716_v22 = vld [vmem:[#allocation9 + $0x2e8] sm:$0xff] }
 0x363   :  { %2342 = vmatpush.msra.mxu2 %v6690_v11  ;;  %2362 = vmatpush.msrb.mxu3 %v6692_v56 }
 0x364   :  { %2303 = vmatpush.msrb.mxu0 %v6410_v19  ;;  %2323 = vmatpush.msra.mxu1 %v6696_v40  ;;  %v6726_v19 = vld [vmem:[#allocation9 + $0x2c8] sm:$0xff] }
 0x365   :  { %2343 = vmatpush.msra.mxu2 %v6700_v24  ;;  %2363 = vmatpush.msrb.mxu3 %v6702_v14 }
 0x366   :  { %2304 = vmatpush.msrb.mxu0 %v6416_v48  ;;  %2324 = vmatpush.msra.mxu1 %v6706_v16  ;;  %v6736_v48 = vld [vmem:[#allocation9 + $0x2a8] sm:$0xff] }
 0x367   :  { %2344 = vmatpush.msra.mxu2 %v6710_v5  ;;  %2364 = vmatpush.msrb.mxu3 %v6712_v27 }
 0x368   :  { %2305 = vmatpush.msrb.mxu0 %v6422_v43  ;;  %2325 = vmatpush.msra.mxu1 %v6716_v22  ;;  %v6746_v43 = vld [vmem:[#allocation9 + $0x288] sm:$0xff] }
 0x369   :  { %2345 = vmatpush.msra.mxu2 %v6720_v42  ;;  %2365 = vmatpush.msrb.mxu3 %v6722_v51  ;;  %9587 = vst [vmem:[#allocation24_spill] sm:$0xff] %v6746_v43 }
 0x36a   :  { %2306 = vmatpush.msrb.mxu0 %v6428_v17  ;;  %2326 = vmatpush.msra.mxu1 %v6726_v19  ;;  %v6756_v17 = vld [vmem:[#allocation9 + $0x268] sm:$0xff] }
 0x36b   :  { %2346 = vmatpush.msra.mxu2 %v6730_v23  ;;  %2366 = vmatpush.msrb.mxu3 %v6732_v18  ;;  %9590 = vst [vmem:[#allocation26_spill] sm:$0xff] %v6756_v17 }
 0x36c   :  { %2307 = vmatpush.msrb.mxu0 %v6434_v20  ;;  %2327 = vmatpush.msra.mxu1 %v6736_v48  ;;  %v6766_v20 = vld [vmem:[#allocation9 + $0x248] sm:$0xff] }
 0x36d   :  { %2347 = vmatpush.msra.mxu2 %v6740_v39  ;;  %2367 = vmatpush.msrb.mxu3 %v6742_v29  ;;  %9593 = vst [vmem:[#allocation28_spill] sm:$0xff] %v6766_v20 }
 0x36e   :  { %2308 = vmatpush.msrb.mxu0 %v6440_v30  ;;  %2328 = vmatpush.msra.mxu1 %v6746_v43  ;;  %v6776_v30 = vld [vmem:[#allocation9 + $0x228] sm:$0xff] }
 0x36f   :  { %2348 = vmatpush.msra.mxu2 %v6750_v32  ;;  %2368 = vmatpush.msrb.mxu3 %v6752_v33  ;;  %9596 = vst [vmem:[#allocation31_spill] sm:$0xff] %v6776_v30  ;;  %v7160_v32 = vld [vmem:[#allocation9 + $0x648] sm:$0xff] }
 0x370   :  { %2309 = vmatpush.msrb.mxu0 %v6446_v31  ;;  %2329 = vmatpush.msra.mxu1 %v6756_v17  ;;  %v6786_v31 = vld [vmem:[#allocation9 + $0x208] sm:$0xff]  ;;  %9719 = vst [vmem:[#allocation155_spill] sm:$0xff] %v7160_v32 }
 0x371   :  { %2349 = vmatpush.msra.mxu2 %v6760_v34  ;;  %2369 = vmatpush.msrb.mxu3 %v6762_v38  ;;  %9599 = vst [vmem:[#allocation34_spill] sm:$0xff] %v6786_v31  ;;  %v7148_v34 = vld [vmem:[#allocation9 + $0x670] sm:$0xff] }
 0x372   :  { %2310 = vmatpush.msrb.mxu0 %v6452_v35  ;;  %2330 = vmatpush.msra.mxu1 %v6766_v20  ;;  %v6800_v35 = vld [vmem:[#allocation9 + $0x5e0] sm:$0xff]  ;;  %v7134_v20 = vld [vmem:[#allocation9 + $0x690] sm:$0xff]  ;;  %9716 = vst [vmem:[#allocation152_spill] sm:$0xff] %v7148_v34 }
 0x373   :  { %2350 = vmatpush.msra.mxu2 %v6770_v41  ;;  %2370 = vmatpush.msrb.mxu3 %v6772_v46  ;;  %9602 = vst [vmem:[#allocation37_spill] sm:$0xff] %v6800_v35  ;;  %v7086_v46 = vld [vmem:[#allocation9 + $0x718] sm:$0xff] }
 0x374   :  { %2311 = vmatpush.msrb.mxu0 %v6458_v44  ;;  %2331 = vmatpush.msra.mxu1 %v6776_v30  ;;  %v6802_v44 = vld [vmem:[#allocation9 + $0x5e8] sm:$0xff]  ;;  %9697 = vst [vmem:[#allocation132_spill] sm:$0xff] %v7086_v46 }
 0x375   :  { %2351 = vmatpush.msra.mxu2 %v6780_v60  ;;  %2371 = vmatpush.msrb.mxu3 %v6782_v50  ;;  %9603 = vst [vmem:[#allocation38_spill] sm:$0xff] %v6802_v44  ;;  %v6808_v60 = vld [vmem:[#allocation9 + $0x5f8] sm:$0xff] }
 0x376   :  { %2312 = vmatpush.msrb.mxu0 %v6464_v54  ;;  %2332 = vmatpush.msra.mxu1 %v6786_v31  ;;  %9605 = vst [vmem:[#allocation40_spill] sm:$0xff] %v6808_v60  ;;  %v6816_v54 = vld [vmem:[#allocation9 + $0x5c0] sm:$0xff]  ;;  %v6824_v31 = vld [vmem:[#allocation9 + $0x5d8] sm:$0xff] }
 0x377   :  { %2352 = vmatpush.msra.mxu2 %v6790_v26  ;;  %2372 = vmatpush.msrb.mxu3 %v6792_v2  ;;  %9606 = vst [vmem:[#allocation41_spill] sm:$0xff] %v6816_v54  ;;  %v6818_v2 = vld [vmem:[#allocation9 + $0x5c8] sm:$0xff]  ;;  %v6820_v26 = vld [vmem:[#allocation9 + $0x5d0] sm:$0xff]  ;;  %v6844_v50 = vld [vmem:[#allocation9 + $0x598] sm:$0xff] }
 0x378   :  { %2313 = vmatmul.f32.vlgmr.msrb.gmra.mxu0 %v6617_v49  ;;  %2333 = vmatmul.f32.vlgmr.msra.gmra.mxu1 %v6617_v49  ;;  %9607 = vst [vmem:[#allocation42_spill] sm:$0xff] %v6818_v2 }
 0x379   :  { %2353 = vmatmul.f32.vlgmr.msra.gmra.mxu2 %v6617_v49  ;;  %2373 = vmatmul.f32.vlgmr.msrb.gmra.mxu3 %v6617_v49  ;;  %9608 = vst [vmem:[#allocation43_spill] sm:$0xff] %v6820_v26  ;;  %v6826_v49 = vld [vmem:[#allocation9 + $0x5a0] sm:$0xff] }
 0x37a   :  { %2527 = vmatpush.msra.mxu0 %v6800_v35  ;;  %2547 = vmatpush.msrb.mxu1 %v6802_v44  ;;  %9609 = vst [vmem:[#allocation44_spill] sm:$0xff] %v6824_v31  ;;  %v6828_v35 = vld [vmem:[#allocation9 + $0x5a8] sm:$0xff]  ;;  %v6836_v44 = vld [vmem:[#allocation9 + $0x580] sm:$0xff] }
 0x37b   :  { %2567 = vmatpush.msrb.mxu2 %v6806_v25  ;;  %2587 = vmatpush.msra.mxu3 %v6808_v60  ;;  %9610 = vst [vmem:[#allocation45_spill] sm:$0xff] %v6826_v49  ;;  %v6832_v60 = vld [vmem:[#allocation9 + $0x5b0] sm:$0xff]  ;;  %v6834_v25 = vld [vmem:[#allocation9 + $0x5b8] sm:$0xff] }
 0x37c   :  { %2528 = vmatpush.msra.mxu0 %v6816_v54  ;;  %2548 = vmatpush.msrb.mxu1 %v6818_v2  ;;  %9611 = vst [vmem:[#allocation46_spill] sm:$0xff] %v6828_v35  ;;  %v6840_v2 = vld [vmem:[#allocation9 + $0x588] sm:$0xff]  ;;  %v6842_v54 = vld [vmem:[#allocation9 + $0x590] sm:$0xff] }
 0x37d   :  { %2568 = vmatpush.msrb.mxu2 %v6820_v26  ;;  %2588 = vmatpush.msra.mxu3 %v6824_v31  ;;  %9612 = vst [vmem:[#allocation47_spill] sm:$0xff] %v6832_v60  ;;  %v6856_v31 = vld [vmem:[#allocation9 + $0x570] sm:$0xff]  ;;  %v7026_v26 = vld [vmem:[#allocation9 + $0x7b8] sm:$0xff] }
 0x37e   :  { %9613 = vst [vmem:[#allocation48_spill] sm:$0xff] %v6834_v25  ;;  %2529 = vmatpush.msra.mxu0 %v6826_v49  ;;  %2549 = vmatpush.msrb.mxu1 %v6828_v35  ;;  %v6852_v49 = vld [vmem:[#allocation9 + $0x560] sm:$0xff]  ;;  %v6854_v35 = vld [vmem:[#allocation9 + $0x568] sm:$0xff] }
 0x37f   :  { %9614 = vst [vmem:[#allocation49_spill] sm:$0xff] %v6836_v44  ;;  %2569 = vmatpush.msrb.mxu2 %v6832_v60  ;;  %2589 = vmatpush.msra.mxu3 %v6834_v25  ;;  %v6860_v60 = vld [vmem:[#allocation9 + $0x578] sm:$0xff]  ;;  %v7010_v25 = vld [vmem:[#allocation9 + $0x7d0] sm:$0xff] }
 0x380   :  { %9615 = vst [vmem:[#allocation50_spill] sm:$0xff] %v6840_v2  ;;  %2530 = vmatpush.msra.mxu0 %v6836_v44  ;;  %2550 = vmatpush.msrb.mxu1 %v6840_v2  ;;  %v6864_v2 = vld [vmem:[#allocation9 + $0x540] sm:$0xff]  ;;  %v6872_v44 = vld [vmem:[#allocation9 + $0x558] sm:$0xff] }
 0x381   :  { %9616 = vst [vmem:[#allocation51_spill] sm:$0xff] %v6842_v54  ;;  %2570 = vmatpush.msrb.mxu2 %v6842_v54  ;;  %2590 = vmatpush.msra.mxu3 %v6844_v50  ;;  %v6866_v54 = vld [vmem:[#allocation9 + $0x548] sm:$0xff] }
 0x382   :  { %9617 = vst [vmem:[#allocation52_spill] sm:$0xff] %v6844_v50  ;;  %2531 = vmatpush.msra.mxu0 %v6852_v49  ;;  %2551 = vmatpush.msrb.mxu1 %v6854_v35  ;;  %v6868_v50 = vld [vmem:[#allocation9 + $0x550] sm:$0xff] }
 0x383   :  { %9618 = vst [vmem:[#allocation53_spill] sm:$0xff] %v6852_v49  ;;  %2571 = vmatpush.msrb.mxu2 %v6856_v31  ;;  %2591 = vmatpush.msra.mxu3 %v6860_v60  ;;  %v6884_v49 = vld [vmem:[#allocation9 + $0x538] sm:$0xff] }
 0x384   :  { %9619 = vst [vmem:[#allocation54_spill] sm:$0xff] %v6854_v35  ;;  %2532 = vmatpush.msra.mxu0 %v6864_v2  ;;  %2552 = vmatpush.msrb.mxu1 %v6866_v54  ;;  %v6876_v35 = vld [vmem:[#allocation9 + $0x520] sm:$0xff] }
 0x385   :  { %9620 = vst [vmem:[#allocation55_spill] sm:$0xff] %v6856_v31  ;;  %2572 = vmatpush.msrb.mxu2 %v6868_v50  ;;  %2592 = vmatpush.msra.mxu3 %v6872_v44  ;;  %v6878_v31 = vld [vmem:[#allocation9 + $0x528] sm:$0xff] }
 0x386   :  { %9621 = vst [vmem:[#allocation56_spill] sm:$0xff] %v6860_v60  ;;  %v6880_v60 = vld [vmem:[#allocation9 + $0x530] sm:$0xff]  ;;  %2533 = vmatpush.msra.mxu0 %v6876_v35  ;;  %2553 = vmatpush.msrb.mxu1 %v6878_v31 }
 0x387   :  { %9622 = vst [vmem:[#allocation57_spill] sm:$0xff] %v6864_v2  ;;  %2573 = vmatpush.msrb.mxu2 %v6880_v60  ;;  %2593 = vmatpush.msra.mxu3 %v6884_v49  ;;  %v6896_v2 = vld [vmem:[#allocation9 + $0x518] sm:$0xff] }
 0x388   :  { %9623 = vst [vmem:[#allocation58_spill] sm:$0xff] %v6866_v54  ;;  %v6888_v54 = vld [vmem:[#allocation9 + $0x500] sm:$0xff] }
 0x389   :  { %9624 = vst [vmem:[#allocation59_spill] sm:$0xff] %v6868_v50  ;;  %v6890_v50 = vld [vmem:[#allocation9 + $0x508] sm:$0xff]  ;;  %2534 = vmatpush.msra.mxu0 %v6888_v54  ;;  %2594 = vmatpush.msra.mxu3 %v6896_v2 }
 0x38a   :  { %9625 = vst [vmem:[#allocation60_spill] sm:$0xff] %v6872_v44  ;;  %v6892_v44 = vld [vmem:[#allocation9 + $0x510] sm:$0xff]  ;;  %2554 = vmatpush.msrb.mxu1 %v6890_v50 }
 0x38b   :  { %9626 = vst [vmem:[#allocation61_spill] sm:$0xff] %v6876_v35  ;;  %2574 = vmatpush.msrb.mxu2 %v6892_v44  ;;  %v6908_v35 = vld [vmem:[#allocation9 + $0x4f8] sm:$0xff] }
 0x38c   :  { %9627 = vst [vmem:[#allocation62_spill] sm:$0xff] %v6878_v31  ;;  %v6900_v31 = vld [vmem:[#allocation9 + $0x4e0] sm:$0xff]  ;;  %2595 = vmatpush.msra.mxu3 %v6908_v35 }
 0x38d   :  { %9628 = vst [vmem:[#allocation63_spill] sm:$0xff] %v6880_v60  ;;  %v6902_v60 = vld [vmem:[#allocation9 + $0x4e8] sm:$0xff]  ;;  %2535 = vmatpush.msra.mxu0 %v6900_v31 }
 0x38e   :  { %9629 = vst [vmem:[#allocation64_spill] sm:$0xff] %v6884_v49  ;;  %v6904_v49 = vld [vmem:[#allocation9 + $0x4f0] sm:$0xff]  ;;  %2555 = vmatpush.msrb.mxu1 %v6902_v60 }
 0x38f   :  { %9630 = vst [vmem:[#allocation65_spill] sm:$0xff] %v6888_v54  ;;  %2575 = vmatpush.msrb.mxu2 %v6904_v49  ;;  %v6920_v54 = vld [vmem:[#allocation9 + $0x4d8] sm:$0xff] }
 0x390   :  { %9631 = vst [vmem:[#allocation66_spill] sm:$0xff] %v6890_v50  ;;  %v6912_v50 = vld [vmem:[#allocation9 + $0x4c0] sm:$0xff]  ;;  %2596 = vmatpush.msra.mxu3 %v6920_v54 }
 0x391   :  { %9632 = vst [vmem:[#allocation67_spill] sm:$0xff] %v6892_v44  ;;  %v6914_v44 = vld [vmem:[#allocation9 + $0x4c8] sm:$0xff]  ;;  %2536 = vmatpush.msra.mxu0 %v6912_v50 }
 0x392   :  { %9633 = vst [vmem:[#allocation68_spill] sm:$0xff] %v6896_v2  ;;  %v6916_v2 = vld [vmem:[#allocation9 + $0x4d0] sm:$0xff]  ;;  %2556 = vmatpush.msrb.mxu1 %v6914_v44 }
 0x393   :  { %9634 = vst [vmem:[#allocation69_spill] sm:$0xff] %v6900_v31  ;;  %2576 = vmatpush.msrb.mxu2 %v6916_v2  ;;  %v6932_v31 = vld [vmem:[#allocation9 + $0x4b8] sm:$0xff] }
 0x394   :  { %9635 = vst [vmem:[#allocation70_spill] sm:$0xff] %v6902_v60  ;;  %v6924_v60 = vld [vmem:[#allocation9 + $0x4a0] sm:$0xff]  ;;  %2597 = vmatpush.msra.mxu3 %v6932_v31 }
 0x395   :  { %9636 = vst [vmem:[#allocation71_spill] sm:$0xff] %v6904_v49  ;;  %v6926_v49 = vld [vmem:[#allocation9 + $0x4a8] sm:$0xff]  ;;  %2537 = vmatpush.msra.mxu0 %v6924_v60 }
 0x396   :  { %9637 = vst [vmem:[#allocation72_spill] sm:$0xff] %v6908_v35  ;;  %v6928_v35 = vld [vmem:[#allocation9 + $0x4b0] sm:$0xff]  ;;  %2557 = vmatpush.msrb.mxu1 %v6926_v49 }
 0x397   :  { %9638 = vst [vmem:[#allocation73_spill] sm:$0xff] %v6912_v50  ;;  %2577 = vmatpush.msrb.mxu2 %v6928_v35  ;;  %v6944_v50 = vld [vmem:[#allocation9 + $0x498] sm:$0xff] }
 0x398   :  { %9639 = vst [vmem:[#allocation74_spill] sm:$0xff] %v6914_v44  ;;  %v6936_v44 = vld [vmem:[#allocation9 + $0x480] sm:$0xff]  ;;  %2598 = vmatpush.msra.mxu3 %v6944_v50 }
 0x399   :  { %9640 = vst [vmem:[#allocation75_spill] sm:$0xff] %v6916_v2  ;;  %v6938_v2 = vld [vmem:[#allocation9 + $0x488] sm:$0xff]  ;;  %2538 = vmatpush.msra.mxu0 %v6936_v44 }
 0x39a   :  { %9641 = vst [vmem:[#allocation76_spill] sm:$0xff] %v6920_v54  ;;  %v6940_v54 = vld [vmem:[#allocation9 + $0x490] sm:$0xff]  ;;  %2558 = vmatpush.msrb.mxu1 %v6938_v2 }
 0x39b   :  { %9642 = vst [vmem:[#allocation77_spill] sm:$0xff] %v6924_v60  ;;  %2578 = vmatpush.msrb.mxu2 %v6940_v54  ;;  %v6956_v60 = vld [vmem:[#allocation9 + $0x478] sm:$0xff] }
 0x39c   :  { %9643 = vst [vmem:[#allocation78_spill] sm:$0xff] %v6926_v49  ;;  %v6948_v49 = vld [vmem:[#allocation9 + $0x460] sm:$0xff]  ;;  %2599 = vmatpush.msra.mxu3 %v6956_v60 }
 0x39d   :  { %9644 = vst [vmem:[#allocation79_spill] sm:$0xff] %v6928_v35  ;;  %v6950_v35 = vld [vmem:[#allocation9 + $0x468] sm:$0xff]  ;;  %2539 = vmatpush.msra.mxu0 %v6948_v49 }
 0x39e   :  { %9645 = vst [vmem:[#allocation80_spill] sm:$0xff] %v6932_v31  ;;  %v6952_v31 = vld [vmem:[#allocation9 + $0x470] sm:$0xff]  ;;  %2559 = vmatpush.msrb.mxu1 %v6950_v35 }
 0x39f   :  { %9646 = vst [vmem:[#allocation81_spill] sm:$0xff] %v6936_v44  ;;  %2579 = vmatpush.msrb.mxu2 %v6952_v31  ;;  %v6968_v44 = vld [vmem:[#allocation9 + $0x458] sm:$0xff] }
 0x3a0   :  { %9647 = vst [vmem:[#allocation82_spill] sm:$0xff] %v6938_v2  ;;  %v6960_v2 = vld [vmem:[#allocation9 + $0x440] sm:$0xff]  ;;  %2600 = vmatpush.msra.mxu3 %v6968_v44 }
 0x3a1   :  { %9648 = vst [vmem:[#allocation83_spill] sm:$0xff] %v6940_v54  ;;  %v6962_v54 = vld [vmem:[#allocation9 + $0x448] sm:$0xff]  ;;  %2540 = vmatpush.msra.mxu0 %v6960_v2 }
 0x3a2   :  { %9649 = vst [vmem:[#allocation84_spill] sm:$0xff] %v6944_v50  ;;  %v6964_v50 = vld [vmem:[#allocation9 + $0x450] sm:$0xff]  ;;  %2560 = vmatpush.msrb.mxu1 %v6962_v54 }
 0x3a3   :  { %9650 = vst [vmem:[#allocation85_spill] sm:$0xff] %v6948_v49  ;;  %2580 = vmatpush.msrb.mxu2 %v6964_v50  ;;  %v6980_v49 = vld [vmem:[#allocation9 + $0x438] sm:$0xff] }
 0x3a4   :  { %9651 = vst [vmem:[#allocation86_spill] sm:$0xff] %v6950_v35  ;;  %v6972_v35 = vld [vmem:[#allocation9 + $0x420] sm:$0xff]  ;;  %2601 = vmatpush.msra.mxu3 %v6980_v49 }
 0x3a5   :  { %9652 = vst [vmem:[#allocation87_spill] sm:$0xff] %v6952_v31  ;;  %v6974_v31 = vld [vmem:[#allocation9 + $0x428] sm:$0xff]  ;;  %2541 = vmatpush.msra.mxu0 %v6972_v35 }
 0x3a6   :  { %9653 = vst [vmem:[#allocation88_spill] sm:$0xff] %v6956_v60  ;;  %v6976_v60 = vld [vmem:[#allocation9 + $0x430] sm:$0xff]  ;;  %2561 = vmatpush.msrb.mxu1 %v6974_v31 }
 0x3a7   :  { %9654 = vst [vmem:[#allocation89_spill] sm:$0xff] %v6960_v2  ;;  %2581 = vmatpush.msrb.mxu2 %v6976_v60  ;;  %v6992_v2 = vld [vmem:[#allocation9 + $0x418] sm:$0xff] }
 0x3a8   :  { %9655 = vst [vmem:[#allocation90_spill] sm:$0xff] %v6962_v54  ;;  %v6984_v54 = vld [vmem:[#allocation9 + $0x400] sm:$0xff]  ;;  %2602 = vmatpush.msra.mxu3 %v6992_v2 }
 0x3a9   :  { %9656 = vst [vmem:[#allocation91_spill] sm:$0xff] %v6964_v50  ;;  %v6986_v50 = vld [vmem:[#allocation9 + $0x408] sm:$0xff]  ;;  %2542 = vmatpush.msra.mxu0 %v6984_v54 }
 0x3aa   :  { %9657 = vst [vmem:[#allocation92_spill] sm:$0xff] %v6968_v44  ;;  %v6988_v44 = vld [vmem:[#allocation9 + $0x410] sm:$0xff]  ;;  %2562 = vmatpush.msrb.mxu1 %v6986_v50 }
 0x3ab   :  { %9658 = vst [vmem:[#allocation93_spill] sm:$0xff] %v6972_v35  ;;  %v6994_v35 = vld [vmem:[#allocation9 + $0x7e0] sm:$0xff]  ;;  %2582 = vmatpush.msrb.mxu2 %v6988_v44 }
 0x3ac   :  { %9659 = vst [vmem:[#allocation94_spill] sm:$0xff] %v6974_v31  ;;  %v6996_v31 = vld [vmem:[#allocation9 + $0x7e8] sm:$0xff]  ;;  %2607 = vmatpush.msrb.mxu0 %v6994_v35 }
 0x3ad   :  { %9660 = vst [vmem:[#allocation95_spill] sm:$0xff] %v6976_v60  ;;  %v7002_v60 = vld [vmem:[#allocation9 + $0x7f8] sm:$0xff]  ;;  %2627 = vmatpush.msra.mxu1 %v6996_v31 }
 0x3ae   :  { %9661 = vst [vmem:[#allocation96_spill] sm:$0xff] %v6980_v49  ;;  %v7000_v49 = vld [vmem:[#allocation9 + $0x7f0] sm:$0xff]  ;;  %2667 = vmatpush.msrb.mxu3 %v7002_v60 }
 0x3af   :  { %9662 = vst [vmem:[#allocation97_spill] sm:$0xff] %v6984_v54  ;;  %v7006_v54 = vld [vmem:[#allocation9 + $0x7c0] sm:$0xff]  ;;  %2647 = vmatpush.msra.mxu2 %v7000_v49 }
 0x3b0   :  { %9663 = vst [vmem:[#allocation98_spill] sm:$0xff] %v6986_v50  ;;  %v7008_v50 = vld [vmem:[#allocation9 + $0x7c8] sm:$0xff]  ;;  %2608 = vmatpush.msrb.mxu0 %v7006_v54 }
 0x3b1   :  { %9664 = vst [vmem:[#allocation99_spill] sm:$0xff] %v6988_v44  ;;  %v7014_v44 = vld [vmem:[#allocation9 + $0x7d8] sm:$0xff]  ;;  %2628 = vmatpush.msra.mxu1 %v7008_v50  ;;  %2648 = vmatpush.msra.mxu2 %v7010_v25 }
 0x3b2   :  { %9665 = vst [vmem:[#allocation100_spill] sm:$0xff] %v6992_v2  ;;  %v7018_v2 = vld [vmem:[#allocation9 + $0x7a0] sm:$0xff]  ;;  %2668 = vmatpush.msrb.mxu3 %v7014_v44 }
 0x3b3   :  { %9666 = vst [vmem:[#allocation101_spill] sm:$0xff] %v6994_v35  ;;  %v7020_v35 = vld [vmem:[#allocation9 + $0x7a8] sm:$0xff]  ;;  %2609 = vmatpush.msrb.mxu0 %v7018_v2 }
 0x3b4   :  { %9667 = vst [vmem:[#allocation102_spill] sm:$0xff] %v6996_v31  ;;  %v7022_v31 = vld [vmem:[#allocation9 + $0x7b0] sm:$0xff]  ;;  %2629 = vmatpush.msra.mxu1 %v7020_v35  ;;  %2669 = vmatpush.msrb.mxu3 %v7026_v26 }
 0x3b5   :  { %9668 = vst [vmem:[#allocation103_spill] sm:$0xff] %v7000_v49  ;;  %2649 = vmatpush.msra.mxu2 %v7022_v31  ;;  %v7038_v49 = vld [vmem:[#allocation9 + $0x798] sm:$0xff] }
 0x3b6   :  { %9669 = vst [vmem:[#allocation104_spill] sm:$0xff] %v7002_v60  ;;  %v7030_v60 = vld [vmem:[#allocation9 + $0x780] sm:$0xff]  ;;  %2670 = vmatpush.msrb.mxu3 %v7038_v49 }
 0x3b7   :  { %9670 = vst [vmem:[#allocation105_spill] sm:$0xff] %v7006_v54  ;;  %v7032_v54 = vld [vmem:[#allocation9 + $0x788] sm:$0xff]  ;;  %2610 = vmatpush.msrb.mxu0 %v7030_v60 }
 0x3b8   :  { %9671 = vst [vmem:[#allocation106_spill] sm:$0xff] %v7008_v50  ;;  %v7034_v50 = vld [vmem:[#allocation9 + $0x790] sm:$0xff]  ;;  %2630 = vmatpush.msra.mxu1 %v7032_v54 }
 0x3b9   :  { %9672 = vst [vmem:[#allocation107_spill] sm:$0xff] %v7010_v25  ;;  %2650 = vmatpush.msra.mxu2 %v7034_v50  ;;  %v7050_v25 = vld [vmem:[#allocation9 + $0x778] sm:$0xff] }
 0x3ba   :  { %9673 = vst [vmem:[#allocation108_spill] sm:$0xff] %v7014_v44  ;;  %v7042_v44 = vld [vmem:[#allocation9 + $0x760] sm:$0xff]  ;;  %2671 = vmatpush.msrb.mxu3 %v7050_v25 }
 0x3bb   :  { %9674 = vst [vmem:[#allocation109_spill] sm:$0xff] %v7018_v2  ;;  %v7044_v2 = vld [vmem:[#allocation9 + $0x768] sm:$0xff]  ;;  %2611 = vmatpush.msrb.mxu0 %v7042_v44 }
 0x3bc   :  { %9675 = vst [vmem:[#allocation110_spill] sm:$0xff] %v7020_v35  ;;  %v7046_v35 = vld [vmem:[#allocation9 + $0x770] sm:$0xff]  ;;  %2631 = vmatpush.msra.mxu1 %v7044_v2 }
 0x3bd   :  { %9676 = vst [vmem:[#allocation111_spill] sm:$0xff] %v7022_v31  ;;  %2651 = vmatpush.msra.mxu2 %v7046_v35  ;;  %v7062_v31 = vld [vmem:[#allocation9 + $0x758] sm:$0xff] }
 0x3be   :  { %9677 = vst [vmem:[#allocation112_spill] sm:$0xff] %v7026_v26  ;;  %v7054_v26 = vld [vmem:[#allocation9 + $0x740] sm:$0xff]  ;;  %2672 = vmatpush.msrb.mxu3 %v7062_v31 }
 0x3bf   :  { %9678 = vst [vmem:[#allocation113_spill] sm:$0xff] %v7030_v60  ;;  %v7056_v60 = vld [vmem:[#allocation9 + $0x748] sm:$0xff]  ;;  %2612 = vmatpush.msrb.mxu0 %v7054_v26 }
 0x3c0   :  { %9679 = vst [vmem:[#allocation114_spill] sm:$0xff] %v7032_v54  ;;  %v7058_v54 = vld [vmem:[#allocation9 + $0x750] sm:$0xff]  ;;  %2632 = vmatpush.msra.mxu1 %v7056_v60 }
 0x3c1   :  { %9680 = vst [vmem:[#allocation115_spill] sm:$0xff] %v7034_v50  ;;  %2652 = vmatpush.msra.mxu2 %v7058_v54 }
 0x3c2   :  { %9681 = vst [vmem:[#allocation116_spill] sm:$0xff] %v7038_v49  ;;  %v7070_v49 = vld [vmem:[#allocation9 + $0x730] sm:$0xff] }
 0x3c3   :  { %9682 = vst [vmem:[#allocation117_spill] sm:$0xff] %v7042_v44  ;;  %v7066_v44 = vld [vmem:[#allocation9 + $0x720] sm:$0xff]  ;;  %2653 = vmatpush.msra.mxu2 %v7070_v49 }
 0x3c4   :  { %9683 = vst [vmem:[#allocation118_spill] sm:$0xff] %v7044_v2  ;;  %v7068_v2 = vld [vmem:[#allocation9 + $0x728] sm:$0xff]  ;;  %2613 = vmatpush.msrb.mxu0 %v7066_v44 }
 0x3c5   :  { %9684 = vst [vmem:[#allocation119_spill] sm:$0xff] %v7046_v35  ;;  %v7074_v35 = vld [vmem:[#allocation9 + $0x738] sm:$0xff]  ;;  %2633 = vmatpush.msra.mxu1 %v7068_v2 }
 0x3c6   :  { %9685 = vst [vmem:[#allocation120_spill] sm:$0xff] %v7050_v25  ;;  %v7082_v25 = vld [vmem:[#allocation9 + $0x710] sm:$0xff]  ;;  %2673 = vmatpush.msrb.mxu3 %v7074_v35 }
 0x3c7   :  { %9686 = vst [vmem:[#allocation121_spill] sm:$0xff] %v7054_v26  ;;  %v7078_v26 = vld [vmem:[#allocation9 + $0x700] sm:$0xff]  ;;  %2654 = vmatpush.msra.mxu2 %v7082_v25 }
 0x3c8   :  { %9687 = vst [vmem:[#allocation122_spill] sm:$0xff] %v7056_v60  ;;  %v7080_v60 = vld [vmem:[#allocation9 + $0x708] sm:$0xff]  ;;  %2614 = vmatpush.msrb.mxu0 %v7078_v26  ;;  %2674 = vmatpush.msrb.mxu3 %v7086_v46  ;;  %v7114_v46 = vld [vmem:[#allocation9 + $0x6a0] sm:$0xff] }
 0x3c9   :  { %9688 = vst [vmem:[#allocation123_spill] sm:$0xff] %v7058_v54  ;;  %2634 = vmatpush.msra.mxu1 %v7080_v60  ;;  %v7098_v54 = vld [vmem:[#allocation9 + $0x6f8] sm:$0xff] }
 0x3ca   :  { %9689 = vst [vmem:[#allocation124_spill] sm:$0xff] %v7062_v31  ;;  %v7090_v31 = vld [vmem:[#allocation9 + $0x6e0] sm:$0xff]  ;;  %2675 = vmatpush.msrb.mxu3 %v7098_v54 }
 0x3cb   :  { %9690 = vst [vmem:[#allocation125_spill] sm:$0xff] %v7066_v44  ;;  %v7092_v44 = vld [vmem:[#allocation9 + $0x6e8] sm:$0xff]  ;;  %2615 = vmatpush.msrb.mxu0 %v7090_v31 }
 0x3cc   :  { %9691 = vst [vmem:[#allocation126_spill] sm:$0xff] %v7068_v2  ;;  %v7094_v2 = vld [vmem:[#allocation9 + $0x6f0] sm:$0xff]  ;;  %2635 = vmatpush.msra.mxu1 %v7092_v44 }
 0x3cd   :  { %9692 = vst [vmem:[#allocation127_spill] sm:$0xff] %v7070_v49  ;;  %2655 = vmatpush.msra.mxu2 %v7094_v2  ;;  %v7110_v49 = vld [vmem:[#allocation9 + $0x6d8] sm:$0xff] }
 0x3ce   :  { %9693 = vst [vmem:[#allocation128_spill] sm:$0xff] %v7074_v35  ;;  %v7102_v35 = vld [vmem:[#allocation9 + $0x6c0] sm:$0xff]  ;;  %2676 = vmatpush.msrb.mxu3 %v7110_v49 }
 0x3cf   :  { %9694 = vst [vmem:[#allocation129_spill] sm:$0xff] %v7078_v26  ;;  %v7104_v26 = vld [vmem:[#allocation9 + $0x6c8] sm:$0xff]  ;;  %2616 = vmatpush.msrb.mxu0 %v7102_v35 }
 0x3d0   :  { %9695 = vst [vmem:[#allocation130_spill] sm:$0xff] %v7080_v60  ;;  %v7106_v60 = vld [vmem:[#allocation9 + $0x6d0] sm:$0xff]  ;;  %2636 = vmatpush.msra.mxu1 %v7104_v26 }
 0x3d1   :  { %v2056_v50 = vpop.f32.mrf.mxu0  ;;  %v2076_v30 = vpop.f32.mrf.mxu1  ;;  %9696 = vst [vmem:[#allocation131_spill] sm:$0xff] %v7082_v25  ;;  %v7120_v25 = vld [vmem:[#allocation11 + $0x4] sm:$0xf]  ;;  %2656 = vmatpush.msra.mxu2 %v7106_v60  ;;  %2617 = vmatpush.msrb.mxu0 %v7114_v46 }
 0x3d2   :  { %9698 = vst [vmem:[#allocation133_spill] sm:$0xff] %v7090_v31  ;;  %v7116_v31 = vld [vmem:[#allocation9 + $0x6a8] sm:$0xff]  ;;  %v2201_v33 = vperm.slane %v7120_v25, 0 }
 0x3d3   :  { %9699 = vst [vmem:[#allocation134_spill] sm:$0xff] %v7092_v44  ;;  %v7118_v44 = vld [vmem:[#allocation9 + $0x6b0] sm:$0xff]  ;;  %2637 = vmatpush.msra.mxu1 %v7116_v31 }
 0x3d4   :  { %9700 = vst [vmem:[#allocation135_spill] sm:$0xff] %v7094_v2  ;;  %v7124_v2 = vld [vmem:[#allocation9 + $0x6b8] sm:$0xff]  ;;  %2657 = vmatpush.msra.mxu2 %v7118_v44 }
 0x3d5   :  { %9701 = vst [vmem:[#allocation136_spill] sm:$0xff] %v7098_v54  ;;  %2677 = vmatpush.msrb.mxu3 %v7124_v2 }
 0x3d6   :  { %9702 = vst [vmem:[#allocation137_spill] sm:$0xff] %v7102_v35  ;;  %v7132_v35 = vld [vmem:[#allocation9 + $0x688] sm:$0xff]  ;;  %2658 = vmatpush.msra.mxu2 %v7134_v20 }
 0x3d7   :  { %9703 = vst [vmem:[#allocation138_spill] sm:$0xff] %v7104_v26  ;;  %v7130_v26 = vld [vmem:[#allocation9 + $0x680] sm:$0xff]  ;;  %2638 = vmatpush.msra.mxu1 %v7132_v35 }
 0x3d8   :  { %9704 = vst [vmem:[#allocation139_spill] sm:$0xff] %v7106_v60  ;;  %v7126_v54 = vpop.f32.mrf.mxu2  ;;  %v7136_v38 = vpop.f32.mrf.mxu3  ;;  %2618 = vmatpush.msrb.mxu0 %v7130_v26  ;;  %2659 = vmatpush.msra.mxu2 %v7148_v34  ;;  %v7178_v34 = vld [vmem:[#allocation9 + $0x638] sm:$0xff] }
 0x3d9   :  { %9705 = vst [vmem:[#allocation140_spill] sm:$0xff] %v7110_v49  ;;  %v7140_v49 = vld [vmem:[#allocation9 + $0x698] sm:$0xff] }
 0x3da   :  { %9706 = vst [vmem:[#allocation141_spill] sm:$0xff] %v7114_v46  ;;  %v7146_v46 = vld [vmem:[#allocation9 + $0x668] sm:$0xff]  ;;  %2678 = vmatpush.msrb.mxu3 %v7140_v49 }
 0x3db   :  { %9707 = vst [vmem:[#allocation142_spill] sm:$0xff] %v7116_v31  ;;  %v2136_v41 = vpop.f32.mrf.mxu0  ;;  %v2156_v60 = vpop.f32.mrf.mxu1  ;;  %v7144_v31 = vld [vmem:[#allocation9 + $0x660] sm:$0xff]  ;;  %2639 = vmatpush.msra.mxu1 %v7146_v46 }
 0x3dc   :  { %9708 = vst [vmem:[#allocation143_spill] sm:$0xff] %v7118_v44  ;;  %v2137_v17 = vadd.f32 %v2136_v41, %v2056_v50  ;;  %v2157_v44 = vadd.f32 %v2156_v60, %v2076_v30  ;;  %2619 = vmatpush.msrb.mxu0 %v7144_v31  ;;  %v7162_v41 = vld [vmem:[#allocation9 + $0x650] sm:$0xff]  ;;  %v7166_v50 = vld [vmem:[#allocation9 + $0x658] sm:$0xff]  ;;  %v7170_v30 = vld [vmem:[#allocation9 + $0x620] sm:$0xff] }
 0x3dd   :  { %9709 = vst [vmem:[#allocation145_spill] sm:$0xff] %v7124_v2  ;;  %v7153_v2 = vld [vmem:[#allocation9 + $0x678] sm:$0xff]  ;;  %2640 = vmatpush.msra.mxu1 %v7160_v32  ;;  %v7172_v60 = vld [vmem:[#allocation9 + $0x628] sm:$0xff]  ;;  %2660 = vmatpush.msra.mxu2 %v7162_v41 }
 0x3de   :  { %9710 = vst [vmem:[#allocation146_spill] sm:$0xff] %v7130_v26  ;;  %v2202_v26 = vperm.slane %v7120_v25, 1  ;;  %2679 = vmatpush.msrb.mxu3 %v7153_v2  ;;  %v7184_v32 = vld [vmem:[#allocation9 + $0x608] sm:$0xff] }
 0x3df   :  { %9711 = vst [vmem:[#allocation147_spill] sm:$0xff] %v7132_v35  ;;  %v7158_v35 = vld [vmem:[#allocation9 + $0x640] sm:$0xff]  ;;  %2641 = vmatpush.msra.mxu1 %v7172_v60 }
 0x3e0   :  { %9712 = vst [vmem:[#allocation148_spill] sm:$0xff] %v7134_v20  ;;  %2620 = vmatpush.msrb.mxu0 %v7158_v35  ;;  %2680 = vmatpush.msrb.mxu3 %v7166_v50 }
 0x3e1   :  { %9713 = vst [vmem:[#allocation149_spill] sm:$0xff] %v7140_v49  ;;  %v7186_v49 = vld [vmem:[#allocation9 + $0x610] sm:$0xff]  ;;  %2642 = vmatpush.msra.mxu1 %v7184_v32 }
 0x3e2   :  { %9714 = vst [vmem:[#allocation150_spill] sm:$0xff] %v7144_v31  ;;  %v2209_v31 = vadd.f32 %v2201_v33, %v2137_v17  ;;  %2621 = vmatpush.msrb.mxu0 %v7170_v30  ;;  %2681 = vmatpush.msrb.mxu3 %v7178_v34  ;;  %v7190_v33 = vld [vmem:[#allocation9 + $0x618] sm:$0xff] }
 0x3e3   :  { %9715 = vst [vmem:[#allocation151_spill] sm:$0xff] %v7146_v46  ;;  %v7174_v46 = vld [vmem:[#allocation9 + $0x630] sm:$0xff] }
 0x3e4   :  { %9717 = vst [vmem:[#allocation153_spill] sm:$0xff] %v7153_v2  ;;  %v2210_v2 = vadd.f32 %v2202_v26, %v2157_v44  ;;  %2661 = vmatpush.msra.mxu2 %v7174_v46  ;;  %v2213_v17 = vmul.f32 0.5, %v2209_v31  ;;  %v2176_v26 = vpop.f32.mrf.mxu2  ;;  %v2196_v44 = vpop.f32.mrf.mxu3  ;;  %2682 = vmatpush.msrb.mxu3 %v7190_v33  ;;  %v2203_v31 = vperm.slane %v7120_v25, 2 }
 0x3e5   :  { %9718 = vst [vmem:[#allocation154_spill] sm:$0xff] %v7158_v35  ;;  %v7182_v35 = vld [vmem:[#allocation9 + $0x600] sm:$0xff] }
 0x3e6   :  { %9720 = vst [vmem:[#allocation156_spill] sm:$0xff] %v7162_v41  ;;  %2622 = vmatpush.msrb.mxu0 %v7182_v35  ;;  %2662 = vmatpush.msra.mxu2 %v7186_v49  ;;  %4556 = vtanh.f32 %v2213_v17 }
 0x3e7   :  { %9721 = vst [vmem:[#allocation160_spill] sm:$0xff] %v7166_v50 }
 0x3e8   :  { %9722 = vst [vmem:[#allocation161_spill] sm:$0xff] %v7170_v30 }
 0x3e9   :  { %9723 = vst [vmem:[#allocation162_spill] sm:$0xff] %v7172_v60  ;;  %v2217_v60 = vmul.f32 0.5, %v2210_v2 }
 0x3ea   :  { %9724 = vst [vmem:[#allocation163_spill] sm:$0xff] %v7174_v46 }
 0x3eb   :  { %9725 = vst [vmem:[#allocation164_spill] sm:$0xff] %v7178_v34  ;;  %4558 = vtanh.f32 %v2217_v60 }
 0x3ec   :  { %9726 = vst [vmem:[#allocation165_spill] sm:$0xff] %v7182_v35 }
 0x3ed   :  { %9727 = vst [vmem:[#allocation166_spill] sm:$0xff] %v7184_v32  ;;  %v2177_v32 = vadd.f32 %v2176_v26, %v7126_v54  ;;  %v2204_v54 = vperm.slane %v7120_v25, 3 }
 0x3ee   :  { %9728 = vst [vmem:[#allocation167_spill] sm:$0xff] %v7186_v49 }
 0x3ef   :  { %9729 = vst [vmem:[#allocation169_spill] sm:$0xff] %v7190_v33  ;;  %v2211_v33 = vadd.f32 %v2203_v31, %v2177_v32 }
 0x3f5   :  { %v2314_v30 = vpop.f32.mrf.mxu0  ;;  %v2334_v50 = vpop.f32.mrf.mxu1 }
 0x3f6   :  { %v2377_v46 = vadd.f32 %v2314_v30, %v9582_v59  ;;  %v2378_v34 = vadd.f32 %v2334_v50, %v9583_v61  ;;  %v4557_v30 = vpop.eup %4556 }
 0x3f7   :  { %v4559_v59 = vpop.eup %4558 }
 0x3f8   :  { %v2381_v41 = vmul.f32 0.5, %v2377_v46  ;;  %v2385_v20 = vmul.f32 0.5, %v2378_v34  ;;  %v2197_v34 = vadd.f32 %v2196_v44, %v7136_v38  ;;  %v2219_v17 = vmul.f32 0.5, %v4559_v59 }
 0x3fa   :  { %4560 = vtanh.f32 %v2381_v41 }
 0x3fb   :  { %4562 = vtanh.f32 %v2385_v20  ;;  %v2215_v20 = vmul.f32 0.5, %v4557_v30 }
 0x3fc   :  { %v2354_v49 = vpop.f32.mrf.mxu2  ;;  %v2374_v35 = vpop.f32.mrf.mxu3 }
 0x3fd   :  { %v2379_v2 = vadd.f32 %v2354_v49, %v9584_v10  ;;  %v2380_v43 = vadd.f32 %v2374_v35, %v9585_v21  ;;  %v2212_v49 = vadd.f32 %v2204_v54, %v2197_v34  ;;  %v2216_v21 = vadd.f32 0.5, %v2215_v20  ;;  %v9760_v20 = vld [vmem:[#allocation51_spill] sm:$0xff] }
 0x3fe   :  { %v2220_v10 = vadd.f32 0.5, %v2219_v17  ;;  %v9761_v17 = vld [vmem:[#allocation52_spill] sm:$0xff] }
 0x3ff   :  { %4564 = vtanh.f32 %v2379_v2  ;;  %v2390_v50 = vmul.f32 0.5, %v2380_v43  ;;  %v2222_v44 = vmul.f32 0.5, %v2212_v49  ;;  %v9764_v49 = vld [vmem:[#allocation55_spill] sm:$0xff] }
 0x400   :  { %v4561_v46 = vpop.eup %4560  ;;  %4566 = vtanh.f32 %v2211_v33  ;;  %v2226_v33 = vmul.f32 %v2220_v10, %v6615_v37 }
 0x401   :  { %v4563_v60 = vpop.eup %4562  ;;  %v2383_v41 = vmul.f32 0.5, %v4561_v46  ;;  %4568 = vtanh.f32 %v2390_v50 }
 0x402   :  { %v2387_v26 = vmul.f32 0.5, %v4563_v60  ;;  %v9758_v60 = vld [vmem:[#allocation49_spill] sm:$0xff] }
 0x403   :  { %v2384_v32 = vadd.f32 0.5, %v2383_v41  ;;  %v9759_v41 = vld [vmem:[#allocation50_spill] sm:$0xff] }
 0x404   :  { %v2388_v31 = vadd.f32 0.5, %v2387_v26  ;;  %v9762_v26 = vld [vmem:[#allocation53_spill] sm:$0xff] }
 0x405   :  { %v4565_v35 = vpop.eup %4564 }
 0x406   :  { %v2394_v43 = vmul.f32 %v2388_v31, %v6611_v12  ;;  %v2395_v2 = vmul.f32 %v4565_v35, %v2384_v32  ;;  %v4567_v61 = vpop.eup %4566  ;;  %v9763_v32 = vld [vmem:[#allocation54_spill] sm:$0xff]  ;;  %v9765_v31 = vld [vmem:[#allocation56_spill] sm:$0xff]  ;;  %v9766_v35 = vld [vmem:[#allocation57_spill] sm:$0xff] }
 0x407   :  { %v4569_v38 = vpop.eup %4568  ;;  %v2227_v30 = vmul.f32 %v4567_v61, %v2216_v21 }
 0x408   :  { %v7205_v25 = vadd.f32 %v2395_v2, %v2394_v43  ;;  %v2392_v59 = vmul.f32 0.5, %v4569_v38  ;;  %v9767_v43 = vld [vmem:[#allocation58_spill] sm:$0xff]  ;;  %v9768_v2 = vld [vmem:[#allocation59_spill] sm:$0xff]  ;;  %v9769_v38 = vld [vmem:[#allocation60_spill] sm:$0xff] }
 0x409   :  { %v7209_v50 = vadd.f32 %v2227_v30, %v2226_v33  ;;  %v9771_v33 = vld [vmem:[#allocation62_spill] sm:$0xff]  ;;  %v9772_v30 = vld [vmem:[#allocation63_spill] sm:$0xff] }
 0x40a   :  { %4570 = vtanh.f32 %v7205_v25  ;;  %v2393_v46 = vadd.f32 0.5, %v2392_v59  ;;  %v9773_v59 = vld [vmem:[#allocation64_spill] sm:$0xff] }
 0x40b   :  { %4572 = vtanh.f32 %v2222_v44  ;;  %v9770_v44 = vld [vmem:[#allocation61_spill] sm:$0xff] }
 0x40c   :  { %4574 = vtanh.f32 %v7209_v50 }
 0x410   :  { %v4571_v34 = vpop.eup %4570 }
 0x411   :  { %v7211_v54 = vmul.f32 %v4571_v34, %v2393_v46  ;;  %v4573_v12 = vpop.eup %4572  ;;  %v9774_v46 = vld [vmem:[#allocation65_spill] sm:$0xff]  ;;  %v9775_v34 = vld [vmem:[#allocation66_spill] sm:$0xff] }
 0x412   :  { %v2224_v61 = vmul.f32 0.5, %v4573_v12  ;;  %v4575_v10 = vpop.eup %4574  ;;  %v9777_v12 = vld [vmem:[#allocation68_spill] sm:$0xff] }
 0x413   :  { %2543 = vmatmul.f32.vlgmr.msra.gmra.mxu0 %v7211_v54  ;;  %2563 = vmatmul.f32.vlgmr.msrb.gmra.mxu1 %v7211_v54 }
 0x414   :  { %2583 = vmatmul.f32.vlgmr.msrb.gmra.mxu2 %v7211_v54  ;;  %2603 = vmatmul.f32.vlgmr.msra.gmra.mxu3 %v7211_v54  ;;  %v2225_v21 = vadd.f32 0.5, %v2224_v61  ;;  %v9778_v61 = vld [vmem:[#allocation69_spill] sm:$0xff] }
 0x415   :  { %2785 = vmatpush.msra.mxu0 %v6620_v45  ;;  %2805 = vmatpush.msrb.mxu1 %v6622_v52  ;;  %v7240_v45 = vld [vmem:[#allocation9 + $0x340] sm:$0xff] }
 0x416   :  { %2825 = vmatpush.msrb.mxu2 %v6626_v28  ;;  %2845 = vmatpush.msra.mxu3 %v6628_v55  ;;  %v7230_v37 = vmul.f32 %v4575_v10, %v2225_v21  ;;  %v7246_v52 = vld [vmem:[#allocation9 + $0x320] sm:$0xff]  ;;  %v9779_v10 = vld [vmem:[#allocation70_spill] sm:$0xff] }
 0x417   :  { %2786 = vmatpush.msra.mxu0 %v6632_v57  ;;  %2806 = vmatpush.msrb.mxu1 %v6634_v58  ;;  %v7252_v28 = vld [vmem:[#allocation9 + $0x300] sm:$0xff] }
 0x418   :  { %2826 = vmatpush.msrb.mxu2 %v6638_v62  ;;  %2846 = vmatpush.msra.mxu3 %v6640_v0  ;;  %9730 = vst [vmem:[#allocation170_spill] sm:$0xff] %v7230_v37  ;;  %v7258_v55 = vld [vmem:[#allocation9 + $0x2e0] sm:$0xff] }
 0x419   :  { %2787 = vmatpush.msra.mxu0 %v6644_v1  ;;  %2807 = vmatpush.msrb.mxu1 %v6646_v47  ;;  %v7264_v57 = vld [vmem:[#allocation9 + $0x2c0] sm:$0xff]  ;;  %v9731_v1 = vld [vmem:[#allocation24_spill] sm:$0xff]  ;;  %v9732_v47 = vld [vmem:[#allocation25_spill] sm:$0xff] }
 0x41a   :  { %2827 = vmatpush.msrb.mxu2 %v6650_v3  ;;  %2847 = vmatpush.msra.mxu3 %v6652_v4  ;;  %v7270_v58 = vld [vmem:[#allocation9 + $0x2a0] sm:$0xff]  ;;  %v9733_v3 = vld [vmem:[#allocation21_spill] sm:$0xff] }
 0x41b   :  { %2788 = vmatpush.msra.mxu0 %v6656_v6  ;;  %2808 = vmatpush.msrb.mxu1 %v6658_v53  ;;  %v7276_v62 = vld [vmem:[#allocation9 + $0x280] sm:$0xff]  ;;  %v9734_v6 = vld [vmem:[#allocation26_spill] sm:$0xff] }
 0x41c   :  { %2828 = vmatpush.msrb.mxu2 %v6662_v9  ;;  %2848 = vmatpush.msra.mxu3 %v6664_v13  ;;  %v7282_v0 = vld [vmem:[#allocation9 + $0x260] sm:$0xff]  ;;  %v9736_v9 = vld [vmem:[#allocation22_spill] sm:$0xff] }
 0x41d   :  { %2623 = vmatmul.f32.vlgmr.msrb.gmra.mxu0 %v7230_v37  ;;  %2643 = vmatmul.f32.vlgmr.msra.gmra.mxu1 %v7230_v37  ;;  %v7288_v4 = vld [vmem:[#allocation9 + $0x240] sm:$0xff] }
 0x41e   :  { %2663 = vmatmul.f32.vlgmr.msra.gmra.mxu2 %v7230_v37  ;;  %2683 = vmatmul.f32.vlgmr.msrb.gmra.mxu3 %v7230_v37  ;;  %v9735_v53 = vld [vmem:[#allocation27_spill] sm:$0xff]  ;;  %v7642_v37 = vld [vmem:[#allocation9 + $0x5f0] sm:$0xff] }
 0x41f   :  { %2789 = vmatpush.msra.mxu0 %v6674_v63  ;;  %2809 = vmatpush.msrb.mxu1 %v6676_v36  ;;  %v7294_v13 = vld [vmem:[#allocation9 + $0x220] sm:$0xff]  ;;  %v9737_v63 = vld [vmem:[#allocation28_spill] sm:$0xff]  ;;  %v9738_v36 = vld [vmem:[#allocation29_spill] sm:$0xff] }
 0x420   :  { %2829 = vmatpush.msrb.mxu2 %v6680_v7  ;;  %2849 = vmatpush.msra.mxu3 %v6682_v15  ;;  %v9739_v7 = vld [vmem:[#allocation30_spill] sm:$0xff]  ;;  %v7300_v15 = vld [vmem:[#allocation9 + $0x200] sm:$0xff] }
 0x421   :  { %2790 = vmatpush.msra.mxu0 %v7240_v45  ;;  %2810 = vmatpush.msrb.mxu1 %v6686_v8  ;;  %v9740_v8 = vld [vmem:[#allocation31_spill] sm:$0xff] }
 0x422   :  { %2830 = vmatpush.msrb.mxu2 %v6690_v11  ;;  %2850 = vmatpush.msra.mxu3 %v6692_v56  ;;  %v9741_v11 = vld [vmem:[#allocation32_spill] sm:$0xff]  ;;  %v9742_v56 = vld [vmem:[#allocation33_spill] sm:$0xff]  ;;  %v9780_v21 = vld [vmem:[#allocation71_spill] sm:$0xff] }
 0x423   :  { %2791 = vmatpush.msra.mxu0 %v7246_v52  ;;  %2811 = vmatpush.msrb.mxu1 %v6696_v40  ;;  %v9743_v40 = vld [vmem:[#allocation34_spill] sm:$0xff] }
 0x424   :  { %2831 = vmatpush.msrb.mxu2 %v6700_v24  ;;  %2851 = vmatpush.msra.mxu3 %v6702_v14  ;;  %v9744_v24 = vld [vmem:[#allocation35_spill] sm:$0xff]  ;;  %v9745_v14 = vld [vmem:[#allocation36_spill] sm:$0xff] }
 0x425   :  { %2792 = vmatpush.msra.mxu0 %v7252_v28  ;;  %2812 = vmatpush.msrb.mxu1 %v6706_v16  ;;  %v9746_v16 = vld [vmem:[#allocation37_spill] sm:$0xff] }
 0x426   :  { %2832 = vmatpush.msrb.mxu2 %v6710_v5  ;;  %2852 = vmatpush.msra.mxu3 %v6712_v27  ;;  %v9747_v5 = vld [vmem:[#allocation38_spill] sm:$0xff]  ;;  %v9748_v27 = vld [vmem:[#allocation39_spill] sm:$0xff] }
 0x427   :  { %2793 = vmatpush.msra.mxu0 %v7258_v55  ;;  %2813 = vmatpush.msrb.mxu1 %v6716_v22  ;;  %v9749_v22 = vld [vmem:[#allocation40_spill] sm:$0xff] }
 0x428   :  { %2833 = vmatpush.msrb.mxu2 %v6720_v42  ;;  %2853 = vmatpush.msra.mxu3 %v6722_v51  ;;  %v9750_v42 = vld [vmem:[#allocation41_spill] sm:$0xff]  ;;  %v9751_v51 = vld [vmem:[#allocation42_spill] sm:$0xff]  ;;  %9896 = vst [vmem:[#allocation40_spill] sm:$0xff] %v7642_v37 }
 0x429   :  { %2794 = vmatpush.msra.mxu0 %v7264_v57  ;;  %2814 = vmatpush.msrb.mxu1 %v6726_v19  ;;  %v9752_v19 = vld [vmem:[#allocation43_spill] sm:$0xff] }
 0x42a   :  { %2834 = vmatpush.msrb.mxu2 %v6730_v23  ;;  %2854 = vmatpush.msra.mxu3 %v6732_v18  ;;  %v9753_v23 = vld [vmem:[#allocation44_spill] sm:$0xff]  ;;  %v9754_v18 = vld [vmem:[#allocation45_spill] sm:$0xff] }
 0x42b   :  { %2795 = vmatpush.msra.mxu0 %v7270_v58  ;;  %2815 = vmatpush.msrb.mxu1 %v6736_v48  ;;  %v9755_v48 = vld [vmem:[#allocation46_spill] sm:$0xff] }
 0x42c   :  { %2835 = vmatpush.msrb.mxu2 %v6740_v39  ;;  %2855 = vmatpush.msra.mxu3 %v6742_v29  ;;  %v9756_v39 = vld [vmem:[#allocation47_spill] sm:$0xff]  ;;  %v9757_v29 = vld [vmem:[#allocation48_spill] sm:$0xff] }
 0x42d   :  { %2796 = vmatpush.msra.mxu0 %v7276_v62  ;;  %2816 = vmatpush.msrb.mxu1 %v9731_v1  ;;  %v9781_v1 = vld [vmem:[#allocation72_spill] sm:$0xff] }
 0x42e   :  { %2836 = vmatpush.msrb.mxu2 %v9732_v47  ;;  %2856 = vmatpush.msra.mxu3 %v9733_v3  ;;  %v9782_v47 = vld [vmem:[#allocation73_spill] sm:$0xff]  ;;  %v9783_v3 = vld [vmem:[#allocation74_spill] sm:$0xff] }
 0x42f   :  { %2797 = vmatpush.msra.mxu0 %v7282_v0  ;;  %2817 = vmatpush.msrb.mxu1 %v9734_v6  ;;  %v9784_v6 = vld [vmem:[#allocation75_spill] sm:$0xff] }
 0x430   :  { %2837 = vmatpush.msrb.mxu2 %v9735_v53  ;;  %2857 = vmatpush.msra.mxu3 %v9736_v9  ;;  %v9785_v53 = vld [vmem:[#allocation76_spill] sm:$0xff]  ;;  %v9786_v9 = vld [vmem:[#allocation77_spill] sm:$0xff] }
 0x431   :  { %2798 = vmatpush.msra.mxu0 %v7288_v4  ;;  %2818 = vmatpush.msrb.mxu1 %v9737_v63  ;;  %v9787_v63 = vld [vmem:[#allocation78_spill] sm:$0xff] }
 0x432   :  { %2838 = vmatpush.msrb.mxu2 %v9738_v36  ;;  %2858 = vmatpush.msra.mxu3 %v9739_v7  ;;  %v9788_v36 = vld [vmem:[#allocation79_spill] sm:$0xff]  ;;  %v9789_v7 = vld [vmem:[#allocation80_spill] sm:$0xff] }
 0x433   :  { %2799 = vmatpush.msra.mxu0 %v7294_v13  ;;  %2819 = vmatpush.msrb.mxu1 %v9740_v8  ;;  %v9790_v8 = vld [vmem:[#allocation81_spill] sm:$0xff] }
 0x434   :  { %2839 = vmatpush.msrb.mxu2 %v9741_v11  ;;  %2859 = vmatpush.msra.mxu3 %v9742_v56  ;;  %v9791_v11 = vld [vmem:[#allocation82_spill] sm:$0xff]  ;;  %v9792_v56 = vld [vmem:[#allocation83_spill] sm:$0xff] }
 0x435   :  { %2800 = vmatpush.msra.mxu0 %v7300_v15  ;;  %2820 = vmatpush.msrb.mxu1 %v9743_v40  ;;  %v9793_v40 = vld [vmem:[#allocation84_spill] sm:$0xff] }
 0x436   :  { %2840 = vmatpush.msrb.mxu2 %v9744_v24  ;;  %2860 = vmatpush.msra.mxu3 %v9745_v14  ;;  %v9794_v24 = vld [vmem:[#allocation85_spill] sm:$0xff]  ;;  %v9795_v14 = vld [vmem:[#allocation86_spill] sm:$0xff] }
 0x437   :  { %2801 = vmatmul.f32.vlgmr.msra.gmra.mxu0 %v7211_v54  ;;  %2821 = vmatmul.f32.vlgmr.msrb.gmra.mxu1 %v7211_v54 }
 0x438   :  { %2841 = vmatmul.f32.vlgmr.msrb.gmra.mxu2 %v7211_v54  ;;  %2861 = vmatmul.f32.vlgmr.msra.gmra.mxu3 %v7211_v54  ;;  %v9776_v54 = vld [vmem:[#allocation67_spill] sm:$0xff] }
 0x439   :  { %3015 = vmatpush.msrb.mxu0 %v9746_v16  ;;  %3035 = vmatpush.msra.mxu1 %v9747_v5  ;;  %v9796_v16 = vld [vmem:[#allocation87_spill] sm:$0xff]  ;;  %v9797_v5 = vld [vmem:[#allocation88_spill] sm:$0xff] }
 0x43a   :  { %3055 = vmatpush.msra.mxu2 %v9748_v27  ;;  %3075 = vmatpush.msrb.mxu3 %v9749_v22  ;;  %v9798_v27 = vld [vmem:[#allocation89_spill] sm:$0xff]  ;;  %v9799_v22 = vld [vmem:[#allocation90_spill] sm:$0xff] }
 0x43b   :  { %3016 = vmatpush.msrb.mxu0 %v9750_v42  ;;  %3036 = vmatpush.msra.mxu1 %v9751_v51  ;;  %v9800_v42 = vld [vmem:[#allocation91_spill] sm:$0xff]  ;;  %v9801_v51 = vld [vmem:[#allocation92_spill] sm:$0xff] }
 0x43c   :  { %3056 = vmatpush.msra.mxu2 %v9752_v19  ;;  %3076 = vmatpush.msrb.mxu3 %v9753_v23  ;;  %v9802_v19 = vld [vmem:[#allocation93_spill] sm:$0xff]  ;;  %v9803_v23 = vld [vmem:[#allocation94_spill] sm:$0xff] }
 0x43d   :  { %3017 = vmatpush.msrb.mxu0 %v9754_v18  ;;  %3037 = vmatpush.msra.mxu1 %v9755_v48  ;;  %v9804_v18 = vld [vmem:[#allocation95_spill] sm:$0xff]  ;;  %v9805_v48 = vld [vmem:[#allocation96_spill] sm:$0xff] }
 0x43e   :  { %3057 = vmatpush.msra.mxu2 %v9756_v39  ;;  %3077 = vmatpush.msrb.mxu3 %v9757_v29  ;;  %v9806_v39 = vld [vmem:[#allocation97_spill] sm:$0xff]  ;;  %v9807_v29 = vld [vmem:[#allocation98_spill] sm:$0xff] }
 0x43f   :  { %3018 = vmatpush.msrb.mxu0 %v9758_v60  ;;  %3038 = vmatpush.msra.mxu1 %v9759_v41  ;;  %v9808_v60 = vld [vmem:[#allocation99_spill] sm:$0xff]  ;;  %v9809_v41 = vld [vmem:[#allocation100_spill] sm:$0xff] }
 0x440   :  { %3058 = vmatpush.msra.mxu2 %v9760_v20  ;;  %3078 = vmatpush.msrb.mxu3 %v9761_v17  ;;  %v9810_v20 = vld [vmem:[#allocation101_spill] sm:$0xff]  ;;  %v9811_v17 = vld [vmem:[#allocation102_spill] sm:$0xff] }
 0x441   :  { %3019 = vmatpush.msrb.mxu0 %v9762_v26  ;;  %3039 = vmatpush.msra.mxu1 %v9763_v32  ;;  %v9812_v26 = vld [vmem:[#allocation103_spill] sm:$0xff]  ;;  %v9813_v32 = vld [vmem:[#allocation104_spill] sm:$0xff] }
 0x442   :  { %3059 = vmatpush.msra.mxu2 %v9764_v49  ;;  %3079 = vmatpush.msrb.mxu3 %v9765_v31  ;;  %v9814_v49 = vld [vmem:[#allocation105_spill] sm:$0xff]  ;;  %v9815_v31 = vld [vmem:[#allocation106_spill] sm:$0xff] }
 0x443   :  { %3020 = vmatpush.msrb.mxu0 %v9766_v35  ;;  %3040 = vmatpush.msra.mxu1 %v9767_v43  ;;  %v9816_v35 = vld [vmem:[#allocation107_spill] sm:$0xff]  ;;  %v9817_v43 = vld [vmem:[#allocation108_spill] sm:$0xff] }
 0x444   :  { %3060 = vmatpush.msra.mxu2 %v9768_v2  ;;  %3080 = vmatpush.msrb.mxu3 %v9769_v38  ;;  %v9818_v2 = vld [vmem:[#allocation109_spill] sm:$0xff]  ;;  %v9819_v38 = vld [vmem:[#allocation110_spill] sm:$0xff] }
 0x445   :  { %3021 = vmatpush.msrb.mxu0 %v9770_v44  ;;  %3041 = vmatpush.msra.mxu1 %v9771_v33  ;;  %v9820_v44 = vld [vmem:[#allocation111_spill] sm:$0xff]  ;;  %v9821_v33 = vld [vmem:[#allocation112_spill] sm:$0xff] }
 0x446   :  { %3061 = vmatpush.msra.mxu2 %v9772_v30  ;;  %3081 = vmatpush.msrb.mxu3 %v9773_v59  ;;  %v9822_v30 = vld [vmem:[#allocation113_spill] sm:$0xff]  ;;  %v9823_v59 = vld [vmem:[#allocation114_spill] sm:$0xff] }
 0x447   :  { %3022 = vmatpush.msrb.mxu0 %v9774_v46  ;;  %3042 = vmatpush.msra.mxu1 %v9775_v34  ;;  %v9824_v46 = vld [vmem:[#allocation115_spill] sm:$0xff]  ;;  %v9825_v34 = vld [vmem:[#allocation116_spill] sm:$0xff] }
 0x448   :  { %3062 = vmatpush.msra.mxu2 %v9776_v54  ;;  %3082 = vmatpush.msrb.mxu3 %v9777_v12  ;;  %v9826_v54 = vld [vmem:[#allocation117_spill] sm:$0xff]  ;;  %v9827_v12 = vld [vmem:[#allocation118_spill] sm:$0xff] }
 0x449   :  { %3023 = vmatpush.msrb.mxu0 %v9778_v61  ;;  %3043 = vmatpush.msra.mxu1 %v9779_v10  ;;  %v9828_v61 = vld [vmem:[#allocation119_spill] sm:$0xff]  ;;  %v9829_v10 = vld [vmem:[#allocation120_spill] sm:$0xff] }
 0x44a   :  { %3063 = vmatpush.msra.mxu2 %v9780_v21  ;;  %3083 = vmatpush.msrb.mxu3 %v9781_v1  ;;  %v9830_v21 = vld [vmem:[#allocation121_spill] sm:$0xff]  ;;  %v9831_v1 = vld [vmem:[#allocation122_spill] sm:$0xff] }
 0x44b   :  { %3024 = vmatpush.msrb.mxu0 %v9782_v47  ;;  %3044 = vmatpush.msra.mxu1 %v9783_v3  ;;  %v9832_v47 = vld [vmem:[#allocation123_spill] sm:$0xff]  ;;  %v9833_v3 = vld [vmem:[#allocation124_spill] sm:$0xff] }
 0x44c   :  { %3064 = vmatpush.msra.mxu2 %v9784_v6  ;;  %3084 = vmatpush.msrb.mxu3 %v9785_v53  ;;  %v9834_v6 = vld [vmem:[#allocation125_spill] sm:$0xff]  ;;  %v9835_v53 = vld [vmem:[#allocation126_spill] sm:$0xff] }
 0x44d   :  { %3025 = vmatpush.msrb.mxu0 %v9786_v9  ;;  %3045 = vmatpush.msra.mxu1 %v9787_v63  ;;  %v9836_v9 = vld [vmem:[#allocation127_spill] sm:$0xff]  ;;  %v9837_v63 = vld [vmem:[#allocation128_spill] sm:$0xff] }
 0x44e   :  { %3065 = vmatpush.msra.mxu2 %v9788_v36  ;;  %3085 = vmatpush.msrb.mxu3 %v9789_v7  ;;  %v9838_v36 = vld [vmem:[#allocation129_spill] sm:$0xff]  ;;  %v9839_v7 = vld [vmem:[#allocation130_spill] sm:$0xff] }
 0x44f   :  { %3026 = vmatpush.msrb.mxu0 %v9790_v8  ;;  %3046 = vmatpush.msra.mxu1 %v9791_v11  ;;  %v9840_v8 = vld [vmem:[#allocation131_spill] sm:$0xff]  ;;  %v9841_v11 = vld [vmem:[#allocation132_spill] sm:$0xff] }
 0x450   :  { %3066 = vmatpush.msra.mxu2 %v9792_v56  ;;  %3086 = vmatpush.msrb.mxu3 %v9793_v40  ;;  %v9842_v56 = vld [vmem:[#allocation133_spill] sm:$0xff]  ;;  %v9843_v40 = vld [vmem:[#allocation134_spill] sm:$0xff] }
 0x451   :  { %3027 = vmatpush.msrb.mxu0 %v9794_v24  ;;  %3047 = vmatpush.msra.mxu1 %v9795_v14  ;;  %v9844_v24 = vld [vmem:[#allocation135_spill] sm:$0xff]  ;;  %v9845_v14 = vld [vmem:[#allocation136_spill] sm:$0xff] }
 0x452   :  { %3067 = vmatpush.msra.mxu2 %v9796_v16  ;;  %3087 = vmatpush.msrb.mxu3 %v9797_v5  ;;  %v9846_v16 = vld [vmem:[#allocation137_spill] sm:$0xff]  ;;  %v9847_v5 = vld [vmem:[#allocation138_spill] sm:$0xff] }
 0x453   :  { %3028 = vmatpush.msrb.mxu0 %v9798_v27  ;;  %3048 = vmatpush.msra.mxu1 %v9799_v22  ;;  %v9848_v27 = vld [vmem:[#allocation139_spill] sm:$0xff]  ;;  %v9849_v22 = vld [vmem:[#allocation140_spill] sm:$0xff] }
 0x454   :  { %3068 = vmatpush.msra.mxu2 %v9800_v42  ;;  %3088 = vmatpush.msrb.mxu3 %v9801_v51  ;;  %v9850_v42 = vld [vmem:[#allocation141_spill] sm:$0xff]  ;;  %v9851_v51 = vld [vmem:[#allocation142_spill] sm:$0xff] }
 0x455   :  { %3029 = vmatpush.msrb.mxu0 %v9802_v19  ;;  %3049 = vmatpush.msra.mxu1 %v9803_v23  ;;  %v9852_v19 = vld [vmem:[#allocation143_spill] sm:$0xff]  ;;  %v9853_v23 = vld [vmem:[#allocation145_spill] sm:$0xff] }
 0x456   :  { %3069 = vmatpush.msra.mxu2 %v9804_v18  ;;  %3089 = vmatpush.msrb.mxu3 %v9805_v48  ;;  %v9854_v18 = vld [vmem:[#allocation146_spill] sm:$0xff]  ;;  %v9855_v48 = vld [vmem:[#allocation147_spill] sm:$0xff] }
 0x457   :  { %3030 = vmatpush.msrb.mxu0 %v9806_v39  ;;  %3050 = vmatpush.msra.mxu1 %v9807_v29  ;;  %v9856_v39 = vld [vmem:[#allocation148_spill] sm:$0xff]  ;;  %v9857_v29 = vld [vmem:[#allocation149_spill] sm:$0xff] }
 0x458   :  { %3070 = vmatpush.msra.mxu2 %v9808_v60  ;;  %3090 = vmatpush.msrb.mxu3 %v9809_v41  ;;  %v9858_v60 = vld [vmem:[#allocation150_spill] sm:$0xff]  ;;  %v9859_v41 = vld [vmem:[#allocation151_spill] sm:$0xff] }
 0x459   :  { %3095 = vmatpush.msra.mxu0 %v9810_v20  ;;  %3115 = vmatpush.msrb.mxu1 %v9811_v17  ;;  %v9860_v20 = vld [vmem:[#allocation152_spill] sm:$0xff]  ;;  %v9861_v17 = vld [vmem:[#allocation153_spill] sm:$0xff] }
 0x45a   :  { %3135 = vmatpush.msrb.mxu2 %v9812_v26  ;;  %3155 = vmatpush.msra.mxu3 %v9813_v32  ;;  %v9862_v26 = vld [vmem:[#allocation154_spill] sm:$0xff]  ;;  %v9863_v32 = vld [vmem:[#allocation155_spill] sm:$0xff] }
 0x45b   :  { %3096 = vmatpush.msra.mxu0 %v9814_v49  ;;  %3116 = vmatpush.msrb.mxu1 %v9815_v31  ;;  %v9864_v49 = vld [vmem:[#allocation156_spill] sm:$0xff] }
 0x45c   :  { %3136 = vmatpush.msrb.mxu2 %v9816_v35  ;;  %3156 = vmatpush.msra.mxu3 %v9817_v43  ;;  %v9865_v31 = vld [vmem:[#allocation160_spill] sm:$0xff]  ;;  %v9866_v35 = vld [vmem:[#allocation161_spill] sm:$0xff]  ;;  %v9867_v43 = vld [vmem:[#allocation162_spill] sm:$0xff] }
 0x45d   :  { %3097 = vmatpush.msra.mxu0 %v9818_v2  ;;  %3117 = vmatpush.msrb.mxu1 %v9819_v38  ;;  %v9868_v2 = vld [vmem:[#allocation163_spill] sm:$0xff]  ;;  %v9869_v38 = vld [vmem:[#allocation164_spill] sm:$0xff] }
 0x45e   :  { %3137 = vmatpush.msrb.mxu2 %v9820_v44  ;;  %3157 = vmatpush.msra.mxu3 %v9821_v33  ;;  %v9870_v44 = vld [vmem:[#allocation165_spill] sm:$0xff]  ;;  %v9871_v33 = vld [vmem:[#allocation166_spill] sm:$0xff] }
 0x45f   :  { %3098 = vmatpush.msra.mxu0 %v9822_v30  ;;  %3118 = vmatpush.msrb.mxu1 %v9823_v59  ;;  %v9872_v30 = vld [vmem:[#allocation167_spill] sm:$0xff]  ;;  %v9873_v59 = vld [vmem:[#allocation169_spill] sm:$0xff] }
 0x460   :  { %3138 = vmatpush.msrb.mxu2 %v9824_v46  ;;  %3158 = vmatpush.msra.mxu3 %v9825_v34 }
 0x461   :  { %3099 = vmatpush.msra.mxu0 %v9826_v54  ;;  %3119 = vmatpush.msrb.mxu1 %v9827_v12 }
 0x462   :  { %3139 = vmatpush.msrb.mxu2 %v9828_v61  ;;  %3159 = vmatpush.msra.mxu3 %v9829_v10  ;;  %v2687_v61 = vld [vmem:[#allocation11 + $0x4] sm:$0xf] }
 0x463   :  { %3100 = vmatpush.msra.mxu0 %v9830_v21  ;;  %3120 = vmatpush.msrb.mxu1 %v9831_v1 }
 0x464   :  { %3140 = vmatpush.msrb.mxu2 %v9832_v47  ;;  %3160 = vmatpush.msra.mxu3 %v9833_v3  ;;  %v2689_v47 = vperm.slane %v2687_v61, 0 }
 0x465   :  { %3101 = vmatpush.msra.mxu0 %v9834_v6  ;;  %3121 = vmatpush.msrb.mxu1 %v9835_v53  ;;  %v2690_v6 = vperm.slane %v2687_v61, 1 }
 0x466   :  { %3141 = vmatpush.msrb.mxu2 %v9836_v9  ;;  %3161 = vmatpush.msra.mxu3 %v9837_v63 }
 0x467   :  { %3102 = vmatpush.msra.mxu0 %v9838_v36  ;;  %3122 = vmatpush.msrb.mxu1 %v9839_v7 }
 0x468   :  { %3142 = vmatpush.msrb.mxu2 %v9840_v8  ;;  %3162 = vmatpush.msra.mxu3 %v9841_v11 }
 0x469   :  { %3103 = vmatpush.msra.mxu0 %v9842_v56  ;;  %3123 = vmatpush.msrb.mxu1 %v9843_v40  ;;  %v9874_v40 = vld [vmem:[#allocation144_spill] sm:$0xff] }
 0x46a   :  { %3143 = vmatpush.msrb.mxu2 %v9844_v24  ;;  %3163 = vmatpush.msra.mxu3 %v9845_v14  ;;  %v9875_v14 = vld [vmem:[#allocation157_spill] sm:$0xff] }
 0x46b   :  { %3104 = vmatpush.msra.mxu0 %v9846_v16  ;;  %3124 = vmatpush.msrb.mxu1 %v9847_v5 }
 0x46c   :  { %3144 = vmatpush.msrb.mxu2 %v9848_v27  ;;  %3164 = vmatpush.msra.mxu3 %v9849_v22 }
 0x46d   :  { %3105 = vmatpush.msra.mxu0 %v9850_v42  ;;  %3125 = vmatpush.msrb.mxu1 %v9851_v51  ;;  %v2691_v42 = vperm.slane %v2687_v61, 2 }
 0x46e   :  { %3145 = vmatpush.msrb.mxu2 %v9852_v19  ;;  %3165 = vmatpush.msra.mxu3 %v9853_v23 }
 0x46f   :  { %3106 = vmatpush.msra.mxu0 %v9854_v18  ;;  %3126 = vmatpush.msrb.mxu1 %v9855_v48  ;;  %v9876_v18 = vld [vmem:[#allocation159_spill] sm:$0xff] }
 0x470   :  { %3146 = vmatpush.msrb.mxu2 %v9856_v39  ;;  %3166 = vmatpush.msra.mxu3 %v9857_v29  ;;  %v9877_v39 = vld [vmem:[#allocation158_spill] sm:$0xff] }
 0x471   :  { %3107 = vmatpush.msra.mxu0 %v9858_v60  ;;  %3127 = vmatpush.msrb.mxu1 %v9859_v41 }
 0x472   :  { %3147 = vmatpush.msrb.mxu2 %v9860_v20  ;;  %3167 = vmatpush.msra.mxu3 %v9861_v17 }
 0x473   :  { %3108 = vmatpush.msra.mxu0 %v9862_v26  ;;  %3128 = vmatpush.msrb.mxu1 %v9863_v32  ;;  %v2692_v32 = vperm.slane %v2687_v61, 3 }
 0x474   :  { %3148 = vmatpush.msrb.mxu2 %v9864_v49  ;;  %3168 = vmatpush.msra.mxu3 %v9865_v31 }
 0x475   :  { %3109 = vmatpush.msra.mxu0 %v9866_v35  ;;  %3129 = vmatpush.msrb.mxu1 %v9867_v43 }
 0x476   :  { %3149 = vmatpush.msrb.mxu2 %v9868_v2  ;;  %3169 = vmatpush.msra.mxu3 %v9869_v38 }
 0x477   :  { %3110 = vmatpush.msra.mxu0 %v9870_v44  ;;  %3130 = vmatpush.msrb.mxu1 %v9871_v33 }
 0x478   :  { %3150 = vmatpush.msrb.mxu2 %v9872_v30  ;;  %3170 = vmatpush.msra.mxu3 %v9873_v59 }
 0x490   :  { %v2544_v46 = vpop.f32.mrf.mxu0  ;;  %v2564_v34 = vpop.f32.mrf.mxu1 }
 0x497   :  { %v2584_v54 = vpop.f32.mrf.mxu2  ;;  %v2604_v10 = vpop.f32.mrf.mxu3 }
 0x49a   :  { %v2624_v12 = vpop.f32.mrf.mxu0  ;;  %v2644_v21 = vpop.f32.mrf.mxu1 }
 0x49b   :  { %v2625_v1 = vadd.f32 %v2624_v12, %v2544_v46  ;;  %v2645_v3 = vadd.f32 %v2644_v21, %v2564_v34 }
 0x49d   :  { %v2697_v53 = vadd.f32 %v2689_v47, %v2625_v1  ;;  %v2698_v9 = vadd.f32 %v2690_v6, %v2645_v3 }
 0x49f   :  { %v2701_v63 = vmul.f32 0.5, %v2697_v53  ;;  %v2705_v8 = vmul.f32 0.5, %v2698_v9 }
 0x4a1   :  { %v2664_v36 = vpop.f32.mrf.mxu2  ;;  %v2684_v7 = vpop.f32.mrf.mxu3  ;;  %4576 = vtanh.f32 %v2701_v63 }
 0x4a2   :  { %4578 = vtanh.f32 %v2705_v8  ;;  %v2665_v22 = vadd.f32 %v2664_v36, %v2584_v54  ;;  %v2685_v26 = vadd.f32 %v2684_v7, %v2604_v10  ;;  %v7456_v36 = vld [vmem:[#allocation9 + $0x3e0] sm:$0xff]  ;;  %v7458_v7 = vld [vmem:[#allocation9 + $0x3e8] sm:$0xff]  ;;  %v7464_v8 = vld [vmem:[#allocation9 + $0x3f8] sm:$0xff] }
 0x4a4   :  { %v2699_v23 = vadd.f32 %v2691_v42, %v2665_v22  ;;  %v2700_v44 = vadd.f32 %v2692_v32, %v2685_v26  ;;  %v7482_v22 = vld [vmem:[#allocation9 + $0x3a8] sm:$0xff]  ;;  %v7486_v42 = vld [vmem:[#allocation9 + $0x3b0] sm:$0xff] }
 0x4a5   :  { %v7512_v26 = vld [vmem:[#allocation9 + $0x368] sm:$0xff]  ;;  %v7516_v32 = vld [vmem:[#allocation9 + $0x370] sm:$0xff] }
 0x4a6   :  { %v2710_v10 = vmul.f32 0.5, %v2700_v44  ;;  %v7538_v44 = vld [vmem:[#allocation9 + $0x338] sm:$0xff] }
 0x4a7   :  { %v4577_v60 = vpop.eup %4576 }
 0x4a8   :  { %v4579_v41 = vpop.eup %4578  ;;  %v2703_v35 = vmul.f32 0.5, %v4577_v60  ;;  %v7498_v60 = vld [vmem:[#allocation9 + $0x390] sm:$0xff] }
 0x4a9   :  { %v2707_v43 = vmul.f32 0.5, %v4579_v41  ;;  %v7500_v41 = vld [vmem:[#allocation9 + $0x398] sm:$0xff] }
 0x4aa   :  { %v2704_v59 = vadd.f32 0.5, %v2703_v35  ;;  %v7526_v35 = vld [vmem:[#allocation9 + $0x350] sm:$0xff] }
 0x4ab   :  { %v2708_v46 = vadd.f32 0.5, %v2707_v43  ;;  %v7528_v43 = vld [vmem:[#allocation9 + $0x358] sm:$0xff] }
 0x4ad   :  { %v2714_v1 = vmul.f32 %v2708_v46, %v7209_v50  ;;  %v7462_v50 = vld [vmem:[#allocation9 + $0x3f0] sm:$0xff] }
 0x4ae   :  { %v7556_v46 = vld [vmem:[#allocation9 + $0x2f0] sm:$0xff] }
 0x4b4   :  { %v2802_v11 = vpop.f32.mrf.mxu0  ;;  %v2822_v56 = vpop.f32.mrf.mxu1 }
 0x4b5   :  { %v2865_v24 = vadd.f32 %v2802_v11, %v9874_v40  ;;  %v2866_v16 = vadd.f32 %v2822_v56, %v9875_v14  ;;  %v7468_v11 = vld [vmem:[#allocation9 + $0x3c0] sm:$0xff]  ;;  %v7470_v56 = vld [vmem:[#allocation9 + $0x3c8] sm:$0xff] }
 0x4b7   :  { %v2869_v5 = vmul.f32 0.5, %v2865_v24  ;;  %v2873_v27 = vmul.f32 0.5, %v2866_v16  ;;  %v7474_v16 = vld [vmem:[#allocation9 + $0x3d0] sm:$0xff] }
 0x4b9   :  { %4580 = vtanh.f32 %v2869_v5  ;;  %v7476_v5 = vld [vmem:[#allocation9 + $0x3d8] sm:$0xff] }
 0x4ba   :  { %4582 = vtanh.f32 %v2873_v27  ;;  %v7480_v27 = vld [vmem:[#allocation9 + $0x3a0] sm:$0xff] }
 0x4bb   :  { %v2842_v51 = vpop.f32.mrf.mxu2  ;;  %v2862_v19 = vpop.f32.mrf.mxu3 }
 0x4bc   :  { %v2867_v48 = vadd.f32 %v2842_v51, %v9876_v18  ;;  %v2868_v29 = vadd.f32 %v2862_v19, %v9877_v39  ;;  %v7488_v51 = vld [vmem:[#allocation9 + $0x3b8] sm:$0xff] }
 0x4be   :  { %4584 = vtanh.f32 %v2867_v48  ;;  %v2878_v20 = vmul.f32 0.5, %v2868_v29  ;;  %v7494_v48 = vld [vmem:[#allocation9 + $0x388] sm:$0xff] }
 0x4bf   :  { %v4581_v17 = vpop.eup %4580  ;;  %4586 = vtanh.f32 %v2699_v23  ;;  %v7492_v23 = vld [vmem:[#allocation9 + $0x380] sm:$0xff] }
 0x4c0   :  { %v4583_v49 = vpop.eup %4582  ;;  %v2871_v31 = vmul.f32 0.5, %v4581_v17  ;;  %4588 = vtanh.f32 %v2878_v20  ;;  %v7510_v17 = vld [vmem:[#allocation9 + $0x360] sm:$0xff] }
 0x4c1   :  { %v2875_v2 = vmul.f32 0.5, %v4583_v49  ;;  %v7518_v49 = vld [vmem:[#allocation9 + $0x378] sm:$0xff] }
 0x4c2   :  { %v2872_v38 = vadd.f32 0.5, %v2871_v31  ;;  %v7522_v31 = vld [vmem:[#allocation9 + $0x348] sm:$0xff] }
 0x4c3   :  { %v2876_v33 = vadd.f32 0.5, %v2875_v2  ;;  %v7532_v2 = vld [vmem:[#allocation9 + $0x328] sm:$0xff] }
 0x4c4   :  { %v4585_v30 = vpop.eup %4584 }
 0x4c5   :  { %v2882_v34 = vmul.f32 %v2876_v33, %v7205_v25  ;;  %v2883_v54 = vmul.f32 %v4585_v30, %v2872_v38  ;;  %v4587_v12 = vpop.eup %4586  ;;  %v7536_v38 = vld [vmem:[#allocation9 + $0x330] sm:$0xff]  ;;  %v7542_v33 = vld [vmem:[#allocation9 + $0x308] sm:$0xff] }
 0x4c6   :  { %v4589_v21 = vpop.eup %4588  ;;  %v2715_v47 = vmul.f32 %v4587_v12, %v2704_v59  ;;  %v7546_v30 = vld [vmem:[#allocation9 + $0x310] sm:$0xff]  ;;  %v7548_v59 = vld [vmem:[#allocation9 + $0x318] sm:$0xff] }
 0x4c7   :  { %v7447_v61 = vadd.f32 %v2883_v54, %v2882_v34  ;;  %v2880_v3 = vmul.f32 0.5, %v4589_v21  ;;  %v7558_v34 = vld [vmem:[#allocation9 + $0x2f8] sm:$0xff]  ;;  %v7566_v54 = vld [vmem:[#allocation9 + $0x2d0] sm:$0xff] }
 0x4c8   :  { %v7451_v6 = vadd.f32 %v2715_v47, %v2714_v1  ;;  %v7568_v12 = vld [vmem:[#allocation9 + $0x2d8] sm:$0xff]  ;;  %v7576_v21 = vld [vmem:[#allocation9 + $0x2b0] sm:$0xff] }
 0x4c9   :  { %4590 = vtanh.f32 %v7447_v61  ;;  %v2881_v53 = vadd.f32 0.5, %v2880_v3  ;;  %v7586_v1 = vld [vmem:[#allocation9 + $0x290] sm:$0xff]  ;;  %v7588_v47 = vld [vmem:[#allocation9 + $0x298] sm:$0xff] }
 0x4ca   :  { %4592 = vtanh.f32 %v2710_v10  ;;  %v7578_v10 = vld [vmem:[#allocation9 + $0x2b8] sm:$0xff]  ;;  %9880 = vst [vmem:[#allocation21_spill] sm:$0xff] %v7586_v1  ;;  %v7596_v3 = vld [vmem:[#allocation9 + $0x270] sm:$0xff] }
 0x4cb   :  { %4594 = vtanh.f32 %v7451_v6  ;;  %9881 = vst [vmem:[#allocation26_spill] sm:$0xff] %v7588_v47 }
 0x4cc   :  { %9883 = vst [vmem:[#allocation22_spill] sm:$0xff] %v7596_v3 }
 0x4cf   :  { %v4591_v9 = vpop.eup %4590 }
 0x4d0   :  { %v7453_v63 = vmul.f32 %v4591_v9, %v2881_v53  ;;  %v4593_v25 = vpop.eup %4592  ;;  %v7598_v53 = vld [vmem:[#allocation9 + $0x278] sm:$0xff]  ;;  %v7606_v9 = vld [vmem:[#allocation9 + $0x250] sm:$0xff] }
 0x4d1   :  { %v2712_v24 = vmul.f32 0.5, %v4593_v25  ;;  %v4595_v19 = vpop.eup %4594  ;;  %9884 = vst [vmem:[#allocation28_spill] sm:$0xff] %v7598_v53  ;;  %v7608_v25 = vld [vmem:[#allocation9 + $0x258] sm:$0xff] }
 0x4d2   :  { %3031 = vmatmul.f32.vlgmr.msrb.gmra.mxu0 %v7453_v63  ;;  %3051 = vmatmul.f32.vlgmr.msra.gmra.mxu1 %v7453_v63  ;;  %9886 = vst [vmem:[#allocation30_spill] sm:$0xff] %v7606_v9 }
 0x4d3   :  { %3071 = vmatmul.f32.vlgmr.msra.gmra.mxu2 %v7453_v63  ;;  %3091 = vmatmul.f32.vlgmr.msrb.gmra.mxu3 %v7453_v63  ;;  %v2713_v29 = vadd.f32 0.5, %v2712_v24  ;;  %9887 = vst [vmem:[#allocation31_spill] sm:$0xff] %v7608_v25  ;;  %v7616_v24 = vld [vmem:[#allocation9 + $0x230] sm:$0xff] }
 0x4d4   :  { %3273 = vmatpush.msrb.mxu0 %v7456_v36  ;;  %3293 = vmatpush.msra.mxu1 %v7458_v7  ;;  %9889 = vst [vmem:[#allocation33_spill] sm:$0xff] %v7616_v24 }
 0x4d5   :  { %3313 = vmatpush.msra.mxu2 %v7462_v50  ;;  %3333 = vmatpush.msrb.mxu3 %v7464_v8  ;;  %v7504_v20 = vmul.f32 %v4595_v19, %v2713_v29  ;;  %v7618_v19 = vld [vmem:[#allocation9 + $0x238] sm:$0xff]  ;;  %v7626_v29 = vld [vmem:[#allocation9 + $0x210] sm:$0xff] }
 0x4d6   :  { %3274 = vmatpush.msrb.mxu0 %v7468_v11  ;;  %3294 = vmatpush.msra.mxu1 %v7470_v56  ;;  %9890 = vst [vmem:[#allocation34_spill] sm:$0xff] %v7618_v19 }
 0x4d7   :  { %3314 = vmatpush.msra.mxu2 %v7474_v16  ;;  %3334 = vmatpush.msrb.mxu3 %v7476_v5  ;;  %9878 = vst [vmem:[#allocation24_spill] sm:$0xff] %v7504_v20 }
 0x4d8   :  { %3275 = vmatpush.msrb.mxu0 %v7480_v27  ;;  %3295 = vmatpush.msra.mxu1 %v7482_v22  ;;  %9892 = vst [vmem:[#allocation36_spill] sm:$0xff] %v7626_v29 }
 0x4d9   :  { %3315 = vmatpush.msra.mxu2 %v7486_v42  ;;  %3335 = vmatpush.msrb.mxu3 %v7488_v51 }
 0x4da   :  { %3276 = vmatpush.msrb.mxu0 %v7492_v23  ;;  %3296 = vmatpush.msra.mxu1 %v7494_v48 }
 0x4db   :  { %3316 = vmatpush.msra.mxu2 %v7498_v60  ;;  %3336 = vmatpush.msrb.mxu3 %v7500_v41 }
 0x4dc   :  { %3111 = vmatmul.f32.vlgmr.msra.gmra.mxu0 %v7504_v20  ;;  %3131 = vmatmul.f32.vlgmr.msrb.gmra.mxu1 %v7504_v20 }
 0x4dd   :  { %3151 = vmatmul.f32.vlgmr.msrb.gmra.mxu2 %v7504_v20  ;;  %3171 = vmatmul.f32.vlgmr.msra.gmra.mxu3 %v7504_v20  ;;  %v7628_v20 = vld [vmem:[#allocation9 + $0x218] sm:$0xff] }
 0x4de   :  { %3277 = vmatpush.msrb.mxu0 %v7510_v17  ;;  %3297 = vmatpush.msra.mxu1 %v7512_v26  ;;  %9893 = vst [vmem:[#allocation37_spill] sm:$0xff] %v7628_v20 }
 0x4df   :  { %3317 = vmatpush.msra.mxu2 %v7516_v32  ;;  %3337 = vmatpush.msrb.mxu3 %v7518_v49 }
 0x4e0   :  { %3278 = vmatpush.msrb.mxu0 %v7240_v45  ;;  %3298 = vmatpush.msra.mxu1 %v7522_v31  ;;  %v7552_v45 = vld [vmem:[#allocation9 + $0x2e8] sm:$0xff] }
 0x4e1   :  { %3318 = vmatpush.msra.mxu2 %v7526_v35  ;;  %3338 = vmatpush.msrb.mxu3 %v7528_v43 }
 0x4e2   :  { %3279 = vmatpush.msrb.mxu0 %v7246_v52  ;;  %3299 = vmatpush.msra.mxu1 %v7532_v2  ;;  %v7562_v52 = vld [vmem:[#allocation9 + $0x2c8] sm:$0xff] }
 0x4e3   :  { %3319 = vmatpush.msra.mxu2 %v7536_v38  ;;  %3339 = vmatpush.msrb.mxu3 %v7538_v44 }
 0x4e4   :  { %3280 = vmatpush.msrb.mxu0 %v7252_v28  ;;  %3300 = vmatpush.msra.mxu1 %v7542_v33  ;;  %v7572_v28 = vld [vmem:[#allocation9 + $0x2a8] sm:$0xff] }
 0x4e5   :  { %3320 = vmatpush.msra.mxu2 %v7546_v30  ;;  %3340 = vmatpush.msrb.mxu3 %v7548_v59 }
 0x4e6   :  { %3281 = vmatpush.msrb.mxu0 %v7258_v55  ;;  %3301 = vmatpush.msra.mxu1 %v7552_v45  ;;  %v7582_v55 = vld [vmem:[#allocation9 + $0x288] sm:$0xff] }
 0x4e7   :  { %3321 = vmatpush.msra.mxu2 %v7556_v46  ;;  %3341 = vmatpush.msrb.mxu3 %v7558_v34  ;;  %9879 = vst [vmem:[#allocation25_spill] sm:$0xff] %v7582_v55 }
 0x4e8   :  { %3282 = vmatpush.msrb.mxu0 %v7264_v57  ;;  %3302 = vmatpush.msra.mxu1 %v7562_v52  ;;  %v7592_v57 = vld [vmem:[#allocation9 + $0x268] sm:$0xff] }
 0x4e9   :  { %3322 = vmatpush.msra.mxu2 %v7566_v54  ;;  %3342 = vmatpush.msrb.mxu3 %v7568_v12  ;;  %9882 = vst [vmem:[#allocation27_spill] sm:$0xff] %v7592_v57 }
 0x4ea   :  { %3283 = vmatpush.msrb.mxu0 %v7270_v58  ;;  %3303 = vmatpush.msra.mxu1 %v7572_v28  ;;  %v7602_v58 = vld [vmem:[#allocation9 + $0x248] sm:$0xff] }
 0x4eb   :  { %3323 = vmatpush.msra.mxu2 %v7576_v21  ;;  %3343 = vmatpush.msrb.mxu3 %v7578_v10  ;;  %9885 = vst [vmem:[#allocation29_spill] sm:$0xff] %v7602_v58 }
 0x4ec   :  { %3284 = vmatpush.msrb.mxu0 %v7276_v62  ;;  %3304 = vmatpush.msra.mxu1 %v7582_v55  ;;  %v7612_v62 = vld [vmem:[#allocation9 + $0x228] sm:$0xff] }
 0x4ed   :  { %3324 = vmatpush.msra.mxu2 %v7586_v1  ;;  %3344 = vmatpush.msrb.mxu3 %v7588_v47  ;;  %9888 = vst [vmem:[#allocation32_spill] sm:$0xff] %v7612_v62  ;;  %v7996_v1 = vld [vmem:[#allocation9 + $0x648] sm:$0xff] }
 0x4ee   :  { %3285 = vmatpush.msrb.mxu0 %v7282_v0  ;;  %3305 = vmatpush.msra.mxu1 %v7592_v57  ;;  %v7622_v0 = vld [vmem:[#allocation9 + $0x208] sm:$0xff]  ;;  %10011 = vst [vmem:[#allocation156_spill] sm:$0xff] %v7996_v1 }
 0x4ef   :  { %3325 = vmatpush.msra.mxu2 %v7596_v3  ;;  %3345 = vmatpush.msrb.mxu3 %v7598_v53  ;;  %9891 = vst [vmem:[#allocation35_spill] sm:$0xff] %v7622_v0  ;;  %v7984_v3 = vld [vmem:[#allocation9 + $0x670] sm:$0xff] }
 0x4f0   :  { %3286 = vmatpush.msrb.mxu0 %v7288_v4  ;;  %3306 = vmatpush.msra.mxu1 %v7602_v58  ;;  %v7636_v4 = vld [vmem:[#allocation9 + $0x5e0] sm:$0xff]  ;;  %v7970_v58 = vld [vmem:[#allocation9 + $0x690] sm:$0xff]  ;;  %10008 = vst [vmem:[#allocation153_spill] sm:$0xff] %v7984_v3 }
 0x4f1   :  { %3326 = vmatpush.msra.mxu2 %v7606_v9  ;;  %3346 = vmatpush.msrb.mxu3 %v7608_v25  ;;  %9894 = vst [vmem:[#allocation38_spill] sm:$0xff] %v7636_v4  ;;  %v7922_v25 = vld [vmem:[#allocation9 + $0x718] sm:$0xff] }
 0x4f2   :  { %3287 = vmatpush.msrb.mxu0 %v7294_v13  ;;  %3307 = vmatpush.msra.mxu1 %v7612_v62  ;;  %v7638_v13 = vld [vmem:[#allocation9 + $0x5e8] sm:$0xff]  ;;  %9989 = vst [vmem:[#allocation133_spill] sm:$0xff] %v7922_v25 }
 0x4f3   :  { %3327 = vmatpush.msra.mxu2 %v7616_v24  ;;  %3347 = vmatpush.msrb.mxu3 %v7618_v19  ;;  %9895 = vst [vmem:[#allocation39_spill] sm:$0xff] %v7638_v13  ;;  %v7644_v24 = vld [vmem:[#allocation9 + $0x5f8] sm:$0xff] }
 0x4f4   :  { %3288 = vmatpush.msrb.mxu0 %v7300_v15  ;;  %3308 = vmatpush.msra.mxu1 %v7622_v0  ;;  %9897 = vst [vmem:[#allocation41_spill] sm:$0xff] %v7644_v24  ;;  %v7652_v15 = vld [vmem:[#allocation9 + $0x5c0] sm:$0xff]  ;;  %v7660_v0 = vld [vmem:[#allocation9 + $0x5d8] sm:$0xff] }
 0x4f5   :  { %3328 = vmatpush.msra.mxu2 %v7626_v29  ;;  %3348 = vmatpush.msrb.mxu3 %v7628_v20  ;;  %9898 = vst [vmem:[#allocation42_spill] sm:$0xff] %v7652_v15  ;;  %v7654_v20 = vld [vmem:[#allocation9 + $0x5c8] sm:$0xff]  ;;  %v7656_v29 = vld [vmem:[#allocation9 + $0x5d0] sm:$0xff]  ;;  %v7680_v19 = vld [vmem:[#allocation9 + $0x598] sm:$0xff] }
 0x4f6   :  { %3289 = vmatmul.f32.vlgmr.msrb.gmra.mxu0 %v7453_v63  ;;  %3309 = vmatmul.f32.vlgmr.msra.gmra.mxu1 %v7453_v63  ;;  %9899 = vst [vmem:[#allocation43_spill] sm:$0xff] %v7654_v20 }
 0x4f7   :  { %3329 = vmatmul.f32.vlgmr.msra.gmra.mxu2 %v7453_v63  ;;  %3349 = vmatmul.f32.vlgmr.msrb.gmra.mxu3 %v7453_v63  ;;  %9900 = vst [vmem:[#allocation44_spill] sm:$0xff] %v7656_v29  ;;  %v7662_v63 = vld [vmem:[#allocation9 + $0x5a0] sm:$0xff] }
 0x4f8   :  { %3503 = vmatpush.msra.mxu0 %v7636_v4  ;;  %3523 = vmatpush.msrb.mxu1 %v7638_v13  ;;  %9901 = vst [vmem:[#allocation45_spill] sm:$0xff] %v7660_v0  ;;  %v7664_v4 = vld [vmem:[#allocation9 + $0x5a8] sm:$0xff]  ;;  %v7672_v13 = vld [vmem:[#allocation9 + $0x580] sm:$0xff] }
 0x4f9   :  { %3543 = vmatpush.msrb.mxu2 %v7642_v37  ;;  %3563 = vmatpush.msra.mxu3 %v7644_v24  ;;  %9902 = vst [vmem:[#allocation46_spill] sm:$0xff] %v7662_v63  ;;  %v7668_v24 = vld [vmem:[#allocation9 + $0x5b0] sm:$0xff]  ;;  %v7670_v37 = vld [vmem:[#allocation9 + $0x5b8] sm:$0xff] }
 0x4fa   :  { %3504 = vmatpush.msra.mxu0 %v7652_v15  ;;  %3524 = vmatpush.msrb.mxu1 %v7654_v20  ;;  %9903 = vst [vmem:[#allocation47_spill] sm:$0xff] %v7664_v4  ;;  %v7676_v20 = vld [vmem:[#allocation9 + $0x588] sm:$0xff]  ;;  %v7678_v15 = vld [vmem:[#allocation9 + $0x590] sm:$0xff] }
 0x4fb   :  { %3544 = vmatpush.msrb.mxu2 %v7656_v29  ;;  %3564 = vmatpush.msra.mxu3 %v7660_v0  ;;  %9904 = vst [vmem:[#allocation48_spill] sm:$0xff] %v7668_v24  ;;  %v7692_v0 = vld [vmem:[#allocation9 + $0x570] sm:$0xff]  ;;  %v7862_v29 = vld [vmem:[#allocation9 + $0x7b8] sm:$0xff] }
 0x4fc   :  { %9905 = vst [vmem:[#allocation49_spill] sm:$0xff] %v7670_v37  ;;  %3505 = vmatpush.msra.mxu0 %v7662_v63  ;;  %3525 = vmatpush.msrb.mxu1 %v7664_v4  ;;  %v7688_v63 = vld [vmem:[#allocation9 + $0x560] sm:$0xff]  ;;  %v7690_v4 = vld [vmem:[#allocation9 + $0x568] sm:$0xff] }
 0x4fd   :  { %9906 = vst [vmem:[#allocation50_spill] sm:$0xff] %v7672_v13  ;;  %3545 = vmatpush.msrb.mxu2 %v7668_v24  ;;  %3565 = vmatpush.msra.mxu3 %v7670_v37  ;;  %v7696_v24 = vld [vmem:[#allocation9 + $0x578] sm:$0xff]  ;;  %v7846_v37 = vld [vmem:[#allocation9 + $0x7d0] sm:$0xff] }
 0x4fe   :  { %9907 = vst [vmem:[#allocation51_spill] sm:$0xff] %v7676_v20  ;;  %3506 = vmatpush.msra.mxu0 %v7672_v13  ;;  %3526 = vmatpush.msrb.mxu1 %v7676_v20  ;;  %v7700_v20 = vld [vmem:[#allocation9 + $0x540] sm:$0xff]  ;;  %v7708_v13 = vld [vmem:[#allocation9 + $0x558] sm:$0xff] }
 0x4ff   :  { %9908 = vst [vmem:[#allocation52_spill] sm:$0xff] %v7678_v15  ;;  %3546 = vmatpush.msrb.mxu2 %v7678_v15  ;;  %3566 = vmatpush.msra.mxu3 %v7680_v19  ;;  %v7702_v15 = vld [vmem:[#allocation9 + $0x548] sm:$0xff] }
 0x500   :  { %9909 = vst [vmem:[#allocation53_spill] sm:$0xff] %v7680_v19  ;;  %3507 = vmatpush.msra.mxu0 %v7688_v63  ;;  %3527 = vmatpush.msrb.mxu1 %v7690_v4  ;;  %v7704_v19 = vld [vmem:[#allocation9 + $0x550] sm:$0xff] }
 0x501   :  { %9910 = vst [vmem:[#allocation54_spill] sm:$0xff] %v7688_v63  ;;  %3547 = vmatpush.msrb.mxu2 %v7692_v0  ;;  %3567 = vmatpush.msra.mxu3 %v7696_v24  ;;  %v7720_v63 = vld [vmem:[#allocation9 + $0x538] sm:$0xff] }
 0x502   :  { %9911 = vst [vmem:[#allocation55_spill] sm:$0xff] %v7690_v4  ;;  %3508 = vmatpush.msra.mxu0 %v7700_v20  ;;  %3528 = vmatpush.msrb.mxu1 %v7702_v15  ;;  %v7712_v4 = vld [vmem:[#allocation9 + $0x520] sm:$0xff] }
 0x503   :  { %9912 = vst [vmem:[#allocation56_spill] sm:$0xff] %v7692_v0  ;;  %3548 = vmatpush.msrb.mxu2 %v7704_v19  ;;  %3568 = vmatpush.msra.mxu3 %v7708_v13  ;;  %v7714_v0 = vld [vmem:[#allocation9 + $0x528] sm:$0xff] }
 0x504   :  { %9913 = vst [vmem:[#allocation57_spill] sm:$0xff] %v7696_v24  ;;  %v7716_v24 = vld [vmem:[#allocation9 + $0x530] sm:$0xff]  ;;  %3509 = vmatpush.msra.mxu0 %v7712_v4  ;;  %3529 = vmatpush.msrb.mxu1 %v7714_v0 }
 0x505   :  { %9914 = vst [vmem:[#allocation58_spill] sm:$0xff] %v7700_v20  ;;  %3549 = vmatpush.msrb.mxu2 %v7716_v24  ;;  %3569 = vmatpush.msra.mxu3 %v7720_v63  ;;  %v7732_v20 = vld [vmem:[#allocation9 + $0x518] sm:$0xff] }
 0x506   :  { %9915 = vst [vmem:[#allocation59_spill] sm:$0xff] %v7702_v15  ;;  %v7724_v15 = vld [vmem:[#allocation9 + $0x500] sm:$0xff] }
 0x507   :  { %9916 = vst [vmem:[#allocation60_spill] sm:$0xff] %v7704_v19  ;;  %v7726_v19 = vld [vmem:[#allocation9 + $0x508] sm:$0xff]  ;;  %3510 = vmatpush.msra.mxu0 %v7724_v15  ;;  %3570 = vmatpush.msra.mxu3 %v7732_v20 }
 0x508   :  { %9917 = vst [vmem:[#allocation61_spill] sm:$0xff] %v7708_v13  ;;  %v7728_v13 = vld [vmem:[#allocation9 + $0x510] sm:$0xff]  ;;  %3530 = vmatpush.msrb.mxu1 %v7726_v19 }
 0x509   :  { %9918 = vst [vmem:[#allocation62_spill] sm:$0xff] %v7712_v4  ;;  %3550 = vmatpush.msrb.mxu2 %v7728_v13  ;;  %v7744_v4 = vld [vmem:[#allocation9 + $0x4f8] sm:$0xff] }
 0x50a   :  { %9919 = vst [vmem:[#allocation63_spill] sm:$0xff] %v7714_v0  ;;  %v7736_v0 = vld [vmem:[#allocation9 + $0x4e0] sm:$0xff]  ;;  %3571 = vmatpush.msra.mxu3 %v7744_v4 }
 0x50b   :  { %9920 = vst [vmem:[#allocation64_spill] sm:$0xff] %v7716_v24  ;;  %v7738_v24 = vld [vmem:[#allocation9 + $0x4e8] sm:$0xff]  ;;  %3511 = vmatpush.msra.mxu0 %v7736_v0 }
 0x50c   :  { %9921 = vst [vmem:[#allocation65_spill] sm:$0xff] %v7720_v63  ;;  %v7740_v63 = vld [vmem:[#allocation9 + $0x4f0] sm:$0xff]  ;;  %3531 = vmatpush.msrb.mxu1 %v7738_v24 }
 0x50d   :  { %9922 = vst [vmem:[#allocation66_spill] sm:$0xff] %v7724_v15  ;;  %3551 = vmatpush.msrb.mxu2 %v7740_v63  ;;  %v7756_v15 = vld [vmem:[#allocation9 + $0x4d8] sm:$0xff] }
 0x50e   :  { %9923 = vst [vmem:[#allocation67_spill] sm:$0xff] %v7726_v19  ;;  %v7748_v19 = vld [vmem:[#allocation9 + $0x4c0] sm:$0xff]  ;;  %3572 = vmatpush.msra.mxu3 %v7756_v15 }
 0x50f   :  { %9924 = vst [vmem:[#allocation68_spill] sm:$0xff] %v7728_v13  ;;  %v7750_v13 = vld [vmem:[#allocation9 + $0x4c8] sm:$0xff]  ;;  %3512 = vmatpush.msra.mxu0 %v7748_v19 }
 0x510   :  { %9925 = vst [vmem:[#allocation69_spill] sm:$0xff] %v7732_v20  ;;  %v7752_v20 = vld [vmem:[#allocation9 + $0x4d0] sm:$0xff]  ;;  %3532 = vmatpush.msrb.mxu1 %v7750_v13 }
 0x511   :  { %9926 = vst [vmem:[#allocation70_spill] sm:$0xff] %v7736_v0  ;;  %3552 = vmatpush.msrb.mxu2 %v7752_v20  ;;  %v7768_v0 = vld [vmem:[#allocation9 + $0x4b8] sm:$0xff] }
 0x512   :  { %9927 = vst [vmem:[#allocation71_spill] sm:$0xff] %v7738_v24  ;;  %v7760_v24 = vld [vmem:[#allocation9 + $0x4a0] sm:$0xff]  ;;  %3573 = vmatpush.msra.mxu3 %v7768_v0 }
 0x513   :  { %9928 = vst [vmem:[#allocation72_spill] sm:$0xff] %v7740_v63  ;;  %v7762_v63 = vld [vmem:[#allocation9 + $0x4a8] sm:$0xff]  ;;  %3513 = vmatpush.msra.mxu0 %v7760_v24 }
 0x514   :  { %9929 = vst [vmem:[#allocation73_spill] sm:$0xff] %v7744_v4  ;;  %v7764_v4 = vld [vmem:[#allocation9 + $0x4b0] sm:$0xff]  ;;  %3533 = vmatpush.msrb.mxu1 %v7762_v63 }
 0x515   :  { %9930 = vst [vmem:[#allocation74_spill] sm:$0xff] %v7748_v19  ;;  %3553 = vmatpush.msrb.mxu2 %v7764_v4  ;;  %v7780_v19 = vld [vmem:[#allocation9 + $0x498] sm:$0xff] }
 0x516   :  { %9931 = vst [vmem:[#allocation75_spill] sm:$0xff] %v7750_v13  ;;  %v7772_v13 = vld [vmem:[#allocation9 + $0x480] sm:$0xff]  ;;  %3574 = vmatpush.msra.mxu3 %v7780_v19 }
 0x517   :  { %9932 = vst [vmem:[#allocation76_spill] sm:$0xff] %v7752_v20  ;;  %v7774_v20 = vld [vmem:[#allocation9 + $0x488] sm:$0xff]  ;;  %3514 = vmatpush.msra.mxu0 %v7772_v13 }
 0x518   :  { %9933 = vst [vmem:[#allocation77_spill] sm:$0xff] %v7756_v15  ;;  %v7776_v15 = vld [vmem:[#allocation9 + $0x490] sm:$0xff]  ;;  %3534 = vmatpush.msrb.mxu1 %v7774_v20 }
 0x519   :  { %9934 = vst [vmem:[#allocation78_spill] sm:$0xff] %v7760_v24  ;;  %3554 = vmatpush.msrb.mxu2 %v7776_v15  ;;  %v7792_v24 = vld [vmem:[#allocation9 + $0x478] sm:$0xff] }
 0x51a   :  { %9935 = vst [vmem:[#allocation79_spill] sm:$0xff] %v7762_v63  ;;  %v7784_v63 = vld [vmem:[#allocation9 + $0x460] sm:$0xff]  ;;  %3575 = vmatpush.msra.mxu3 %v7792_v24 }
 0x51b   :  { %9936 = vst [vmem:[#allocation80_spill] sm:$0xff] %v7764_v4  ;;  %v7786_v4 = vld [vmem:[#allocation9 + $0x468] sm:$0xff]  ;;  %3515 = vmatpush.msra.mxu0 %v7784_v63 }
 0x51c   :  { %9937 = vst [vmem:[#allocation81_spill] sm:$0xff] %v7768_v0  ;;  %v7788_v0 = vld [vmem:[#allocation9 + $0x470] sm:$0xff]  ;;  %3535 = vmatpush.msrb.mxu1 %v7786_v4 }
 0x51d   :  { %9938 = vst [vmem:[#allocation82_spill] sm:$0xff] %v7772_v13  ;;  %3555 = vmatpush.msrb.mxu2 %v7788_v0  ;;  %v7804_v13 = vld [vmem:[#allocation9 + $0x458] sm:$0xff] }
 0x51e   :  { %9939 = vst [vmem:[#allocation83_spill] sm:$0xff] %v7774_v20  ;;  %v7796_v20 = vld [vmem:[#allocation9 + $0x440] sm:$0xff]  ;;  %3576 = vmatpush.msra.mxu3 %v7804_v13 }
 0x51f   :  { %9940 = vst [vmem:[#allocation84_spill] sm:$0xff] %v7776_v15  ;;  %v7798_v15 = vld [vmem:[#allocation9 + $0x448] sm:$0xff]  ;;  %3516 = vmatpush.msra.mxu0 %v7796_v20 }
 0x520   :  { %9941 = vst [vmem:[#allocation85_spill] sm:$0xff] %v7780_v19  ;;  %v7800_v19 = vld [vmem:[#allocation9 + $0x450] sm:$0xff]  ;;  %3536 = vmatpush.msrb.mxu1 %v7798_v15 }
 0x521   :  { %9942 = vst [vmem:[#allocation86_spill] sm:$0xff] %v7784_v63  ;;  %3556 = vmatpush.msrb.mxu2 %v7800_v19  ;;  %v7816_v63 = vld [vmem:[#allocation9 + $0x438] sm:$0xff] }
 0x522   :  { %9943 = vst [vmem:[#allocation87_spill] sm:$0xff] %v7786_v4  ;;  %v7808_v4 = vld [vmem:[#allocation9 + $0x420] sm:$0xff]  ;;  %3577 = vmatpush.msra.mxu3 %v7816_v63 }
 0x523   :  { %9944 = vst [vmem:[#allocation88_spill] sm:$0xff] %v7788_v0  ;;  %v7810_v0 = vld [vmem:[#allocation9 + $0x428] sm:$0xff]  ;;  %3517 = vmatpush.msra.mxu0 %v7808_v4 }
 0x524   :  { %9945 = vst [vmem:[#allocation89_spill] sm:$0xff] %v7792_v24  ;;  %v7812_v24 = vld [vmem:[#allocation9 + $0x430] sm:$0xff]  ;;  %3537 = vmatpush.msrb.mxu1 %v7810_v0 }
 0x525   :  { %9946 = vst [vmem:[#allocation90_spill] sm:$0xff] %v7796_v20  ;;  %3557 = vmatpush.msrb.mxu2 %v7812_v24  ;;  %v7828_v20 = vld [vmem:[#allocation9 + $0x418] sm:$0xff] }
 0x526   :  { %9947 = vst [vmem:[#allocation91_spill] sm:$0xff] %v7798_v15  ;;  %v7820_v15 = vld [vmem:[#allocation9 + $0x400] sm:$0xff]  ;;  %3578 = vmatpush.msra.mxu3 %v7828_v20 }
 0x527   :  { %9948 = vst [vmem:[#allocation92_spill] sm:$0xff] %v7800_v19  ;;  %v7822_v19 = vld [vmem:[#allocation9 + $0x408] sm:$0xff]  ;;  %3518 = vmatpush.msra.mxu0 %v7820_v15 }
 0x528   :  { %9949 = vst [vmem:[#allocation93_spill] sm:$0xff] %v7804_v13  ;;  %v7824_v13 = vld [vmem:[#allocation9 + $0x410] sm:$0xff]  ;;  %3538 = vmatpush.msrb.mxu1 %v7822_v19 }
 0x529   :  { %9950 = vst [vmem:[#allocation94_spill] sm:$0xff] %v7808_v4  ;;  %v7830_v4 = vld [vmem:[#allocation9 + $0x7e0] sm:$0xff]  ;;  %3558 = vmatpush.msrb.mxu2 %v7824_v13 }
 0x52a   :  { %9951 = vst [vmem:[#allocation95_spill] sm:$0xff] %v7810_v0  ;;  %v7832_v0 = vld [vmem:[#allocation9 + $0x7e8] sm:$0xff]  ;;  %3583 = vmatpush.msrb.mxu0 %v7830_v4 }
 0x52b   :  { %9952 = vst [vmem:[#allocation96_spill] sm:$0xff] %v7812_v24  ;;  %v7838_v24 = vld [vmem:[#allocation9 + $0x7f8] sm:$0xff]  ;;  %3603 = vmatpush.msra.mxu1 %v7832_v0 }
 0x52c   :  { %9953 = vst [vmem:[#allocation97_spill] sm:$0xff] %v7816_v63  ;;  %v7836_v63 = vld [vmem:[#allocation9 + $0x7f0] sm:$0xff]  ;;  %3643 = vmatpush.msrb.mxu3 %v7838_v24 }
 0x52d   :  { %9954 = vst [vmem:[#allocation98_spill] sm:$0xff] %v7820_v15  ;;  %v7842_v15 = vld [vmem:[#allocation9 + $0x7c0] sm:$0xff]  ;;  %3623 = vmatpush.msra.mxu2 %v7836_v63 }
 0x52e   :  { %9955 = vst [vmem:[#allocation99_spill] sm:$0xff] %v7822_v19  ;;  %v7844_v19 = vld [vmem:[#allocation9 + $0x7c8] sm:$0xff]  ;;  %3584 = vmatpush.msrb.mxu0 %v7842_v15 }
 0x52f   :  { %9956 = vst [vmem:[#allocation100_spill] sm:$0xff] %v7824_v13  ;;  %v7850_v13 = vld [vmem:[#allocation9 + $0x7d8] sm:$0xff]  ;;  %3604 = vmatpush.msra.mxu1 %v7844_v19  ;;  %3624 = vmatpush.msra.mxu2 %v7846_v37 }
 0x530   :  { %9957 = vst [vmem:[#allocation101_spill] sm:$0xff] %v7828_v20  ;;  %v7854_v20 = vld [vmem:[#allocation9 + $0x7a0] sm:$0xff]  ;;  %3644 = vmatpush.msrb.mxu3 %v7850_v13 }
 0x531   :  { %9958 = vst [vmem:[#allocation102_spill] sm:$0xff] %v7830_v4  ;;  %v7856_v4 = vld [vmem:[#allocation9 + $0x7a8] sm:$0xff]  ;;  %3585 = vmatpush.msrb.mxu0 %v7854_v20 }
 0x532   :  { %9959 = vst [vmem:[#allocation103_spill] sm:$0xff] %v7832_v0  ;;  %v7858_v0 = vld [vmem:[#allocation9 + $0x7b0] sm:$0xff]  ;;  %3605 = vmatpush.msra.mxu1 %v7856_v4  ;;  %3645 = vmatpush.msrb.mxu3 %v7862_v29 }
 0x533   :  { %9960 = vst [vmem:[#allocation104_spill] sm:$0xff] %v7836_v63  ;;  %v7868_v63 = vld [vmem:[#allocation9 + $0x788] sm:$0xff]  ;;  %3625 = vmatpush.msra.mxu2 %v7858_v0 }
 0x534   :  { %9961 = vst [vmem:[#allocation105_spill] sm:$0xff] %v7838_v24  ;;  %v7866_v24 = vld [vmem:[#allocation9 + $0x780] sm:$0xff]  ;;  %3606 = vmatpush.msra.mxu1 %v7868_v63 }
 0x535   :  { %9962 = vst [vmem:[#allocation106_spill] sm:$0xff] %v7842_v15  ;;  %v7874_v15 = vld [vmem:[#allocation9 + $0x798] sm:$0xff]  ;;  %3586 = vmatpush.msrb.mxu0 %v7866_v24 }
 0x536   :  { %9963 = vst [vmem:[#allocation107_spill] sm:$0xff] %v7844_v19  ;;  %v7870_v19 = vld [vmem:[#allocation9 + $0x790] sm:$0xff]  ;;  %3646 = vmatpush.msrb.mxu3 %v7874_v15 }
 0x537   :  { %9964 = vst [vmem:[#allocation108_spill] sm:$0xff] %v7846_v37  ;;  %v7880_v37 = vld [vmem:[#allocation9 + $0x768] sm:$0xff]  ;;  %3626 = vmatpush.msra.mxu2 %v7870_v19 }
 0x538   :  { %9965 = vst [vmem:[#allocation109_spill] sm:$0xff] %v7850_v13  ;;  %v7878_v13 = vld [vmem:[#allocation9 + $0x760] sm:$0xff]  ;;  %3607 = vmatpush.msra.mxu1 %v7880_v37 }
 0x539   :  { %9966 = vst [vmem:[#allocation110_spill] sm:$0xff] %v7854_v20  ;;  %v7886_v20 = vld [vmem:[#allocation9 + $0x778] sm:$0xff]  ;;  %3587 = vmatpush.msrb.mxu0 %v7878_v13 }
 0x53a   :  { %9967 = vst [vmem:[#allocation111_spill] sm:$0xff] %v7856_v4  ;;  %v7882_v4 = vld [vmem:[#allocation9 + $0x770] sm:$0xff]  ;;  %3647 = vmatpush.msrb.mxu3 %v7886_v20 }
 0x53b   :  { %9968 = vst [vmem:[#allocation112_spill] sm:$0xff] %v7858_v0  ;;  %v7892_v0 = vld [vmem:[#allocation9 + $0x748] sm:$0xff]  ;;  %3627 = vmatpush.msra.mxu2 %v7882_v4 }
 0x53c   :  { %9969 = vst [vmem:[#allocation113_spill] sm:$0xff] %v7862_v29  ;;  %v7890_v29 = vld [vmem:[#allocation9 + $0x740] sm:$0xff]  ;;  %3608 = vmatpush.msra.mxu1 %v7892_v0 }
 0x53d   :  { %9970 = vst [vmem:[#allocation114_spill] sm:$0xff] %v7866_v24  ;;  %v7898_v24 = vld [vmem:[#allocation9 + $0x758] sm:$0xff]  ;;  %3588 = vmatpush.msrb.mxu0 %v7890_v29 }
 0x53e   :  { %9971 = vst [vmem:[#allocation115_spill] sm:$0xff] %v7868_v63  ;;  %v7894_v63 = vld [vmem:[#allocation9 + $0x750] sm:$0xff]  ;;  %3648 = vmatpush.msrb.mxu3 %v7898_v24 }
 0x53f   :  { %9972 = vst [vmem:[#allocation116_spill] sm:$0xff] %v7870_v19  ;;  %3628 = vmatpush.msra.mxu2 %v7894_v63 }
 0x540   :  { %9973 = vst [vmem:[#allocation117_spill] sm:$0xff] %v7874_v15  ;;  %v7902_v15 = vld [vmem:[#allocation9 + $0x720] sm:$0xff] }
 0x541   :  { %9974 = vst [vmem:[#allocation118_spill] sm:$0xff] %v7878_v13  ;;  %v7906_v13 = vld [vmem:[#allocation9 + $0x730] sm:$0xff]  ;;  %3589 = vmatpush.msrb.mxu0 %v7902_v15 }
 0x542   :  { %9975 = vst [vmem:[#allocation119_spill] sm:$0xff] %v7880_v37  ;;  %v7904_v37 = vld [vmem:[#allocation9 + $0x728] sm:$0xff]  ;;  %3629 = vmatpush.msra.mxu2 %v7906_v13 }
 0x543   :  { %9976 = vst [vmem:[#allocation120_spill] sm:$0xff] %v7882_v4  ;;  %v7910_v4 = vld [vmem:[#allocation9 + $0x738] sm:$0xff]  ;;  %3609 = vmatpush.msra.mxu1 %v7904_v37 }
 0x544   :  { %9977 = vst [vmem:[#allocation121_spill] sm:$0xff] %v7886_v20  ;;  %v7914_v20 = vld [vmem:[#allocation9 + $0x700] sm:$0xff]  ;;  %3649 = vmatpush.msrb.mxu3 %v7910_v4 }
 0x545   :  { %9978 = vst [vmem:[#allocation122_spill] sm:$0xff] %v7890_v29  ;;  %v7918_v29 = vld [vmem:[#allocation9 + $0x710] sm:$0xff]  ;;  %3590 = vmatpush.msrb.mxu0 %v7914_v20 }
 0x546   :  { %9979 = vst [vmem:[#allocation123_spill] sm:$0xff] %v7892_v0  ;;  %v7916_v0 = vld [vmem:[#allocation9 + $0x708] sm:$0xff]  ;;  %3630 = vmatpush.msra.mxu2 %v7918_v29  ;;  %3650 = vmatpush.msrb.mxu3 %v7922_v25  ;;  %v7950_v25 = vld [vmem:[#allocation9 + $0x6a0] sm:$0xff] }
 0x547   :  { %9980 = vst [vmem:[#allocation124_spill] sm:$0xff] %v7894_v63  ;;  %3610 = vmatpush.msra.mxu1 %v7916_v0  ;;  %v7928_v63 = vld [vmem:[#allocation9 + $0x6e8] sm:$0xff] }
 0x548   :  { %9981 = vst [vmem:[#allocation125_spill] sm:$0xff] %v7898_v24  ;;  %v7926_v24 = vld [vmem:[#allocation9 + $0x6e0] sm:$0xff] }
 0x549   :  { %9982 = vst [vmem:[#allocation126_spill] sm:$0xff] %v7902_v15  ;;  %v7934_v15 = vld [vmem:[#allocation9 + $0x6f8] sm:$0xff]  ;;  %3591 = vmatpush.msrb.mxu0 %v7926_v24  ;;  %3611 = vmatpush.msra.mxu1 %v7928_v63 }
 0x54a   :  { %9983 = vst [vmem:[#allocation127_spill] sm:$0xff] %v7904_v37  ;;  %v7930_v37 = vld [vmem:[#allocation9 + $0x6f0] sm:$0xff]  ;;  %3651 = vmatpush.msrb.mxu3 %v7934_v15 }
 0x54b   :  { %9984 = vst [vmem:[#allocation128_spill] sm:$0xff] %v7906_v13  ;;  %v7940_v13 = vld [vmem:[#allocation9 + $0x6c8] sm:$0xff]  ;;  %3631 = vmatpush.msra.mxu2 %v7930_v37 }
 0x54c   :  { %9985 = vst [vmem:[#allocation129_spill] sm:$0xff] %v7910_v4  ;;  %v7938_v4 = vld [vmem:[#allocation9 + $0x6c0] sm:$0xff]  ;;  %3612 = vmatpush.msra.mxu1 %v7940_v13 }
 0x54d   :  { %9986 = vst [vmem:[#allocation130_spill] sm:$0xff] %v7914_v20  ;;  %v7946_v20 = vld [vmem:[#allocation9 + $0x6d8] sm:$0xff]  ;;  %3592 = vmatpush.msrb.mxu0 %v7938_v4 }
 0x54e   :  { %9987 = vst [vmem:[#allocation131_spill] sm:$0xff] %v7916_v0  ;;  %v7942_v0 = vld [vmem:[#allocation9 + $0x6d0] sm:$0xff]  ;;  %3652 = vmatpush.msrb.mxu3 %v7946_v20 }
 0x54f   :  { %v3032_v19 = vpop.f32.mrf.mxu0  ;;  %v3052_v62 = vpop.f32.mrf.mxu1  ;;  %9988 = vst [vmem:[#allocation132_spill] sm:$0xff] %v7918_v29  ;;  %v7952_v29 = vld [vmem:[#allocation9 + $0x6a8] sm:$0xff]  ;;  %3632 = vmatpush.msra.mxu2 %v7942_v0  ;;  %3593 = vmatpush.msrb.mxu0 %v7950_v25 }
 0x550   :  { %9990 = vst [vmem:[#allocation134_spill] sm:$0xff] %v7926_v24  ;;  %v7956_v24 = vld [vmem:[#allocation11 + $0x4] sm:$0xf]  ;;  %3613 = vmatpush.msra.mxu1 %v7952_v29 }
 0x551   :  { %9991 = vst [vmem:[#allocation135_spill] sm:$0xff] %v7928_v63  ;;  %v7954_v63 = vld [vmem:[#allocation9 + $0x6b0] sm:$0xff]  ;;  %v3177_v47 = vperm.slane %v7956_v24, 0 }
 0x552   :  { %9992 = vst [vmem:[#allocation136_spill] sm:$0xff] %v7930_v37  ;;  %v7960_v37 = vld [vmem:[#allocation9 + $0x6b8] sm:$0xff]  ;;  %3633 = vmatpush.msra.mxu2 %v7954_v63 }
 0x553   :  { %9993 = vst [vmem:[#allocation137_spill] sm:$0xff] %v7934_v15  ;;  %3653 = vmatpush.msrb.mxu3 %v7960_v37 }
 0x554   :  { %9994 = vst [vmem:[#allocation138_spill] sm:$0xff] %v7938_v4  ;;  %v7968_v4 = vld [vmem:[#allocation9 + $0x688] sm:$0xff]  ;;  %3634 = vmatpush.msra.mxu2 %v7970_v58 }
 0x555   :  { %9995 = vst [vmem:[#allocation139_spill] sm:$0xff] %v7940_v13  ;;  %v7966_v13 = vld [vmem:[#allocation9 + $0x680] sm:$0xff]  ;;  %3614 = vmatpush.msra.mxu1 %v7968_v4 }
 0x556   :  { %9996 = vst [vmem:[#allocation140_spill] sm:$0xff] %v7942_v0  ;;  %v7962_v15 = vpop.f32.mrf.mxu2  ;;  %v7972_v53 = vpop.f32.mrf.mxu3  ;;  %3594 = vmatpush.msrb.mxu0 %v7966_v13  ;;  %3635 = vmatpush.msra.mxu2 %v7984_v3  ;;  %v8014_v3 = vld [vmem:[#allocation9 + $0x638] sm:$0xff] }
 0x557   :  { %9997 = vst [vmem:[#allocation141_spill] sm:$0xff] %v7946_v20  ;;  %v7976_v20 = vld [vmem:[#allocation9 + $0x698] sm:$0xff] }
 0x558   :  { %9998 = vst [vmem:[#allocation142_spill] sm:$0xff] %v7950_v25  ;;  %v7982_v25 = vld [vmem:[#allocation9 + $0x668] sm:$0xff]  ;;  %3654 = vmatpush.msrb.mxu3 %v7976_v20 }
 0x559   :  { %9999 = vst [vmem:[#allocation143_spill] sm:$0xff] %v7952_v29  ;;  %v3112_v9 = vpop.f32.mrf.mxu0  ;;  %v3132_v0 = vpop.f32.mrf.mxu1  ;;  %v7980_v29 = vld [vmem:[#allocation9 + $0x660] sm:$0xff]  ;;  %3615 = vmatpush.msra.mxu1 %v7982_v25 }
 0x55a   :  { %10000 = vst [vmem:[#allocation145_spill] sm:$0xff] %v7954_v63  ;;  %v3113_v57 = vadd.f32 %v3112_v9, %v3032_v19  ;;  %v3133_v63 = vadd.f32 %v3132_v0, %v3052_v62  ;;  %3595 = vmatpush.msrb.mxu0 %v7980_v29  ;;  %v7998_v9 = vld [vmem:[#allocation9 + $0x650] sm:$0xff]  ;;  %v8002_v19 = vld [vmem:[#allocation9 + $0x658] sm:$0xff]  ;;  %v8006_v62 = vld [vmem:[#allocation9 + $0x620] sm:$0xff] }
 0x55b   :  { %10001 = vst [vmem:[#allocation146_spill] sm:$0xff] %v7960_v37  ;;  %v7989_v37 = vld [vmem:[#allocation9 + $0x678] sm:$0xff]  ;;  %3616 = vmatpush.msra.mxu1 %v7996_v1  ;;  %v8008_v0 = vld [vmem:[#allocation9 + $0x628] sm:$0xff]  ;;  %3636 = vmatpush.msra.mxu2 %v7998_v9 }
 0x55c   :  { %10002 = vst [vmem:[#allocation147_spill] sm:$0xff] %v7966_v13  ;;  %v3178_v13 = vperm.slane %v7956_v24, 1  ;;  %3655 = vmatpush.msrb.mxu3 %v7989_v37  ;;  %v8020_v1 = vld [vmem:[#allocation9 + $0x608] sm:$0xff] }
 0x55d   :  { %10003 = vst [vmem:[#allocation148_spill] sm:$0xff] %v7968_v4  ;;  %v7994_v4 = vld [vmem:[#allocation9 + $0x640] sm:$0xff]  ;;  %3617 = vmatpush.msra.mxu1 %v8008_v0 }
 0x55e   :  { %10004 = vst [vmem:[#allocation149_spill] sm:$0xff] %v7970_v58  ;;  %3596 = vmatpush.msrb.mxu0 %v7994_v4  ;;  %3656 = vmatpush.msrb.mxu3 %v8002_v19  ;;  %v8022_v58 = vld [vmem:[#allocation9 + $0x610] sm:$0xff] }
 0x55f   :  { %10005 = vst [vmem:[#allocation150_spill] sm:$0xff] %v7976_v20  ;;  %v3185_v20 = vadd.f32 %v3177_v47, %v3113_v57  ;;  %v8026_v47 = vld [vmem:[#allocation9 + $0x618] sm:$0xff]  ;;  %3618 = vmatpush.msra.mxu1 %v8020_v1 }
 0x560   :  { %10006 = vst [vmem:[#allocation151_spill] sm:$0xff] %v7980_v29  ;;  %3597 = vmatpush.msrb.mxu0 %v8006_v62  ;;  %3657 = vmatpush.msrb.mxu3 %v8014_v3 }
 0x561   :  { %10007 = vst [vmem:[#allocation152_spill] sm:$0xff] %v7982_v25  ;;  %v8010_v25 = vld [vmem:[#allocation9 + $0x630] sm:$0xff]  ;;  %v3189_v57 = vmul.f32 0.5, %v3185_v20  ;;  %v3179_v20 = vperm.slane %v7956_v24, 2 }
 0x562   :  { %10009 = vst [vmem:[#allocation154_spill] sm:$0xff] %v7989_v37  ;;  %v3186_v37 = vadd.f32 %v3178_v13, %v3133_v63  ;;  %3637 = vmatpush.msra.mxu2 %v8010_v25  ;;  %v3152_v13 = vpop.f32.mrf.mxu2  ;;  %v3172_v63 = vpop.f32.mrf.mxu3  ;;  %3658 = vmatpush.msrb.mxu3 %v8026_v47 }
 0x563   :  { %10010 = vst [vmem:[#allocation155_spill] sm:$0xff] %v7994_v4  ;;  %v8018_v4 = vld [vmem:[#allocation9 + $0x600] sm:$0xff]  ;;  %4596 = vtanh.f32 %v3189_v57 }
 0x564   :  { %10012 = vst [vmem:[#allocation160_spill] sm:$0xff] %v7998_v9  ;;  %3598 = vmatpush.msrb.mxu0 %v8018_v4  ;;  %3638 = vmatpush.msra.mxu2 %v8022_v58 }
 0x565   :  { %10013 = vst [vmem:[#allocation161_spill] sm:$0xff] %v8002_v19 }
 0x566   :  { %10014 = vst [vmem:[#allocation162_spill] sm:$0xff] %v8006_v62 }
 0x567   :  { %10015 = vst [vmem:[#allocation163_spill] sm:$0xff] %v8008_v0  ;;  %v3193_v0 = vmul.f32 0.5, %v3186_v37 }
 0x568   :  { %10016 = vst [vmem:[#allocation164_spill] sm:$0xff] %v8010_v25 }
 0x569   :  { %10017 = vst [vmem:[#allocation165_spill] sm:$0xff] %v8014_v3  ;;  %4598 = vtanh.f32 %v3193_v0 }
 0x56a   :  { %10018 = vst [vmem:[#allocation166_spill] sm:$0xff] %v8018_v4 }
 0x56b   :  { %10019 = vst [vmem:[#allocation167_spill] sm:$0xff] %v8020_v1  ;;  %v3153_v1 = vadd.f32 %v3152_v13, %v7962_v15  ;;  %v3180_v15 = vperm.slane %v7956_v24, 3 }
 0x56c   :  { %10020 = vst [vmem:[#allocation169_spill] sm:$0xff] %v8022_v58 }
 0x56d   :  { %10021 = vst [vmem:[#allocation171_spill] sm:$0xff] %v8026_v47  ;;  %v3187_v47 = vadd.f32 %v3179_v20, %v3153_v1 }
 0x573   :  { %v3290_v19 = vpop.f32.mrf.mxu0  ;;  %v3310_v9 = vpop.f32.mrf.mxu1 }
 0x574   :  { %v3353_v25 = vadd.f32 %v3290_v19, %v9874_v40  ;;  %v3354_v3 = vadd.f32 %v3310_v9, %v9875_v14  ;;  %v4597_v19 = vpop.eup %4596 }
 0x575   :  { %v4599_v40 = vpop.eup %4598 }
 0x576   :  { %v3357_v62 = vmul.f32 0.5, %v3353_v25  ;;  %v3361_v29 = vmul.f32 0.5, %v3354_v3  ;;  %v3173_v3 = vadd.f32 %v3172_v63, %v7972_v53  ;;  %v3195_v57 = vmul.f32 0.5, %v4599_v40 }
 0x578   :  { %4600 = vtanh.f32 %v3357_v62 }
 0x579   :  { %4602 = vtanh.f32 %v3361_v29  ;;  %v3191_v29 = vmul.f32 0.5, %v4597_v19 }
 0x57a   :  { %v3330_v58 = vpop.f32.mrf.mxu2  ;;  %v3350_v4 = vpop.f32.mrf.mxu3 }
 0x57b   :  { %v3355_v37 = vadd.f32 %v3330_v58, %v9876_v18  ;;  %v3356_v55 = vadd.f32 %v3350_v4, %v9877_v39  ;;  %v3188_v58 = vadd.f32 %v3180_v15, %v3173_v3  ;;  %v3192_v39 = vadd.f32 0.5, %v3191_v29  ;;  %v10051_v29 = vld [vmem:[#allocation52_spill] sm:$0xff] }
 0x57c   :  { %v3196_v18 = vadd.f32 0.5, %v3195_v57  ;;  %v10052_v57 = vld [vmem:[#allocation53_spill] sm:$0xff] }
 0x57d   :  { %4604 = vtanh.f32 %v3355_v37  ;;  %v3366_v9 = vmul.f32 0.5, %v3356_v55  ;;  %v3198_v63 = vmul.f32 0.5, %v3188_v58  ;;  %v10055_v58 = vld [vmem:[#allocation56_spill] sm:$0xff] }
 0x57e   :  { %v4601_v25 = vpop.eup %4600  ;;  %4606 = vtanh.f32 %v3187_v47  ;;  %v3202_v47 = vmul.f32 %v3196_v18, %v7451_v6 }
 0x57f   :  { %v4603_v0 = vpop.eup %4602  ;;  %v3359_v62 = vmul.f32 0.5, %v4601_v25  ;;  %4608 = vtanh.f32 %v3366_v9 }
 0x580   :  { %v3363_v13 = vmul.f32 0.5, %v4603_v0  ;;  %v10049_v0 = vld [vmem:[#allocation50_spill] sm:$0xff] }
 0x581   :  { %v3360_v1 = vadd.f32 0.5, %v3359_v62  ;;  %v10050_v62 = vld [vmem:[#allocation51_spill] sm:$0xff] }
 0x582   :  { %v3364_v20 = vadd.f32 0.5, %v3363_v13  ;;  %v10053_v13 = vld [vmem:[#allocation54_spill] sm:$0xff] }
 0x583   :  { %v4605_v4 = vpop.eup %4604 }
 0x584   :  { %v3370_v55 = vmul.f32 %v3364_v20, %v7447_v61  ;;  %v3371_v37 = vmul.f32 %v4605_v4, %v3360_v1  ;;  %v4607_v14 = vpop.eup %4606  ;;  %v10054_v1 = vld [vmem:[#allocation55_spill] sm:$0xff]  ;;  %v10056_v20 = vld [vmem:[#allocation57_spill] sm:$0xff]  ;;  %v10057_v4 = vld [vmem:[#allocation58_spill] sm:$0xff] }
 0x585   :  { %v4609_v53 = vpop.eup %4608  ;;  %v3203_v19 = vmul.f32 %v4607_v14, %v3192_v39 }
 0x586   :  { %v8041_v24 = vadd.f32 %v3371_v37, %v3370_v55  ;;  %v3368_v40 = vmul.f32 0.5, %v4609_v53  ;;  %v10058_v55 = vld [vmem:[#allocation59_spill] sm:$0xff]  ;;  %v10059_v37 = vld [vmem:[#allocation60_spill] sm:$0xff]  ;;  %v10060_v53 = vld [vmem:[#allocation61_spill] sm:$0xff] }
 0x587   :  { %v8045_v9 = vadd.f32 %v3203_v19, %v3202_v47  ;;  %v10062_v47 = vld [vmem:[#allocation63_spill] sm:$0xff]  ;;  %v10063_v19 = vld [vmem:[#allocation64_spill] sm:$0xff] }
 0x588   :  { %4610 = vtanh.f32 %v8041_v24  ;;  %v3369_v25 = vadd.f32 0.5, %v3368_v40  ;;  %v10064_v40 = vld [vmem:[#allocation65_spill] sm:$0xff] }
 0x589   :  { %4612 = vtanh.f32 %v3198_v63  ;;  %v10061_v63 = vld [vmem:[#allocation62_spill] sm:$0xff] }
 0x58a   :  { %4614 = vtanh.f32 %v8045_v9 }
 0x58e   :  { %v4611_v3 = vpop.eup %4610 }
 0x58f   :  { %v8047_v15 = vmul.f32 %v4611_v3, %v3369_v25  ;;  %v4613_v61 = vpop.eup %4612  ;;  %v10065_v25 = vld [vmem:[#allocation66_spill] sm:$0xff]  ;;  %v10066_v3 = vld [vmem:[#allocation67_spill] sm:$0xff] }
 0x590   :  { %v3200_v14 = vmul.f32 0.5, %v4613_v61  ;;  %v4615_v18 = vpop.eup %4614  ;;  %v10068_v61 = vld [vmem:[#allocation69_spill] sm:$0xff] }
 0x591   :  { %3519 = vmatmul.f32.vlgmr.msra.gmra.mxu0 %v8047_v15  ;;  %3539 = vmatmul.f32.vlgmr.msrb.gmra.mxu1 %v8047_v15 }
 0x592   :  { %3559 = vmatmul.f32.vlgmr.msrb.gmra.mxu2 %v8047_v15  ;;  %3579 = vmatmul.f32.vlgmr.msra.gmra.mxu3 %v8047_v15  ;;  %v3201_v39 = vadd.f32 0.5, %v3200_v14  ;;  %v10069_v14 = vld [vmem:[#allocation70_spill] sm:$0xff] }
 0x593   :  { %3761 = vmatpush.msra.mxu0 %v7456_v36  ;;  %3781 = vmatpush.msrb.mxu1 %v7458_v7  ;;  %v3737_v36 = vld [vmem:[#allocation9 + $0x340] sm:$0xff] }
 0x594   :  { %3801 = vmatpush.msrb.mxu2 %v7462_v50  ;;  %3821 = vmatpush.msra.mxu3 %v7464_v8  ;;  %v8066_v6 = vmul.f32 %v4615_v18, %v3201_v39  ;;  %v3733_v7 = vld [vmem:[#allocation9 + $0x320] sm:$0xff]  ;;  %v10071_v39 = vld [vmem:[#allocation72_spill] sm:$0xff] }
 0x595   :  { %3762 = vmatpush.msra.mxu0 %v7468_v11  ;;  %3782 = vmatpush.msrb.mxu1 %v7470_v56  ;;  %v3729_v50 = vld [vmem:[#allocation9 + $0x300] sm:$0xff] }
 0x596   :  { %3802 = vmatpush.msrb.mxu2 %v7474_v16  ;;  %3822 = vmatpush.msra.mxu3 %v7476_v5  ;;  %v3725_v8 = vld [vmem:[#allocation9 + $0x2e0] sm:$0xff] }
 0x597   :  { %3763 = vmatpush.msra.mxu0 %v7480_v27  ;;  %3783 = vmatpush.msrb.mxu1 %v7482_v22  ;;  %v3721_v11 = vld [vmem:[#allocation9 + $0x2c0] sm:$0xff]  ;;  %v10022_v27 = vld [vmem:[#allocation25_spill] sm:$0xff] }
 0x598   :  { %3803 = vmatpush.msrb.mxu2 %v7486_v42  ;;  %3823 = vmatpush.msra.mxu3 %v7488_v51  ;;  %v3717_v56 = vld [vmem:[#allocation9 + $0x2a0] sm:$0xff]  ;;  %v10023_v22 = vld [vmem:[#allocation21_spill] sm:$0xff]  ;;  %v10024_v42 = vld [vmem:[#allocation26_spill] sm:$0xff] }
 0x599   :  { %3764 = vmatpush.msra.mxu0 %v7492_v23  ;;  %3784 = vmatpush.msrb.mxu1 %v7494_v48  ;;  %v3713_v16 = vld [vmem:[#allocation9 + $0x280] sm:$0xff]  ;;  %v10026_v48 = vld [vmem:[#allocation22_spill] sm:$0xff] }
 0x59a   :  { %3804 = vmatpush.msrb.mxu2 %v7498_v60  ;;  %3824 = vmatpush.msra.mxu3 %v7500_v41  ;;  %v3709_v5 = vld [vmem:[#allocation9 + $0x260] sm:$0xff]  ;;  %v10027_v60 = vld [vmem:[#allocation28_spill] sm:$0xff] }
 0x59b   :  { %3599 = vmatmul.f32.vlgmr.msrb.gmra.mxu0 %v8066_v6  ;;  %3619 = vmatmul.f32.vlgmr.msra.gmra.mxu1 %v8066_v6  ;;  %v3705_v51 = vld [vmem:[#allocation9 + $0x240] sm:$0xff] }
 0x59c   :  { %3639 = vmatmul.f32.vlgmr.msra.gmra.mxu2 %v8066_v6  ;;  %3659 = vmatmul.f32.vlgmr.msrb.gmra.mxu3 %v8066_v6  ;;  %v10025_v23 = vld [vmem:[#allocation27_spill] sm:$0xff] }
 0x59d   :  { %3765 = vmatpush.msra.mxu0 %v7510_v17  ;;  %3785 = vmatpush.msrb.mxu1 %v7512_v26  ;;  %v3701_v41 = vld [vmem:[#allocation9 + $0x220] sm:$0xff]  ;;  %v10028_v17 = vld [vmem:[#allocation29_spill] sm:$0xff]  ;;  %v10029_v26 = vld [vmem:[#allocation30_spill] sm:$0xff] }
 0x59e   :  { %3805 = vmatpush.msrb.mxu2 %v7516_v32  ;;  %3825 = vmatpush.msra.mxu3 %v7518_v49  ;;  %v10030_v32 = vld [vmem:[#allocation31_spill] sm:$0xff] }
 0x59f   :  { %3766 = vmatpush.msra.mxu0 %v3737_v36  ;;  %3786 = vmatpush.msrb.mxu1 %v7522_v31  ;;  %v3697_v49 = vld [vmem:[#allocation9 + $0x200] sm:$0xff]  ;;  %v10031_v31 = vld [vmem:[#allocation32_spill] sm:$0xff]  ;;  %v10072_v36 = vld [vmem:[#allocation73_spill] sm:$0xff] }
 0x5a0   :  { %3806 = vmatpush.msrb.mxu2 %v7526_v35  ;;  %3826 = vmatpush.msra.mxu3 %v7528_v43  ;;  %v10032_v35 = vld [vmem:[#allocation33_spill] sm:$0xff]  ;;  %v10033_v43 = vld [vmem:[#allocation34_spill] sm:$0xff]  ;;  %v10070_v18 = vld [vmem:[#allocation71_spill] sm:$0xff] }
 0x5a1   :  { %3767 = vmatpush.msra.mxu0 %v3733_v7  ;;  %3787 = vmatpush.msrb.mxu1 %v7532_v2  ;;  %v10034_v2 = vld [vmem:[#allocation35_spill] sm:$0xff]  ;;  %v10073_v7 = vld [vmem:[#allocation74_spill] sm:$0xff] }
 0x5a2   :  { %3807 = vmatpush.msrb.mxu2 %v7536_v38  ;;  %3827 = vmatpush.msra.mxu3 %v7538_v44  ;;  %v10035_v38 = vld [vmem:[#allocation36_spill] sm:$0xff]  ;;  %v10036_v44 = vld [vmem:[#allocation37_spill] sm:$0xff] }
 0x5a3   :  { %3768 = vmatpush.msra.mxu0 %v3729_v50  ;;  %3788 = vmatpush.msrb.mxu1 %v7542_v33  ;;  %v10037_v33 = vld [vmem:[#allocation38_spill] sm:$0xff]  ;;  %v10074_v50 = vld [vmem:[#allocation75_spill] sm:$0xff] }
 0x5a4   :  { %3808 = vmatpush.msrb.mxu2 %v7546_v30  ;;  %3828 = vmatpush.msra.mxu3 %v7548_v59  ;;  %v10038_v30 = vld [vmem:[#allocation39_spill] sm:$0xff]  ;;  %v10039_v59 = vld [vmem:[#allocation40_spill] sm:$0xff] }
 0x5a5   :  { %3769 = vmatpush.msra.mxu0 %v3725_v8  ;;  %3789 = vmatpush.msrb.mxu1 %v7552_v45  ;;  %v10040_v45 = vld [vmem:[#allocation41_spill] sm:$0xff]  ;;  %v10075_v8 = vld [vmem:[#allocation76_spill] sm:$0xff] }
 0x5a6   :  { %3809 = vmatpush.msrb.mxu2 %v7556_v46  ;;  %3829 = vmatpush.msra.mxu3 %v7558_v34  ;;  %v10041_v46 = vld [vmem:[#allocation42_spill] sm:$0xff]  ;;  %v10042_v34 = vld [vmem:[#allocation43_spill] sm:$0xff] }
 0x5a7   :  { %3770 = vmatpush.msra.mxu0 %v3721_v11  ;;  %3790 = vmatpush.msrb.mxu1 %v7562_v52  ;;  %v10043_v52 = vld [vmem:[#allocation44_spill] sm:$0xff]  ;;  %v10076_v11 = vld [vmem:[#allocation77_spill] sm:$0xff] }
 0x5a8   :  { %3810 = vmatpush.msrb.mxu2 %v7566_v54  ;;  %3830 = vmatpush.msra.mxu3 %v7568_v12  ;;  %v10044_v54 = vld [vmem:[#allocation45_spill] sm:$0xff]  ;;  %v10045_v12 = vld [vmem:[#allocation46_spill] sm:$0xff] }
 0x5a9   :  { %3771 = vmatpush.msra.mxu0 %v3717_v56  ;;  %3791 = vmatpush.msrb.mxu1 %v7572_v28  ;;  %v10046_v28 = vld [vmem:[#allocation47_spill] sm:$0xff]  ;;  %v10077_v56 = vld [vmem:[#allocation78_spill] sm:$0xff] }
 0x5aa   :  { %3811 = vmatpush.msrb.mxu2 %v7576_v21  ;;  %3831 = vmatpush.msra.mxu3 %v7578_v10  ;;  %v10047_v21 = vld [vmem:[#allocation48_spill] sm:$0xff]  ;;  %v10048_v10 = vld [vmem:[#allocation49_spill] sm:$0xff] }
 0x5ab   :  { %3772 = vmatpush.msra.mxu0 %v3713_v16  ;;  %3792 = vmatpush.msrb.mxu1 %v10022_v27  ;;  %v10078_v16 = vld [vmem:[#allocation79_spill] sm:$0xff]  ;;  %v10080_v27 = vld [vmem:[#allocation81_spill] sm:$0xff] }
 0x5ac   :  { %3812 = vmatpush.msrb.mxu2 %v10023_v22  ;;  %3832 = vmatpush.msra.mxu3 %v10024_v42  ;;  %v10081_v22 = vld [vmem:[#allocation82_spill] sm:$0xff]  ;;  %v10082_v42 = vld [vmem:[#allocation83_spill] sm:$0xff] }
 0x5ad   :  { %3773 = vmatpush.msra.mxu0 %v3709_v5  ;;  %3793 = vmatpush.msrb.mxu1 %v10025_v23  ;;  %v10079_v5 = vld [vmem:[#allocation80_spill] sm:$0xff]  ;;  %v10084_v23 = vld [vmem:[#allocation85_spill] sm:$0xff] }
 0x5ae   :  { %3813 = vmatpush.msrb.mxu2 %v10026_v48  ;;  %3833 = vmatpush.msra.mxu3 %v10027_v60  ;;  %v10085_v48 = vld [vmem:[#allocation86_spill] sm:$0xff]  ;;  %v10086_v60 = vld [vmem:[#allocation87_spill] sm:$0xff] }
 0x5af   :  { %3774 = vmatpush.msra.mxu0 %v3705_v51  ;;  %3794 = vmatpush.msrb.mxu1 %v10028_v17  ;;  %v10083_v51 = vld [vmem:[#allocation84_spill] sm:$0xff]  ;;  %v10088_v17 = vld [vmem:[#allocation89_spill] sm:$0xff] }
 0x5b0   :  { %3814 = vmatpush.msrb.mxu2 %v10029_v26  ;;  %3834 = vmatpush.msra.mxu3 %v10030_v32  ;;  %v10089_v26 = vld [vmem:[#allocation90_spill] sm:$0xff]  ;;  %v10090_v32 = vld [vmem:[#allocation91_spill] sm:$0xff] }
 0x5b1   :  { %3775 = vmatpush.msra.mxu0 %v3701_v41  ;;  %3795 = vmatpush.msrb.mxu1 %v10031_v31  ;;  %v10087_v41 = vld [vmem:[#allocation88_spill] sm:$0xff]  ;;  %v10092_v31 = vld [vmem:[#allocation93_spill] sm:$0xff] }
 0x5b2   :  { %3815 = vmatpush.msrb.mxu2 %v10032_v35  ;;  %3835 = vmatpush.msra.mxu3 %v10033_v43  ;;  %v10093_v35 = vld [vmem:[#allocation94_spill] sm:$0xff]  ;;  %v10094_v43 = vld [vmem:[#allocation95_spill] sm:$0xff] }
 0x5b3   :  { %3776 = vmatpush.msra.mxu0 %v3697_v49  ;;  %3796 = vmatpush.msrb.mxu1 %v10034_v2  ;;  %v10091_v49 = vld [vmem:[#allocation92_spill] sm:$0xff] }
 0x5b4   :  { %3816 = vmatpush.msrb.mxu2 %v10035_v38  ;;  %3836 = vmatpush.msra.mxu3 %v10036_v44  ;;  %v10095_v2 = vld [vmem:[#allocation96_spill] sm:$0xff]  ;;  %v10096_v38 = vld [vmem:[#allocation97_spill] sm:$0xff]  ;;  %v10097_v44 = vld [vmem:[#allocation98_spill] sm:$0xff] }
 0x5b5   :  { %3777 = vmatmul.f32.vlgmr.msra.gmra.mxu0 %v8047_v15  ;;  %3797 = vmatmul.f32.vlgmr.msrb.gmra.mxu1 %v8047_v15 }
 0x5b6   :  { %3817 = vmatmul.f32.vlgmr.msrb.gmra.mxu2 %v8047_v15  ;;  %3837 = vmatmul.f32.vlgmr.msra.gmra.mxu3 %v8047_v15  ;;  %v10067_v15 = vld [vmem:[#allocation68_spill] sm:$0xff] }
 0x5b7   :  { %3991 = vmatpush.msrb.mxu0 %v10037_v33  ;;  %4011 = vmatpush.msra.mxu1 %v10038_v30  ;;  %v10098_v33 = vld [vmem:[#allocation99_spill] sm:$0xff]  ;;  %v10099_v30 = vld [vmem:[#allocation102_spill] sm:$0xff] }
 0x5b8   :  { %4031 = vmatpush.msra.mxu2 %v10039_v59  ;;  %4051 = vmatpush.msrb.mxu3 %v10040_v45  ;;  %v10100_v59 = vld [vmem:[#allocation100_spill] sm:$0xff]  ;;  %v10101_v45 = vld [vmem:[#allocation101_spill] sm:$0xff] }
 0x5b9   :  { %3992 = vmatpush.msrb.mxu0 %v10041_v46  ;;  %4012 = vmatpush.msra.mxu1 %v10042_v34  ;;  %v10102_v46 = vld [vmem:[#allocation103_spill] sm:$0xff]  ;;  %v10103_v34 = vld [vmem:[#allocation106_spill] sm:$0xff] }
 0x5ba   :  { %4032 = vmatpush.msra.mxu2 %v10043_v52  ;;  %4052 = vmatpush.msrb.mxu3 %v10044_v54  ;;  %v10104_v52 = vld [vmem:[#allocation104_spill] sm:$0xff]  ;;  %v10105_v54 = vld [vmem:[#allocation105_spill] sm:$0xff] }
 0x5bb   :  { %3993 = vmatpush.msrb.mxu0 %v10045_v12  ;;  %4013 = vmatpush.msra.mxu1 %v10046_v28  ;;  %v10106_v12 = vld [vmem:[#allocation107_spill] sm:$0xff]  ;;  %v10107_v28 = vld [vmem:[#allocation110_spill] sm:$0xff] }
 0x5bc   :  { %4033 = vmatpush.msra.mxu2 %v10047_v21  ;;  %4053 = vmatpush.msrb.mxu3 %v10048_v10  ;;  %v10108_v21 = vld [vmem:[#allocation108_spill] sm:$0xff]  ;;  %v10109_v10 = vld [vmem:[#allocation109_spill] sm:$0xff] }
 0x5bd   :  { %3994 = vmatpush.msrb.mxu0 %v10049_v0  ;;  %4014 = vmatpush.msra.mxu1 %v10050_v62  ;;  %v10110_v0 = vld [vmem:[#allocation111_spill] sm:$0xff]  ;;  %v10111_v62 = vld [vmem:[#allocation114_spill] sm:$0xff] }
 0x5be   :  { %4034 = vmatpush.msra.mxu2 %v10051_v29  ;;  %4054 = vmatpush.msrb.mxu3 %v10052_v57  ;;  %v10112_v29 = vld [vmem:[#allocation112_spill] sm:$0xff]  ;;  %v10113_v57 = vld [vmem:[#allocation113_spill] sm:$0xff] }
 0x5bf   :  { %3995 = vmatpush.msrb.mxu0 %v10053_v13  ;;  %4015 = vmatpush.msra.mxu1 %v10054_v1  ;;  %v10114_v13 = vld [vmem:[#allocation115_spill] sm:$0xff]  ;;  %v10115_v1 = vld [vmem:[#allocation118_spill] sm:$0xff] }
 0x5c0   :  { %4035 = vmatpush.msra.mxu2 %v10055_v58  ;;  %4055 = vmatpush.msrb.mxu3 %v10056_v20  ;;  %v10116_v58 = vld [vmem:[#allocation116_spill] sm:$0xff]  ;;  %v10117_v20 = vld [vmem:[#allocation117_spill] sm:$0xff] }
 0x5c1   :  { %3996 = vmatpush.msrb.mxu0 %v10057_v4  ;;  %4016 = vmatpush.msra.mxu1 %v10058_v55  ;;  %v10118_v4 = vld [vmem:[#allocation119_spill] sm:$0xff]  ;;  %v10119_v55 = vld [vmem:[#allocation122_spill] sm:$0xff] }
 0x5c2   :  { %4036 = vmatpush.msra.mxu2 %v10059_v37  ;;  %4056 = vmatpush.msrb.mxu3 %v10060_v53  ;;  %v10120_v37 = vld [vmem:[#allocation120_spill] sm:$0xff]  ;;  %v10121_v53 = vld [vmem:[#allocation121_spill] sm:$0xff] }
 0x5c3   :  { %3997 = vmatpush.msrb.mxu0 %v10061_v63  ;;  %4017 = vmatpush.msra.mxu1 %v10062_v47  ;;  %v10122_v63 = vld [vmem:[#allocation123_spill] sm:$0xff]  ;;  %v10123_v47 = vld [vmem:[#allocation126_spill] sm:$0xff] }
 0x5c4   :  { %4037 = vmatpush.msra.mxu2 %v10063_v19  ;;  %4057 = vmatpush.msrb.mxu3 %v10064_v40  ;;  %v10124_v19 = vld [vmem:[#allocation124_spill] sm:$0xff]  ;;  %v10125_v40 = vld [vmem:[#allocation125_spill] sm:$0xff] }
 0x5c5   :  { %3998 = vmatpush.msrb.mxu0 %v10065_v25  ;;  %4018 = vmatpush.msra.mxu1 %v10066_v3  ;;  %v10126_v25 = vld [vmem:[#allocation127_spill] sm:$0xff]  ;;  %v10127_v3 = vld [vmem:[#allocation130_spill] sm:$0xff] }
 0x5c6   :  { %4038 = vmatpush.msra.mxu2 %v10067_v15  ;;  %4058 = vmatpush.msrb.mxu3 %v10068_v61  ;;  %v10128_v15 = vld [vmem:[#allocation128_spill] sm:$0xff]  ;;  %v10129_v61 = vld [vmem:[#allocation129_spill] sm:$0xff] }
 0x5c7   :  { %3999 = vmatpush.msrb.mxu0 %v10069_v14  ;;  %4019 = vmatpush.msra.mxu1 %v10070_v18  ;;  %v10130_v14 = vld [vmem:[#allocation131_spill] sm:$0xff]  ;;  %v10131_v18 = vld [vmem:[#allocation134_spill] sm:$0xff] }
 0x5c8   :  { %4039 = vmatpush.msra.mxu2 %v10071_v39  ;;  %4059 = vmatpush.msrb.mxu3 %v10072_v36  ;;  %v10132_v39 = vld [vmem:[#allocation132_spill] sm:$0xff]  ;;  %v10133_v36 = vld [vmem:[#allocation133_spill] sm:$0xff] }
 0x5c9   :  { %4000 = vmatpush.msrb.mxu0 %v10073_v7  ;;  %4020 = vmatpush.msra.mxu1 %v10074_v50  ;;  %v10134_v7 = vld [vmem:[#allocation135_spill] sm:$0xff]  ;;  %v10135_v50 = vld [vmem:[#allocation138_spill] sm:$0xff] }
 0x5ca   :  { %4040 = vmatpush.msra.mxu2 %v10075_v8  ;;  %4060 = vmatpush.msrb.mxu3 %v10076_v11  ;;  %v10136_v8 = vld [vmem:[#allocation136_spill] sm:$0xff]  ;;  %v10137_v11 = vld [vmem:[#allocation137_spill] sm:$0xff] }
 0x5cb   :  { %4001 = vmatpush.msrb.mxu0 %v10077_v56  ;;  %4021 = vmatpush.msra.mxu1 %v10078_v16  ;;  %v10138_v56 = vld [vmem:[#allocation139_spill] sm:$0xff]  ;;  %v10139_v16 = vld [vmem:[#allocation142_spill] sm:$0xff] }
 0x5cc   :  { %4041 = vmatpush.msra.mxu2 %v10079_v5  ;;  %4061 = vmatpush.msrb.mxu3 %v10080_v27  ;;  %v10140_v5 = vld [vmem:[#allocation140_spill] sm:$0xff]  ;;  %v10141_v27 = vld [vmem:[#allocation141_spill] sm:$0xff] }
 0x5cd   :  { %4002 = vmatpush.msrb.mxu0 %v10081_v22  ;;  %4022 = vmatpush.msra.mxu1 %v10082_v42  ;;  %v10142_v22 = vld [vmem:[#allocation143_spill] sm:$0xff] }
 0x5ce   :  { %4042 = vmatpush.msra.mxu2 %v10083_v51  ;;  %4062 = vmatpush.msrb.mxu3 %v10084_v23  ;;  %v10143_v42 = vld [vmem:[#allocation147_spill] sm:$0xff]  ;;  %v10144_v51 = vld [vmem:[#allocation145_spill] sm:$0xff]  ;;  %v10145_v23 = vld [vmem:[#allocation146_spill] sm:$0xff] }
 0x5cf   :  { %4003 = vmatpush.msrb.mxu0 %v10085_v48  ;;  %4023 = vmatpush.msra.mxu1 %v10086_v60  ;;  %v10146_v48 = vld [vmem:[#allocation148_spill] sm:$0xff]  ;;  %v10147_v60 = vld [vmem:[#allocation151_spill] sm:$0xff] }
 0x5d0   :  { %4043 = vmatpush.msra.mxu2 %v10087_v41  ;;  %4063 = vmatpush.msrb.mxu3 %v10088_v17  ;;  %v10148_v41 = vld [vmem:[#allocation149_spill] sm:$0xff]  ;;  %v10149_v17 = vld [vmem:[#allocation150_spill] sm:$0xff] }
 0x5d1   :  { %4004 = vmatpush.msrb.mxu0 %v10089_v26  ;;  %4024 = vmatpush.msra.mxu1 %v10090_v32  ;;  %v10150_v26 = vld [vmem:[#allocation152_spill] sm:$0xff]  ;;  %v10151_v32 = vld [vmem:[#allocation155_spill] sm:$0xff] }
 0x5d2   :  { %4044 = vmatpush.msra.mxu2 %v10091_v49  ;;  %4064 = vmatpush.msrb.mxu3 %v10092_v31  ;;  %v10152_v49 = vld [vmem:[#allocation153_spill] sm:$0xff]  ;;  %v10153_v31 = vld [vmem:[#allocation154_spill] sm:$0xff] }
 0x5d3   :  { %4005 = vmatpush.msrb.mxu0 %v10093_v35  ;;  %4025 = vmatpush.msra.mxu1 %v10094_v43  ;;  %v10154_v35 = vld [vmem:[#allocation156_spill] sm:$0xff]  ;;  %v10155_v43 = vld [vmem:[#allocation162_spill] sm:$0xff] }
 0x5d4   :  { %4045 = vmatpush.msra.mxu2 %v10095_v2  ;;  %4065 = vmatpush.msrb.mxu3 %v10096_v38  ;;  %v10156_v2 = vld [vmem:[#allocation160_spill] sm:$0xff]  ;;  %v10157_v38 = vld [vmem:[#allocation161_spill] sm:$0xff] }
 0x5d5   :  { %4006 = vmatpush.msrb.mxu0 %v10097_v44  ;;  %4026 = vmatpush.msra.mxu1 %v10098_v33  ;;  %v10158_v44 = vld [vmem:[#allocation163_spill] sm:$0xff]  ;;  %v10159_v33 = vld [vmem:[#allocation166_spill] sm:$0xff] }
 0x5d6   :  { %4046 = vmatpush.msra.mxu2 %v10100_v59  ;;  %4066 = vmatpush.msrb.mxu3 %v10101_v45  ;;  %v10161_v59 = vld [vmem:[#allocation165_spill] sm:$0xff]  ;;  %v10162_v45 = vld [vmem:[#allocation167_spill] sm:$0xff] }
 0x5d7   :  { %4071 = vmatpush.msra.mxu0 %v10099_v30  ;;  %4091 = vmatpush.msrb.mxu1 %v10102_v46  ;;  %v10160_v30 = vld [vmem:[#allocation164_spill] sm:$0xff]  ;;  %v10163_v46 = vld [vmem:[#allocation169_spill] sm:$0xff] }
 0x5d8   :  { %4111 = vmatpush.msrb.mxu2 %v10104_v52  ;;  %4131 = vmatpush.msra.mxu3 %v10105_v54 }
 0x5d9   :  { %4072 = vmatpush.msra.mxu0 %v10103_v34  ;;  %4092 = vmatpush.msrb.mxu1 %v10106_v12  ;;  %v10164_v34 = vld [vmem:[#allocation171_spill] sm:$0xff] }
 0x5da   :  { %4112 = vmatpush.msrb.mxu2 %v10108_v21  ;;  %4132 = vmatpush.msra.mxu3 %v10109_v10 }
 0x5db   :  { %4073 = vmatpush.msra.mxu0 %v10107_v28  ;;  %4093 = vmatpush.msrb.mxu1 %v10110_v0  ;;  %v3663_v28 = vld [vmem:[#allocation11 + $0x4] sm:$0xf] }
 0x5dc   :  { %4113 = vmatpush.msrb.mxu2 %v10112_v29  ;;  %4133 = vmatpush.msra.mxu3 %v10113_v57  ;;  %v3665_v29 = vperm.slane %v3663_v28, 0 }
 0x5dd   :  { %4074 = vmatpush.msra.mxu0 %v10111_v62  ;;  %4094 = vmatpush.msrb.mxu1 %v10114_v13  ;;  %v3666_v13 = vperm.slane %v3663_v28, 1 }
 0x5de   :  { %4114 = vmatpush.msrb.mxu2 %v10116_v58  ;;  %4134 = vmatpush.msra.mxu3 %v10117_v20 }
 0x5df   :  { %4075 = vmatpush.msra.mxu0 %v10115_v1  ;;  %4095 = vmatpush.msrb.mxu1 %v10118_v4 }
 0x5e0   :  { %4115 = vmatpush.msrb.mxu2 %v10120_v37  ;;  %4135 = vmatpush.msra.mxu3 %v10121_v53  ;;  %v3667_v53 = vperm.slane %v3663_v28, 2 }
 0x5e1   :  { %4076 = vmatpush.msra.mxu0 %v10119_v55  ;;  %4096 = vmatpush.msrb.mxu1 %v10122_v63 }
 0x5e2   :  { %4116 = vmatpush.msrb.mxu2 %v10124_v19  ;;  %4136 = vmatpush.msra.mxu3 %v10125_v40  ;;  %v10165_v40 = vld [vmem:[#allocation144_spill] sm:$0xff] }
 0x5e3   :  { %4077 = vmatpush.msra.mxu0 %v10123_v47  ;;  %4097 = vmatpush.msrb.mxu1 %v10126_v25 }
 0x5e4   :  { %4117 = vmatpush.msrb.mxu2 %v10128_v15  ;;  %4137 = vmatpush.msra.mxu3 %v10129_v61 }
 0x5e5   :  { %4078 = vmatpush.msra.mxu0 %v10127_v3  ;;  %4098 = vmatpush.msrb.mxu1 %v10130_v14  ;;  %v10166_v3 = vld [vmem:[#allocation157_spill] sm:$0xff] }
 0x5e6   :  { %4118 = vmatpush.msrb.mxu2 %v10132_v39  ;;  %4138 = vmatpush.msra.mxu3 %v10133_v36 }
 0x5e7   :  { %4079 = vmatpush.msra.mxu0 %v10131_v18  ;;  %4099 = vmatpush.msrb.mxu1 %v10134_v7 }
 0x5e8   :  { %4119 = vmatpush.msrb.mxu2 %v10136_v8  ;;  %4139 = vmatpush.msra.mxu3 %v10137_v11  ;;  %v3668_v11 = vperm.slane %v3663_v28, 3 }
 0x5e9   :  { %4080 = vmatpush.msra.mxu0 %v10135_v50  ;;  %4100 = vmatpush.msrb.mxu1 %v10138_v56  ;;  %v10167_v56 = vld [vmem:[#allocation159_spill] sm:$0xff] }
 0x5ea   :  { %4120 = vmatpush.msrb.mxu2 %v10140_v5  ;;  %4140 = vmatpush.msra.mxu3 %v10141_v27  ;;  %v10168_v5 = vld [vmem:[#allocation158_spill] sm:$0xff] }
 0x5eb   :  { %4081 = vmatpush.msra.mxu0 %v10139_v16  ;;  %4101 = vmatpush.msrb.mxu1 %v10142_v22 }
 0x5ec   :  { %4121 = vmatpush.msrb.mxu2 %v10144_v51  ;;  %4141 = vmatpush.msra.mxu3 %v10145_v23 }
 0x5ed   :  { %4082 = vmatpush.msra.mxu0 %v10143_v42  ;;  %4102 = vmatpush.msrb.mxu1 %v10146_v48 }
 0x5ee   :  { %4122 = vmatpush.msrb.mxu2 %v10148_v41  ;;  %4142 = vmatpush.msra.mxu3 %v10149_v17 }
 0x5ef   :  { %4083 = vmatpush.msra.mxu0 %v10147_v60  ;;  %4103 = vmatpush.msrb.mxu1 %v10150_v26 }
 0x5f0   :  { %4123 = vmatpush.msrb.mxu2 %v10152_v49  ;;  %4143 = vmatpush.msra.mxu3 %v10153_v31 }
 0x5f1   :  { %4084 = vmatpush.msra.mxu0 %v10151_v32  ;;  %4104 = vmatpush.msrb.mxu1 %v10154_v35 }
 0x5f2   :  { %4124 = vmatpush.msrb.mxu2 %v10156_v2  ;;  %4144 = vmatpush.msra.mxu3 %v10157_v38 }
 0x5f3   :  { %4085 = vmatpush.msra.mxu0 %v10155_v43  ;;  %4105 = vmatpush.msrb.mxu1 %v10158_v44 }
 0x5f4   :  { %4125 = vmatpush.msrb.mxu2 %v10160_v30  ;;  %4145 = vmatpush.msra.mxu3 %v10161_v59 }
 0x5f5   :  { %4086 = vmatpush.msra.mxu0 %v10159_v33  ;;  %4106 = vmatpush.msrb.mxu1 %v10162_v45 }
 0x5f6   :  { %4126 = vmatpush.msrb.mxu2 %v10163_v46  ;;  %4146 = vmatpush.msra.mxu3 %v10164_v34 }
 0x60e   :  { %v3520_v52 = vpop.f32.mrf.mxu0  ;;  %v3540_v54 = vpop.f32.mrf.mxu1 }
 0x615   :  { %v3560_v10 = vpop.f32.mrf.mxu2  ;;  %v3580_v0 = vpop.f32.mrf.mxu3 }
 0x618   :  { %v3600_v12 = vpop.f32.mrf.mxu0  ;;  %v3620_v21 = vpop.f32.mrf.mxu1 }
 0x619   :  { %v3601_v62 = vadd.f32 %v3600_v12, %v3520_v52  ;;  %v3621_v57 = vadd.f32 %v3620_v21, %v3540_v54  ;;  %v4208_v21 = vld [vmem:[#allocation12 + $0x78] sm:$0xff] }
 0x61b   :  { %v3673_v1 = vadd.f32 %v3665_v29, %v3601_v62  ;;  %v3674_v58 = vadd.f32 %v3666_v13, %v3621_v57  ;;  %v4205_v29 = vld [vmem:[#allocation12 + $0x60] sm:$0xff]  ;;  %v4204_v13 = vld [vmem:[#allocation12 + $0x58] sm:$0xff] }
 0x61d   :  { %v3677_v20 = vmul.f32 0.5, %v3673_v1  ;;  %v3681_v4 = vmul.f32 0.5, %v3674_v58  ;;  %v4203_v1 = vld [vmem:[#allocation12 + $0x50] sm:$0xff]  ;;  %v4202_v58 = vld [vmem:[#allocation12 + $0x48] sm:$0xff] }
 0x61f   :  { %v3640_v55 = vpop.f32.mrf.mxu2  ;;  %v3660_v37 = vpop.f32.mrf.mxu3  ;;  %4616 = vtanh.f32 %v3677_v20  ;;  %v4201_v20 = vld [vmem:[#allocation12 + $0x40] sm:$0xff] }
 0x620   :  { %v3641_v19 = vadd.f32 %v3640_v55, %v3560_v10  ;;  %4618 = vtanh.f32 %v3681_v4  ;;  %v3661_v8 = vadd.f32 %v3660_v37, %v3580_v0  ;;  %v4206_v0 = vld [vmem:[#allocation12 + $0x68] sm:$0xff]  ;;  %v4200_v4 = vld [vmem:[#allocation12 + $0x38] sm:$0xff]  ;;  %v4199_v55 = vld [vmem:[#allocation12 + $0x30] sm:$0xff] }
 0x621   :  { %v4198_v37 = vld [vmem:[#allocation12 + $0x28] sm:$0xff] }
 0x622   :  { %v3675_v18 = vadd.f32 %v3667_v53, %v3641_v19  ;;  %v3676_v60 = vadd.f32 %v3668_v11, %v3661_v8  ;;  %v4197_v53 = vld [vmem:[#allocation12 + $0x20] sm:$0xff]  ;;  %v4194_v19 = vld [vmem:[#allocation12 + $0x8] sm:$0xff] }
 0x624   :  { %v3686_v2 = vmul.f32 0.5, %v3676_v60 }
 0x625   :  { %v4617_v39 = vpop.eup %4616 }
 0x626   :  { %v4619_v50 = vpop.eup %4618  ;;  %v3679_v51 = vmul.f32 0.5, %v4617_v39 }
 0x627   :  { %v3683_v23 = vmul.f32 0.5, %v4619_v50 }
 0x628   :  { %v3680_v49 = vadd.f32 0.5, %v3679_v51 }
 0x629   :  { %v3684_v31 = vadd.f32 0.5, %v3683_v23 }
 0x62b   :  { %v3690_v30 = vmul.f32 %v3684_v31, %v8045_v9 }
 0x632   :  { %v3778_v63 = vpop.f32.mrf.mxu0  ;;  %v3798_v47 = vpop.f32.mrf.mxu1 }
 0x633   :  { %v3841_v25 = vadd.f32 %v3778_v63, %v10165_v40  ;;  %v3842_v15 = vadd.f32 %v3798_v47, %v10166_v3  ;;  %v4196_v63 = vld [vmem:[#allocation12 + $0x18] sm:$0xff]  ;;  %v4195_v47 = vld [vmem:[#allocation12 + $0x10] sm:$0xff]  ;;  %v4193_v40 = vld [vmem:[#allocation12] sm:$0xff] }
 0x634   :  { %v10170_v3 = vld [vmem:[#allocation168_spill] sm:$0xff] }
 0x635   :  { %v3845_v61 = vmul.f32 0.5, %v3841_v25  ;;  %v3849_v14 = vmul.f32 0.5, %v3842_v15  ;;  %v10169_v25 = vld [vmem:[#allocation23_spill] sm:$0xff]  ;;  %v10171_v15 = vld [vmem:[#allocation20_spill] sm:$0xff] }
 0x637   :  { %4620 = vtanh.f32 %v3845_v61  ;;  %v10172_v61 = vld [vmem:[#allocation170_spill] sm:$0xff] }
 0x638   :  { %4622 = vtanh.f32 %v3849_v14  ;;  %v10173_v14 = vld [vmem:[#allocation24_spill] sm:$0xff] }
 0x639   :  { %v3818_v36 = vpop.f32.mrf.mxu2  ;;  %v3838_v7 = vpop.f32.mrf.mxu3  ;;  %4624 = vtanh.f32 %v3675_v18 }
 0x63a   :  { %v3843_v16 = vadd.f32 %v3818_v36, %v10167_v56  ;;  %v3844_v27 = vadd.f32 %v3838_v7, %v10168_v5  ;;  %v4151_v36 = vld [vmem:[#allocation11 + $0x4] sm:$0xf] }
 0x63b   :  { %v4154_v8 = vperm.slane %v4151_v36, 1  ;;  %v4153_v11 = vperm.slane %v4151_v36, 0 }
 0x63c   :  { %4626 = vtanh.f32 %v3843_v16  ;;  %v3854_v22 = vmul.f32 0.5, %v3844_v27 }
 0x63d   :  { %v4621_v42 = vpop.eup %4620 }
 0x63e   :  { %v4623_v48 = vpop.eup %4622  ;;  %v3847_v41 = vmul.f32 0.5, %v4621_v42  ;;  %4628 = vtanh.f32 %v3854_v22 }
 0x63f   :  { %v3851_v17 = vmul.f32 0.5, %v4623_v48  ;;  %v4625_v32 = vpop.eup %4624  ;;  %4630 = vtanh.f32 %v3686_v2  ;;  %v4155_v48 = vperm.slane %v4151_v36, 2 }
 0x640   :  { %v3848_v26 = vadd.f32 0.5, %v3847_v41  ;;  %v3691_v59 = vmul.f32 %v4625_v32, %v3680_v49 }
 0x641   :  { %v3852_v35 = vadd.f32 0.5, %v3851_v17 }
 0x642   :  { %v4627_v43 = vpop.eup %4626  ;;  %v8251_v34 = vadd.f32 %v3691_v59, %v3690_v30  ;;  %v4254_v30 = vlaneseq }
 0x643   :  { %v3858_v38 = vmul.f32 %v3852_v35, %v8041_v24  ;;  %v3859_v44 = vmul.f32 %v4627_v43, %v3848_v26  ;;  %v4207_v24 = vld [vmem:[#allocation12 + $0x70] sm:$0xff] }
 0x644   :  { %v4629_v33 = vpop.eup %4628 }
 0x645   :  { %v3860_v45 = vadd.f32 %v3859_v44, %v3858_v38  ;;  %v3856_v46 = vmul.f32 0.5, %v4629_v33  ;;  %v4631_v52 = vpop.eup %4630 }
 0x646   :  { %v3688_v10 = vmul.f32 0.5, %v4631_v52 }
 0x647   :  { %4632 = vtanh.f32 %v3860_v45  ;;  %v3857_v54 = vadd.f32 0.5, %v3856_v46 }
 0x648   :  { %4634 = vtanh.f32 %v8251_v34  ;;  %v3689_v62 = vadd.f32 0.5, %v3688_v10 }
 0x64d   :  { %v4633_v12 = vpop.eup %4632 }
 0x64e   :  { %v3862_v28 = vmul.f32 %v4633_v12, %v3857_v54  ;;  %v4635_v9 = vpop.eup %4634  ;;  %v8261_v54 = vand.u32 127, %v4254_v30 }
 0x64f   :  { %v3694_v57 = vmul.f32 %v4635_v9, %v3689_v62 }
 0x650   :  { %4007 = vmatmul.f32.vlgmr.msrb.gmra.mxu0 %v3862_v28  ;;  %4027 = vmatmul.f32.vlgmr.msra.gmra.mxu1 %v3862_v28  ;;  %vm4256_vm0 = vcmp.lt.s32.totalorder %v8261_v54, 5  ;;  %vm4257_vm1 = vcmp.eq.s32.totalorder %v8261_v54, 5 }
 0x651   :  { %4047 = vmatmul.f32.vlgmr.msra.gmra.mxu2 %v3862_v28  ;;  %4067 = vmatmul.f32.vlgmr.msrb.gmra.mxu3 %v3862_v28  ;;  %v4485_v28 = vld [vmem:[%s8424_s6] ss:$0 sm:$0xff]  ;;  %s4900_s6 = smov [#allocation14]  }
 0x652   :  { %4213 = vmatpush.msrb.mxu0 %v4208_v21  ;;  %s4454_s12 = sshll.u32 %s4900_s6, 4  ;;  %s4455_s12 = int_to_ptr.vmem [resolvable:$true] %s4454_s12 }
 0x654   :  { %4214 = vmatpush.msrb.mxu0 %v4207_v24 }
 0x656   :  { %4215 = vmatpush.msrb.mxu0 %v4206_v0 }
 0x658   :  { %4216 = vmatpush.msrb.mxu0 %v4205_v29  ;;  %4107 = vmatmul.f32.vlgmr.msrb.gmra.mxu1 %v3694_v57 }
 0x659   :  { %4087 = vmatmul.f32.vlgmr.msra.gmra.mxu0 %v3694_v57  ;;  %4127 = vmatmul.f32.vlgmr.msrb.gmra.mxu2 %v3694_v57 }
 0x65a   :  { %4147 = vmatmul.f32.vlgmr.msra.gmra.mxu3 %v3694_v57  ;;  %4217 = vmatpush.msrb.mxu0 %v4204_v13 }
 0x65c   :  { %4218 = vmatpush.msrb.mxu0 %v4203_v1 }
 0x65e   :  { %4219 = vmatpush.msrb.mxu0 %v4202_v58 }
 0x660   :  { %4220 = vmatpush.msrb.mxu0 %v4201_v20 }
 0x662   :  { %4221 = vmatpush.msrb.mxu0 %v4200_v4 }
 0x664   :  { %4222 = vmatpush.msrb.mxu0 %v4199_v55 }
 0x666   :  { %4223 = vmatpush.msrb.mxu0 %v4198_v37 }
 0x668   :  { %4224 = vmatpush.msrb.mxu0 %v4197_v53 }
 0x66a   :  { %4225 = vmatpush.msrb.mxu0 %v4196_v63 }
 0x66c   :  { %4226 = vmatpush.msrb.mxu0 %v4195_v47 }
 0x66e   :  { %4227 = vmatpush.msrb.mxu0 %v4194_v19 }
 0x670   :  { %4228 = vmatpush.msrb.mxu0 %v4193_v40 }
 0x671   :  { %4229 = vmatmul.f32.vlgmr.msrb.gmra.mxu0 %v10169_v25 }
 0x679   :  { %4232 = vmatmul.f32.gmra.mxu0 %v10170_v3 }
 0x681   :  { %4235 = vmatmul.f32.gmra.mxu0 %v10171_v15 }
 0x689   :  { %4238 = vmatmul.f32.gmra.mxu0 %v10172_v61 }
 0x691   :  { %4241 = vmatmul.f32.gmra.mxu0 %v10173_v14 }
 0x699   :  { %4244 = vmatmul.f32.gmra.mxu0 %v8066_v6  ;;  %v4156_v6 = vperm.slane %v4151_v36, 3 }
 0x6a1   :  { %4247 = vmatmul.f32.gmra.mxu0 %v3694_v57 }
 0x6cd   :  { %v4008_v18 = vpop.f32.mrf.mxu0  ;;  %v4028_v39 = vpop.f32.mrf.mxu1 }
 0x6d4   :  { %v4048_v7 = vpop.f32.mrf.mxu2  ;;  %v4068_v50 = vpop.f32.mrf.mxu3 }
 0x6d5   :  { %v4108_v56 = vpop.f32.mrf.mxu1 }
 0x6d6   :  { %v4088_v16 = vpop.f32.mrf.mxu0  ;;  %v4109_v5 = vadd.f32 %v4108_v56, %v4028_v39 }
 0x6d7   :  { %v4089_v27 = vadd.f32 %v4088_v16, %v4008_v18 }
 0x6d8   :  { %v4162_v22 = vadd.f32 %v4154_v8, %v4109_v5 }
 0x6d9   :  { %v4161_v42 = vadd.f32 %v4153_v11, %v4089_v27 }
 0x6da   :  { %v4169_v51 = vmul.f32 0.5, %v4162_v22 }
 0x6db   :  { %v4165_v23 = vmul.f32 0.5, %v4161_v42 }
 0x6dc   :  { %4636 = vtanh.f32 %v4169_v51  ;;  %v4128_v60 = vpop.f32.mrf.mxu2 }
 0x6dd   :  { %4638 = vtanh.f32 %v4165_v23  ;;  %v4129_v41 = vadd.f32 %v4128_v60, %v4048_v7  ;;  %v4148_v17 = vpop.f32.mrf.mxu3 }
 0x6de   :  { %v4149_v26 = vadd.f32 %v4148_v17, %v4068_v50 }
 0x6df   :  { %v4163_v32 = vadd.f32 %v4155_v48, %v4129_v41 }
 0x6e0   :  { %v4164_v49 = vadd.f32 %v4156_v6, %v4149_v26 }
 0x6e1   :  { %4640 = vtanh.f32 %v4163_v32 }
 0x6e2   :  { %v4637_v31 = vpop.eup %4636  ;;  %v4174_v35 = vmul.f32 0.5, %v4164_v49 }
 0x6e3   :  { %v4639_v43 = vpop.eup %4638  ;;  %v4171_v2 = vmul.f32 0.5, %v4637_v31 }
 0x6e4   :  { %v4167_v38 = vmul.f32 0.5, %v4639_v43  ;;  %4642 = vtanh.f32 %v4174_v35 }
 0x6e5   :  { %v4172_v44 = vadd.f32 0.5, %v4171_v2 }
 0x6e6   :  { %v4168_v33 = vadd.f32 0.5, %v4167_v38 }
 0x6e7   :  { %v4641_v59 = vpop.eup %4640  ;;  %v4178_v45 = vmul.f32 %v4172_v44, %v8251_v34 }
 0x6e8   :  { %v4179_v46 = vmul.f32 %v4641_v59, %v4168_v33 }
 0x6ea   :  { %v4643_v52 = vpop.eup %4642  ;;  %v4180_v12 = vadd.f32 %v4179_v46, %v4178_v45 }
 0x6eb   :  { %v4176_v21 = vmul.f32 0.5, %v4643_v52 }
 0x6ec   :  { %4644 = vtanh.f32 %v4180_v12 }
 0x6ed   :  { %v4177_v9 = vadd.f32 0.5, %v4176_v21 }
 0x6ee   :  { %v4230_v10 = vpop.f32.mrf.mxu0 }
 0x6ef   :  { %v8267_v24 = vadd.f32 %v4485_v28, %v4230_v10 }
 0x6f1   :  { %v4258_v34 = vsel %vm4256_vm0, %v8267_v24, -inf  ;;  %v4362_v21 = vand.u32 2147483647, %v8267_v24 }
 0x6f2   :  { %v4645_v0 = vpop.eup %4644  ;;  %4266 = vmax.xlane.f32.xlu0 %v4258_v34 }
 0x6f3   :  { %v4182_v62 = vmul.f32 %v4645_v0, %v4177_v9  ;;  %v4370_v10 = vsub.f32 0.0, %v4362_v21 }
 0x6f5   :  { %4250 = vmatmul.f32.gmra.mxu0 %v4182_v62  ;;  %v4378_v9 = vmul.f32 1.442695, %v4370_v10 }
 0x6f6   :  { %v4233_v29 = vpop.f32.mrf.mxu0 }
 0x6f7   :  { %v8272_v57 = vadd.f32 %v4485_v28, %v4233_v29 }
 0x6f9   :  { %v4259_v13 = vsel %vm4256_vm0, %v8272_v57, -inf  ;;  %v4363_v34 = vand.u32 2147483647, %v8272_v57 }
 0x6fa   :  { %4268 = vmax.xlane.f32.xlu0 %v4259_v13 }
 0x6fb   :  { %v4371_v0 = vsub.f32 0.0, %v4363_v34 }
 0x6fd   :  { %v4380_v29 = vmul.f32 1.442695, %v4371_v0 }
 0x6fe   :  { %v4236_v1 = vpop.f32.mrf.mxu0 }
 0x6ff   :  { %v8277_v58 = vadd.f32 %v4485_v28, %v4236_v1 }
 0x701   :  { %v4260_v20 = vsel %vm4256_vm0, %v8277_v58, -inf  ;;  %v4364_v62 = vand.u32 2147483647, %v8277_v58  ;;  %v4356_v0 = vmin.f32 %v8277_v58, 0.0 }
 0x702   :  { %4270 = vmax.xlane.f32.xlu1 %v4260_v20 }
 0x703   :  { %v4372_v1 = vsub.f32 0.0, %v4364_v62 }
 0x706   :  { %v4239_v4 = vpop.f32.mrf.mxu0 }
 0x707   :  { %v8282_v55 = vadd.f32 %v4485_v28, %v4239_v4  ;;  %v4382_v4 = vmul.f32 1.442695, %v4372_v1 }
 0x709   :  { %v4261_v37 = vsel %vm4256_vm0, %v8282_v55, -inf }
 0x70a   :  { %4272 = vmax.xlane.f32.xlu1 %v4261_v37  ;;  %v4365_v37 = vand.u32 2147483647, %v8282_v55 }
 0x70e   :  { %v4242_v53 = vpop.f32.mrf.mxu0 }
 0x70f   :  { %v8287_v63 = vadd.f32 %v4485_v28, %v4242_v53 }
 0x711   :  { %v4262_v47 = vsel %vm4256_vm0, %v8287_v63, -inf }
 0x712   :  { %4274 = vmax.xlane.f32.xlu2 %v4262_v47  ;;  %v4373_v47 = vsub.f32 0.0, %v4365_v37 }
 0x716   :  { %v4245_v19 = vpop.f32.mrf.mxu0 }
 0x717   :  { %v8292_v40 = vadd.f32 %v4485_v28, %v4245_v19 }
 0x719   :  { %v4263_v25 = vsel %vm4256_vm0, %v8292_v40, -inf }
 0x71a   :  { %4276 = vmax.xlane.f32.xlu2 %v4263_v25 }
 0x71e   :  { %v4248_v3 = vpop.f32.mrf.mxu0 }
 0x71f   :  { %v8297_v15 = vadd.f32 %v4485_v28, %v4248_v3 }
 0x721   :  { %v4264_v61 = vsel %vm4256_vm0, %v8297_v15, -inf }
 0x722   :  { %4278 = vmax.xlane.f32.xlu0 %v4264_v61 }
 0x765   :  { %v4267_v14 = vpop.xlane.xlu0 %4266 }
 0x766   :  { %v8303_v18 = vsub.f32 %v8267_v24, %v4267_v14  ;;  %v4384_v14 = vmul.f32 1.442695, %v4373_v47 }
 0x768   :  { %v4290_v39 = vmul.f32 1.442695, %v8303_v18 }
 0x76a   :  { %4646 = vpow2.f32 %v4290_v39  ;;  %v4366_v39 = vand.u32 2147483647, %v8287_v63 }
 0x76d   :  { %v4269_v36 = vpop.xlane.xlu0 %4268 }
 0x76e   :  { %v8307_v7 = vsub.f32 %v8272_v57, %v4269_v36 }
 0x770   :  { %v4647_v50 = vpop.eup %4646  ;;  %v4292_v8 = vmul.f32 1.442695, %v8307_v7 }
 0x771   :  { %v4306_v11 = vsel %vm4256_vm0, %v4647_v50, 0.0 }
 0x772   :  { %4648 = vpow2.f32 %v4292_v8  ;;  %4314 = vadd.xlane.f32.xlu2 %v4306_v11  ;;  %v4251_v56 = vpop.f32.mrf.mxu0  ;;  %v4354_v11 = vmin.f32 %v8267_v24, 0.0 }
 0x773   :  { %v8312_v16 = vadd.f32 %v4485_v28, %v4251_v56  ;;  %v4374_v56 = vsub.f32 0.0, %v4366_v39 }
 0x775   :  { %v4271_v5 = vpop.xlane.xlu1 %4270  ;;  %v4265_v27 = vsel %vm4256_vm0, %v8312_v16, -inf }
 0x776   :  { %v8318_v22 = vsub.f32 %v8277_v58, %v4271_v5  ;;  %4280 = vmax.xlane.f32.xlu1 %v4265_v27 }
 0x778   :  { %v4649_v42 = vpop.eup %4648  ;;  %v4294_v51 = vmul.f32 1.442695, %v8318_v22 }
 0x779   :  { %v4307_v23 = vsel %vm4256_vm0, %v4649_v42, 0.0 }
 0x77a   :  { %4650 = vpow2.f32 %v4294_v51  ;;  %4316 = vadd.xlane.f32.xlu0 %v4307_v23 }
 0x77d   :  { %v4273_v48 = vpop.xlane.xlu1 %4272 }
 0x77e   :  { %v8324_v60 = vsub.f32 %v8282_v55, %v4273_v48 }
 0x780   :  { %v4651_v6 = vpop.eup %4650  ;;  %v4296_v41 = vmul.f32 1.442695, %v8324_v60 }
 0x781   :  { %v4308_v17 = vsel %vm4256_vm0, %v4651_v6, 0.0 }
 0x782   :  { %4652 = vpow2.f32 %v4296_v41  ;;  %4318 = vadd.xlane.f32.xlu1 %v4308_v17  ;;  %v4386_v41 = vmul.f32 1.442695, %v4374_v56  ;;  %v4367_v17 = vand.u32 2147483647, %v8292_v40 }
 0x785   :  { %v4275_v26 = vpop.xlane.xlu2 %4274 }
 0x786   :  { %v8330_v32 = vsub.f32 %v8287_v63, %v4275_v26 }
 0x788   :  { %v4653_v49 = vpop.eup %4652  ;;  %v4298_v31 = vmul.f32 1.442695, %v8330_v32 }
 0x789   :  { %v4309_v35 = vsel %vm4256_vm0, %v4653_v49, 0.0 }
 0x78a   :  { %4654 = vpow2.f32 %v4298_v31  ;;  %4320 = vadd.xlane.f32.xlu2 %v4309_v35 }
 0x78d   :  { %v4277_v43 = vpop.xlane.xlu2 %4276 }
 0x78e   :  { %v8336_v2 = vsub.f32 %v8292_v40, %v4277_v43  ;;  %v4375_v43 = vsub.f32 0.0, %v4367_v17 }
 0x790   :  { %v4655_v38 = vpop.eup %4654  ;;  %v4300_v44 = vmul.f32 1.442695, %v8336_v2 }
 0x791   :  { %v4310_v33 = vsel %vm4256_vm0, %v4655_v38, 0.0 }
 0x792   :  { %4656 = vpow2.f32 %v4300_v44  ;;  %4322 = vadd.xlane.f32.xlu0 %v4310_v33  ;;  %v4355_v44 = vmin.f32 %v8272_v57, 0.0 }
 0x795   :  { %v4279_v30 = vpop.xlane.xlu0 %4278 }
 0x796   :  { %v8342_v59 = vsub.f32 %v8297_v15, %v4279_v30 }
 0x798   :  { %v4657_v45 = vpop.eup %4656  ;;  %v4302_v46 = vmul.f32 1.442695, %v8342_v59 }
 0x799   :  { %v4311_v52 = vsel %vm4256_vm0, %v4657_v45, 0.0 }
 0x79a   :  { %4658 = vpow2.f32 %v4302_v46  ;;  %4324 = vadd.xlane.f32.xlu1 %v4311_v52 }
 0x79b   :  { %4660 = vpow2.f32 %v4378_v9 }
 0x79c   :  { %4662 = vpow2.f32 %v4380_v29 }
 0x7a0   :  { %v4659_v12 = vpop.eup %4658 }
 0x7a1   :  { %v4312_v28 = vsel %vm4256_vm0, %v4659_v12, 0.0  ;;  %v4661_v13 = vpop.eup %4660  ;;  %v4388_v12 = vmul.f32 1.442695, %v4375_v43 }
 0x7a2   :  { %4326 = vadd.xlane.f32.xlu2 %v4312_v28  ;;  %v4394_v20 = vadd.f32 1.0, %v4661_v13  ;;  %v4663_v53 = vpop.eup %4662  ;;  %v4368_v28 = vand.u32 2147483647, %v8297_v15 }
 0x7a3   :  { %v4395_v19 = vadd.f32 1.0, %v4663_v53 }
 0x7a4   :  { %4664 = vlog2.f32 %v4394_v20  ;;  %v4376_v62 = vsub.f32 0.0, %v4368_v28 }
 0x7a5   :  { %4666 = vpow2.f32 %v4382_v4 }
 0x7a6   :  { %v4390_v47 = vmul.f32 1.442695, %v4376_v62 }
 0x7aa   :  { %v4665_v25 = vpop.eup %4664 }
 0x7ab   :  { %v4667_v61 = vpop.eup %4666  ;;  %v4403_v36 = vmul.f32 0.6931472, %v4665_v25 }
 0x7ac   :  { %v4396_v50 = vadd.f32 1.0, %v4667_v61  ;;  %v4357_v61 = vmin.f32 %v8282_v55, 0.0 }
 0x7ad   :  { %v4418_v42 = vsub.f32 %v4354_v11, %v4403_v36 }
 0x7af   :  { %v4426_v49 = vsel %vm4257_vm1, %v4418_v42, 0.0 }
 0x7e5   :  { %v4315_v3 = vpop.xlane.xlu2 %4314 }
 0x7e6   :  { %4668 = vlog2.f32 %v4315_v3 }
 0x7e7   :  { %4670 = vlog2.f32 %v4395_v19 }
 0x7e8   :  { %4672 = vpow2.f32 %v4384_v14 }
 0x7e9   :  { %v4281_v8 = vpop.xlane.xlu1 %4280  ;;  %4674 = vlog2.f32 %v4396_v50 }
 0x7ea   :  { %v8356_v5 = vsub.f32 %v8312_v16, %v4281_v8 }
 0x7ec   :  { %v4669_v27 = vpop.eup %4668  ;;  %v4304_v51 = vmul.f32 1.442695, %v8356_v5 }
 0x7ed   :  { %v4331_v23 = vmul.f32 0.6931472, %v4669_v27  ;;  %v4317_v48 = vpop.xlane.xlu0 %4316  ;;  %v4671_v6 = vpop.eup %4670 }
 0x7ee   :  { %4676 = vpow2.f32 %v4304_v51  ;;  %v4673_v26 = vpop.eup %4672  ;;  %v4405_v31 = vmul.f32 0.6931472, %v4671_v6  ;;  %v4358_v51 = vmin.f32 %v8287_v63, 0.0  ;;  %v4359_v63 = vmin.f32 %v8292_v40, 0.0 }
 0x7ef   :  { %v4346_v24 = vsub.f32 %v8303_v18, %v4331_v23  ;;  %4678 = vlog2.f32 %v4317_v48  ;;  %v4675_v38 = vpop.eup %4674  ;;  %v4397_v33 = vadd.f32 1.0, %v4673_v26 }
 0x7f0   :  { %4680 = vpow2.f32 %v4386_v41  ;;  %v4419_v46 = vsub.f32 %v4355_v44, %v4405_v31  ;;  %v4407_v9 = vmul.f32 0.6931472, %v4675_v38 }
 0x7f1   :  { %v4434_v35 = vsel %vm4256_vm0, %v4346_v24, %v4426_v49 }
 0x7f2   :  { %4442 = vst [vmem:[#allocation14] sm:$0xff] %v4434_v35  ;;  %v4427_v57 = vsel %vm4257_vm1, %v4419_v46, 0.0  ;;  %v4420_v20 = vsub.f32 %v4356_v0, %v4407_v9 }
 0x7f4   :  { %v4677_v30 = vpop.eup %4676  ;;  %v4428_v58 = vsel %vm4257_vm1, %v4420_v20, 0.0 }
 0x7f5   :  { %v4679_v45 = vpop.eup %4678  ;;  %v4319_v18 = vpop.xlane.xlu1 %4318  ;;  %v4313_v52 = vsel %vm4256_vm0, %v4677_v30, 0.0 }
 0x7f6   :  { %v4333_v21 = vmul.f32 0.6931472, %v4679_v45  ;;  %4682 = vlog2.f32 %v4319_v18  ;;  %4328 = vadd.xlane.f32.xlu0 %v4313_v52  ;;  %v4681_v10 = vpop.eup %4680  ;;  %v4360_v18 = vmin.f32 %v8297_v15, 0.0 }
 0x7f7   :  { %4684 = vlog2.f32 %v4397_v33  ;;  %v4398_v13 = vadd.f32 1.0, %v4681_v10  ;;  %v4369_v10 = vand.u32 2147483647, %v8312_v16 }
 0x7f8   :  { %v4347_v34 = vsub.f32 %v8307_v7, %v4333_v21  ;;  %4686 = vpow2.f32 %v4388_v12 }
 0x7f9   :  { %v4377_v9 = vsub.f32 0.0, %v4369_v10 }
 0x7fa   :  { %v4435_v29 = vsel %vm4256_vm0, %v4347_v34, %v4427_v57 }
 0x7fb   :  { %4443 = vst [vmem:[#allocation14 + $0x8] sm:$0xff] %v4435_v29  ;;  %v4392_v34 = vmul.f32 1.442695, %v4377_v9 }
 0x7fc   :  { %v4683_v1 = vpop.eup %4682 }
 0x7fd   :  { %v4685_v4 = vpop.eup %4684  ;;  %v4335_v37 = vmul.f32 0.6931472, %v4683_v1  ;;  %v4321_v53 = vpop.xlane.xlu2 %4320 }
 0x7fe   :  { %4688 = vlog2.f32 %v4321_v53  ;;  %v4687_v19 = vpop.eup %4686  ;;  %v4409_v25 = vmul.f32 0.6931472, %v4685_v4 }
 0x7ff   :  { %4690 = vlog2.f32 %v4398_v13  ;;  %v4348_v7 = vsub.f32 %v8318_v22, %v4335_v37  ;;  %v4399_v14 = vadd.f32 1.0, %v4687_v19 }
 0x800   :  { %4692 = vpow2.f32 %v4390_v47  ;;  %v4421_v36 = vsub.f32 %v4357_v61, %v4409_v25 }
 0x801   :  { %v4436_v3 = vsel %vm4256_vm0, %v4348_v7, %v4428_v58 }
 0x802   :  { %4444 = vst [vmem:[#allocation14 + $0x10] sm:$0xff] %v4436_v3  ;;  %v4429_v42 = vsel %vm4257_vm1, %v4421_v36, 0.0 }
 0x804   :  { %v4689_v39 = vpop.eup %4688 }
 0x805   :  { %v4691_v50 = vpop.eup %4690  ;;  %v4337_v8 = vmul.f32 0.6931472, %v4689_v39  ;;  %v4323_v11 = vpop.xlane.xlu0 %4322 }
 0x806   :  { %4694 = vlog2.f32 %v4323_v11  ;;  %v4693_v56 = vpop.eup %4692  ;;  %v4411_v27 = vmul.f32 0.6931472, %v4691_v50 }
 0x807   :  { %4696 = vlog2.f32 %v4399_v14  ;;  %v4349_v22 = vsub.f32 %v8324_v60, %v4337_v8  ;;  %v4400_v23 = vadd.f32 1.0, %v4693_v56 }
 0x808   :  { %v4422_v6 = vsub.f32 %v4358_v51, %v4411_v27 }
 0x809   :  { %v4437_v55 = vsel %vm4256_vm0, %v4349_v22, %v4429_v42 }
 0x80a   :  { %4445 = vst [vmem:[#allocation14 + $0x18] sm:$0xff] %v4437_v55  ;;  %v4430_v49 = vsel %vm4257_vm1, %v4422_v6, 0.0 }
 0x80c   :  { %v4695_v48 = vpop.eup %4694 }
 0x80d   :  { %v4697_v41 = vpop.eup %4696  ;;  %v4339_v17 = vmul.f32 0.6931472, %v4695_v48  ;;  %v4325_v24 = vpop.xlane.xlu1 %4324 }
 0x80e   :  { %4698 = vlog2.f32 %v4325_v24  ;;  %v4413_v26 = vmul.f32 0.6931472, %v4697_v41 }
 0x80f   :  { %4700 = vlog2.f32 %v4400_v23  ;;  %v4350_v60 = vsub.f32 %v8330_v32, %v4339_v17 }
 0x810   :  { %v4423_v43 = vsub.f32 %v4359_v63, %v4413_v26 }
 0x811   :  { %v4438_v31 = vsel %vm4256_vm0, %v4350_v60, %v4430_v49 }
 0x812   :  { %4446 = vst [vmem:[#allocation14 + $0x20] sm:$0xff] %v4438_v31  ;;  %v4431_v32 = vsel %vm4257_vm1, %v4423_v43, 0.0 }
 0x814   :  { %v4699_v35 = vpop.eup %4698 }
 0x815   :  { %v4701_v38 = vpop.eup %4700  ;;  %v4341_v44 = vmul.f32 0.6931472, %v4699_v35  ;;  %v4327_v33 = vpop.xlane.xlu2 %4326 }
 0x816   :  { %4702 = vlog2.f32 %v4327_v33  ;;  %v4415_v45 = vmul.f32 0.6931472, %v4701_v38 }
 0x817   :  { %v4351_v30 = vsub.f32 %v8336_v2, %v4341_v44  ;;  %4704 = vpow2.f32 %v4392_v34 }
 0x818   :  { %v4424_v52 = vsub.f32 %v4360_v18, %v4415_v45 }
 0x819   :  { %v4439_v46 = vsel %vm4256_vm0, %v4351_v30, %v4431_v32 }
 0x81a   :  { %4447 = vst [vmem:[#allocation14 + $0x28] sm:$0xff] %v4439_v46  ;;  %v4432_v21 = vsel %vm4257_vm1, %v4424_v52, 0.0 }
 0x81c   :  { %v4703_v40 = vpop.eup %4702 }
 0x81d   :  { %v4343_v12 = vmul.f32 0.6931472, %v4703_v40  ;;  %v4705_v57 = vpop.eup %4704 }
 0x81e   :  { %v4401_v15 = vadd.f32 1.0, %v4705_v57 }
 0x81f   :  { %v4352_v28 = vsub.f32 %v8342_v59, %v4343_v12  ;;  %v4361_v59 = vmin.f32 %v8312_v16, 0.0 }
 0x820   :  { %4706 = vlog2.f32 %v4401_v15 }
 0x821   :  { %v4440_v2 = vsel %vm4256_vm0, %v4352_v28, %v4432_v21 }
 0x822   :  { %4448 = vst [vmem:[#allocation14 + $0x30] sm:$0xff] %v4440_v2 }
 0x826   :  { %v4707_v0 = vpop.eup %4706 }
 0x827   :  { %v4417_v29 = vmul.f32 0.6931472, %v4707_v0 }
 0x829   :  { %v4425_v1 = vsub.f32 %v4361_v59, %v4417_v29 }
 0x82b   :  { %v4433_v37 = vsel %vm4257_vm1, %v4425_v1, 0.0 }
 0x869   :  { %v4329_v62 = vpop.xlane.xlu0 %4328 }
 0x86a   :  { %4708 = vlog2.f32 %v4329_v62 }
 0x870   :  { %v4709_v13 = vpop.eup %4708 }
 0x871   :  { %v4345_v20 = vmul.f32 0.6931472, %v4709_v13 }
 0x873   :  { %v4353_v4 = vsub.f32 %v8356_v5, %v4345_v20 }
 0x875   :  { %v4441_v53 = vsel %vm4256_vm0, %v4353_v4, %v4433_v37 }
 0x876   :  { %4449 = vst [vmem:[#allocation14 + $0x38] sm:$0xff] %v4441_v53 }
 0x877   :  { %4462 = dma.vmem_to_hbm [thread:$0]  %s4455_s12, 1024, %s4457_s14, [#allocation5], %s4889_s9, %s4889_s9, %s4890_s10  }
 0x878   :  { %4886 = dma.done.wait [#allocation5], 1024  }
 0x879   :  { %4887 = vsyncadd [#allocation5], 4294966272 }
 0x87a   :  { %4467 = vsyncpa [#allocation4], 1 }
 0x87b   :  { %4468 = vsyncpa [#allocation7], 1 }
 0x87c   :  { %4469 = vsyncpa [#allocation10], 1 }
 0x87d   :  { %4470 = vsyncpa [#allocation13], 1 }
 0x87e   :  { %4471 = vsyncpa [#allocation5], 1 }

</bundles_post_ra>
